<compile_context>
chip_gen: v6e
topology: v6e:2x2x1
jax: 0.10.0
libtpu: 0.0.40
codegen_flags: <defaults>
</compile_context>

<pallas_src>
import functools
import math

import jax
import jax.numpy as jnp
from jax.experimental import pallas as pl
from jax.experimental.pallas import tpu as pltpu


def _round_up(v, m):
    return (v + m - 1) // m * m


# ----------------------------- fused kernel ---------------------------------

def _fused_sparse_mha_kernel(
    x_ref,        # (1, S, D) f32 : same block for every q-tile of a batch
    wqkv_ref,     # (D, 3D) f32   : concatenated Q/K/V projection weights
    bqkv_ref,     # (1, 3D) f32
    wo_ref,       # (D, D) f32
    bo_ref,       # (1, D) f32
    *refs,        # outputs (out [, attn]) then scratches (q_heads,k_heads,v_heads)
    num_heads, k, q_tile, compute_dtype, return_attention):
    if return_attention:
        out_ref, attn_ref, qh_sc, kh_sc, vh_sc = refs
    else:
        out_ref, qh_sc, kh_sc, vh_sc = refs
        attn_ref = None

    S, D = x_ref.shape[1], x_ref.shape[2]
    H = num_heads
    hd = D // H
    score_scale = 1.0 / math.sqrt(D)   # module: scores / sqrt(embed_dim)
    head_scale = 1.0 / math.sqrt(hd)   # MHA:     qk     / sqrt(head_dim)

    qi = pl.program_id(1)
    row0 = pl.multiple_of(qi * q_tile, q_tile)

    x_full = x_ref[0]                                    # (S, D) f32

    # --- once per batch: Q/K/V projection (one MXU matmul), split into
    #     head-major scratches so per-tile access is leading-axis (free) ------
    @pl.when(qi == 0)
    def _():
        qkv = jnp.dot(x_full.astype(compute_dtype),
                      wqkv_ref[...].astype(compute_dtype),
                      preferred_element_type=jnp.float32) + bqkv_ref[...]  # (S,3D)
        for h in range(H):                               # lane slices only here
            sl_q = slice(h * hd, (h + 1) * hd)
            sl_k = slice(D + h * hd, D + (h + 1) * hd)
            sl_v = slice(2 * D + h * hd, 2 * D + (h + 1) * hd)
            # head_scale folded into Q once per batch (not per tile per head)
            qh_sc[h] = (qkv[:, sl_q] * head_scale).astype(compute_dtype)
            kh_sc[h] = qkv[:, sl_k].astype(compute_dtype)
            vh_sc[h] = qkv[:, sl_v].astype(compute_dtype)

    # --- raw similarity scores for this q-tile (strictly f32: feeds top-k) ---
    # score_scale folded into the small (Tq,D) operand; NT dot_general avoids
    # materializing x_full^T.
    x_q = x_ref[0, pl.ds(row0, q_tile), :] * score_scale          # (Tq, D)
    scores = jax.lax.dot_general(
        x_q, x_full, dimension_numbers=(((1,), (1,)), ((), ())),
        preferred_element_type=jnp.float32)                        # (Tq, S)

    # --- iterative top-k (k static & small), lowest-index tie-break like
    #     torch.topk / lax.top_k; mask derived once at the end -----------------
    col_ids = jax.lax.broadcasted_iota(jnp.int32, (q_tile, S), 1)
    neg_inf = jnp.float32(-jnp.inf)
    work = scores
    for _ in range(k):
        row_max = jnp.max(work, axis=-1, keepdims=True)
        first = jnp.min(jnp.where(work == row_max, col_ids, S),
                        axis=-1, keepdims=True)
        work = jnp.where(col_ids == first, neg_inf, work)
    # selected positions were overwritten with -inf -> they differ from scores
    add_mask = jnp.where(work == scores, neg_inf, jnp.float32(0.0))  # (Tq, S)

    # --- per-head masked softmax attention + per-head Wo accumulation --------
    wo_c = wo_ref[...].astype(compute_dtype)                        # (D, D)
    acc = jnp.zeros((q_tile, D), jnp.float32)                       # lane-dense
    for h in range(H):                                              # static unroll
        qh = qh_sc[h, pl.ds(row0, q_tile), :]                       # (Tq, hd)
        s = jax.lax.dot_general(
            qh, kh_sc[h], dimension_numbers=(((1,), (1,)), ((), ())),
            preferred_element_type=jnp.float32)                     # (Tq, S)
        s = s + add_mask
        smax = jnp.max(s, axis=-1, keepdims=True)
        e = jnp.exp(s - smax)
        denom = jnp.sum(e, axis=-1, keepdims=True)
        p = e * pl.reciprocal(denom)     # exact reciprocal; p stays f32
        if attn_ref is not None:
            attn_ref[0, h] = p
        oh = jnp.dot(p.astype(compute_dtype), vh_sc[h],
                     preferred_element_type=jnp.float32)            # (Tq, hd)
        # (Tq,hd) @ (hd,D): rows of Wo are a cheap sublane slice; result is a
        # lane-dense (Tq, D) accumulation -> no masked partial stores.
        acc = acc + jnp.dot(oh.astype(compute_dtype),
                            wo_c[h * hd:(h + 1) * hd, :],
                            preferred_element_type=jnp.float32)

    out_ref[0] = (acc + bo_ref[...]).astype(out_ref.dtype)


# ----------------------------- wrapper ---------------------------------------

def sparse_attention_forward(x, params, *, num_heads, sparsity_ratio,
                             q_tile=None, use_bf16_matmuls=False,
                             return_attention=True):
    """Returns (output (B,S,D), attention_weights (B,H,S,S)) or just output."""
    B, S, D = x.shape
    wq, wk, wv, wo, bq, bk, bv, bo = params
    H = num_heads
    assert D % H == 0
    hd = D // H
    k = max(1, int(S * sparsity_ratio))

    # q_tile heuristic: keep the ~4 live (Tq,S) f32 arrays of the top-k loop
    # comfortably inside the vreg file (spills defeat the fusion).
    if q_tile is None:
        row_budget = max(8, 24576 // max(S, 1))
        q_tile = S
        for cand in (256, 128, 64, 32, 16, 8):
            if cand <= min(S, row_budget) and S % cand == 0:
                q_tile = cand
                break
    q_tile = min(q_tile, S)
    assert S % q_tile == 0, "S must be divisible by q_tile"
    assert q_tile % 8 == 0, "q_tile must be a multiple of 8 (sublane alignment)"

    cdt = jnp.bfloat16 if use_bf16_matmuls else jnp.float32
    itemsize = 2 if use_bf16_matmuls else 4

    # Host-side fusion of the Q/K/V projections into one matmul operand.
    wqkv = jnp.concatenate([wq, wk, wv], axis=1)     # (D, 3D)
    bqkv = jnp.concatenate([bq, bk, bv], axis=1)     # (1, 3D)

    nq = S // q_tile

    # ---- VMEM budget derived from shapes (with (8,128) padding), not hardcoded
    lane_hd, lane_D, lane_3D, lane_S = (_round_up(hd, 128), _round_up(D, 128),
                                        _round_up(3 * D, 128), _round_up(S, 128))
    sub_S, sub_Tq, sub_D = _round_up(S, 8), _round_up(q_tile, 8), _round_up(D, 8)
    scratch_bytes = 3 * H * sub_S * lane_hd * itemsize
    io_bytes = 2 * (sub_S * lane_D * 4          # x block
                    + sub_D * lane_3D * 4       # wqkv
                    + sub_D * lane_D * 4        # wo
                    + 8 * lane_3D * 4 + 8 * lane_D * 4   # biases
                    + sub_Tq * lane_D * 4)      # out block
    if return_attention:
        io_bytes += 2 * H * sub_Tq * lane_S * 4
    vmem_limit = int(min(max(2 * (scratch_bytes + io_bytes), 32 * 1024 * 1024),
                         110 * 1024 * 1024))

    # ---- advisory cost estimate so XLA schedules around the custom call ------
    flops = B * (2 * S * D * 3 * D      # QKV projection
                 + 2 * S * S * D        # raw score matmul
                 + 2 * S * S * D        # per-head QK^T
                 + 2 * S * S * D        # per-head PV
                 + 2 * S * D * D)       # per-head Wo accumulation
    transcendentals = B * H * S * S
    bytes_accessed = (B * S * D * 4 + (3 * D * D + D * D + 4 * D) * 4
                      + B * S * D * 4
                      + (B * H * S * S * 4 if return_attention else 0))
    cost = pl.CostEstimate(flops=flops, transcendentals=transcendentals,
                           bytes_accessed=bytes_accessed)

    kernel = functools.partial(
        _fused_sparse_mha_kernel, num_heads=H, k=k, q_tile=q_tile,
        compute_dtype=cdt, return_attention=return_attention)

    if return_attention:
        out_shape = (jax.ShapeDtypeStruct((B, S, D), jnp.float32),
                     jax.ShapeDtypeStruct((B, H, S, S), jnp.float32))
        out_specs = (pl.BlockSpec((1, q_tile, D), lambda b, q: (b, q, 0)),
                     pl.BlockSpec((1, H, q_tile, S), lambda b, q: (b, 0, q, 0)))
    else:
        out_shape = jax.ShapeDtypeStruct((B, S, D), jnp.float32)
        out_specs = pl.BlockSpec((1, q_tile, D), lambda b, q: (b, q, 0))

    result = pl.pallas_call(
        kernel,
        out_shape=out_shape,
        grid=(B, nq),
        in_specs=[
            pl.BlockSpec((1, S, D), lambda b, q: (b, 0, 0)),   # x (reused across q)
            pl.BlockSpec((D, 3 * D), lambda b, q: (0, 0)),     # wqkv (grid-invariant)
            pl.BlockSpec((1, 3 * D), lambda b, q: (0, 0)),     # bqkv
            pl.BlockSpec((D, D), lambda b, q: (0, 0)),         # wo
            pl.BlockSpec((1, D), lambda b, q: (0, 0)),         # bo
        ],
        out_specs=out_specs,
        scratch_shapes=[
            pltpu.VMEM((H, S, hd), cdt),     # Q heads (head_scale pre-folded)
            pltpu.VMEM((H, S, hd), cdt),     # K heads
            pltpu.VMEM((H, S, hd), cdt),     # V heads
        ],
        compiler_params=pltpu.CompilerParams(
            # Batch is independent (megacore); the q-tile axis carries the
            # head scratches across iterations -> "arbitrary".
            # NOTE(v7x): with B==1 only one TensorCore is used; restructure
            # (precompute K/V separately) if that case matters.
            dimension_semantics=("parallel", "arbitrary"),
            vmem_limit_bytes=vmem_limit,
        ),
        cost_estimate=cost,
    )(x, wqkv, bqkv, wo, bo)
    return result


# ----------------------------- pure-JAX reference (for validation) ----------

def _reference(x, params, *, num_heads, sparsity_ratio):
    B, S, D = x.shape
    wq, wk, wv, wo, bq, bk, bv, bo = params
    k = max(1, int(S * sparsity_ratio))
    prec = jax.lax.Precision.HIGHEST

    scores = jnp.einsum('bsd,btd->bst', x, x, precision=prec) / math.sqrt(D)
    _, idx = jax.lax.top_k(scores, k)                       # (B, S, k)
    keep = jax.nn.one_hot(idx, S, dtype=jnp.float32).sum(-2) > 0
    add_mask = jnp.where(keep, 0.0, -jnp.inf)

    q = jnp.einsum('bsd,de->bse', x, wq, precision=prec) + bq
    kk = jnp.einsum('bsd,de->bse', x, wk, precision=prec) + bk
    v = jnp.einsum('bsd,de->bse', x, wv, precision=prec) + bv
    hd = D // num_heads
    q = q.reshape(B, S, num_heads, hd).transpose(0, 2, 1, 3)
    kk = kk.reshape(B, S, num_heads, hd).transpose(0, 2, 1, 3)
    v = v.reshape(B, S, num_heads, hd).transpose(0, 2, 1, 3)
    s = jnp.einsum('bhqd,bhkd->bhqk', q, kk, precision=prec) / math.sqrt(hd)
    s = s + add_mask[:, None]
    p = jax.nn.softmax(s, axis=-1)
    o = jnp.einsum('bhqk,bhkd->bhqd', p, v, precision=prec)
    o = o.transpose(0, 2, 1, 3).reshape(B, S, D)
    out = jnp.einsum('bsd,de->bse', o, wo, precision=prec) + bo
    return out, p


# ----------------------------- main ------------------------------------------

if __name__ == "__main__":
    B, S, D, H = 2, 128, 64, 4
    sparsity_ratio = 0.125    # k = 16
    q_tile = 64               # 2 q-tiles per batch -> exercises the scratch carry

    key = jax.random.PRNGKey(0)
    kx, kq, kk_, kv, ko, kbq, kbk, kbv, kbo = jax.random.split(key, 9)
    x = jax.random.normal(kx, (B, S, D), dtype=jnp.float32)

    s0 = 1.0 / math.sqrt(D)
    params = (
        jax.random.normal(kq, (D, D), jnp.float32) * s0,
        jax.random.normal(kk_, (D, D), jnp.float32) * s0,
        jax.random.normal(kv, (D, D), jnp.float32) * s0,
        jax.random.normal(ko, (D, D), jnp.float32) * s0,
        jax.random.normal(kbq, (1, D), jnp.float32) * 0.01,
        jax.random.normal(kbk, (1, D), jnp.float32) * 0.01,
        jax.random.normal(kbv, (1, D), jnp.float32) * 0.01,
        jax.random.normal(kbo, (1, D), jnp.float32) * 0.01,
    )

    ref_out, ref_attn = _reference(
        x, params, num_heads=H, sparsity_ratio=sparsity_ratio)

    # 1) exact f32 path — matches the PyTorch module numerics tightly.
    out, attn = sparse_attention_forward(
        x, params, num_heads=H, sparsity_ratio=sparsity_ratio, q_tile=q_tile)
    out, attn = jax.block_until_ready((out, attn))
    assert out.shape == (B, S, D) and attn.shape == (B, H, S, S)
    assert jnp.allclose(out, ref_out, rtol=2e-4, atol=2e-4)
    assert jnp.allclose(attn, ref_attn, rtol=2e-4, atol=2e-4)

    # 2) bf16 MXU operands (top-k / score path stays f32) — looser tolerance
    #    sized to bf16 operand-rounding error, identical sparse mask.
    out_bf, attn_bf = sparse_attention_forward(
        x, params, num_heads=H, sparsity_ratio=sparsity_ratio, q_tile=q_tile,
        use_bf16_matmuls=True)
    out_bf, attn_bf = jax.block_until_ready((out_bf, attn_bf))
    assert jnp.allclose(out_bf, ref_out, rtol=5e-2, atol=5e-2)
    assert jnp.allclose(attn_bf, ref_attn, rtol=5e-2, atol=5e-2)

    # 3) output-only variant: skips the (B,H,S,S) f32 attention writeback.
    out_only = sparse_attention_forward(
        x, params, num_heads=H, sparsity_ratio=sparsity_ratio, q_tile=q_tile,
        return_attention=False)
    out_only = jax.block_until_ready(out_only)
    assert jnp.allclose(out_only, ref_out, rtol=2e-4, atol=2e-4)

    print("KERNEL_OK")
</pallas_src>

<mosaic_0001>
module attributes {stable_mosaic.version = 11 : i64} {
  func.func @_fused_sparse_mha_kernel(%arg0: i32, %arg1: i32, %arg2: memref<1x128x64xf32, #tpu.memory_space<vmem>>, %arg3: memref<64x192xf32, #tpu.memory_space<vmem>>, %arg4: memref<1x192xf32, #tpu.memory_space<vmem>>, %arg5: memref<64x64xf32, #tpu.memory_space<vmem>>, %arg6: memref<1x64xf32, #tpu.memory_space<vmem>>, %arg7: memref<1x64x64xf32, #tpu.memory_space<vmem>>, %arg8: memref<1x4x64x128xf32, #tpu.memory_space<vmem>>, %arg9: memref<4x128x16xf32, #tpu.memory_space<vmem>>, %arg10: memref<4x128x16xf32, #tpu.memory_space<vmem>>, %arg11: memref<4x128x16xf32, #tpu.memory_space<vmem>>) attributes {dimension_semantics = [#tpu.dimension_semantics<parallel>, #tpu.dimension_semantics<arbitrary>], iteration_bounds = array<i64: 2, 2>, scalar_prefetch = 0 : i64, scratch_operands = 3 : i64, tpu.core_type = #tpu.core_type<tc>, window_params = [{transform_indices = @transform_0, window_bounds = array<i64: 1, 128, 64>}, {pipeline_mode = #tpu.pipeline_mode<synchronous>, transform_indices = @transform_1, window_bounds = array<i64: 64, 192>}, {pipeline_mode = #tpu.pipeline_mode<synchronous>, transform_indices = @transform_2, window_bounds = array<i64: 1, 192>}, {pipeline_mode = #tpu.pipeline_mode<synchronous>, transform_indices = @transform_3, window_bounds = array<i64: 64, 64>}, {pipeline_mode = #tpu.pipeline_mode<synchronous>, transform_indices = @transform_4, window_bounds = array<i64: 1, 64>}, {transform_indices = @transform_5, window_bounds = array<i64: 1, 64, 64>}, {transform_indices = @transform_6, window_bounds = array<i64: 1, 4, 64, 128>}]} {
    %c64_i32 = arith.constant 64 : i32
    %0 = arith.muli %arg1, %c64_i32 : i32
    %1 = tpu.assume_multiple %0, 64 : i32
    %c0 = arith.constant 0 : index
    %c0_0 = arith.constant 0 : index
    %c0_1 = arith.constant 0 : index
    %2 = vector.load %arg2[%c0, %c0_0, %c0_1] : memref<1x128x64xf32, #tpu.memory_space<vmem>>, vector<1x128x64xf32>
    %3 = vector.shape_cast %2 : vector<1x128x64xf32> to vector<128x64xf32>
    %c0_i32 = arith.constant 0 : i32
    %4 = arith.cmpi eq, %arg1, %c0_i32 : i32
    %5 = arith.extui %4 : i1 to i32
    %c0_i32_2 = arith.constant 0 : i32
    %6 = arith.cmpi ne, %5, %c0_i32_2 : i32
    scf.if %6 {
      %c0_144 = arith.constant 0 : index
      %c0_145 = arith.constant 0 : index
      %322 = vector.load %arg3[%c0_144, %c0_145] : memref<64x192xf32, #tpu.memory_space<vmem>>, vector<64x192xf32>
      %cst_146 = arith.constant dense<0.000000e+00> : vector<128x192xf32>
      %323 = tpu.matmul %3, %322, %cst_146 {dimension_numbers = #tpu.dot_dimension_numbers<[1], [0], [0], [1], [0, 0, 1, 1], [], []>} : vector<128x64xf32>, vector<64x192xf32>, vector<128x192xf32> -> vector<128x192xf32>
      %c0_147 = arith.constant 0 : index
      %c0_148 = arith.constant 0 : index
      %324 = vector.load %arg4[%c0_147, %c0_148] : memref<1x192xf32, #tpu.memory_space<vmem>>, vector<1x192xf32>
      %325 = vector.broadcast %324 : vector<1x192xf32> to vector<128x192xf32>
      %326 = arith.addf %323, %325 : vector<128x192xf32>
      %327 = vector.extract_strided_slice %326 {offsets = [0, 0], sizes = [128, 16], strides = [1, 1]} : vector<128x192xf32> to vector<128x16xf32>
      %cst_149 = arith.constant 2.500000e-01 : f32
      %328 = vector.broadcast %cst_149 : f32 to vector<128x16xf32>
      %329 = arith.mulf %327, %328 : vector<128x16xf32>
      %c0_150 = arith.constant 0 : index
      %c0_151 = arith.constant 0 : index
      %c0_152 = arith.constant 0 : index
      %330 = vector.load %arg9[%c0_150, %c0_151, %c0_152] : memref<4x128x16xf32, #tpu.memory_space<vmem>>, vector<1x128x16xf32>
      %331 = vector.shape_cast %330 : vector<1x128x16xf32> to vector<128x16xf32>
      %332 = vector.shape_cast %329 : vector<128x16xf32> to vector<1x128x16xf32>
      tpu.vector_store %arg9[%c0_150, %c0_151, %c0_152], %332 {strides = array<i32>} : memref<4x128x16xf32, #tpu.memory_space<vmem>>, vector<1x128x16xf32>,
      %333 = vector.extract_strided_slice %326 {offsets = [0, 64], sizes = [128, 16], strides = [1, 1]} : vector<128x192xf32> to vector<128x16xf32>
      %c0_153 = arith.constant 0 : index
      %c0_154 = arith.constant 0 : index
      %c0_155 = arith.constant 0 : index
      %334 = vector.load %arg10[%c0_153, %c0_154, %c0_155] : memref<4x128x16xf32, #tpu.memory_space<vmem>>, vector<1x128x16xf32>
      %335 = vector.shape_cast %334 : vector<1x128x16xf32> to vector<128x16xf32>
      %336 = vector.shape_cast %333 : vector<128x16xf32> to vector<1x128x16xf32>
      tpu.vector_store %arg10[%c0_153, %c0_154, %c0_155], %336 {strides = array<i32>} : memref<4x128x16xf32, #tpu.memory_space<vmem>>, vector<1x128x16xf32>,
      %337 = vector.extract_strided_slice %326 {offsets = [0, 128], sizes = [128, 16], strides = [1, 1]} : vector<128x192xf32> to vector<128x16xf32>
      %c0_156 = arith.constant 0 : index
      %c0_157 = arith.constant 0 : index
      %c0_158 = arith.constant 0 : index
      %338 = vector.load %arg11[%c0_156, %c0_157, %c0_158] : memref<4x128x16xf32, #tpu.memory_space<vmem>>, vector<1x128x16xf32>
      %339 = vector.shape_cast %338 : vector<1x128x16xf32> to vector<128x16xf32>
      %340 = vector.shape_cast %337 : vector<128x16xf32> to vector<1x128x16xf32>
      tpu.vector_store %arg11[%c0_156, %c0_157, %c0_158], %340 {strides = array<i32>} : memref<4x128x16xf32, #tpu.memory_space<vmem>>, vector<1x128x16xf32>,
      %341 = vector.extract_strided_slice %326 {offsets = [0, 16], sizes = [128, 16], strides = [1, 1]} : vector<128x192xf32> to vector<128x16xf32>
      %cst_159 = arith.constant 2.500000e-01 : f32
      %342 = vector.broadcast %cst_159 : f32 to vector<128x16xf32>
      %343 = arith.mulf %341, %342 : vector<128x16xf32>
      %c1_160 = arith.constant 1 : index
      %c0_161 = arith.constant 0 : index
      %c0_162 = arith.constant 0 : index
      %344 = vector.load %arg9[%c1_160, %c0_161, %c0_162] : memref<4x128x16xf32, #tpu.memory_space<vmem>>, vector<1x128x16xf32>
      %345 = vector.shape_cast %344 : vector<1x128x16xf32> to vector<128x16xf32>
      %346 = vector.shape_cast %343 : vector<128x16xf32> to vector<1x128x16xf32>
      tpu.vector_store %arg9[%c1_160, %c0_161, %c0_162], %346 {strides = array<i32>} : memref<4x128x16xf32, #tpu.memory_space<vmem>>, vector<1x128x16xf32>,
      %347 = vector.extract_strided_slice %326 {offsets = [0, 80], sizes = [128, 16], strides = [1, 1]} : vector<128x192xf32> to vector<128x16xf32>
      %c1_163 = arith.constant 1 : index
      %c0_164 = arith.constant 0 : index
      %c0_165 = arith.constant 0 : index
      %348 = vector.load %arg10[%c1_163, %c0_164, %c0_165] : memref<4x128x16xf32, #tpu.memory_space<vmem>>, vector<1x128x16xf32>
      %349 = vector.shape_cast %348 : vector<1x128x16xf32> to vector<128x16xf32>
      %350 = vector.shape_cast %347 : vector<128x16xf32> to vector<1x128x16xf32>
      tpu.vector_store %arg10[%c1_163, %c0_164, %c0_165], %350 {strides = array<i32>} : memref<4x128x16xf32, #tpu.memory_space<vmem>>, vector<1x128x16xf32>,
      %351 = vector.extract_strided_slice %326 {offsets = [0, 144], sizes = [128, 16], strides = [1, 1]} : vector<128x192xf32> to vector<128x16xf32>
      %c1_166 = arith.constant 1 : index
      %c0_167 = arith.constant 0 : index
      %c0_168 = arith.constant 0 : index
      %352 = vector.load %arg11[%c1_166, %c0_167, %c0_168] : memref<4x128x16xf32, #tpu.memory_space<vmem>>, vector<1x128x16xf32>
      %353 = vector.shape_cast %352 : vector<1x128x16xf32> to vector<128x16xf32>
      %354 = vector.shape_cast %351 : vector<128x16xf32> to vector<1x128x16xf32>
      tpu.vector_store %arg11[%c1_166, %c0_167, %c0_168], %354 {strides = array<i32>} : memref<4x128x16xf32, #tpu.memory_space<vmem>>, vector<1x128x16xf32>,
      %355 = vector.extract_strided_slice %326 {offsets = [0, 32], sizes = [128, 16], strides = [1, 1]} : vector<128x192xf32> to vector<128x16xf32>
      %cst_169 = arith.constant 2.500000e-01 : f32
      %356 = vector.broadcast %cst_169 : f32 to vector<128x16xf32>
      %357 = arith.mulf %355, %356 : vector<128x16xf32>
      %c2_170 = arith.constant 2 : index
      %c0_171 = arith.constant 0 : index
      %c0_172 = arith.constant 0 : index
      %358 = vector.load %arg9[%c2_170, %c0_171, %c0_172] : memref<4x128x16xf32, #tpu.memory_space<vmem>>, vector<1x128x16xf32>
      %359 = vector.shape_cast %358 : vector<1x128x16xf32> to vector<128x16xf32>
      %360 = vector.shape_cast %357 : vector<128x16xf32> to vector<1x128x16xf32>
      tpu.vector_store %arg9[%c2_170, %c0_171, %c0_172], %360 {strides = array<i32>} : memref<4x128x16xf32, #tpu.memory_space<vmem>>, vector<1x128x16xf32>,
      %361 = vector.extract_strided_slice %326 {offsets = [0, 96], sizes = [128, 16], strides = [1, 1]} : vector<128x192xf32> to vector<128x16xf32>
      %c2_173 = arith.constant 2 : index
      %c0_174 = arith.constant 0 : index
      %c0_175 = arith.constant 0 : index
      %362 = vector.load %arg10[%c2_173, %c0_174, %c0_175] : memref<4x128x16xf32, #tpu.memory_space<vmem>>, vector<1x128x16xf32>
      %363 = vector.shape_cast %362 : vector<1x128x16xf32> to vector<128x16xf32>
      %364 = vector.shape_cast %361 : vector<128x16xf32> to vector<1x128x16xf32>
      tpu.vector_store %arg10[%c2_173, %c0_174, %c0_175], %364 {strides = array<i32>} : memref<4x128x16xf32, #tpu.memory_space<vmem>>, vector<1x128x16xf32>,
      %365 = vector.extract_strided_slice %326 {offsets = [0, 160], sizes = [128, 16], strides = [1, 1]} : vector<128x192xf32> to vector<128x16xf32>
      %c2_176 = arith.constant 2 : index
      %c0_177 = arith.constant 0 : index
      %c0_178 = arith.constant 0 : index
      %366 = vector.load %arg11[%c2_176, %c0_177, %c0_178] : memref<4x128x16xf32, #tpu.memory_space<vmem>>, vector<1x128x16xf32>
      %367 = vector.shape_cast %366 : vector<1x128x16xf32> to vector<128x16xf32>
      %368 = vector.shape_cast %365 : vector<128x16xf32> to vector<1x128x16xf32>
      tpu.vector_store %arg11[%c2_176, %c0_177, %c0_178], %368 {strides = array<i32>} : memref<4x128x16xf32, #tpu.memory_space<vmem>>, vector<1x128x16xf32>,
      %369 = vector.extract_strided_slice %326 {offsets = [0, 48], sizes = [128, 16], strides = [1, 1]} : vector<128x192xf32> to vector<128x16xf32>
      %cst_179 = arith.constant 2.500000e-01 : f32
      %370 = vector.broadcast %cst_179 : f32 to vector<128x16xf32>
      %371 = arith.mulf %369, %370 : vector<128x16xf32>
      %c3_180 = arith.constant 3 : index
      %c0_181 = arith.constant 0 : index
      %c0_182 = arith.constant 0 : index
      %372 = vector.load %arg9[%c3_180, %c0_181, %c0_182] : memref<4x128x16xf32, #tpu.memory_space<vmem>>, vector<1x128x16xf32>
      %373 = vector.shape_cast %372 : vector<1x128x16xf32> to vector<128x16xf32>
      %374 = vector.shape_cast %371 : vector<128x16xf32> to vector<1x128x16xf32>
      tpu.vector_store %arg9[%c3_180, %c0_181, %c0_182], %374 {strides = array<i32>} : memref<4x128x16xf32, #tpu.memory_space<vmem>>, vector<1x128x16xf32>,
      %375 = vector.extract_strided_slice %326 {offsets = [0, 112], sizes = [128, 16], strides = [1, 1]} : vector<128x192xf32> to vector<128x16xf32>
      %c3_183 = arith.constant 3 : index
      %c0_184 = arith.constant 0 : index
      %c0_185 = arith.constant 0 : index
      %376 = vector.load %arg10[%c3_183, %c0_184, %c0_185] : memref<4x128x16xf32, #tpu.memory_space<vmem>>, vector<1x128x16xf32>
      %377 = vector.shape_cast %376 : vector<1x128x16xf32> to vector<128x16xf32>
      %378 = vector.shape_cast %375 : vector<128x16xf32> to vector<1x128x16xf32>
      tpu.vector_store %arg10[%c3_183, %c0_184, %c0_185], %378 {strides = array<i32>} : memref<4x128x16xf32, #tpu.memory_space<vmem>>, vector<1x128x16xf32>,
      %379 = vector.extract_strided_slice %326 {offsets = [0, 176], sizes = [128, 16], strides = [1, 1]} : vector<128x192xf32> to vector<128x16xf32>
      %c3_186 = arith.constant 3 : index
      %c0_187 = arith.constant 0 : index
      %c0_188 = arith.constant 0 : index
      %380 = vector.load %arg11[%c3_186, %c0_187, %c0_188] : memref<4x128x16xf32, #tpu.memory_space<vmem>>, vector<1x128x16xf32>
      %381 = vector.shape_cast %380 : vector<1x128x16xf32> to vector<128x16xf32>
      %382 = vector.shape_cast %379 : vector<128x16xf32> to vector<1x128x16xf32>
      tpu.vector_store %arg11[%c3_186, %c0_187, %c0_188], %382 {strides = array<i32>} : memref<4x128x16xf32, #tpu.memory_space<vmem>>, vector<1x128x16xf32>,
    } else {
    }
    %c0_3 = arith.constant 0 : index
    %7 = arith.index_cast %1 : i32 to index
    %c0_4 = arith.constant 0 : index
    %8 = vector.load %arg2[%c0_3, %7, %c0_4] : memref<1x128x64xf32, #tpu.memory_space<vmem>>, vector<1x64x64xf32>
    %9 = vector.shape_cast %8 : vector<1x64x64xf32> to vector<64x64xf32>
    %cst = arith.constant 1.250000e-01 : f32
    %10 = vector.broadcast %cst : f32 to vector<64x64xf32>
    %11 = arith.mulf %9, %10 : vector<64x64xf32>
    %cst_5 = arith.constant dense<0.000000e+00> : vector<64x128xf32>
    %12 = tpu.matmul %11, %3, %cst_5 {dimension_numbers = #tpu.dot_dimension_numbers<[1], [1], [0], [0], [0, 0, 1, 0], [], []>} : vector<64x64xf32>, vector<128x64xf32>, vector<64x128xf32> -> vector<64x128xf32>
    %13 = tpu.iota {dimensions = array<i32: 1>} : vector<64x128xi32>
    %cst_6 = arith.constant dense<0xFF800000> : vector<64xf32>
    %14 = vector.multi_reduction <maximumf>, %12, %cst_6 [1] : vector<64x128xf32> to vector<64xf32>
    %15 = vector.shape_cast %14 : vector<64xf32> to vector<64x1xf32>
    %16 = vector.broadcast %15 : vector<64x1xf32> to vector<64x128xf32>
    %17 = arith.cmpf oeq, %12, %16 : vector<64x128xf32>
    %c128_i32 = arith.constant 128 : i32
    %18 = vector.broadcast %c128_i32 : i32 to vector<64x128xi32>
    %19 = arith.select %17, %13, %18 : vector<64x128xi1>, vector<64x128xi32>
    %cst_7 = arith.constant dense<2147483647> : vector<64xi32>
    %20 = vector.multi_reduction <minsi>, %19, %cst_7 [1] : vector<64x128xi32> to vector<64xi32>
    %21 = vector.shape_cast %20 : vector<64xi32> to vector<64x1xi32>
    %22 = vector.broadcast %21 : vector<64x1xi32> to vector<64x128xi32>
    %23 = arith.cmpi eq, %13, %22 : vector<64x128xi32>
    %cst_8 = arith.constant 0xFF800000 : f32
    %24 = vector.broadcast %cst_8 : f32 to vector<64x128xf32>
    %25 = arith.select %23, %24, %12 : vector<64x128xi1>, vector<64x128xf32>
    %cst_9 = arith.constant dense<0xFF800000> : vector<64xf32>
    %26 = vector.multi_reduction <maximumf>, %25, %cst_9 [1] : vector<64x128xf32> to vector<64xf32>
    %27 = vector.shape_cast %26 : vector<64xf32> to vector<64x1xf32>
    %28 = vector.broadcast %27 : vector<64x1xf32> to vector<64x128xf32>
    %29 = arith.cmpf oeq, %25, %28 : vector<64x128xf32>
    %c128_i32_10 = arith.constant 128 : i32
    %30 = vector.broadcast %c128_i32_10 : i32 to vector<64x128xi32>
    %31 = arith.select %29, %13, %30 : vector<64x128xi1>, vector<64x128xi32>
    %cst_11 = arith.constant dense<2147483647> : vector<64xi32>
    %32 = vector.multi_reduction <minsi>, %31, %cst_11 [1] : vector<64x128xi32> to vector<64xi32>
    %33 = vector.shape_cast %32 : vector<64xi32> to vector<64x1xi32>
    %34 = vector.broadcast %33 : vector<64x1xi32> to vector<64x128xi32>
    %35 = arith.cmpi eq, %13, %34 : vector<64x128xi32>
    %cst_12 = arith.constant 0xFF800000 : f32
    %36 = vector.broadcast %cst_12 : f32 to vector<64x128xf32>
    %37 = arith.select %35, %36, %25 : vector<64x128xi1>, vector<64x128xf32>
    %cst_13 = arith.constant dense<0xFF800000> : vector<64xf32>
    %38 = vector.multi_reduction <maximumf>, %37, %cst_13 [1] : vector<64x128xf32> to vector<64xf32>
    %39 = vector.shape_cast %38 : vector<64xf32> to vector<64x1xf32>
    %40 = vector.broadcast %39 : vector<64x1xf32> to vector<64x128xf32>
    %41 = arith.cmpf oeq, %37, %40 : vector<64x128xf32>
    %c128_i32_14 = arith.constant 128 : i32
    %42 = vector.broadcast %c128_i32_14 : i32 to vector<64x128xi32>
    %43 = arith.select %41, %13, %42 : vector<64x128xi1>, vector<64x128xi32>
    %cst_15 = arith.constant dense<2147483647> : vector<64xi32>
    %44 = vector.multi_reduction <minsi>, %43, %cst_15 [1] : vector<64x128xi32> to vector<64xi32>
    %45 = vector.shape_cast %44 : vector<64xi32> to vector<64x1xi32>
    %46 = vector.broadcast %45 : vector<64x1xi32> to vector<64x128xi32>
    %47 = arith.cmpi eq, %13, %46 : vector<64x128xi32>
    %cst_16 = arith.constant 0xFF800000 : f32
    %48 = vector.broadcast %cst_16 : f32 to vector<64x128xf32>
    %49 = arith.select %47, %48, %37 : vector<64x128xi1>, vector<64x128xf32>
    %cst_17 = arith.constant dense<0xFF800000> : vector<64xf32>
    %50 = vector.multi_reduction <maximumf>, %49, %cst_17 [1] : vector<64x128xf32> to vector<64xf32>
    %51 = vector.shape_cast %50 : vector<64xf32> to vector<64x1xf32>
    %52 = vector.broadcast %51 : vector<64x1xf32> to vector<64x128xf32>
    %53 = arith.cmpf oeq, %49, %52 : vector<64x128xf32>
    %c128_i32_18 = arith.constant 128 : i32
    %54 = vector.broadcast %c128_i32_18 : i32 to vector<64x128xi32>
    %55 = arith.select %53, %13, %54 : vector<64x128xi1>, vector<64x128xi32>
    %cst_19 = arith.constant dense<2147483647> : vector<64xi32>
    %56 = vector.multi_reduction <minsi>, %55, %cst_19 [1] : vector<64x128xi32> to vector<64xi32>
    %57 = vector.shape_cast %56 : vector<64xi32> to vector<64x1xi32>
    %58 = vector.broadcast %57 : vector<64x1xi32> to vector<64x128xi32>
    %59 = arith.cmpi eq, %13, %58 : vector<64x128xi32>
    %cst_20 = arith.constant 0xFF800000 : f32
    %60 = vector.broadcast %cst_20 : f32 to vector<64x128xf32>
    %61 = arith.select %59, %60, %49 : vector<64x128xi1>, vector<64x128xf32>
    %cst_21 = arith.constant dense<0xFF800000> : vector<64xf32>
    %62 = vector.multi_reduction <maximumf>, %61, %cst_21 [1] : vector<64x128xf32> to vector<64xf32>
    %63 = vector.shape_cast %62 : vector<64xf32> to vector<64x1xf32>
    %64 = vector.broadcast %63 : vector<64x1xf32> to vector<64x128xf32>
    %65 = arith.cmpf oeq, %61, %64 : vector<64x128xf32>
    %c128_i32_22 = arith.constant 128 : i32
    %66 = vector.broadcast %c128_i32_22 : i32 to vector<64x128xi32>
    %67 = arith.select %65, %13, %66 : vector<64x128xi1>, vector<64x128xi32>
    %cst_23 = arith.constant dense<2147483647> : vector<64xi32>
    %68 = vector.multi_reduction <minsi>, %67, %cst_23 [1] : vector<64x128xi32> to vector<64xi32>
    %69 = vector.shape_cast %68 : vector<64xi32> to vector<64x1xi32>
    %70 = vector.broadcast %69 : vector<64x1xi32> to vector<64x128xi32>
    %71 = arith.cmpi eq, %13, %70 : vector<64x128xi32>
    %cst_24 = arith.constant 0xFF800000 : f32
    %72 = vector.broadcast %cst_24 : f32 to vector<64x128xf32>
    %73 = arith.select %71, %72, %61 : vector<64x128xi1>, vector<64x128xf32>
    %cst_25 = arith.constant dense<0xFF800000> : vector<64xf32>
    %74 = vector.multi_reduction <maximumf>, %73, %cst_25 [1] : vector<64x128xf32> to vector<64xf32>
    %75 = vector.shape_cast %74 : vector<64xf32> to vector<64x1xf32>
    %76 = vector.broadcast %75 : vector<64x1xf32> to vector<64x128xf32>
    %77 = arith.cmpf oeq, %73, %76 : vector<64x128xf32>
    %c128_i32_26 = arith.constant 128 : i32
    %78 = vector.broadcast %c128_i32_26 : i32 to vector<64x128xi32>
    %79 = arith.select %77, %13, %78 : vector<64x128xi1>, vector<64x128xi32>
    %cst_27 = arith.constant dense<2147483647> : vector<64xi32>
    %80 = vector.multi_reduction <minsi>, %79, %cst_27 [1] : vector<64x128xi32> to vector<64xi32>
    %81 = vector.shape_cast %80 : vector<64xi32> to vector<64x1xi32>
    %82 = vector.broadcast %81 : vector<64x1xi32> to vector<64x128xi32>
    %83 = arith.cmpi eq, %13, %82 : vector<64x128xi32>
    %cst_28 = arith.constant 0xFF800000 : f32
    %84 = vector.broadcast %cst_28 : f32 to vector<64x128xf32>
    %85 = arith.select %83, %84, %73 : vector<64x128xi1>, vector<64x128xf32>
    %cst_29 = arith.constant dense<0xFF800000> : vector<64xf32>
    %86 = vector.multi_reduction <maximumf>, %85, %cst_29 [1] : vector<64x128xf32> to vector<64xf32>
    %87 = vector.shape_cast %86 : vector<64xf32> to vector<64x1xf32>
    %88 = vector.broadcast %87 : vector<64x1xf32> to vector<64x128xf32>
    %89 = arith.cmpf oeq, %85, %88 : vector<64x128xf32>
    %c128_i32_30 = arith.constant 128 : i32
    %90 = vector.broadcast %c128_i32_30 : i32 to vector<64x128xi32>
    %91 = arith.select %89, %13, %90 : vector<64x128xi1>, vector<64x128xi32>
    %cst_31 = arith.constant dense<2147483647> : vector<64xi32>
    %92 = vector.multi_reduction <minsi>, %91, %cst_31 [1] : vector<64x128xi32> to vector<64xi32>
    %93 = vector.shape_cast %92 : vector<64xi32> to vector<64x1xi32>
    %94 = vector.broadcast %93 : vector<64x1xi32> to vector<64x128xi32>
    %95 = arith.cmpi eq, %13, %94 : vector<64x128xi32>
    %cst_32 = arith.constant 0xFF800000 : f32
    %96 = vector.broadcast %cst_32 : f32 to vector<64x128xf32>
    %97 = arith.select %95, %96, %85 : vector<64x128xi1>, vector<64x128xf32>
    %cst_33 = arith.constant dense<0xFF800000> : vector<64xf32>
    %98 = vector.multi_reduction <maximumf>, %97, %cst_33 [1] : vector<64x128xf32> to vector<64xf32>
    %99 = vector.shape_cast %98 : vector<64xf32> to vector<64x1xf32>
    %100 = vector.broadcast %99 : vector<64x1xf32> to vector<64x128xf32>
    %101 = arith.cmpf oeq, %97, %100 : vector<64x128xf32>
    %c128_i32_34 = arith.constant 128 : i32
    %102 = vector.broadcast %c128_i32_34 : i32 to vector<64x128xi32>
    %103 = arith.select %101, %13, %102 : vector<64x128xi1>, vector<64x128xi32>
    %cst_35 = arith.constant dense<2147483647> : vector<64xi32>
    %104 = vector.multi_reduction <minsi>, %103, %cst_35 [1] : vector<64x128xi32> to vector<64xi32>
    %105 = vector.shape_cast %104 : vector<64xi32> to vector<64x1xi32>
    %106 = vector.broadcast %105 : vector<64x1xi32> to vector<64x128xi32>
    %107 = arith.cmpi eq, %13, %106 : vector<64x128xi32>
    %cst_36 = arith.constant 0xFF800000 : f32
    %108 = vector.broadcast %cst_36 : f32 to vector<64x128xf32>
    %109 = arith.select %107, %108, %97 : vector<64x128xi1>, vector<64x128xf32>
    %cst_37 = arith.constant dense<0xFF800000> : vector<64xf32>
    %110 = vector.multi_reduction <maximumf>, %109, %cst_37 [1] : vector<64x128xf32> to vector<64xf32>
    %111 = vector.shape_cast %110 : vector<64xf32> to vector<64x1xf32>
    %112 = vector.broadcast %111 : vector<64x1xf32> to vector<64x128xf32>
    %113 = arith.cmpf oeq, %109, %112 : vector<64x128xf32>
    %c128_i32_38 = arith.constant 128 : i32
    %114 = vector.broadcast %c128_i32_38 : i32 to vector<64x128xi32>
    %115 = arith.select %113, %13, %114 : vector<64x128xi1>, vector<64x128xi32>
    %cst_39 = arith.constant dense<2147483647> : vector<64xi32>
    %116 = vector.multi_reduction <minsi>, %115, %cst_39 [1] : vector<64x128xi32> to vector<64xi32>
    %117 = vector.shape_cast %116 : vector<64xi32> to vector<64x1xi32>
    %118 = vector.broadcast %117 : vector<64x1xi32> to vector<64x128xi32>
    %119 = arith.cmpi eq, %13, %118 : vector<64x128xi32>
    %cst_40 = arith.constant 0xFF800000 : f32
    %120 = vector.broadcast %cst_40 : f32 to vector<64x128xf32>
    %121 = arith.select %119, %120, %109 : vector<64x128xi1>, vector<64x128xf32>
    %cst_41 = arith.constant dense<0xFF800000> : vector<64xf32>
    %122 = vector.multi_reduction <maximumf>, %121, %cst_41 [1] : vector<64x128xf32> to vector<64xf32>
    %123 = vector.shape_cast %122 : vector<64xf32> to vector<64x1xf32>
    %124 = vector.broadcast %123 : vector<64x1xf32> to vector<64x128xf32>
    %125 = arith.cmpf oeq, %121, %124 : vector<64x128xf32>
    %c128_i32_42 = arith.constant 128 : i32
    %126 = vector.broadcast %c128_i32_42 : i32 to vector<64x128xi32>
    %127 = arith.select %125, %13, %126 : vector<64x128xi1>, vector<64x128xi32>
    %cst_43 = arith.constant dense<2147483647> : vector<64xi32>
    %128 = vector.multi_reduction <minsi>, %127, %cst_43 [1] : vector<64x128xi32> to vector<64xi32>
    %129 = vector.shape_cast %128 : vector<64xi32> to vector<64x1xi32>
    %130 = vector.broadcast %129 : vector<64x1xi32> to vector<64x128xi32>
    %131 = arith.cmpi eq, %13, %130 : vector<64x128xi32>
    %cst_44 = arith.constant 0xFF800000 : f32
    %132 = vector.broadcast %cst_44 : f32 to vector<64x128xf32>
    %133 = arith.select %131, %132, %121 : vector<64x128xi1>, vector<64x128xf32>
    %cst_45 = arith.constant dense<0xFF800000> : vector<64xf32>
    %134 = vector.multi_reduction <maximumf>, %133, %cst_45 [1] : vector<64x128xf32> to vector<64xf32>
    %135 = vector.shape_cast %134 : vector<64xf32> to vector<64x1xf32>
    %136 = vector.broadcast %135 : vector<64x1xf32> to vector<64x128xf32>
    %137 = arith.cmpf oeq, %133, %136 : vector<64x128xf32>
    %c128_i32_46 = arith.constant 128 : i32
    %138 = vector.broadcast %c128_i32_46 : i32 to vector<64x128xi32>
    %139 = arith.select %137, %13, %138 : vector<64x128xi1>, vector<64x128xi32>
    %cst_47 = arith.constant dense<2147483647> : vector<64xi32>
    %140 = vector.multi_reduction <minsi>, %139, %cst_47 [1] : vector<64x128xi32> to vector<64xi32>
    %141 = vector.shape_cast %140 : vector<64xi32> to vector<64x1xi32>
    %142 = vector.broadcast %141 : vector<64x1xi32> to vector<64x128xi32>
    %143 = arith.cmpi eq, %13, %142 : vector<64x128xi32>
    %cst_48 = arith.constant 0xFF800000 : f32
    %144 = vector.broadcast %cst_48 : f32 to vector<64x128xf32>
    %145 = arith.select %143, %144, %133 : vector<64x128xi1>, vector<64x128xf32>
    %cst_49 = arith.constant dense<0xFF800000> : vector<64xf32>
    %146 = vector.multi_reduction <maximumf>, %145, %cst_49 [1] : vector<64x128xf32> to vector<64xf32>
    %147 = vector.shape_cast %146 : vector<64xf32> to vector<64x1xf32>
    %148 = vector.broadcast %147 : vector<64x1xf32> to vector<64x128xf32>
    %149 = arith.cmpf oeq, %145, %148 : vector<64x128xf32>
    %c128_i32_50 = arith.constant 128 : i32
    %150 = vector.broadcast %c128_i32_50 : i32 to vector<64x128xi32>
    %151 = arith.select %149, %13, %150 : vector<64x128xi1>, vector<64x128xi32>
    %cst_51 = arith.constant dense<2147483647> : vector<64xi32>
    %152 = vector.multi_reduction <minsi>, %151, %cst_51 [1] : vector<64x128xi32> to vector<64xi32>
    %153 = vector.shape_cast %152 : vector<64xi32> to vector<64x1xi32>
    %154 = vector.broadcast %153 : vector<64x1xi32> to vector<64x128xi32>
    %155 = arith.cmpi eq, %13, %154 : vector<64x128xi32>
    %cst_52 = arith.constant 0xFF800000 : f32
    %156 = vector.broadcast %cst_52 : f32 to vector<64x128xf32>
    %157 = arith.select %155, %156, %145 : vector<64x128xi1>, vector<64x128xf32>
    %cst_53 = arith.constant dense<0xFF800000> : vector<64xf32>
    %158 = vector.multi_reduction <maximumf>, %157, %cst_53 [1] : vector<64x128xf32> to vector<64xf32>
    %159 = vector.shape_cast %158 : vector<64xf32> to vector<64x1xf32>
    %160 = vector.broadcast %159 : vector<64x1xf32> to vector<64x128xf32>
    %161 = arith.cmpf oeq, %157, %160 : vector<64x128xf32>
    %c128_i32_54 = arith.constant 128 : i32
    %162 = vector.broadcast %c128_i32_54 : i32 to vector<64x128xi32>
    %163 = arith.select %161, %13, %162 : vector<64x128xi1>, vector<64x128xi32>
    %cst_55 = arith.constant dense<2147483647> : vector<64xi32>
    %164 = vector.multi_reduction <minsi>, %163, %cst_55 [1] : vector<64x128xi32> to vector<64xi32>
    %165 = vector.shape_cast %164 : vector<64xi32> to vector<64x1xi32>
    %166 = vector.broadcast %165 : vector<64x1xi32> to vector<64x128xi32>
    %167 = arith.cmpi eq, %13, %166 : vector<64x128xi32>
    %cst_56 = arith.constant 0xFF800000 : f32
    %168 = vector.broadcast %cst_56 : f32 to vector<64x128xf32>
    %169 = arith.select %167, %168, %157 : vector<64x128xi1>, vector<64x128xf32>
    %cst_57 = arith.constant dense<0xFF800000> : vector<64xf32>
    %170 = vector.multi_reduction <maximumf>, %169, %cst_57 [1] : vector<64x128xf32> to vector<64xf32>
    %171 = vector.shape_cast %170 : vector<64xf32> to vector<64x1xf32>
    %172 = vector.broadcast %171 : vector<64x1xf32> to vector<64x128xf32>
    %173 = arith.cmpf oeq, %169, %172 : vector<64x128xf32>
    %c128_i32_58 = arith.constant 128 : i32
    %174 = vector.broadcast %c128_i32_58 : i32 to vector<64x128xi32>
    %175 = arith.select %173, %13, %174 : vector<64x128xi1>, vector<64x128xi32>
    %cst_59 = arith.constant dense<2147483647> : vector<64xi32>
    %176 = vector.multi_reduction <minsi>, %175, %cst_59 [1] : vector<64x128xi32> to vector<64xi32>
    %177 = vector.shape_cast %176 : vector<64xi32> to vector<64x1xi32>
    %178 = vector.broadcast %177 : vector<64x1xi32> to vector<64x128xi32>
    %179 = arith.cmpi eq, %13, %178 : vector<64x128xi32>
    %cst_60 = arith.constant 0xFF800000 : f32
    %180 = vector.broadcast %cst_60 : f32 to vector<64x128xf32>
    %181 = arith.select %179, %180, %169 : vector<64x128xi1>, vector<64x128xf32>
    %cst_61 = arith.constant dense<0xFF800000> : vector<64xf32>
    %182 = vector.multi_reduction <maximumf>, %181, %cst_61 [1] : vector<64x128xf32> to vector<64xf32>
    %183 = vector.shape_cast %182 : vector<64xf32> to vector<64x1xf32>
    %184 = vector.broadcast %183 : vector<64x1xf32> to vector<64x128xf32>
    %185 = arith.cmpf oeq, %181, %184 : vector<64x128xf32>
    %c128_i32_62 = arith.constant 128 : i32
    %186 = vector.broadcast %c128_i32_62 : i32 to vector<64x128xi32>
    %187 = arith.select %185, %13, %186 : vector<64x128xi1>, vector<64x128xi32>
    %cst_63 = arith.constant dense<2147483647> : vector<64xi32>
    %188 = vector.multi_reduction <minsi>, %187, %cst_63 [1] : vector<64x128xi32> to vector<64xi32>
    %189 = vector.shape_cast %188 : vector<64xi32> to vector<64x1xi32>
    %190 = vector.broadcast %189 : vector<64x1xi32> to vector<64x128xi32>
    %191 = arith.cmpi eq, %13, %190 : vector<64x128xi32>
    %cst_64 = arith.constant 0xFF800000 : f32
    %192 = vector.broadcast %cst_64 : f32 to vector<64x128xf32>
    %193 = arith.select %191, %192, %181 : vector<64x128xi1>, vector<64x128xf32>
    %cst_65 = arith.constant dense<0xFF800000> : vector<64xf32>
    %194 = vector.multi_reduction <maximumf>, %193, %cst_65 [1] : vector<64x128xf32> to vector<64xf32>
    %195 = vector.shape_cast %194 : vector<64xf32> to vector<64x1xf32>
    %196 = vector.broadcast %195 : vector<64x1xf32> to vector<64x128xf32>
    %197 = arith.cmpf oeq, %193, %196 : vector<64x128xf32>
    %c128_i32_66 = arith.constant 128 : i32
    %198 = vector.broadcast %c128_i32_66 : i32 to vector<64x128xi32>
    %199 = arith.select %197, %13, %198 : vector<64x128xi1>, vector<64x128xi32>
    %cst_67 = arith.constant dense<2147483647> : vector<64xi32>
    %200 = vector.multi_reduction <minsi>, %199, %cst_67 [1] : vector<64x128xi32> to vector<64xi32>
    %201 = vector.shape_cast %200 : vector<64xi32> to vector<64x1xi32>
    %202 = vector.broadcast %201 : vector<64x1xi32> to vector<64x128xi32>
    %203 = arith.cmpi eq, %13, %202 : vector<64x128xi32>
    %cst_68 = arith.constant 0xFF800000 : f32
    %204 = vector.broadcast %cst_68 : f32 to vector<64x128xf32>
    %205 = arith.select %203, %204, %193 : vector<64x128xi1>, vector<64x128xf32>
    %206 = arith.cmpf oeq, %205, %12 : vector<64x128xf32>
    %cst_69 = arith.constant 0xFF800000 : f32
    %cst_70 = arith.constant 0.000000e+00 : f32
    %207 = vector.broadcast %cst_69 : f32 to vector<64x128xf32>
    %208 = vector.broadcast %cst_70 : f32 to vector<64x128xf32>
    %209 = arith.select %206, %207, %208 : vector<64x128xi1>, vector<64x128xf32>
    %c0_71 = arith.constant 0 : index
    %c0_72 = arith.constant 0 : index
    %210 = vector.load %arg5[%c0_71, %c0_72] : memref<64x64xf32, #tpu.memory_space<vmem>>, vector<64x64xf32>
    %cst_73 = arith.constant 0.000000e+00 : f32
    %211 = vector.broadcast %cst_73 : f32 to vector<64x64xf32>
    %c0_74 = arith.constant 0 : index
    %212 = arith.index_cast %1 : i32 to index
    %c0_75 = arith.constant 0 : index
    %213 = vector.load %arg9[%c0_74, %212, %c0_75] : memref<4x128x16xf32, #tpu.memory_space<vmem>>, vector<1x64x16xf32>
    %214 = vector.shape_cast %213 : vector<1x64x16xf32> to vector<64x16xf32>
    %c0_76 = arith.constant 0 : index
    %c0_77 = arith.constant 0 : index
    %c0_78 = arith.constant 0 : index
    %215 = vector.load %arg10[%c0_76, %c0_77, %c0_78] : memref<4x128x16xf32, #tpu.memory_space<vmem>>, vector<1x128x16xf32>
    %216 = vector.shape_cast %215 : vector<1x128x16xf32> to vector<128x16xf32>
    %cst_79 = arith.constant dense<0.000000e+00> : vector<64x128xf32>
    %217 = tpu.matmul %214, %216, %cst_79 {dimension_numbers = #tpu.dot_dimension_numbers<[1], [1], [0], [0], [0, 0, 1, 0], [], []>} : vector<64x16xf32>, vector<128x16xf32>, vector<64x128xf32> -> vector<64x128xf32>
    %218 = arith.addf %217, %209 : vector<64x128xf32>
    %cst_80 = arith.constant dense<0xFF800000> : vector<64xf32>
    %219 = vector.multi_reduction <maximumf>, %218, %cst_80 [1] : vector<64x128xf32> to vector<64xf32>
    %220 = vector.shape_cast %219 : vector<64xf32> to vector<64x1xf32>
    %221 = vector.broadcast %220 : vector<64x1xf32> to vector<64x128xf32>
    %222 = arith.subf %218, %221 : vector<64x128xf32>
    %223 = math.exp %222 : vector<64x128xf32>
    %cst_81 = arith.constant dense<0.000000e+00> : vector<64xf32>
    %224 = vector.multi_reduction <add>, %223, %cst_81 [1] : vector<64x128xf32> to vector<64xf32>
    %225 = vector.shape_cast %224 : vector<64xf32> to vector<64x1xf32>
    %226 = tpu.reciprocal %225 : vector<64x1xf32> -> vector<64x1xf32>
    %227 = vector.broadcast %226 : vector<64x1xf32> to vector<64x128xf32>
    %228 = arith.mulf %223, %227 : vector<64x128xf32>
    %c0_82 = arith.constant 0 : index
    %c0_83 = arith.constant 0 : index
    %c0_84 = arith.constant 0 : index
    %c0_85 = arith.constant 0 : index
    %229 = vector.load %arg8[%c0_82, %c0_83, %c0_84, %c0_85] : memref<1x4x64x128xf32, #tpu.memory_space<vmem>>, vector<1x1x64x128xf32>
    %230 = vector.shape_cast %229 : vector<1x1x64x128xf32> to vector<64x128xf32>
    %231 = vector.shape_cast %228 : vector<64x128xf32> to vector<1x1x64x128xf32>
    tpu.vector_store %arg8[%c0_82, %c0_83, %c0_84, %c0_85], %231 {strides = array<i32>} : memref<1x4x64x128xf32, #tpu.memory_space<vmem>>, vector<1x1x64x128xf32>,
    %c0_86 = arith.constant 0 : index
    %c0_87 = arith.constant 0 : index
    %c0_88 = arith.constant 0 : index
    %232 = vector.load %arg11[%c0_86, %c0_87, %c0_88] : memref<4x128x16xf32, #tpu.memory_space<vmem>>, vector<1x128x16xf32>
    %233 = vector.shape_cast %232 : vector<1x128x16xf32> to vector<128x16xf32>
    %cst_89 = arith.constant dense<0.000000e+00> : vector<64x16xf32>
    %234 = tpu.matmul %228, %233, %cst_89 {dimension_numbers = #tpu.dot_dimension_numbers<[1], [0], [0], [1], [0, 0, 1, 1], [], []>} : vector<64x128xf32>, vector<128x16xf32>, vector<64x16xf32> -> vector<64x16xf32>
    %235 = vector.extract_strided_slice %210 {offsets = [0, 0], sizes = [16, 64], strides = [1, 1]} : vector<64x64xf32> to vector<16x64xf32>
    %cst_90 = arith.constant dense<0.000000e+00> : vector<64x64xf32>
    %236 = tpu.matmul %234, %235, %cst_90 {dimension_numbers = #tpu.dot_dimension_numbers<[1], [0], [0], [1], [0, 0, 1, 1], [], []>} : vector<64x16xf32>, vector<16x64xf32>, vector<64x64xf32> -> vector<64x64xf32>
    %237 = arith.addf %211, %236 : vector<64x64xf32>
    %c1 = arith.constant 1 : index
    %238 = arith.index_cast %1 : i32 to index
    %c0_91 = arith.constant 0 : index
    %239 = vector.load %arg9[%c1, %238, %c0_91] : memref<4x128x16xf32, #tpu.memory_space<vmem>>, vector<1x64x16xf32>
    %240 = vector.shape_cast %239 : vector<1x64x16xf32> to vector<64x16xf32>
    %c1_92 = arith.constant 1 : index
    %c0_93 = arith.constant 0 : index
    %c0_94 = arith.constant 0 : index
    %241 = vector.load %arg10[%c1_92, %c0_93, %c0_94] : memref<4x128x16xf32, #tpu.memory_space<vmem>>, vector<1x128x16xf32>
    %242 = vector.shape_cast %241 : vector<1x128x16xf32> to vector<128x16xf32>
    %cst_95 = arith.constant dense<0.000000e+00> : vector<64x128xf32>
    %243 = tpu.matmul %240, %242, %cst_95 {dimension_numbers = #tpu.dot_dimension_numbers<[1], [1], [0], [0], [0, 0, 1, 0], [], []>} : vector<64x16xf32>, vector<128x16xf32>, vector<64x128xf32> -> vector<64x128xf32>
    %244 = arith.addf %243, %209 : vector<64x128xf32>
    %cst_96 = arith.constant dense<0xFF800000> : vector<64xf32>
    %245 = vector.multi_reduction <maximumf>, %244, %cst_96 [1] : vector<64x128xf32> to vector<64xf32>
    %246 = vector.shape_cast %245 : vector<64xf32> to vector<64x1xf32>
    %247 = vector.broadcast %246 : vector<64x1xf32> to vector<64x128xf32>
    %248 = arith.subf %244, %247 : vector<64x128xf32>
    %249 = math.exp %248 : vector<64x128xf32>
    %cst_97 = arith.constant dense<0.000000e+00> : vector<64xf32>
    %250 = vector.multi_reduction <add>, %249, %cst_97 [1] : vector<64x128xf32> to vector<64xf32>
    %251 = vector.shape_cast %250 : vector<64xf32> to vector<64x1xf32>
    %252 = tpu.reciprocal %251 : vector<64x1xf32> -> vector<64x1xf32>
    %253 = vector.broadcast %252 : vector<64x1xf32> to vector<64x128xf32>
    %254 = arith.mulf %249, %253 : vector<64x128xf32>
    %c0_98 = arith.constant 0 : index
    %c1_99 = arith.constant 1 : index
    %c0_100 = arith.constant 0 : index
    %c0_101 = arith.constant 0 : index
    %255 = vector.load %arg8[%c0_98, %c1_99, %c0_100, %c0_101] : memref<1x4x64x128xf32, #tpu.memory_space<vmem>>, vector<1x1x64x128xf32>
    %256 = vector.shape_cast %255 : vector<1x1x64x128xf32> to vector<64x128xf32>
    %257 = vector.shape_cast %254 : vector<64x128xf32> to vector<1x1x64x128xf32>
    tpu.vector_store %arg8[%c0_98, %c1_99, %c0_100, %c0_101], %257 {strides = array<i32>} : memref<1x4x64x128xf32, #tpu.memory_space<vmem>>, vector<1x1x64x128xf32>,
    %c1_102 = arith.constant 1 : index
    %c0_103 = arith.constant 0 : index
    %c0_104 = arith.constant 0 : index
    %258 = vector.load %arg11[%c1_102, %c0_103, %c0_104] : memref<4x128x16xf32, #tpu.memory_space<vmem>>, vector<1x128x16xf32>
    %259 = vector.shape_cast %258 : vector<1x128x16xf32> to vector<128x16xf32>
    %cst_105 = arith.constant dense<0.000000e+00> : vector<64x16xf32>
    %260 = tpu.matmul %254, %259, %cst_105 {dimension_numbers = #tpu.dot_dimension_numbers<[1], [0], [0], [1], [0, 0, 1, 1], [], []>} : vector<64x128xf32>, vector<128x16xf32>, vector<64x16xf32> -> vector<64x16xf32>
    %261 = vector.extract_strided_slice %210 {offsets = [16, 0], sizes = [16, 64], strides = [1, 1]} : vector<64x64xf32> to vector<16x64xf32>
    %cst_106 = arith.constant dense<0.000000e+00> : vector<64x64xf32>
    %262 = tpu.matmul %260, %261, %cst_106 {dimension_numbers = #tpu.dot_dimension_numbers<[1], [0], [0], [1], [0, 0, 1, 1], [], []>} : vector<64x16xf32>, vector<16x64xf32>, vector<64x64xf32> -> vector<64x64xf32>
    %263 = arith.addf %237, %262 : vector<64x64xf32>
    %c2 = arith.constant 2 : index
    %264 = arith.index_cast %1 : i32 to index
    %c0_107 = arith.constant 0 : index
    %265 = vector.load %arg9[%c2, %264, %c0_107] : memref<4x128x16xf32, #tpu.memory_space<vmem>>, vector<1x64x16xf32>
    %266 = vector.shape_cast %265 : vector<1x64x16xf32> to vector<64x16xf32>
    %c2_108 = arith.constant 2 : index
    %c0_109 = arith.constant 0 : index
    %c0_110 = arith.constant 0 : index
    %267 = vector.load %arg10[%c2_108, %c0_109, %c0_110] : memref<4x128x16xf32, #tpu.memory_space<vmem>>, vector<1x128x16xf32>
    %268 = vector.shape_cast %267 : vector<1x128x16xf32> to vector<128x16xf32>
    %cst_111 = arith.constant dense<0.000000e+00> : vector<64x128xf32>
    %269 = tpu.matmul %266, %268, %cst_111 {dimension_numbers = #tpu.dot_dimension_numbers<[1], [1], [0], [0], [0, 0, 1, 0], [], []>} : vector<64x16xf32>, vector<128x16xf32>, vector<64x128xf32> -> vector<64x128xf32>
    %270 = arith.addf %269, %209 : vector<64x128xf32>
    %cst_112 = arith.constant dense<0xFF800000> : vector<64xf32>
    %271 = vector.multi_reduction <maximumf>, %270, %cst_112 [1] : vector<64x128xf32> to vector<64xf32>
    %272 = vector.shape_cast %271 : vector<64xf32> to vector<64x1xf32>
    %273 = vector.broadcast %272 : vector<64x1xf32> to vector<64x128xf32>
    %274 = arith.subf %270, %273 : vector<64x128xf32>
    %275 = math.exp %274 : vector<64x128xf32>
    %cst_113 = arith.constant dense<0.000000e+00> : vector<64xf32>
    %276 = vector.multi_reduction <add>, %275, %cst_113 [1] : vector<64x128xf32> to vector<64xf32>
    %277 = vector.shape_cast %276 : vector<64xf32> to vector<64x1xf32>
    %278 = tpu.reciprocal %277 : vector<64x1xf32> -> vector<64x1xf32>
    %279 = vector.broadcast %278 : vector<64x1xf32> to vector<64x128xf32>
    %280 = arith.mulf %275, %279 : vector<64x128xf32>
    %c0_114 = arith.constant 0 : index
    %c2_115 = arith.constant 2 : index
    %c0_116 = arith.constant 0 : index
    %c0_117 = arith.constant 0 : index
    %281 = vector.load %arg8[%c0_114, %c2_115, %c0_116, %c0_117] : memref<1x4x64x128xf32, #tpu.memory_space<vmem>>, vector<1x1x64x128xf32>
    %282 = vector.shape_cast %281 : vector<1x1x64x128xf32> to vector<64x128xf32>
    %283 = vector.shape_cast %280 : vector<64x128xf32> to vector<1x1x64x128xf32>
    tpu.vector_store %arg8[%c0_114, %c2_115, %c0_116, %c0_117], %283 {strides = array<i32>} : memref<1x4x64x128xf32, #tpu.memory_space<vmem>>, vector<1x1x64x128xf32>,
    %c2_118 = arith.constant 2 : index
    %c0_119 = arith.constant 0 : index
    %c0_120 = arith.constant 0 : index
    %284 = vector.load %arg11[%c2_118, %c0_119, %c0_120] : memref<4x128x16xf32, #tpu.memory_space<vmem>>, vector<1x128x16xf32>
    %285 = vector.shape_cast %284 : vector<1x128x16xf32> to vector<128x16xf32>
    %cst_121 = arith.constant dense<0.000000e+00> : vector<64x16xf32>
    %286 = tpu.matmul %280, %285, %cst_121 {dimension_numbers = #tpu.dot_dimension_numbers<[1], [0], [0], [1], [0, 0, 1, 1], [], []>} : vector<64x128xf32>, vector<128x16xf32>, vector<64x16xf32> -> vector<64x16xf32>
    %287 = vector.extract_strided_slice %210 {offsets = [32, 0], sizes = [16, 64], strides = [1, 1]} : vector<64x64xf32> to vector<16x64xf32>
    %cst_122 = arith.constant dense<0.000000e+00> : vector<64x64xf32>
    %288 = tpu.matmul %286, %287, %cst_122 {dimension_numbers = #tpu.dot_dimension_numbers<[1], [0], [0], [1], [0, 0, 1, 1], [], []>} : vector<64x16xf32>, vector<16x64xf32>, vector<64x64xf32> -> vector<64x64xf32>
    %289 = arith.addf %263, %288 : vector<64x64xf32>
    %c3 = arith.constant 3 : index
    %290 = arith.index_cast %1 : i32 to index
    %c0_123 = arith.constant 0 : index
    %291 = vector.load %arg9[%c3, %290, %c0_123] : memref<4x128x16xf32, #tpu.memory_space<vmem>>, vector<1x64x16xf32>
    %292 = vector.shape_cast %291 : vector<1x64x16xf32> to vector<64x16xf32>
    %c3_124 = arith.constant 3 : index
    %c0_125 = arith.constant 0 : index
    %c0_126 = arith.constant 0 : index
    %293 = vector.load %arg10[%c3_124, %c0_125, %c0_126] : memref<4x128x16xf32, #tpu.memory_space<vmem>>, vector<1x128x16xf32>
    %294 = vector.shape_cast %293 : vector<1x128x16xf32> to vector<128x16xf32>
    %cst_127 = arith.constant dense<0.000000e+00> : vector<64x128xf32>
    %295 = tpu.matmul %292, %294, %cst_127 {dimension_numbers = #tpu.dot_dimension_numbers<[1], [1], [0], [0], [0, 0, 1, 0], [], []>} : vector<64x16xf32>, vector<128x16xf32>, vector<64x128xf32> -> vector<64x128xf32>
    %296 = arith.addf %295, %209 : vector<64x128xf32>
    %cst_128 = arith.constant dense<0xFF800000> : vector<64xf32>
    %297 = vector.multi_reduction <maximumf>, %296, %cst_128 [1] : vector<64x128xf32> to vector<64xf32>
    %298 = vector.shape_cast %297 : vector<64xf32> to vector<64x1xf32>
    %299 = vector.broadcast %298 : vector<64x1xf32> to vector<64x128xf32>
    %300 = arith.subf %296, %299 : vector<64x128xf32>
    %301 = math.exp %300 : vector<64x128xf32>
    %cst_129 = arith.constant dense<0.000000e+00> : vector<64xf32>
    %302 = vector.multi_reduction <add>, %301, %cst_129 [1] : vector<64x128xf32> to vector<64xf32>
    %303 = vector.shape_cast %302 : vector<64xf32> to vector<64x1xf32>
    %304 = tpu.reciprocal %303 : vector<64x1xf32> -> vector<64x1xf32>
    %305 = vector.broadcast %304 : vector<64x1xf32> to vector<64x128xf32>
    %306 = arith.mulf %301, %305 : vector<64x128xf32>
    %c0_130 = arith.constant 0 : index
    %c3_131 = arith.constant 3 : index
    %c0_132 = arith.constant 0 : index
    %c0_133 = arith.constant 0 : index
    %307 = vector.load %arg8[%c0_130, %c3_131, %c0_132, %c0_133] : memref<1x4x64x128xf32, #tpu.memory_space<vmem>>, vector<1x1x64x128xf32>
    %308 = vector.shape_cast %307 : vector<1x1x64x128xf32> to vector<64x128xf32>
    %309 = vector.shape_cast %306 : vector<64x128xf32> to vector<1x1x64x128xf32>
    tpu.vector_store %arg8[%c0_130, %c3_131, %c0_132, %c0_133], %309 {strides = array<i32>} : memref<1x4x64x128xf32, #tpu.memory_space<vmem>>, vector<1x1x64x128xf32>,
    %c3_134 = arith.constant 3 : index
    %c0_135 = arith.constant 0 : index
    %c0_136 = arith.constant 0 : index
    %310 = vector.load %arg11[%c3_134, %c0_135, %c0_136] : memref<4x128x16xf32, #tpu.memory_space<vmem>>, vector<1x128x16xf32>
    %311 = vector.shape_cast %310 : vector<1x128x16xf32> to vector<128x16xf32>
    %cst_137 = arith.constant dense<0.000000e+00> : vector<64x16xf32>
    %312 = tpu.matmul %306, %311, %cst_137 {dimension_numbers = #tpu.dot_dimension_numbers<[1], [0], [0], [1], [0, 0, 1, 1], [], []>} : vector<64x128xf32>, vector<128x16xf32>, vector<64x16xf32> -> vector<64x16xf32>
    %313 = vector.extract_strided_slice %210 {offsets = [48, 0], sizes = [16, 64], strides = [1, 1]} : vector<64x64xf32> to vector<16x64xf32>
    %cst_138 = arith.constant dense<0.000000e+00> : vector<64x64xf32>
    %314 = tpu.matmul %312, %313, %cst_138 {dimension_numbers = #tpu.dot_dimension_numbers<[1], [0], [0], [1], [0, 0, 1, 1], [], []>} : vector<64x16xf32>, vector<16x64xf32>, vector<64x64xf32> -> vector<64x64xf32>
    %315 = arith.addf %289, %314 : vector<64x64xf32>
    %c0_139 = arith.constant 0 : index
    %c0_140 = arith.constant 0 : index
    %316 = vector.load %arg6[%c0_139, %c0_140] : memref<1x64xf32, #tpu.memory_space<vmem>>, vector<1x64xf32>
    %317 = vector.broadcast %316 : vector<1x64xf32> to vector<64x64xf32>
    %318 = arith.addf %315, %317 : vector<64x64xf32>
    %c0_141 = arith.constant 0 : index
    %c0_142 = arith.constant 0 : index
    %c0_143 = arith.constant 0 : index
    %319 = vector.load %arg7[%c0_141, %c0_142, %c0_143] : memref<1x64x64xf32, #tpu.memory_space<vmem>>, vector<1x64x64xf32>
    %320 = vector.shape_cast %319 : vector<1x64x64xf32> to vector<64x64xf32>
    %321 = vector.shape_cast %318 : vector<64x64xf32> to vector<1x64x64xf32>
    tpu.vector_store %arg7[%c0_141, %c0_142, %c0_143], %321 {strides = array<i32>} : memref<1x64x64xf32, #tpu.memory_space<vmem>>, vector<1x64x64xf32>,
    return
  }
  func.func @transform_0(%arg0: i32, %arg1: i32) -> (i32, i32, i32) {
    %c0_i32 = arith.constant 0 : i32
    %c0_i32_0 = arith.constant 0 : i32
    %c0_i32_1 = arith.constant 0 : i32
    return %arg0, %c0_i32, %c0_i32_0 : i32, i32, i32
  }
  func.func @transform_1(%arg0: i32, %arg1: i32) -> (i32, i32) {
    %c0_i32 = arith.constant 0 : i32
    %c0_i32_0 = arith.constant 0 : i32
    %c0_i32_1 = arith.constant 0 : i32
    return %c0_i32, %c0_i32_0 : i32, i32
  }
  func.func @transform_2(%arg0: i32, %arg1: i32) -> (i32, i32) {
    %c0_i32 = arith.constant 0 : i32
    %c0_i32_0 = arith.constant 0 : i32
    %c0_i32_1 = arith.constant 0 : i32
    return %c0_i32, %c0_i32_0 : i32, i32
  }
  func.func @transform_3(%arg0: i32, %arg1: i32) -> (i32, i32) {
    %c0_i32 = arith.constant 0 : i32
    %c0_i32_0 = arith.constant 0 : i32
    %c0_i32_1 = arith.constant 0 : i32
    return %c0_i32, %c0_i32_0 : i32, i32
  }
  func.func @transform_4(%arg0: i32, %arg1: i32) -> (i32, i32) {
    %c0_i32 = arith.constant 0 : i32
    %c0_i32_0 = arith.constant 0 : i32
    %c0_i32_1 = arith.constant 0 : i32
    return %c0_i32, %c0_i32_0 : i32, i32
  }
  func.func @transform_5(%arg0: i32, %arg1: i32) -> (i32, i32, i32) {
    %c0_i32 = arith.constant 0 : i32
    %c0_i32_0 = arith.constant 0 : i32
    return %arg0, %arg1, %c0_i32 : i32, i32, i32
  }
  func.func @transform_6(%arg0: i32, %arg1: i32) -> (i32, i32, i32, i32) {
    %c0_i32 = arith.constant 0 : i32
    %c0_i32_0 = arith.constant 0 : i32
    %c0_i32_1 = arith.constant 0 : i32
    return %arg0, %c0_i32, %arg1, %c0_i32_0 : i32, i32, i32, i32
  }
}

</mosaic_0001>

<bundles_post_ra>
// kernel: tpu_custom_call.1
= control target key start
LH: loop header
LB: loop body
LE: loop exit
PB: predicated region body
PF: predicated region fallthrough
CT: control target
= control target key end

     0   :  { %s10354_s0 = inlined_call_operand.vmem [shape: f32[2,128,64], index: 0, kind: input, shape index: {}]   ;;  %s10355_s1 = inlined_call_operand.vmem [shape: f32[64,192], index: 1, kind: input, shape index: {}]   ;;  %s10356_s2 = inlined_call_operand.vmem [shape: f32[1,192], index: 2, kind: input, shape index: {}]   ;;  %s10357_s3 = inlined_call_operand.vmem [shape: f32[64,64], index: 3, kind: input, shape index: {}]   ;;  %s10358_s4 = inlined_call_operand.vmem [shape: f32[1,64], index: 4, kind: input, shape index: {}]   ;;  %s10359_s5 = inlined_call_operand.vmem [shape: f32[2,128,64], index: 5, kind: output, shape index: {0}]   ;;  %s10360_s6 = inlined_call_operand.hbm [shape: f32[2,4,128,128], index: 6, kind: output, shape index: {1}]  }
   0x1   :  { %10367 = sst [smem:[#allocation13_spill]] %s10354_s0 }
   0x2   :  { %10368 = sst [smem:[#allocation14_spill]] %s10359_s5 }
   0x3   :  { %12 = vsyncpa [#allocation6], 0 }
   0x4   :  { %14 = vsyncpa [#allocation6 + $0x1], 0  ;;  %s7743_s21 = smov 0   ;;  %s7745_s22 = smov 0  }
   0x5   :  { %s7747_s23 = smov 0   ;;  %s7749_s24 = smov 0  }
   0x6   :  { %s7751_s25 = smov 0   ;;  %s7753_s26 = smov 0  }
   0x7   :  { %s7755_s27 = smov 0   ;;  %s7757_s28 = smov 0  }
   0x8 LB: > { %s6433_s29 = sadd.s32 4294967295, %s7691_s28   ;;  %s6434_s30 = sadd.s32 4294967294, %s7691_s28   ;;  %s7691_s28 = sphi %s7757_s28, %s20_s28   ;;  %s7687_s27 = sphi %s7755_s27, %s10388_s27   ;;  %s7683_s26 = sphi %s7753_s26, %s10387_s26   ;;  %s7679_s25 = sphi %s7751_s25, %s10386_s25   ;;  %s7675_s24 = sphi %s7749_s24, %s10385_s24   ;;  %s7671_s23 = sphi %s7747_s23, %s10384_s23   ;;  %s7667_s22 = sphi %s7745_s22, %s10383_s22   ;;  %s7663_s21 = sphi %s7743_s21, %s10382_s21  }
   0x9   : > { %s29_s7 = sadd.s32 1, %s7683_s26  ;;  %s32_s8 = sadd.s32 1, %s7687_s27 }
   0xa   : > { %p30_p0 = scmp.ge.s32.totalorder %s29_s7, 2  ;;  %p189_p1 = scmp.ne.s32.totalorder %s7671_s23, %s7667_s22 }
   0xb   : > { %p190_p2 = scmp.eq.s32.totalorder %s6433_s29, 3  ;;  %p195_p5 = scmp.ne.s32.totalorder %s7667_s22, %s7663_s21 }
   0xc   : > { %s10390_s7 = smov (%p30_p0, %s29_s7), 0  ;;  %s10392_s8 = smov (!%p30_p0, %s32_s8), %s7687_s27 }
   0xd   : > { %s175_s9 = ssub.s32 %s7683_s26, %s10390_s7  ;;  %p7794_p3 = por %p190_p2, %p189_p1 }
   0xe   : > { %p34_p4 = scmp.ge.s32.totalorder %s10392_s8, 2  ;;  %p196_p6 = scmp.eq.s32.totalorder %s6434_s30, 3 }
   0xf   : > { %p6437_p7 = scmp.ge.s32.totalorder %s7691_s28, 1  ;;  %p234_p9 = scmp.lt.s32.totalorder %s7691_s28, 5 }
  0x10   : > { %s10394_s8 = smov (%p34_p4, %s10392_s8), 0  ;;  %p7803_p8 = por %p196_p6, %p195_p5 }
  0x11   : > { %10370 = sst [smem:[#allocation10_spill]] %s10394_s8  ;;  %s174_s12 = ssub.s32 %s7687_s27, %s10394_s8 }
  0x12   : > { %s179_s13 = sadd.s32 1, %s7671_s23  ;;  %s176_s14 = sor.u32 %s175_s9, %s174_s12 }
  0x13   : > { %p235_p10 = pnand %p6437_p7, %p234_p9  ;;  %p177_p11 = scmp.eq.s32.totalorder %s176_s14, 0 }
  0x15   : > { %s7812_s15 = scalar_select %p177_p11, %s7671_s23, %s179_s13  }
  0x16   : > { %238 = sbr.rel (%p235_p10) target bundleno = 10171 (0x27bb), region = 40 }
  0x1b   : > { %s10361_s16 = sand.u32 1, %s7667_s22   ;;  %p273_p12 = scmp.lt.s32.totalorder %s7679_s25, 1 }
  0x1c   : > { %s6438_s17 = sshll.u32 %s10361_s16, 8  ;;  %s7819_s18 = sshll.u32 %s7675_s24, 3 }
  0x1d   : > { %p281_p13 = scmp.lt.s32.totalorder %s7819_s18, 15  ;;  %s10372_s0 = sld [smem:[#allocation13_spill]] }
  0x1e   : > { %s274_s19 = scalar_select %p273_p12, %s7679_s25, 1 }
  0x1f   : > { %s282_s20 = scalar_select %p281_p13, %s7819_s18, 15 }
  0x20   : > { %s6672_s29 = sshll.u32 %s274_s19, 7  ;;  %s6442_s30 = sshll.u32 %s274_s19, 4 }
  0x21   : > { %s284_s14 = sadd.s32 %s6442_s30, %s282_s20  ;;  %s10375_s5 = sld [smem:[#allocation14_spill]] }
  0x22   : > { %s6443_s19 = sshll.u32 %s284_s14, 3  ;;  %s7883_s20 = scalar_lea.vmem [#allocation5], %s6438_s17 }
  0x23   : > { %s7827_s13 = scalar_lea.vmem %s10372_s0, %s6672_s29  ;;  %p6445_p0 = scmp.ne.s32.totalorder %s7675_s24, 0 }
  0x24   : > { %v7831_v0 = vld [vmem:[%s7827_s13] sm:$0xff]  ;;  %v7834_v1 = vld [vmem:[%s7827_s13 + $0x8] sm:$0xff]  ;;  %v7837_v2 = vld [vmem:[%s7827_s13 + $0x10] sm:$0xff]  ;;  %s7694_s0 = smov (!%p6445_p0), 64   ;;  %s7695_s29 = smov (!%p6445_p0), 48  }
  0x25   : > { %10373 = vst [vmem:[#allocation11_spill] sm:$0xff] %v7831_v0  ;;  %10374 = vst [vmem:[#allocation12_spill] sm:$0xff] %v7834_v1  ;;  %v7845_v3 = vld [vmem:[%s7827_s13 + $0x18] sm:$0xff]  ;;  %v7848_v4 = vld [vmem:[%s7827_s13 + $0x20] sm:$0xff]  ;;  %309 = sbr.rel (%p6445_p0) target bundleno = 691 (0x2b3), region = 44  ;;  %s7697_s8 = smov (!%p6445_p0), 112  }
  0x26   : > { %v7851_v5 = vld [vmem:[%s7827_s13 + $0x28] sm:$0xff]  ;;  %v7854_v6 = vld [vmem:[%s7827_s13 + $0x30] sm:$0xff]  ;;  %v7857_v7 = vld [vmem:[%s7827_s13 + $0x38] sm:$0xff]  ;;  %s7698_s9 = smov (!%p6445_p0), 96   ;;  %s7699_s17 = smov (!%p6445_p0), 80  }
  0x27   : > { %s7842_s12 = scalar_lea.vmem %s10375_s5, %s6443_s19  ;;  %v7860_v8 = vld [vmem:[%s7827_s13 + $0x40] sm:$0xff]  ;;  %v7863_v9 = vld [vmem:[%s7827_s13 + $0x48] sm:$0xff]  ;;  %v7866_v10 = vld [vmem:[%s7827_s13 + $0x50] sm:$0xff]  ;;  %s7696_s5 = smov (!%p6445_p0), 32  }
  0x28   : > { %v7869_v11 = vld [vmem:[%s7827_s13 + $0x58] sm:$0xff]  ;;  %v7872_v12 = vld [vmem:[%s7827_s13 + $0x60] sm:$0xff]  ;;  %v7875_v13 = vld [vmem:[%s7827_s13 + $0x68] sm:$0xff]  ;;  %s7700_s30 = smov (!%p6445_p0), 16  }
  0x29   : > { %v7878_v14 = vld [vmem:[%s7827_s13 + $0x70] sm:$0xff]  ;;  %v7881_v15 = vld [vmem:[%s7827_s13 + $0x78] sm:$0xff] }
  0x2a   : > { %v325_v16 = vld [vmem:[%s10355_s1 + $0x78] sm:$0xff]  ;;  %v324_v17 = vld [vmem:[%s10355_s1 + $0x70] sm:$0xff]  ;;  %v323_v18 = vld [vmem:[%s10355_s1 + $0x68] sm:$0xff]  ;;  %vm338_vm0 = vcmask 523264   ;;  %v7693_v32 = vmov 0.0   ;;  %v328_v33 = vlaneseq  ;;  %vm564_vm1 = vcmask 130048  }
  0x2b   : > { %403 = vmatprep.subr.mxu0 %v325_v16  ;;  %7389 = vmatprep.subr.mxu1 %v325_v16  ;;  %v322_v19 = vld [vmem:[%s10355_s1 + $0x60] sm:$0xff]  ;;  %v321_v20 = vld [vmem:[%s10355_s1 + $0x58] sm:$0xff]  ;;  %v320_v21 = vld [vmem:[%s10355_s1 + $0x50] sm:$0xff] }
  0x2c   : > { %404 = vmatpush1.msra.mxu0 %v324_v17  ;;  %7397 = vmatpush1.msra.mxu1 %v324_v17  ;;  %v319_v22 = vld [vmem:[%s10355_s1 + $0x48] sm:$0xff]  ;;  %v318_v23 = vld [vmem:[%s10355_s1 + $0x40] sm:$0xff]  ;;  %v317_v24 = vld [vmem:[%s10355_s1 + $0x38] sm:$0xff]  ;;  %v329_v34 = vshrl.u32 %v328_v33, 7 }
  0x2d   : > { %405 = vmatprep.subr.mxu0 %v323_v18  ;;  %7390 = vmatprep.subr.mxu1 %v323_v18  ;;  %v316_v25 = vld [vmem:[%s10355_s1 + $0x30] sm:$0xff]  ;;  %v315_v26 = vld [vmem:[%s10355_s1 + $0x28] sm:$0xff]  ;;  %v314_v27 = vld [vmem:[%s10355_s1 + $0x20] sm:$0xff] }
  0x2e   : > { %406 = vmatpush1.msra.mxu0 %v322_v19  ;;  %7398 = vmatpush1.msra.mxu1 %v322_v19  ;;  %v313_v28 = vld [vmem:[%s10355_s1 + $0x18] sm:$0xff]  ;;  %v312_v29 = vld [vmem:[%s10355_s1 + $0x10] sm:$0xff]  ;;  %v311_v30 = vld [vmem:[%s10355_s1 + $0x8] sm:$0xff]  ;;  %v330_v35 = vsub.s32 0, %v329_v34  ;;  %v334_v37 = vsub.s32 1, %v329_v34 }
  0x2f   : > { %407 = vmatprep.subr.mxu0 %v321_v20  ;;  %7391 = vmatprep.subr.mxu1 %v321_v20  ;;  %v310_v31 = vld [vmem:[%s10355_s1] sm:$0xff] }
  0x30   : > { %408 = vmatpush1.msra.mxu0 %v320_v21  ;;  %7399 = vmatpush1.msra.mxu1 %v320_v21  ;;  %v326_v36 = vld [vmem:[%s10356_s2] sm:$0x3] }
  0x31   : > { %409 = vmatprep.subr.mxu0 %v319_v22  ;;  %7392 = vmatprep.subr.mxu1 %v319_v22  ;;  %v7969_v38 = vrot.slane %v326_v36, %v330_v35  ;;  %v7971_v39 = vrot.slane %v326_v36, %v334_v37 }
  0x32   : > { %410 = vmatpush1.msra.mxu0 %v318_v23  ;;  %7400 = vmatpush1.msra.mxu1 %v318_v23 }
  0x33   : > { %411 = vmatprep.subr.mxu0 %v317_v24  ;;  %7393 = vmatprep.subr.mxu1 %v317_v24 }
  0x34   : > { %412 = vmatpush1.msra.mxu0 %v316_v25  ;;  %7401 = vmatpush1.msra.mxu1 %v316_v25 }
  0x35   : > { %413 = vmatprep.subr.mxu0 %v315_v26  ;;  %7394 = vmatprep.subr.mxu1 %v315_v26 }
  0x36   : > { %414 = vmatpush1.msra.mxu0 %v314_v27  ;;  %7402 = vmatpush1.msra.mxu1 %v314_v27 }
  0x37   : > { %415 = vmatprep.subr.mxu0 %v313_v28  ;;  %7395 = vmatprep.subr.mxu1 %v313_v28 }
  0x38   : > { %416 = vmatpush1.msra.mxu0 %v312_v29  ;;  %7403 = vmatpush1.msra.mxu1 %v312_v29 }
  0x39   : > { %417 = vmatprep.subr.mxu0 %v311_v30  ;;  %7396 = vmatprep.subr.mxu1 %v311_v30 }
  0x3a   : > { %418 = vmatpush1.msra.mxu0 %v310_v31  ;;  %7404 = vmatpush1.msra.mxu1 %v310_v31 }
  0x3b   : > { %451 = vmatprep.mubr.f32.mxu0 %v7693_v32  ;;  %499 = vmatprep.mubr.f32.mxu1 %v7693_v32 }
  0x3c   : > { %6446 = vmatmul.mubr.msk.f32.vlgmr.msra.gmra.mxu0 %vm338_vm0, %v7831_v0  ;;  %6454 = vmatmul.mubr.msk.f32.vlgmr.msra.gmra.mxu1 %vm338_vm0, %v7860_v8 }
  0x3d   : > { %505 = vmatprep.mubr.f32.mxu1 %v7693_v32  ;;  %457 = vmatprep.mubr.f32.mxu0 %v7693_v32 }
  0x40   : > { %6455 = vmatmul.mubr.msk.f32.gmra.mxu1 %vm338_vm0, %v7863_v9  ;;  %6447 = vmatmul.mubr.msk.f32.gmra.mxu0 %vm338_vm0, %v7834_v1 }
  0x41   : > { %463 = vmatprep.mubr.f32.mxu0 %v7693_v32  ;;  %511 = vmatprep.mubr.f32.mxu1 %v7693_v32 }
  0x44   : > { %6448 = vmatmul.mubr.msk.f32.gmra.mxu0 %vm338_vm0, %v7837_v2  ;;  %6456 = vmatmul.mubr.msk.f32.gmra.mxu1 %vm338_vm0, %v7866_v10 }
  0x45   : > { %469 = vmatprep.mubr.f32.mxu0 %v7693_v32  ;;  %517 = vmatprep.mubr.f32.mxu1 %v7693_v32 }
  0x48   : > { %6449 = vmatmul.mubr.msk.f32.gmra.mxu0 %vm338_vm0, %v7845_v3  ;;  %6457 = vmatmul.mubr.msk.f32.gmra.mxu1 %vm338_vm0, %v7869_v11 }
  0x49   : > { %475 = vmatprep.mubr.f32.mxu0 %v7693_v32  ;;  %523 = vmatprep.mubr.f32.mxu1 %v7693_v32 }
  0x4c   : > { %6450 = vmatmul.mubr.msk.f32.gmra.mxu0 %vm338_vm0, %v7848_v4  ;;  %6458 = vmatmul.mubr.msk.f32.gmra.mxu1 %vm338_vm0, %v7872_v12 }
  0x4d   : > { %481 = vmatprep.mubr.f32.mxu0 %v7693_v32  ;;  %529 = vmatprep.mubr.f32.mxu1 %v7693_v32 }
  0x50   : > { %6451 = vmatmul.mubr.msk.f32.gmra.mxu0 %vm338_vm0, %v7851_v5  ;;  %6459 = vmatmul.mubr.msk.f32.gmra.mxu1 %vm338_vm0, %v7875_v13 }
  0x51   : > { %487 = vmatprep.mubr.f32.mxu0 %v7693_v32  ;;  %535 = vmatprep.mubr.f32.mxu1 %v7693_v32 }
  0x54   : > { %6452 = vmatmul.mubr.msk.f32.gmra.mxu0 %vm338_vm0, %v7854_v6  ;;  %6460 = vmatmul.mubr.msk.f32.gmra.mxu1 %vm338_vm0, %v7878_v14 }
  0x55   : > { %493 = vmatprep.mubr.f32.mxu0 %v7693_v32  ;;  %541 = vmatprep.mubr.f32.mxu1 %v7693_v32 }
  0x58   : > { %6453 = vmatmul.mubr.msk.f32.gmra.mxu0 %vm338_vm0, %v7857_v7  ;;  %6461 = vmatmul.mubr.msk.f32.gmra.mxu1 %vm338_vm0, %v7881_v15 }
  0xfc   : > { %v453_v40 = vpop.f32.mrf.mxu0  ;;  %v501_v41 = vpop.f32.mrf.mxu1 }
  0xfd   : > { %v7974_v42 = vadd.f32 %v453_v40, %v7969_v38  ;;  %v7977_v43 = vadd.f32 %v501_v41, %v7969_v38 }
  0xfe   : > { %v503_v44 = vpop.f32.mrf.mxu1  ;;  %v455_v45 = vpop.f32.mrf.mxu0 }
  0xff   : > { %v7980_v46 = vadd.f32 %v503_v44, %v7971_v39  ;;  %597 = vrot.lane.b32.xlu0 %v7974_v42, %s7694_s0  ;;  %v7985_v47 = vadd.f32 %v455_v45, %v7971_v39  ;;  %v7988_v48 = vmul.f32 0.25, %v7974_v42  ;;  %v7991_v49 = vmul.f32 0.25, %v7977_v43 }
 0x100   : > { %v507_v50 = vpop.f32.mrf.mxu1  ;;  %v459_v51 = vpop.f32.mrf.mxu0 }
 0x101   : > { %669 = vst.msk [vmem:[#allocation4 + $0x40] sm:$0xff] %vm564_vm1, %v7980_v46  ;;  %661 = vst.msk [vmem:[#allocation4] sm:$0xff] %vm564_vm1, %v7985_v47  ;;  %v7998_v52 = vadd.f32 %v507_v50, %v7969_v38  ;;  %v8001_v53 = vadd.f32 %v459_v51, %v7969_v38 }
 0x102   : > { %565 = vst.msk [vmem:[#allocation2] sm:$0xff] %vm564_vm1, %v7988_v48  ;;  %573 = vst.msk [vmem:[#allocation2 + $0x40] sm:$0xff] %vm564_vm1, %v7991_v49  ;;  %v509_v54 = vpop.f32.mrf.mxu1  ;;  %v461_v55 = vpop.f32.mrf.mxu0 }
 0x103   : > { %v8008_v56 = vadd.f32 %v509_v54, %v7971_v39  ;;  %615 = vrot.lane.b32.xlu1 %v7998_v52, %s7694_s0  ;;  %613 = vrot.lane.b32.xlu0 %v7977_v43, %s7694_s0  ;;  %v8015_v57 = vadd.f32 %v461_v55, %v7971_v39  ;;  %v8018_v58 = vmul.f32 0.25, %v8001_v53  ;;  %v8021_v59 = vmul.f32 0.25, %v7998_v52 }
 0x104   : > { %v465_v60 = vpop.f32.mrf.mxu0  ;;  %v513_v61 = vpop.f32.mrf.mxu1 }
 0x105   : > { %670 = vst.msk [vmem:[#allocation4 + $0x48] sm:$0xff] %vm564_vm1, %v8008_v56  ;;  %662 = vst.msk [vmem:[#allocation4 + $0x8] sm:$0xff] %vm564_vm1, %v8015_v57  ;;  %v8032_v62 = vadd.f32 %v465_v60, %v7969_v38  ;;  %v8035_v63 = vadd.f32 %v513_v61, %v7969_v38 }
 0x106   : > { %566 = vst.msk [vmem:[#allocation2 + $0x8] sm:$0xff] %vm564_vm1, %v8018_v58  ;;  %574 = vst.msk [vmem:[#allocation2 + $0x48] sm:$0xff] %vm564_vm1, %v8021_v59  ;;  %v467_v16 = vpop.f32.mrf.mxu0  ;;  %v515_v17 = vpop.f32.mrf.mxu1 }
 0x107   : > { %760 = vrot.lane.b32.xlu1 %v8001_v53, %s7695_s29  ;;  %758 = vrot.lane.b32.xlu0 %v7974_v42, %s7695_s29  ;;  %v8042_v18 = vadd.f32 %v467_v16, %v7971_v39  ;;  %v8045_v19 = vadd.f32 %v515_v17, %v7971_v39  ;;  %v8048_v20 = vmul.f32 0.25, %v8032_v62  ;;  %v8051_v21 = vmul.f32 0.25, %v8035_v63 }
 0x108   : > { %v471_v22 = vpop.f32.mrf.mxu0  ;;  %v519_v23 = vpop.f32.mrf.mxu1 }
 0x109   : > { %663 = vst.msk [vmem:[#allocation4 + $0x10] sm:$0xff] %vm564_vm1, %v8042_v18  ;;  %v8056_v24 = vadd.f32 %v471_v22, %v7969_v38  ;;  %671 = vst.msk [vmem:[#allocation4 + $0x50] sm:$0xff] %vm564_vm1, %v8045_v19  ;;  %v8061_v25 = vadd.f32 %v519_v23, %v7969_v38 }
 0x10a   : > { %567 = vst.msk [vmem:[#allocation2 + $0x10] sm:$0xff] %vm564_vm1, %v8048_v20  ;;  %575 = vst.msk [vmem:[#allocation2 + $0x50] sm:$0xff] %vm564_vm1, %v8051_v21  ;;  %v473_v26 = vpop.f32.mrf.mxu0  ;;  %v521_v27 = vpop.f32.mrf.mxu1 }
 0x10b   : > { %776 = vrot.lane.b32.xlu1 %v7998_v52, %s7695_s29  ;;  %774 = vrot.lane.b32.xlu0 %v7977_v43, %s7695_s29  ;;  %v8072_v28 = vadd.f32 %v473_v26, %v7971_v39  ;;  %v8075_v29 = vadd.f32 %v521_v27, %v7971_v39  ;;  %v8078_v30 = vmul.f32 0.25, %v8056_v24  ;;  %v8081_v31 = vmul.f32 0.25, %v8061_v25 }
 0x10c   : > { %v477_v32 = vpop.f32.mrf.mxu0  ;;  %v525_v33 = vpop.f32.mrf.mxu1 }
 0x10d   : > { %664 = vst.msk [vmem:[#allocation4 + $0x18] sm:$0xff] %vm564_vm1, %v8072_v28  ;;  %672 = vst.msk [vmem:[#allocation4 + $0x58] sm:$0xff] %vm564_vm1, %v8075_v29  ;;  %v8092_v34 = vadd.f32 %v477_v32, %v7969_v38  ;;  %v8095_v35 = vadd.f32 %v525_v33, %v7969_v38 }
 0x10e   : > { %568 = vst.msk [vmem:[#allocation2 + $0x18] sm:$0xff] %vm564_vm1, %v8078_v30  ;;  %576 = vst.msk [vmem:[#allocation2 + $0x58] sm:$0xff] %vm564_vm1, %v8081_v31  ;;  %v479_v36 = vpop.f32.mrf.mxu0  ;;  %v527_v37 = vpop.f32.mrf.mxu1 }
 0x10f   : > { %971 = vrot.lane.b32.xlu1 %v8001_v53, %s7696_s5  ;;  %969 = vrot.lane.b32.xlu0 %v7974_v42, %s7696_s5  ;;  %v8102_v40 = vadd.f32 %v479_v36, %v7971_v39  ;;  %v8105_v41 = vadd.f32 %v527_v37, %v7971_v39  ;;  %v8108_v44 = vmul.f32 0.25, %v8092_v34  ;;  %v8111_v45 = vmul.f32 0.25, %v8095_v35 }
 0x110   : > { %v483_v50 = vpop.f32.mrf.mxu0  ;;  %v531_v51 = vpop.f32.mrf.mxu1 }
 0x111   : > { %665 = vst.msk [vmem:[#allocation4 + $0x20] sm:$0xff] %vm564_vm1, %v8102_v40  ;;  %v8116_v54 = vadd.f32 %v483_v50, %v7969_v38  ;;  %673 = vst.msk [vmem:[#allocation4 + $0x60] sm:$0xff] %vm564_vm1, %v8105_v41  ;;  %v8121_v55 = vadd.f32 %v531_v51, %v7969_v38 }
 0x112   : > { %569 = vst.msk [vmem:[#allocation2 + $0x20] sm:$0xff] %vm564_vm1, %v8108_v44  ;;  %577 = vst.msk [vmem:[#allocation2 + $0x60] sm:$0xff] %vm564_vm1, %v8111_v45  ;;  %v485_v60 = vpop.f32.mrf.mxu0  ;;  %v533_v61 = vpop.f32.mrf.mxu1 }
 0x113   : > { %987 = vrot.lane.b32.xlu1 %v7998_v52, %s7696_s5  ;;  %985 = vrot.lane.b32.xlu0 %v7977_v43, %s7696_s5  ;;  %v8132_v16 = vadd.f32 %v485_v60, %v7971_v39  ;;  %v8135_v17 = vadd.f32 %v533_v61, %v7971_v39  ;;  %v8138_v22 = vmul.f32 0.25, %v8116_v54  ;;  %v8141_v23 = vmul.f32 0.25, %v8121_v55 }
 0x114   : > { %v489_v26 = vpop.f32.mrf.mxu0  ;;  %v537_v36 = vpop.f32.mrf.mxu1 }
 0x115   : > { %666 = vst.msk [vmem:[#allocation4 + $0x28] sm:$0xff] %vm564_vm1, %v8132_v16  ;;  %674 = vst.msk [vmem:[#allocation4 + $0x68] sm:$0xff] %vm564_vm1, %v8135_v17  ;;  %v8187_v33 = vadd.f32 %v489_v26, %v7969_v38 }
 0x116   : > { %570 = vst.msk [vmem:[#allocation2 + $0x28] sm:$0xff] %vm564_vm1, %v8138_v22  ;;  %578 = vst.msk [vmem:[#allocation2 + $0x68] sm:$0xff] %vm564_vm1, %v8141_v23  ;;  %v491_v27 = vpop.f32.mrf.mxu0  ;;  %v539_v51 = vpop.f32.mrf.mxu1 }
 0x117   : > { %695 = vrot.lane.b32.xlu1 %v8018_v58, %s7697_s8  ;;  %693 = vrot.lane.b32.xlu0 %v7988_v48, %s7697_s8  ;;  %v8184_v32 = vadd.f32 %v491_v27, %v7971_v39  ;;  %v8199_v60 = vmul.f32 0.25, %v8187_v33  ;;  %v8202_v26 = vadd.f32 %v539_v51, %v7971_v39  ;;  %v8205_v27 = vadd.f32 %v537_v36, %v7969_v38 }
 0x118   : > { %v495_v37 = vpop.f32.mrf.mxu0 }
 0x119   : > { %667 = vst.msk [vmem:[#allocation4 + $0x30] sm:$0xff] %vm564_vm1, %v8184_v32  ;;  %v8196_v50 = vadd.f32 %v495_v37, %v7969_v38  ;;  %571 = vst.msk [vmem:[#allocation2 + $0x30] sm:$0xff] %vm564_vm1, %v8199_v60  ;;  %v8224_v36 = vmul.f32 0.25, %v8205_v27 }
 0x11a   : > { %v497_v61 = vpop.f32.mrf.mxu0  ;;  %675 = vst.msk [vmem:[#allocation4 + $0x70] sm:$0xff] %vm564_vm1, %v8202_v26 }
 0x11b   : > { %711 = vrot.lane.b32.xlu1 %v8021_v59, %s7697_s8  ;;  %709 = vrot.lane.b32.xlu0 %v7991_v49, %s7697_s8  ;;  %v8208_v0 = vadd.f32 %v497_v61, %v7971_v39  ;;  %v8227_v37 = vmul.f32 0.25, %v8196_v50  ;;  %579 = vst.msk [vmem:[#allocation2 + $0x70] sm:$0xff] %vm564_vm1, %v8224_v36 }
 0x11d   : > { %668 = vst.msk [vmem:[#allocation4 + $0x38] sm:$0xff] %vm564_vm1, %v8208_v0  ;;  %572 = vst.msk [vmem:[#allocation2 + $0x38] sm:$0xff] %vm564_vm1, %v8227_v37 }
 0x11f   : > { %841 = vrot.lane.b32.xlu1 %v8015_v57, %s7697_s8  ;;  %839 = vrot.lane.b32.xlu0 %v7985_v47, %s7697_s8 }
 0x123   : > { %857 = vrot.lane.b32.xlu1 %v8008_v56, %s7697_s8  ;;  %855 = vrot.lane.b32.xlu0 %v7980_v46, %s7697_s8 }
 0x127   : > { %906 = vrot.lane.b32.xlu1 %v8018_v58, %s7698_s9  ;;  %904 = vrot.lane.b32.xlu0 %v7988_v48, %s7698_s9 }
 0x12b   : > { %922 = vrot.lane.b32.xlu1 %v8021_v59, %s7698_s9  ;;  %920 = vrot.lane.b32.xlu0 %v7991_v49, %s7698_s9 }
 0x12f   : > { %1036 = vrot.lane.b32.xlu1 %v8015_v57, %s7698_s9  ;;  %1034 = vrot.lane.b32.xlu0 %v7985_v47, %s7698_s9 }
 0x133   : > { %1052 = vrot.lane.b32.xlu1 %v8008_v56, %s7698_s9  ;;  %1050 = vrot.lane.b32.xlu0 %v7980_v46, %s7698_s9 }
 0x137   : > { %1101 = vrot.lane.b32.xlu1 %v8018_v58, %s7699_s17  ;;  %1099 = vrot.lane.b32.xlu0 %v7988_v48, %s7699_s17  ;;  %v543_v48 = vpop.f32.mrf.mxu1 }
 0x138   : > { %v8221_v58 = vadd.f32 %v543_v48, %v7969_v38 }
 0x139   : > { %v545_v51 = vpop.f32.mrf.mxu1 }
 0x13a   : > { %v8230_v61 = vadd.f32 %v545_v51, %v7971_v39  ;;  %v8243_v38 = vmul.f32 0.25, %v8221_v58 }
 0x13b   : > { %601 = vrot.lane.b32.xlu1 %v8032_v62, %s7694_s0  ;;  %599 = vrot.lane.b32.xlu0 %v8001_v53, %s7694_s0 }
 0x13c   : > { %676 = vst.msk [vmem:[#allocation4 + $0x78] sm:$0xff] %vm564_vm1, %v8230_v61  ;;  %580 = vst.msk [vmem:[#allocation2 + $0x78] sm:$0xff] %vm564_vm1, %v8243_v38 }
 0x13f   : > { %603 = vrot.lane.b32.xlu1 %v8056_v24, %s7694_s0  ;;  %617 = vrot.lane.b32.xlu0 %v8035_v63, %s7694_s0 }
 0x143   : > { %619 = vrot.lane.b32.xlu1 %v8061_v25, %s7694_s0  ;;  %762 = vrot.lane.b32.xlu0 %v8032_v62, %s7695_s29 }
 0x147   : > { %764 = vrot.lane.b32.xlu1 %v8056_v24, %s7695_s29  ;;  %778 = vrot.lane.b32.xlu0 %v8035_v63, %s7695_s29 }
 0x14b   : > { %780 = vrot.lane.b32.xlu1 %v8061_v25, %s7695_s29  ;;  %973 = vrot.lane.b32.xlu0 %v8032_v62, %s7696_s5 }
 0x14f   : > { %975 = vrot.lane.b32.xlu1 %v8056_v24, %s7696_s5  ;;  %989 = vrot.lane.b32.xlu0 %v8035_v63, %s7696_s5 }
 0x153   : > { %991 = vrot.lane.b32.xlu1 %v8061_v25, %s7696_s5  ;;  %697 = vrot.lane.b32.xlu0 %v8048_v20, %s7697_s8 }
 0x157   : > { %699 = vrot.lane.b32.xlu1 %v8078_v30, %s7697_s8  ;;  %713 = vrot.lane.b32.xlu0 %v8051_v21, %s7697_s8 }
 0x15b   : > { %715 = vrot.lane.b32.xlu1 %v8081_v31, %s7697_s8  ;;  %843 = vrot.lane.b32.xlu0 %v8042_v18, %s7697_s8 }
 0x15f   : > { %845 = vrot.lane.b32.xlu1 %v8072_v28, %s7697_s8  ;;  %859 = vrot.lane.b32.xlu0 %v8045_v19, %s7697_s8 }
 0x163   : > { %861 = vrot.lane.b32.xlu1 %v8075_v29, %s7697_s8  ;;  %908 = vrot.lane.b32.xlu0 %v8048_v20, %s7698_s9 }
 0x167   : > { %910 = vrot.lane.b32.xlu1 %v8078_v30, %s7698_s9  ;;  %924 = vrot.lane.b32.xlu0 %v8051_v21, %s7698_s9 }
 0x16b   : > { %926 = vrot.lane.b32.xlu1 %v8081_v31, %s7698_s9  ;;  %1038 = vrot.lane.b32.xlu0 %v8042_v18, %s7698_s9 }
 0x16f   : > { %1040 = vrot.lane.b32.xlu1 %v8072_v28, %s7698_s9  ;;  %1054 = vrot.lane.b32.xlu0 %v8045_v19, %s7698_s9 }
 0x171   : > { %v598_v39 = vpop.permute.xlu0 %597 }
 0x172   : > { %645 = vst.msk [vmem:[#allocation3] sm:$0xff] %vm564_vm1, %v598_v39 }
 0x173   : > { %1056 = vrot.lane.b32.xlu1 %v8075_v29, %s7698_s9  ;;  %1103 = vrot.lane.b32.xlu0 %v8048_v20, %s7699_s17 }
 0x175   : > { %v616_v48 = vpop.permute.xlu1 %615  ;;  %v614_v51 = vpop.permute.xlu0 %613 }
 0x176   : > { %654 = vst.msk [vmem:[#allocation3 + $0x48] sm:$0xff] %vm564_vm1, %v616_v48  ;;  %653 = vst.msk [vmem:[#allocation3 + $0x40] sm:$0xff] %vm564_vm1, %v614_v51 }
 0x177   : > { %1105 = vrot.lane.b32.xlu1 %v8078_v30, %s7699_s17  ;;  %605 = vrot.lane.b32.xlu0 %v8092_v34, %s7694_s0 }
 0x179   : > { %v761_v1 = vpop.permute.xlu1 %760  ;;  %v759_v39 = vpop.permute.xlu0 %758 }
 0x17a   : > { %808 = vst.msk [vmem:[#allocation3 + $0x88] sm:$0xff] %vm564_vm1, %v761_v1  ;;  %807 = vst.msk [vmem:[#allocation3 + $0x80] sm:$0xff] %vm564_vm1, %v759_v39 }
 0x17b   : > { %607 = vrot.lane.b32.xlu1 %v8116_v54, %s7694_s0  ;;  %621 = vrot.lane.b32.xlu0 %v8095_v35, %s7694_s0 }
 0x17d   : > { %v777_v20 = vpop.permute.xlu1 %776  ;;  %v775_v48 = vpop.permute.xlu0 %774 }
 0x17e   : > { %816 = vst.msk [vmem:[#allocation3 + $0xc8] sm:$0xff] %vm564_vm1, %v777_v20  ;;  %815 = vst.msk [vmem:[#allocation3 + $0xc0] sm:$0xff] %vm564_vm1, %v775_v48 }
 0x17f   : > { %623 = vrot.lane.b32.xlu1 %v8121_v55, %s7694_s0  ;;  %766 = vrot.lane.b32.xlu0 %v8092_v34, %s7695_s29 }
 0x181   : > { %v972_v1 = vpop.permute.xlu1 %971  ;;  %v970_v30 = vpop.permute.xlu0 %969 }
 0x182   : > { %1019 = vst.msk [vmem:[#allocation3 + $0x108] sm:$0xff] %vm564_vm1, %v972_v1  ;;  %1018 = vst.msk [vmem:[#allocation3 + $0x100] sm:$0xff] %vm564_vm1, %v970_v30 }
 0x183   : > { %768 = vrot.lane.b32.xlu1 %v8116_v54, %s7695_s29  ;;  %782 = vrot.lane.b32.xlu0 %v8095_v35, %s7695_s29 }
 0x185   : > { %v988_v51 = vpop.permute.xlu1 %987  ;;  %v986_v39 = vpop.permute.xlu0 %985 }
 0x186   : > { %1027 = vst.msk [vmem:[#allocation3 + $0x148] sm:$0xff] %vm564_vm1, %v988_v51  ;;  %1026 = vst.msk [vmem:[#allocation3 + $0x140] sm:$0xff] %vm564_vm1, %v986_v39 }
 0x187   : > { %784 = vrot.lane.b32.xlu1 %v8121_v55, %s7695_s29  ;;  %977 = vrot.lane.b32.xlu0 %v8092_v34, %s7696_s5 }
 0x189   : > { %v696_v20 = vpop.permute.xlu1 %695  ;;  %v694_v48 = vpop.permute.xlu0 %693 }
 0x18a   : > { %743 = vst.msk [vmem:[#allocation2 + $0x88] sm:$0xff] %vm564_vm1, %v696_v20  ;;  %742 = vst.msk [vmem:[#allocation2 + $0x80] sm:$0xff] %vm564_vm1, %v694_v48 }
 0x18b   : > { %979 = vrot.lane.b32.xlu1 %v8116_v54, %s7696_s5  ;;  %993 = vrot.lane.b32.xlu0 %v8095_v35, %s7696_s5 }
 0x18d   : > { %v712_v1 = vpop.permute.xlu1 %711  ;;  %v710_v30 = vpop.permute.xlu0 %709 }
 0x18e   : > { %751 = vst.msk [vmem:[#allocation2 + $0xc8] sm:$0xff] %vm564_vm1, %v712_v1  ;;  %750 = vst.msk [vmem:[#allocation2 + $0xc0] sm:$0xff] %vm564_vm1, %v710_v30 }
 0x18f   : > { %995 = vrot.lane.b32.xlu1 %v8121_v55, %s7696_s5  ;;  %701 = vrot.lane.b32.xlu0 %v8108_v44, %s7697_s8 }
 0x191   : > { %v842_v51 = vpop.permute.xlu1 %841  ;;  %v840_v39 = vpop.permute.xlu0 %839 }
 0x192   : > { %889 = vst.msk [vmem:[#allocation4 + $0x88] sm:$0xff] %vm564_vm1, %v842_v51  ;;  %888 = vst.msk [vmem:[#allocation4 + $0x80] sm:$0xff] %vm564_vm1, %v840_v39 }
 0x193   : > { %703 = vrot.lane.b32.xlu1 %v8138_v22, %s7697_s8  ;;  %717 = vrot.lane.b32.xlu0 %v8111_v45, %s7697_s8 }
 0x195   : > { %v858_v20 = vpop.permute.xlu1 %857  ;;  %v856_v48 = vpop.permute.xlu0 %855 }
 0x196   : > { %897 = vst.msk [vmem:[#allocation4 + $0xc8] sm:$0xff] %vm564_vm1, %v858_v20  ;;  %896 = vst.msk [vmem:[#allocation4 + $0xc0] sm:$0xff] %vm564_vm1, %v856_v48 }
 0x197   : > { %719 = vrot.lane.b32.xlu1 %v8141_v23, %s7697_s8  ;;  %847 = vrot.lane.b32.xlu0 %v8102_v40, %s7697_s8 }
 0x199   : > { %v907_v1 = vpop.permute.xlu1 %906  ;;  %v905_v30 = vpop.permute.xlu0 %904 }
 0x19a   : > { %954 = vst.msk [vmem:[#allocation2 + $0x108] sm:$0xff] %vm564_vm1, %v907_v1  ;;  %953 = vst.msk [vmem:[#allocation2 + $0x100] sm:$0xff] %vm564_vm1, %v905_v30 }
 0x19b   : > { %849 = vrot.lane.b32.xlu1 %v8132_v16, %s7697_s8  ;;  %863 = vrot.lane.b32.xlu0 %v8105_v41, %s7697_s8 }
 0x19d   : > { %v923_v51 = vpop.permute.xlu1 %922  ;;  %v921_v39 = vpop.permute.xlu0 %920 }
 0x19e   : > { %962 = vst.msk [vmem:[#allocation2 + $0x148] sm:$0xff] %vm564_vm1, %v923_v51  ;;  %961 = vst.msk [vmem:[#allocation2 + $0x140] sm:$0xff] %vm564_vm1, %v921_v39 }
 0x19f   : > { %865 = vrot.lane.b32.xlu1 %v8135_v17, %s7697_s8  ;;  %912 = vrot.lane.b32.xlu0 %v8108_v44, %s7698_s9 }
 0x1a1   : > { %v1037_v20 = vpop.permute.xlu1 %1036  ;;  %v1035_v48 = vpop.permute.xlu0 %1034 }
 0x1a2   : > { %1084 = vst.msk [vmem:[#allocation4 + $0x108] sm:$0xff] %vm564_vm1, %v1037_v20  ;;  %1083 = vst.msk [vmem:[#allocation4 + $0x100] sm:$0xff] %vm564_vm1, %v1035_v48 }
 0x1a3   : > { %914 = vrot.lane.b32.xlu1 %v8138_v22, %s7698_s9  ;;  %928 = vrot.lane.b32.xlu0 %v8111_v45, %s7698_s9 }
 0x1a5   : > { %v1053_v1 = vpop.permute.xlu1 %1052  ;;  %v1051_v30 = vpop.permute.xlu0 %1050 }
 0x1a6   : > { %1092 = vst.msk [vmem:[#allocation4 + $0x148] sm:$0xff] %vm564_vm1, %v1053_v1  ;;  %1091 = vst.msk [vmem:[#allocation4 + $0x140] sm:$0xff] %vm564_vm1, %v1051_v30 }
 0x1a7   : > { %930 = vrot.lane.b32.xlu1 %v8141_v23, %s7698_s9  ;;  %1042 = vrot.lane.b32.xlu0 %v8102_v40, %s7698_s9 }
 0x1a9   : > { %v1102_v51 = vpop.permute.xlu1 %1101  ;;  %v1100_v39 = vpop.permute.xlu0 %1099 }
 0x1aa   : > { %1149 = vst.msk [vmem:[#allocation2 + $0x188] sm:$0xff] %vm564_vm1, %v1102_v51  ;;  %1148 = vst.msk [vmem:[#allocation2 + $0x180] sm:$0xff] %vm564_vm1, %v1100_v39 }
 0x1ab   : > { %1044 = vrot.lane.b32.xlu1 %v8132_v16, %s7698_s9  ;;  %1058 = vrot.lane.b32.xlu0 %v8105_v41, %s7698_s9 }
 0x1ad   : > { %v602_v20 = vpop.permute.xlu1 %601  ;;  %v600_v48 = vpop.permute.xlu0 %599 }
 0x1ae   : > { %647 = vst.msk [vmem:[#allocation3 + $0x10] sm:$0xff] %vm564_vm1, %v602_v20  ;;  %646 = vst.msk [vmem:[#allocation3 + $0x8] sm:$0xff] %vm564_vm1, %v600_v48 }
 0x1af   : > { %1060 = vrot.lane.b32.xlu1 %v8135_v17, %s7698_s9  ;;  %1107 = vrot.lane.b32.xlu0 %v8108_v44, %s7699_s17 }
 0x1b1   : > { %v604_v1 = vpop.permute.xlu1 %603  ;;  %v618_v30 = vpop.permute.xlu0 %617 }
 0x1b2   : > { %648 = vst.msk [vmem:[#allocation3 + $0x18] sm:$0xff] %vm564_vm1, %v604_v1  ;;  %655 = vst.msk [vmem:[#allocation3 + $0x50] sm:$0xff] %vm564_vm1, %v618_v30 }
 0x1b3   : > { %1109 = vrot.lane.b32.xlu1 %v8138_v22, %s7699_s17  ;;  %609 = vrot.lane.b32.xlu0 %v8187_v33, %s7694_s0 }
 0x1b5   : > { %v620_v51 = vpop.permute.xlu1 %619  ;;  %v763_v39 = vpop.permute.xlu0 %762 }
 0x1b6   : > { %656 = vst.msk [vmem:[#allocation3 + $0x58] sm:$0xff] %vm564_vm1, %v620_v51  ;;  %809 = vst.msk [vmem:[#allocation3 + $0x90] sm:$0xff] %vm564_vm1, %v763_v39 }
 0x1b7   : > { %1117 = vrot.lane.b32.xlu1 %v8021_v59, %s7699_s17  ;;  %625 = vrot.lane.b32.xlu0 %v8205_v27, %s7694_s0 }
 0x1b9   : > { %v765_v44 = vpop.permute.xlu1 %764  ;;  %v779_v20 = vpop.permute.xlu0 %778 }
 0x1ba   : > { %810 = vst.msk [vmem:[#allocation3 + $0x98] sm:$0xff] %vm564_vm1, %v765_v44  ;;  %817 = vst.msk [vmem:[#allocation3 + $0xd0] sm:$0xff] %vm564_vm1, %v779_v20 }
 0x1bb   : > { %611 = vrot.lane.b32.xlu1 %v8196_v50, %s7694_s0  ;;  %770 = vrot.lane.b32.xlu0 %v8187_v33, %s7695_s29 }
 0x1bd   : > { %v781_v22 = vpop.permute.xlu1 %780  ;;  %v974_v48 = vpop.permute.xlu0 %973 }
 0x1be   : > { %818 = vst.msk [vmem:[#allocation3 + $0xd8] sm:$0xff] %vm564_vm1, %v781_v22  ;;  %1020 = vst.msk [vmem:[#allocation3 + $0x110] sm:$0xff] %vm564_vm1, %v974_v48 }
 0x1bf   : > { %627 = vrot.lane.b32.xlu1 %v8221_v58, %s7694_s0  ;;  %786 = vrot.lane.b32.xlu0 %v8205_v27, %s7695_s29 }
 0x1c1   : > { %v976_v59 = vpop.permute.xlu1 %975  ;;  %v990_v1 = vpop.permute.xlu0 %989 }
 0x1c2   : > { %1021 = vst.msk [vmem:[#allocation3 + $0x118] sm:$0xff] %vm564_vm1, %v976_v59  ;;  %1028 = vst.msk [vmem:[#allocation3 + $0x150] sm:$0xff] %vm564_vm1, %v990_v1 }
 0x1c3   : > { %772 = vrot.lane.b32.xlu1 %v8196_v50, %s7695_s29  ;;  %981 = vrot.lane.b32.xlu0 %v8187_v33, %s7696_s5 }
 0x1c5   : > { %v992_v30 = vpop.permute.xlu1 %991  ;;  %v698_v51 = vpop.permute.xlu0 %697 }
 0x1c6   : > { %1029 = vst.msk [vmem:[#allocation3 + $0x158] sm:$0xff] %vm564_vm1, %v992_v30  ;;  %744 = vst.msk [vmem:[#allocation2 + $0x90] sm:$0xff] %vm564_vm1, %v698_v51 }
 0x1c7   : > { %788 = vrot.lane.b32.xlu1 %v8221_v58, %s7695_s29  ;;  %997 = vrot.lane.b32.xlu0 %v8205_v27, %s7696_s5 }
 0x1c9   : > { %v700_v39 = vpop.permute.xlu1 %699  ;;  %v714_v44 = vpop.permute.xlu0 %713 }
 0x1ca   : > { %745 = vst.msk [vmem:[#allocation2 + $0x98] sm:$0xff] %vm564_vm1, %v700_v39  ;;  %752 = vst.msk [vmem:[#allocation2 + $0xd0] sm:$0xff] %vm564_vm1, %v714_v44 }
 0x1cb   : > { %983 = vrot.lane.b32.xlu1 %v8196_v50, %s7696_s5  ;;  %705 = vrot.lane.b32.xlu0 %v8199_v60, %s7697_s8 }
 0x1cd   : > { %v716_v20 = vpop.permute.xlu1 %715  ;;  %v844_v22 = vpop.permute.xlu0 %843 }
 0x1ce   : > { %753 = vst.msk [vmem:[#allocation2 + $0xd8] sm:$0xff] %vm564_vm1, %v716_v20  ;;  %890 = vst.msk [vmem:[#allocation4 + $0x90] sm:$0xff] %vm564_vm1, %v844_v22 }
 0x1cf   : > { %999 = vrot.lane.b32.xlu1 %v8221_v58, %s7696_s5  ;;  %721 = vrot.lane.b32.xlu0 %v8224_v36, %s7697_s8 }
 0x1d1   : > { %v846_v48 = vpop.permute.xlu1 %845  ;;  %v860_v59 = vpop.permute.xlu0 %859 }
 0x1d2   : > { %891 = vst.msk [vmem:[#allocation4 + $0x98] sm:$0xff] %vm564_vm1, %v846_v48  ;;  %898 = vst.msk [vmem:[#allocation4 + $0xd0] sm:$0xff] %vm564_vm1, %v860_v59 }
 0x1d3   : > { %707 = vrot.lane.b32.xlu1 %v8227_v37, %s7697_s8  ;;  %851 = vrot.lane.b32.xlu0 %v8184_v32, %s7697_s8 }
 0x1d5   : > { %v862_v1 = vpop.permute.xlu1 %861  ;;  %v909_v30 = vpop.permute.xlu0 %908 }
 0x1d6   : > { %899 = vst.msk [vmem:[#allocation4 + $0xd8] sm:$0xff] %vm564_vm1, %v862_v1  ;;  %955 = vst.msk [vmem:[#allocation2 + $0x110] sm:$0xff] %vm564_vm1, %v909_v30 }
 0x1d7   : > { %723 = vrot.lane.b32.xlu1 %v8243_v38, %s7697_s8  ;;  %867 = vrot.lane.b32.xlu0 %v8202_v26, %s7697_s8 }
 0x1d9   : > { %v911_v51 = vpop.permute.xlu1 %910  ;;  %v925_v39 = vpop.permute.xlu0 %924 }
 0x1da   : > { %956 = vst.msk [vmem:[#allocation2 + $0x118] sm:$0xff] %vm564_vm1, %v911_v51  ;;  %963 = vst.msk [vmem:[#allocation2 + $0x150] sm:$0xff] %vm564_vm1, %v925_v39 }
 0x1db   : > { %853 = vrot.lane.b32.xlu1 %v8208_v0, %s7697_s8  ;;  %916 = vrot.lane.b32.xlu0 %v8199_v60, %s7698_s9 }
 0x1dd   : > { %v927_v44 = vpop.permute.xlu1 %926  ;;  %v1039_v20 = vpop.permute.xlu0 %1038 }
 0x1de   : > { %964 = vst.msk [vmem:[#allocation2 + $0x158] sm:$0xff] %vm564_vm1, %v927_v44  ;;  %1085 = vst.msk [vmem:[#allocation4 + $0x110] sm:$0xff] %vm564_vm1, %v1039_v20 }
 0x1df   : > { %869 = vrot.lane.b32.xlu1 %v8230_v61, %s7697_s8  ;;  %932 = vrot.lane.b32.xlu0 %v8224_v36, %s7698_s9 }
 0x1e1   : > { %v1041_v22 = vpop.permute.xlu1 %1040  ;;  %v1055_v48 = vpop.permute.xlu0 %1054 }
 0x1e2   : > { %1086 = vst.msk [vmem:[#allocation4 + $0x118] sm:$0xff] %vm564_vm1, %v1041_v22  ;;  %1093 = vst.msk [vmem:[#allocation4 + $0x150] sm:$0xff] %vm564_vm1, %v1055_v48 }
 0x1e3   : > { %918 = vrot.lane.b32.xlu1 %v8227_v37, %s7698_s9  ;;  %1046 = vrot.lane.b32.xlu0 %v8184_v32, %s7698_s9 }
 0x1e5   : > { %v1057_v59 = vpop.permute.xlu1 %1056  ;;  %v1104_v1 = vpop.permute.xlu0 %1103 }
 0x1e6   : > { %1094 = vst.msk [vmem:[#allocation4 + $0x158] sm:$0xff] %vm564_vm1, %v1057_v59  ;;  %1150 = vst.msk [vmem:[#allocation2 + $0x190] sm:$0xff] %vm564_vm1, %v1104_v1 }
 0x1e7   : > { %934 = vrot.lane.b32.xlu1 %v8243_v38, %s7698_s9  ;;  %1062 = vrot.lane.b32.xlu0 %v8202_v26, %s7698_s9 }
 0x1e9   : > { %v1106_v30 = vpop.permute.xlu1 %1105  ;;  %v606_v51 = vpop.permute.xlu0 %605 }
 0x1ea   : > { %1151 = vst.msk [vmem:[#allocation2 + $0x198] sm:$0xff] %vm564_vm1, %v1106_v30  ;;  %649 = vst.msk [vmem:[#allocation3 + $0x20] sm:$0xff] %vm564_vm1, %v606_v51 }
 0x1eb   : > { %1048 = vrot.lane.b32.xlu1 %v8208_v0, %s7698_s9  ;;  %1111 = vrot.lane.b32.xlu0 %v8199_v60, %s7699_s17 }
 0x1ed   : > { %v608_v39 = vpop.permute.xlu1 %607  ;;  %v622_v44 = vpop.permute.xlu0 %621 }
 0x1ee   : > { %650 = vst.msk [vmem:[#allocation3 + $0x28] sm:$0xff] %vm564_vm1, %v608_v39  ;;  %657 = vst.msk [vmem:[#allocation3 + $0x60] sm:$0xff] %vm564_vm1, %v622_v44 }
 0x1ef   : > { %1064 = vrot.lane.b32.xlu1 %v8230_v61, %s7698_s9  ;;  %1115 = vrot.lane.b32.xlu0 %v7991_v49, %s7699_s17 }
 0x1f1   : > { %v624_v20 = vpop.permute.xlu1 %623  ;;  %v767_v22 = vpop.permute.xlu0 %766 }
 0x1f2   : > { %658 = vst.msk [vmem:[#allocation3 + $0x68] sm:$0xff] %vm564_vm1, %v624_v20  ;;  %811 = vst.msk [vmem:[#allocation3 + $0xa0] sm:$0xff] %vm564_vm1, %v767_v22 }
 0x1f3   : > { %1113 = vrot.lane.b32.xlu1 %v8227_v37, %s7699_s17  ;;  %1119 = vrot.lane.b32.xlu0 %v8051_v21, %s7699_s17 }
 0x1f5   : > { %v769_v60 = vpop.permute.xlu1 %768  ;;  %v783_v48 = vpop.permute.xlu0 %782 }
 0x1f6   : > { %812 = vst.msk [vmem:[#allocation3 + $0xa8] sm:$0xff] %vm564_vm1, %v769_v60  ;;  %819 = vst.msk [vmem:[#allocation3 + $0xe0] sm:$0xff] %vm564_vm1, %v783_v48 }
 0x1f7   : > { %1121 = vrot.lane.b32.xlu1 %v8081_v31, %s7699_s17  ;;  %1123 = vrot.lane.b32.xlu0 %v8111_v45, %s7699_s17 }
 0x1f9   : > { %v785_v49 = vpop.permute.xlu1 %784  ;;  %v978_v59 = vpop.permute.xlu0 %977 }
 0x1fa   : > { %820 = vst.msk [vmem:[#allocation3 + $0xe8] sm:$0xff] %vm564_vm1, %v785_v49  ;;  %1022 = vst.msk [vmem:[#allocation3 + $0x120] sm:$0xff] %vm564_vm1, %v978_v59 }
 0x1fb   : > { %1125 = vrot.lane.b32.xlu1 %v8141_v23, %s7699_s17  ;;  %1127 = vrot.lane.b32.xlu0 %v8224_v36, %s7699_s17 }
 0x1fd   : > { %v980_v21 = vpop.permute.xlu1 %979  ;;  %v994_v37 = vpop.permute.xlu0 %993 }
 0x1fe   : > { %1023 = vst.msk [vmem:[#allocation3 + $0x128] sm:$0xff] %vm564_vm1, %v980_v21  ;;  %1030 = vst.msk [vmem:[#allocation3 + $0x160] sm:$0xff] %vm564_vm1, %v994_v37 }
 0x1ff   : > { %1129 = vrot.lane.b32.xlu1 %v8243_v38, %s7699_s17  ;;  %1164 = vrot.lane.b32.xlu0 %v7974_v42, %s7700_s30 }
 0x201   : > { %v996_v31 = vpop.permute.xlu1 %995  ;;  %v702_v45 = vpop.permute.xlu0 %701 }
 0x202   : > { %1031 = vst.msk [vmem:[#allocation3 + $0x168] sm:$0xff] %vm564_vm1, %v996_v31  ;;  %746 = vst.msk [vmem:[#allocation2 + $0xa0] sm:$0xff] %vm564_vm1, %v702_v45 }
 0x203   : > { %1166 = vrot.lane.b32.xlu1 %v8001_v53, %s7700_s30  ;;  %1168 = vrot.lane.b32.xlu0 %v8032_v62, %s7700_s30 }
 0x205   : > { %v704_v23 = vpop.permute.xlu1 %703  ;;  %v718_v36 = vpop.permute.xlu0 %717 }
 0x206   : > { %747 = vst.msk [vmem:[#allocation2 + $0xa8] sm:$0xff] %vm564_vm1, %v704_v23  ;;  %754 = vst.msk [vmem:[#allocation2 + $0xe0] sm:$0xff] %vm564_vm1, %v718_v36 }
 0x207   : > { %1170 = vrot.lane.b32.xlu1 %v8056_v24, %s7700_s30  ;;  %1172 = vrot.lane.b32.xlu0 %v8092_v34, %s7700_s30 }
 0x209   : > { %v720_v42 = vpop.permute.xlu1 %719  ;;  %v848_v38 = vpop.permute.xlu0 %847 }
 0x20a   : > { %755 = vst.msk [vmem:[#allocation2 + $0xe8] sm:$0xff] %vm564_vm1, %v720_v42  ;;  %892 = vst.msk [vmem:[#allocation4 + $0xa0] sm:$0xff] %vm564_vm1, %v848_v38 }
 0x20b   : > { %1174 = vrot.lane.b32.xlu1 %v8116_v54, %s7700_s30  ;;  %1176 = vrot.lane.b32.xlu0 %v8187_v33, %s7700_s30 }
 0x20d   : > { %v850_v53 = vpop.permute.xlu1 %849  ;;  %v864_v62 = vpop.permute.xlu0 %863 }
 0x20e   : > { %893 = vst.msk [vmem:[#allocation4 + $0xa8] sm:$0xff] %vm564_vm1, %v850_v53  ;;  %900 = vst.msk [vmem:[#allocation4 + $0xe0] sm:$0xff] %vm564_vm1, %v864_v62 }
 0x20f   : > { %1178 = vrot.lane.b32.xlu1 %v8196_v50, %s7700_s30  ;;  %1180 = vrot.lane.b32.xlu0 %v7977_v43, %s7700_s30 }
 0x211   : > { %v866_v24 = vpop.permute.xlu1 %865  ;;  %v913_v34 = vpop.permute.xlu0 %912 }
 0x212   : > { %901 = vst.msk [vmem:[#allocation4 + $0xe8] sm:$0xff] %vm564_vm1, %v866_v24  ;;  %957 = vst.msk [vmem:[#allocation2 + $0x120] sm:$0xff] %vm564_vm1, %v913_v34 }
 0x213   : > { %1182 = vrot.lane.b32.xlu1 %v7998_v52, %s7700_s30  ;;  %1184 = vrot.lane.b32.xlu0 %v8035_v63, %s7700_s30 }
 0x215   : > { %v915_v54 = vpop.permute.xlu1 %914  ;;  %v929_v33 = vpop.permute.xlu0 %928 }
 0x216   : > { %958 = vst.msk [vmem:[#allocation2 + $0x128] sm:$0xff] %vm564_vm1, %v915_v54  ;;  %965 = vst.msk [vmem:[#allocation2 + $0x160] sm:$0xff] %vm564_vm1, %v929_v33 }
 0x217   : > { %1186 = vrot.lane.b32.xlu1 %v8061_v25, %s7700_s30  ;;  %1188 = vrot.lane.b32.xlu0 %v8095_v35, %s7700_s30 }
 0x219   : > { %v931_v43 = vpop.permute.xlu1 %930  ;;  %v1043_v50 = vpop.permute.xlu0 %1042 }
 0x21a   : > { %966 = vst.msk [vmem:[#allocation2 + $0x168] sm:$0xff] %vm564_vm1, %v931_v43  ;;  %1087 = vst.msk [vmem:[#allocation4 + $0x120] sm:$0xff] %vm564_vm1, %v1043_v50 }
 0x21b   : > { %1190 = vrot.lane.b32.xlu1 %v8121_v55, %s7700_s30  ;;  %1192 = vrot.lane.b32.xlu0 %v8205_v27, %s7700_s30 }
 0x21d   : > { %v1045_v52 = vpop.permute.xlu1 %1044  ;;  %v1059_v63 = vpop.permute.xlu0 %1058 }
 0x21e   : > { %1088 = vst.msk [vmem:[#allocation4 + $0x128] sm:$0xff] %vm564_vm1, %v1045_v52  ;;  %1095 = vst.msk [vmem:[#allocation4 + $0x160] sm:$0xff] %vm564_vm1, %v1059_v63 }
 0x21f   : > { %1194 = vrot.lane.b32.xlu1 %v8221_v58, %s7700_s30  ;;  %1229 = vrot.lane.b32.xlu0 %v7985_v47, %s7699_s17 }
 0x221   : > { %v1061_v25 = vpop.permute.xlu1 %1060  ;;  %v1108_v35 = vpop.permute.xlu0 %1107 }
 0x222   : > { %1096 = vst.msk [vmem:[#allocation4 + $0x168] sm:$0xff] %vm564_vm1, %v1061_v25  ;;  %1152 = vst.msk [vmem:[#allocation2 + $0x1a0] sm:$0xff] %vm564_vm1, %v1108_v35 }
 0x223   : > { %1231 = vrot.lane.b32.xlu1 %v8015_v57, %s7699_s17  ;;  %1233 = vrot.lane.b32.xlu0 %v8042_v18, %s7699_s17 }
 0x225   : > { %v1110_v55 = vpop.permute.xlu1 %1109  ;;  %v610_v27 = vpop.permute.xlu0 %609 }
 0x226   : > { %1153 = vst.msk [vmem:[#allocation2 + $0x1a8] sm:$0xff] %vm564_vm1, %v1110_v55  ;;  %651 = vst.msk [vmem:[#allocation3 + $0x30] sm:$0xff] %vm564_vm1, %v610_v27 }
 0x227   : > { %1235 = vrot.lane.b32.xlu1 %v8072_v28, %s7699_s17  ;;  %1237 = vrot.lane.b32.xlu0 %v8102_v40, %s7699_s17 }
 0x229   : > { %v1118_v47 = vpop.permute.xlu1 %1117  ;;  %v626_v58 = vpop.permute.xlu0 %625 }
 0x22a   : > { %1157 = vst.msk [vmem:[#allocation2 + $0x1c8] sm:$0xff] %vm564_vm1, %v1118_v47  ;;  %659 = vst.msk [vmem:[#allocation3 + $0x70] sm:$0xff] %vm564_vm1, %v626_v58 }
 0x22b   : > { %1239 = vrot.lane.b32.xlu1 %v8132_v16, %s7699_s17  ;;  %1241 = vrot.lane.b32.xlu0 %v8184_v32, %s7699_s17 }
 0x22d   : > { %v612_v57 = vpop.permute.xlu1 %611  ;;  %v771_v18 = vpop.permute.xlu0 %770 }
 0x22e   : > { %652 = vst.msk [vmem:[#allocation3 + $0x38] sm:$0xff] %vm564_vm1, %v612_v57  ;;  %813 = vst.msk [vmem:[#allocation3 + $0xb0] sm:$0xff] %vm564_vm1, %v771_v18 }
 0x22f   : > { %1243 = vrot.lane.b32.xlu1 %v8208_v0, %s7699_s17  ;;  %1245 = vrot.lane.b32.xlu0 %v7980_v46, %s7699_s17 }
 0x231   : > { %v628_v28 = vpop.permute.xlu1 %627  ;;  %v787_v40 = vpop.permute.xlu0 %786 }
 0x232   : > { %660 = vst.msk [vmem:[#allocation3 + $0x78] sm:$0xff] %vm564_vm1, %v628_v28  ;;  %821 = vst.msk [vmem:[#allocation3 + $0xf0] sm:$0xff] %vm564_vm1, %v787_v40 }
 0x233   : > { %1247 = vrot.lane.b32.xlu1 %v8008_v56, %s7699_s17  ;;  %1249 = vrot.lane.b32.xlu0 %v8045_v19, %s7699_s17 }
 0x235   : > { %v773_v16 = vpop.permute.xlu1 %772  ;;  %v982_v32 = vpop.permute.xlu0 %981 }
 0x236   : > { %814 = vst.msk [vmem:[#allocation3 + $0xb8] sm:$0xff] %vm564_vm1, %v773_v16  ;;  %1024 = vst.msk [vmem:[#allocation3 + $0x130] sm:$0xff] %vm564_vm1, %v982_v32 }
 0x237   : > { %1251 = vrot.lane.b32.xlu1 %v8075_v29, %s7699_s17  ;;  %1253 = vrot.lane.b32.xlu0 %v8105_v41, %s7699_s17 }
 0x239   : > { %v789_v0 = vpop.permute.xlu1 %788  ;;  %v998_v46 = vpop.permute.xlu0 %997 }
 0x23a   : > { %822 = vst.msk [vmem:[#allocation3 + $0xf8] sm:$0xff] %vm564_vm1, %v789_v0  ;;  %1032 = vst.msk [vmem:[#allocation3 + $0x170] sm:$0xff] %vm564_vm1, %v998_v46 }
 0x23b   : > { %1255 = vrot.lane.b32.xlu1 %v8135_v17, %s7699_s17  ;;  %1257 = vrot.lane.b32.xlu0 %v8202_v26, %s7699_s17 }
 0x23d   : > { %v984_v56 = vpop.permute.xlu1 %983  ;;  %v706_v19 = vpop.permute.xlu0 %705 }
 0x23e   : > { %1025 = vst.msk [vmem:[#allocation3 + $0x138] sm:$0xff] %vm564_vm1, %v984_v56  ;;  %748 = vst.msk [vmem:[#allocation2 + $0xb0] sm:$0xff] %vm564_vm1, %v706_v19 }
 0x23f   : > { %1259 = vrot.lane.b32.xlu1 %v8230_v61, %s7699_s17 }
 0x241   : > { %v1000_v29 = vpop.permute.xlu1 %999  ;;  %v722_v41 = vpop.permute.xlu0 %721 }
 0x242   : > { %1033 = vst.msk [vmem:[#allocation3 + $0x178] sm:$0xff] %vm564_vm1, %v1000_v29  ;;  %756 = vst.msk [vmem:[#allocation2 + $0xf0] sm:$0xff] %vm564_vm1, %v722_v41 }
 0x245   : > { %v708_v1 = vpop.permute.xlu1 %707  ;;  %v852_v17 = vpop.permute.xlu0 %851 }
 0x246   : > { %749 = vst.msk [vmem:[#allocation2 + $0xb8] sm:$0xff] %vm564_vm1, %v708_v1  ;;  %894 = vst.msk [vmem:[#allocation4 + $0xb0] sm:$0xff] %vm564_vm1, %v852_v17 }
 0x249   : > { %v724_v26 = vpop.permute.xlu1 %723  ;;  %v868_v30 = vpop.permute.xlu0 %867 }
 0x24a   : > { %757 = vst.msk [vmem:[#allocation2 + $0xf8] sm:$0xff] %vm564_vm1, %v724_v26  ;;  %902 = vst.msk [vmem:[#allocation4 + $0xf0] sm:$0xff] %vm564_vm1, %v868_v30 }
 0x24d   : > { %v854_v51 = vpop.permute.xlu1 %853  ;;  %v917_v61 = vpop.permute.xlu0 %916 }
 0x24e   : > { %895 = vst.msk [vmem:[#allocation4 + $0xb8] sm:$0xff] %vm564_vm1, %v854_v51  ;;  %959 = vst.msk [vmem:[#allocation2 + $0x130] sm:$0xff] %vm564_vm1, %v917_v61 }
 0x251   : > { %v870_v39 = vpop.permute.xlu1 %869  ;;  %v933_v44 = vpop.permute.xlu0 %932 }
 0x252   : > { %903 = vst.msk [vmem:[#allocation4 + $0xf8] sm:$0xff] %vm564_vm1, %v870_v39  ;;  %967 = vst.msk [vmem:[#allocation2 + $0x170] sm:$0xff] %vm564_vm1, %v933_v44 }
 0x255   : > { %v919_v20 = vpop.permute.xlu1 %918  ;;  %v1047_v22 = vpop.permute.xlu0 %1046 }
 0x256   : > { %960 = vst.msk [vmem:[#allocation2 + $0x138] sm:$0xff] %vm564_vm1, %v919_v20  ;;  %1089 = vst.msk [vmem:[#allocation4 + $0x130] sm:$0xff] %vm564_vm1, %v1047_v22 }
 0x259   : > { %v935_v60 = vpop.permute.xlu1 %934  ;;  %v1063_v48 = vpop.permute.xlu0 %1062 }
 0x25a   : > { %968 = vst.msk [vmem:[#allocation2 + $0x178] sm:$0xff] %vm564_vm1, %v935_v60  ;;  %1097 = vst.msk [vmem:[#allocation4 + $0x170] sm:$0xff] %vm564_vm1, %v1063_v48 }
 0x25d   : > { %v1049_v49 = vpop.permute.xlu1 %1048  ;;  %v1112_v59 = vpop.permute.xlu0 %1111 }
 0x25e   : > { %1090 = vst.msk [vmem:[#allocation4 + $0x138] sm:$0xff] %vm564_vm1, %v1049_v49  ;;  %1154 = vst.msk [vmem:[#allocation2 + $0x1b0] sm:$0xff] %vm564_vm1, %v1112_v59 }
 0x261   : > { %v1065_v21 = vpop.permute.xlu1 %1064  ;;  %v1116_v37 = vpop.permute.xlu0 %1115 }
 0x262   : > { %1098 = vst.msk [vmem:[#allocation4 + $0x178] sm:$0xff] %vm564_vm1, %v1065_v21  ;;  %1156 = vst.msk [vmem:[#allocation2 + $0x1c0] sm:$0xff] %vm564_vm1, %v1116_v37 }
 0x265   : > { %v1114_v31 = vpop.permute.xlu1 %1113  ;;  %v1120_v45 = vpop.permute.xlu0 %1119 }
 0x266   : > { %1155 = vst.msk [vmem:[#allocation2 + $0x1b8] sm:$0xff] %vm564_vm1, %v1114_v31  ;;  %1158 = vst.msk [vmem:[#allocation2 + $0x1d0] sm:$0xff] %vm564_vm1, %v1120_v45 }
 0x269   : > { %v1122_v23 = vpop.permute.xlu1 %1121  ;;  %v1124_v36 = vpop.permute.xlu0 %1123 }
 0x26a   : > { %1159 = vst.msk [vmem:[#allocation2 + $0x1d8] sm:$0xff] %vm564_vm1, %v1122_v23  ;;  %1160 = vst.msk [vmem:[#allocation2 + $0x1e0] sm:$0xff] %vm564_vm1, %v1124_v36 }
 0x26d   : > { %v1126_v42 = vpop.permute.xlu1 %1125  ;;  %v1128_v38 = vpop.permute.xlu0 %1127 }
 0x26e   : > { %1161 = vst.msk [vmem:[#allocation2 + $0x1e8] sm:$0xff] %vm564_vm1, %v1126_v42  ;;  %1162 = vst.msk [vmem:[#allocation2 + $0x1f0] sm:$0xff] %vm564_vm1, %v1128_v38 }
 0x271   : > { %v1130_v53 = vpop.permute.xlu1 %1129  ;;  %v1165_v62 = vpop.permute.xlu0 %1164 }
 0x272   : > { %1163 = vst.msk [vmem:[#allocation2 + $0x1f8] sm:$0xff] %vm564_vm1, %v1130_v53  ;;  %1213 = vst.msk [vmem:[#allocation3 + $0x180] sm:$0xff] %vm564_vm1, %v1165_v62 }
 0x275   : > { %v1167_v24 = vpop.permute.xlu1 %1166  ;;  %v1169_v34 = vpop.permute.xlu0 %1168 }
 0x276   : > { %1214 = vst.msk [vmem:[#allocation3 + $0x188] sm:$0xff] %vm564_vm1, %v1167_v24  ;;  %1215 = vst.msk [vmem:[#allocation3 + $0x190] sm:$0xff] %vm564_vm1, %v1169_v34 }
 0x279   : > { %v1171_v54 = vpop.permute.xlu1 %1170  ;;  %v1173_v33 = vpop.permute.xlu0 %1172 }
 0x27a   : > { %1216 = vst.msk [vmem:[#allocation3 + $0x198] sm:$0xff] %vm564_vm1, %v1171_v54  ;;  %1217 = vst.msk [vmem:[#allocation3 + $0x1a0] sm:$0xff] %vm564_vm1, %v1173_v33 }
 0x27d   : > { %v1175_v43 = vpop.permute.xlu1 %1174  ;;  %v1177_v50 = vpop.permute.xlu0 %1176 }
 0x27e   : > { %1218 = vst.msk [vmem:[#allocation3 + $0x1a8] sm:$0xff] %vm564_vm1, %v1175_v43  ;;  %1219 = vst.msk [vmem:[#allocation3 + $0x1b0] sm:$0xff] %vm564_vm1, %v1177_v50 }
 0x281   : > { %v1179_v52 = vpop.permute.xlu1 %1178  ;;  %v1181_v63 = vpop.permute.xlu0 %1180 }
 0x282   : > { %1220 = vst.msk [vmem:[#allocation3 + $0x1b8] sm:$0xff] %vm564_vm1, %v1179_v52  ;;  %1221 = vst.msk [vmem:[#allocation3 + $0x1c0] sm:$0xff] %vm564_vm1, %v1181_v63 }
 0x285   : > { %v1183_v25 = vpop.permute.xlu1 %1182  ;;  %v1185_v35 = vpop.permute.xlu0 %1184 }
 0x286   : > { %1222 = vst.msk [vmem:[#allocation3 + $0x1c8] sm:$0xff] %vm564_vm1, %v1183_v25  ;;  %1223 = vst.msk [vmem:[#allocation3 + $0x1d0] sm:$0xff] %vm564_vm1, %v1185_v35 }
 0x289   : > { %v1187_v55 = vpop.permute.xlu1 %1186  ;;  %v1189_v27 = vpop.permute.xlu0 %1188 }
 0x28a   : > { %1224 = vst.msk [vmem:[#allocation3 + $0x1d8] sm:$0xff] %vm564_vm1, %v1187_v55  ;;  %1225 = vst.msk [vmem:[#allocation3 + $0x1e0] sm:$0xff] %vm564_vm1, %v1189_v27 }
 0x28d   : > { %v1191_v47 = vpop.permute.xlu1 %1190  ;;  %v1193_v58 = vpop.permute.xlu0 %1192 }
 0x28e   : > { %1226 = vst.msk [vmem:[#allocation3 + $0x1e8] sm:$0xff] %vm564_vm1, %v1191_v47  ;;  %1227 = vst.msk [vmem:[#allocation3 + $0x1f0] sm:$0xff] %vm564_vm1, %v1193_v58 }
 0x291   : > { %v1195_v57 = vpop.permute.xlu1 %1194  ;;  %v1230_v18 = vpop.permute.xlu0 %1229 }
 0x292   : > { %1228 = vst.msk [vmem:[#allocation3 + $0x1f8] sm:$0xff] %vm564_vm1, %v1195_v57  ;;  %1278 = vst.msk [vmem:[#allocation4 + $0x180] sm:$0xff] %vm564_vm1, %v1230_v18 }
 0x295   : > { %v1232_v28 = vpop.permute.xlu1 %1231  ;;  %v1234_v40 = vpop.permute.xlu0 %1233 }
 0x296   : > { %1279 = vst.msk [vmem:[#allocation4 + $0x188] sm:$0xff] %vm564_vm1, %v1232_v28  ;;  %1280 = vst.msk [vmem:[#allocation4 + $0x190] sm:$0xff] %vm564_vm1, %v1234_v40 }
 0x299   : > { %v1236_v16 = vpop.permute.xlu1 %1235  ;;  %v1238_v32 = vpop.permute.xlu0 %1237 }
 0x29a   : > { %1281 = vst.msk [vmem:[#allocation4 + $0x198] sm:$0xff] %vm564_vm1, %v1236_v16  ;;  %1282 = vst.msk [vmem:[#allocation4 + $0x1a0] sm:$0xff] %vm564_vm1, %v1238_v32 }
 0x29d   : > { %v1240_v0 = vpop.permute.xlu1 %1239  ;;  %v1242_v46 = vpop.permute.xlu0 %1241 }
 0x29e   : > { %1283 = vst.msk [vmem:[#allocation4 + $0x1a8] sm:$0xff] %vm564_vm1, %v1240_v0  ;;  %1284 = vst.msk [vmem:[#allocation4 + $0x1b0] sm:$0xff] %vm564_vm1, %v1242_v46 }
 0x2a1   : > { %v1244_v56 = vpop.permute.xlu1 %1243  ;;  %v1246_v19 = vpop.permute.xlu0 %1245 }
 0x2a2   : > { %1285 = vst.msk [vmem:[#allocation4 + $0x1b8] sm:$0xff] %vm564_vm1, %v1244_v56  ;;  %1286 = vst.msk [vmem:[#allocation4 + $0x1c0] sm:$0xff] %vm564_vm1, %v1246_v19 }
 0x2a5   : > { %v1248_v29 = vpop.permute.xlu1 %1247  ;;  %v1250_v41 = vpop.permute.xlu0 %1249 }
 0x2a6   : > { %1287 = vst.msk [vmem:[#allocation4 + $0x1c8] sm:$0xff] %vm564_vm1, %v1248_v29  ;;  %1288 = vst.msk [vmem:[#allocation4 + $0x1d0] sm:$0xff] %vm564_vm1, %v1250_v41 }
 0x2a9   : > { %v1252_v1 = vpop.permute.xlu1 %1251  ;;  %v1254_v17 = vpop.permute.xlu0 %1253 }
 0x2aa   : > { %1289 = vst.msk [vmem:[#allocation4 + $0x1d8] sm:$0xff] %vm564_vm1, %v1252_v1  ;;  %1290 = vst.msk [vmem:[#allocation4 + $0x1e0] sm:$0xff] %vm564_vm1, %v1254_v17 }
 0x2ad   : > { %v1256_v26 = vpop.permute.xlu1 %1255  ;;  %v1258_v30 = vpop.permute.xlu0 %1257 }
 0x2ae   : > { %1291 = vst.msk [vmem:[#allocation4 + $0x1e8] sm:$0xff] %vm564_vm1, %v1256_v26  ;;  %1292 = vst.msk [vmem:[#allocation4 + $0x1f0] sm:$0xff] %vm564_vm1, %v1258_v30 }
 0x2b1   : > { %v1260_v51 = vpop.permute.xlu1 %1259 }
 0x2b2   : > { %1293 = vst.msk [vmem:[#allocation4 + $0x1f8] sm:$0xff] %vm564_vm1, %v1260_v51 }
 0x2b3 PF: > { %vm1311_vm2 = vcmask 523264   ;;  %s10376_s14 = sshll.u32 %s7675_s24, 6  ;;  %v1489_v45 = vlaneseq  ;;  %s10380_s17 = sand.u32 1, %s7667_s22  }
 0x2b4   : > { %s8664_s16 = scalar_lea.vmem %s7827_s13, %s10376_s14  ;;  %6929 = vmatprep.subr.msk.mxu0 %vm1311_vm2, %v7881_v15  ;;  %s10379_s13 = smov %s10376_s14 }
 0x2b5   : > { %v1295_v61 = vld [vmem:[%s8664_s16] sm:$0xff]  ;;  %6930 = vmatpush3.xpose.msk.msra.mxu0 %vm1311_vm2, %v7881_v15  ;;  %v1302_v44 = vld [vmem:[%s8664_s16 + $0x38] sm:$0xff]  ;;  %v8770_v23 = vand.u32 127, %v1489_v45  ;;  %s9674_s19 = scalar_lea.vmem [#allocation2], %s10379_s13  ;;  %s6265_s30 = scalar_lea.sflag [#allocation6], %s10380_s17 }
 0x2b6   : > { %v1303_v39 = vmul.f32 0.125, %v1295_v61  ;;  %6931 = vmatprep.subr.msk.mxu0 %vm1311_vm2, %v7878_v14  ;;  %v1310_v20 = vmul.f32 0.125, %v1302_v44 }
 0x2b8   : > { %6961 = vmatprep.mubr.msk.f32.mxu0 %vm1311_vm2, %v1303_v39 }
 0x2b9   : > { %6932 = vmatpush3.xpose.msk.msra.mxu0 %vm1311_vm2, %v7878_v14 }
 0x2ba   : > { %6933 = vmatprep.subr.msk.mxu0 %vm1311_vm2, %v7875_v13 }
 0x2bd   : > { %6934 = vmatpush3.xpose.msk.msra.mxu0 %vm1311_vm2, %v7875_v13  ;;  %v1301_v13 = vld [vmem:[%s8664_s16 + $0x30] sm:$0xff] }
 0x2be   : > { %6935 = vmatprep.subr.msk.mxu0 %vm1311_vm2, %v7872_v12  ;;  %v1309_v15 = vmul.f32 0.125, %v1301_v13 }
 0x2c1   : > { %6936 = vmatpush3.xpose.msk.msra.mxu0 %vm1311_vm2, %v7872_v12  ;;  %v1300_v12 = vld [vmem:[%s8664_s16 + $0x28] sm:$0xff] }
 0x2c2   : > { %6937 = vmatprep.subr.msk.mxu0 %vm1311_vm2, %v7869_v11  ;;  %v1308_v14 = vmul.f32 0.125, %v1300_v12 }
 0x2c5   : > { %6938 = vmatpush3.xpose.msk.msra.mxu0 %vm1311_vm2, %v7869_v11 }
 0x2c6   : > { %6939 = vmatprep.subr.msk.mxu0 %vm1311_vm2, %v7866_v10 }
 0x2c9   : > { %6940 = vmatpush3.xpose.msk.msra.mxu0 %vm1311_vm2, %v7866_v10 }
 0x2ca   : > { %6941 = vmatprep.subr.msk.mxu0 %vm1311_vm2, %v7863_v9 }
 0x2cd   : > { %6942 = vmatpush3.xpose.msk.msra.mxu0 %vm1311_vm2, %v7863_v9  ;;  %v1298_v9 = vld [vmem:[%s8664_s16 + $0x18] sm:$0xff] }
 0x2ce   : > { %6943 = vmatprep.subr.msk.mxu0 %vm1311_vm2, %v7860_v8  ;;  %v1306_v10 = vmul.f32 0.125, %v1298_v9 }
 0x2d1   : > { %6944 = vmatpush3.xpose.msk.msra.mxu0 %vm1311_vm2, %v7860_v8 }
 0x2d2   : > { %6945 = vmatprep.subr.msk.mxu0 %vm1311_vm2, %v7857_v7 }
 0x2d5   : > { %6946 = vmatpush3.xpose.msk.msra.mxu0 %vm1311_vm2, %v7857_v7  ;;  %v1297_v7 = vld [vmem:[%s8664_s16 + $0x10] sm:$0xff] }
 0x2d6   : > { %6947 = vmatprep.subr.msk.mxu0 %vm1311_vm2, %v7854_v6  ;;  %v1305_v8 = vmul.f32 0.125, %v1297_v7 }
 0x2d9   : > { %6948 = vmatpush3.xpose.msk.msra.mxu0 %vm1311_vm2, %v7854_v6  ;;  %v10378_v6 = vld [vmem:[#allocation11_spill] sm:$0xff] }
 0x2da   : > { %6949 = vmatprep.subr.msk.mxu0 %vm1311_vm2, %v7851_v5 }
 0x2dd   : > { %6950 = vmatpush3.xpose.msk.msra.mxu0 %vm1311_vm2, %v7851_v5  ;;  %v10377_v5 = vld [vmem:[#allocation12_spill] sm:$0xff] }
 0x2de   : > { %6951 = vmatprep.subr.msk.mxu0 %vm1311_vm2, %v7848_v4 }
 0x2e1   : > { %6952 = vmatpush3.xpose.msk.msra.mxu0 %vm1311_vm2, %v7848_v4  ;;  %v1296_v4 = vld [vmem:[%s8664_s16 + $0x8] sm:$0xff] }
 0x2e2   : > { %6953 = vmatprep.subr.msk.mxu0 %vm1311_vm2, %v7845_v3 }
 0x2e5   : > { %6954 = vmatpush3.xpose.msk.msra.mxu0 %vm1311_vm2, %v7845_v3  ;;  %v1304_v3 = vmul.f32 0.125, %v1296_v4 }
 0x2e6   : > { %6955 = vmatprep.subr.msk.mxu0 %vm1311_vm2, %v7837_v2 }
 0x2e9   : > { %6956 = vmatpush3.xpose.msk.msra.mxu0 %vm1311_vm2, %v7837_v2  ;;  %v1299_v2 = vld [vmem:[%s8664_s16 + $0x20] sm:$0xff] }
 0x2ea   : > { %6957 = vmatprep.subr.msk.mxu0 %vm1311_vm2, %v10377_v5  ;;  %v1307_v11 = vmul.f32 0.125, %v1299_v2 }
 0x2ed   : > { %6958 = vmatpush3.xpose.msk.msra.mxu0 %vm1311_vm2, %v10377_v5 }
 0x2ee   : > { %6959 = vmatprep.subr.msk.mxu0 %vm1311_vm2, %v10378_v6 }
 0x2f1   : > { %6960 = vmatpush3.xpose.msk.msra.mxu0 %vm1311_vm2, %v10378_v6 }
 0x2f4   : > { %6962 = vmatmul.mubr.msk.f32.vlgmr.msra.gmra.mxu0 %vm1311_vm2, %v1304_v3 }
 0x2f5   : > { %6964 = vmatprep.mubr.msk.f32.mxu0 %vm1311_vm2, %v1305_v8 }
 0x2f8   : > { %6965 = vmatmul.mubr.msk.f32.gmra.mxu0 %vm1311_vm2, %v1306_v10 }
 0x2f9   : > { %6967 = vmatprep.mubr.msk.f32.mxu0 %vm1311_vm2, %v1307_v11 }
 0x2fc   : > { %6968 = vmatmul.mubr.msk.f32.gmra.mxu0 %vm1311_vm2, %v1308_v14 }
 0x2fd   : > { %6970 = vmatprep.mubr.msk.f32.mxu0 %vm1311_vm2, %v1309_v15 }
 0x300   : > { %6971 = vmatmul.mubr.msk.f32.gmra.mxu0 %vm1311_vm2, %v1310_v20 }
 0x3b4   : > { %v8746_v22 = vpop.f32.mrf.mxu0 }
 0x3b6   : > { %v8748_v60 = vpop.f32.mrf.mxu0 }
 0x3b7   : > { %1491 = vmax.xlane.f32.xlu0 %v8748_v60 }
 0x3b8   : > { %v8751_v48 = vpop.f32.mrf.mxu0 }
 0x3ba   : > { %v8753_v49 = vpop.f32.mrf.mxu0 }
 0x3bb   : > { %1493 = vmax.xlane.f32.xlu0 %v8746_v22  ;;  %1495 = vmax.xlane.f32.xlu1 %v8753_v49 }
 0x3bc   : > { %v8757_v59 = vpop.f32.mrf.mxu0 }
 0x3be   : > { %v8759_v21 = vpop.f32.mrf.mxu0 }
 0x3bf   : > { %1497 = vmax.xlane.f32.xlu1 %v8751_v48  ;;  %1499 = vmax.xlane.f32.xlu0 %v8759_v21 }
 0x3c0   : > { %v8763_v37 = vpop.f32.mrf.mxu0 }
 0x3c2   : > { %v8765_v31 = vpop.f32.mrf.mxu0 }
 0x3c3   : > { %1501 = vmax.xlane.f32.xlu1 %v8757_v59  ;;  %1503 = vmax.xlane.f32.xlu0 %v8765_v31 }
 0x3c7   : > { %1505 = vmax.xlane.f32.xlu1 %v8763_v37 }
 0x440   : > { %v1492_v36 = vpop.xlane.xlu0 %1491 }
 0x441   : > { %vm1507_vm3 = vcmp.eq.f32.partialorder %v8748_v60, %v1492_v36 }
 0x442   : > { %v1515_v42 = vsel %vm1507_vm3, %v8770_v23, 128 }
 0x443   : > { %v1524_v38 = vshra.s32 %v1515_v42, 16  ;;  %v1523_v17 = vand.u32 65535, %v1515_v42 }
 0x444   : > { %v1494_v53 = vpop.xlane.xlu0 %1493  ;;  %v1496_v62 = vpop.xlane.xlu1 %1495 }
 0x445   : > { %vm1508_vm4 = vcmp.eq.f32.partialorder %v8746_v22, %v1494_v53  ;;  %vm1509_vm5 = vcmp.eq.f32.partialorder %v8753_v49, %v1496_v62  ;;  %v1526_v24 = vcvt.s32.f32 %v1524_v38  ;;  %v1525_v30 = vcvt.s32.f32 %v1523_v17 }
 0x446   : > { %v1516_v34 = vsel %vm1508_vm4, %v8770_v23, 128  ;;  %v1517_v54 = vsel %vm1509_vm5, %v8770_v23, 128 }
 0x447   : > { %1527 = vmin.xlane.f32.xlu0 %v1526_v24  ;;  %v1538_v33 = vshra.s32 %v1516_v34, 16  ;;  %v1552_v43 = vshra.s32 %v1517_v54, 16  ;;  %v1537_v51 = vand.u32 65535, %v1516_v34  ;;  %v1551_v61 = vand.u32 65535, %v1517_v54 }
 0x448   : > { %v1498_v50 = vpop.xlane.xlu1 %1497  ;;  %v1500_v52 = vpop.xlane.xlu0 %1499 }
 0x449   : > { %vm1510_vm6 = vcmp.eq.f32.partialorder %v8751_v48, %v1498_v50  ;;  %vm1511_vm7 = vcmp.eq.f32.partialorder %v8759_v21, %v1500_v52  ;;  %v1540_v63 = vcvt.s32.f32 %v1538_v33  ;;  %v1554_v25 = vcvt.s32.f32 %v1552_v43 }
 0x44a   : > { %v1518_v35 = vsel %vm1510_vm6, %v8770_v23, 128  ;;  %v1519_v55 = vsel %vm1511_vm7, %v8770_v23, 128  ;;  %v1539_v6 = vcvt.s32.f32 %v1537_v51  ;;  %v1553_v7 = vcvt.s32.f32 %v1551_v61 }
 0x44b   : > { %1541 = vmin.xlane.f32.xlu1 %v1540_v63  ;;  %1555 = vmin.xlane.f32.xlu0 %v1554_v25  ;;  %v1566_v27 = vshra.s32 %v1518_v35, 16  ;;  %v1580_v47 = vshra.s32 %v1519_v55, 16  ;;  %v1565_v3 = vand.u32 65535, %v1518_v35  ;;  %v1579_v8 = vand.u32 65535, %v1519_v55 }
 0x44c   : > { %v1502_v58 = vpop.xlane.xlu1 %1501  ;;  %v1504_v57 = vpop.xlane.xlu0 %1503 }
 0x44d   : > { %vm1512_vm8 = vcmp.eq.f32.partialorder %v8757_v59, %v1502_v58  ;;  %vm1513_vm9 = vcmp.eq.f32.partialorder %v8765_v31, %v1504_v57  ;;  %v1568_v18 = vcvt.s32.f32 %v1566_v27  ;;  %v1582_v28 = vcvt.s32.f32 %v1580_v47 }
 0x44e   : > { %v1520_v40 = vsel %vm1512_vm8, %v8770_v23, 128  ;;  %v1521_v16 = vsel %vm1513_vm9, %v8770_v23, 128  ;;  %v1567_v12 = vcvt.s32.f32 %v1565_v3  ;;  %v1581_v13 = vcvt.s32.f32 %v1579_v8 }
 0x44f   : > { %1569 = vmin.xlane.f32.xlu1 %v1568_v18  ;;  %1583 = vmin.xlane.f32.xlu0 %v1582_v28  ;;  %v1594_v32 = vshra.s32 %v1520_v40, 16  ;;  %v1608_v0 = vshra.s32 %v1521_v16, 16  ;;  %v1593_v14 = vand.u32 65535, %v1520_v40  ;;  %v1607_v15 = vand.u32 65535, %v1521_v16 }
 0x450   : > { %v1506_v46 = vpop.xlane.xlu1 %1505 }
 0x451   : > { %vm1514_vm10 = vcmp.eq.f32.partialorder %v8763_v37, %v1506_v46  ;;  %v1596_v56 = vcvt.s32.f32 %v1594_v32  ;;  %v1610_v19 = vcvt.s32.f32 %v1608_v0  ;;  %v1595_v42 = vcvt.s32.f32 %v1593_v14 }
 0x452   : > { %v1522_v29 = vsel %vm1514_vm10, %v8770_v23, 128  ;;  %v1609_v38 = vcvt.s32.f32 %v1607_v15 }
 0x453   : > { %1597 = vmin.xlane.f32.xlu1 %v1596_v56  ;;  %1611 = vmin.xlane.f32.xlu0 %v1610_v19  ;;  %v1622_v41 = vshra.s32 %v1522_v29, 16  ;;  %v1621_v53 = vand.u32 65535, %v1522_v29 }
 0x455   : > { %v1624_v1 = vcvt.s32.f32 %v1622_v41  ;;  %v1623_v54 = vcvt.s32.f32 %v1621_v53 }
 0x457   : > { %1625 = vmin.xlane.f32.xlu1 %v1624_v1 }
 0x4d0   : > { %v1528_v26 = vpop.xlane.xlu0 %1527 }
 0x4d1   : > { %vm1529_vm11 = vcmp.eq.f32.partialorder %v1526_v24, %v1528_v26  ;;  %v1534_v43 = vcvt.f32.s32 %v1528_v26 }
 0x4d2   : > { %v1530_v39 = vsel %vm1529_vm11, %v1525_v30, inf }
 0x4d3   : > { %1531 = vmin.xlane.f32.xlu0 %v1530_v39 }
 0x4d4   : > { %v1542_v5 = vpop.xlane.xlu1 %1541  ;;  %v1556_v4 = vpop.xlane.xlu0 %1555 }
 0x4d5   : > { %vm1543_vm12 = vcmp.eq.f32.partialorder %v1540_v63, %v1542_v5  ;;  %vm1557_vm13 = vcmp.eq.f32.partialorder %v1554_v25, %v1556_v4  ;;  %v1548_v50 = vcvt.f32.s32 %v1542_v5  ;;  %v1535_v63 = vshll.u32 %v1534_v43, 16 }
 0x4d6   : > { %v1544_v9 = vsel %vm1543_vm12, %v1539_v6, inf  ;;  %v1558_v2 = vsel %vm1557_vm13, %v1553_v7, inf  ;;  %v1562_v25 = vcvt.f32.s32 %v1556_v4 }
 0x4d7   : > { %1545 = vmin.xlane.f32.xlu1 %v1544_v9  ;;  %1559 = vmin.xlane.f32.xlu0 %v1558_v2  ;;  %v1549_v27 = vshll.u32 %v1548_v50, 16 }
 0x4d8   : > { %v1570_v10 = vpop.xlane.xlu1 %1569  ;;  %v1584_v11 = vpop.xlane.xlu0 %1583 }
 0x4d9   : > { %vm1571_vm14 = vcmp.eq.f32.partialorder %v1568_v18, %v1570_v10  ;;  %vm1585_vm15 = vcmp.eq.f32.partialorder %v1582_v28, %v1584_v11  ;;  %v1576_v47 = vcvt.f32.s32 %v1570_v10  ;;  %v1590_v58 = vcvt.f32.s32 %v1584_v11 }
 0x4da   : > { %v1572_v44 = vsel %vm1571_vm14, %v1567_v12, inf  ;;  %v1586_v20 = vsel %vm1585_vm15, %v1581_v13, inf  ;;  %v1563_v28 = vshll.u32 %v1562_v25, 16 }
 0x4db   : > { %1573 = vmin.xlane.f32.xlu1 %v1572_v44  ;;  %1587 = vmin.xlane.f32.xlu0 %v1586_v20 }
 0x4dc   : > { %v1598_v45 = vpop.xlane.xlu1 %1597  ;;  %v1612_v36 = vpop.xlane.xlu0 %1611 }
 0x4dd   : > { %vm1599_vm0 = vcmp.eq.f32.partialorder %v1596_v56, %v1598_v45  ;;  %vm1613_vm1 = vcmp.eq.f32.partialorder %v1610_v19, %v1612_v36  ;;  %v1577_v56 = vshll.u32 %v1576_v47, 16  ;;  %v1591_v19 = vshll.u32 %v1590_v58, 16 }
 0x4de   : > { %v1600_v62 = vsel %vm1599_vm0, %v1595_v42, inf  ;;  %v1614_v24 = vsel %vm1613_vm1, %v1609_v38, inf  ;;  %v1604_v29 = vcvt.f32.s32 %v1598_v45  ;;  %v1618_v41 = vcvt.f32.s32 %v1612_v36 }
 0x4df   : > { %1601 = vmin.xlane.f32.xlu1 %v1600_v62  ;;  %1615 = vmin.xlane.f32.xlu0 %v1614_v24 }
 0x4e0   : > { %v1626_v34 = vpop.xlane.xlu1 %1625  ;;  %v1605_v4 = vshll.u32 %v1604_v29, 16  ;;  %v1619_v6 = vshll.u32 %v1618_v41, 16 }
 0x4e1   : > { %vm1627_vm3 = vcmp.eq.f32.partialorder %v1624_v1, %v1626_v34  ;;  %v1632_v7 = vcvt.f32.s32 %v1626_v34 }
 0x4e2   : > { %v1628_v33 = vsel %vm1627_vm3, %v1623_v54, inf }
 0x4e3   : > { %1629 = vmin.xlane.f32.xlu1 %v1628_v33  ;;  %v1633_v15 = vshll.u32 %v1632_v7, 16 }
 0x55c   : > { %v1532_v52 = vpop.xlane.xlu0 %1531 }
 0x55d   : > { %v1533_v35 = vcvt.f32.s32 %v1532_v52 }
 0x55f   : > { %v1536_v55 = vadd.s32 %v1535_v63, %v1533_v35 }
 0x560   : > { %v1546_v57 = vpop.xlane.xlu1 %1545  ;;  %v1560_v18 = vpop.xlane.xlu0 %1559 }
 0x561   : > { %v1547_v40 = vcvt.f32.s32 %v1546_v57  ;;  %v1561_v16 = vcvt.f32.s32 %v1560_v18  ;;  %vm1635_vm4 = vcmp.eq.s32.totalorder %v8770_v23, %v1536_v55 }
 0x562   : > { %v8790_v32 = vsel %vm1635_vm4, -inf, %v8748_v60 }
 0x563   : > { %v1550_v0 = vadd.s32 %v1549_v27, %v1547_v40  ;;  %v1564_v46 = vadd.s32 %v1563_v28, %v1561_v16  ;;  %1651 = vmax.xlane.f32.xlu0 %v8790_v32 }
 0x564   : > { %v1574_v1 = vpop.xlane.xlu1 %1573  ;;  %v1588_v17 = vpop.xlane.xlu0 %1587 }
 0x565   : > { %v1575_v26 = vcvt.f32.s32 %v1574_v1  ;;  %v1589_v30 = vcvt.f32.s32 %v1588_v17  ;;  %vm1636_vm5 = vcmp.eq.s32.totalorder %v8770_v23, %v1550_v0  ;;  %vm1637_vm6 = vcmp.eq.s32.totalorder %v8770_v23, %v1564_v46 }
 0x566   : > { %v8796_v51 = vsel %vm1636_vm5, -inf, %v8746_v22  ;;  %v8799_v61 = vsel %vm1637_vm6, -inf, %v8753_v49 }
 0x567   : > { %v1578_v39 = vadd.s32 %v1577_v56, %v1575_v26  ;;  %v1592_v5 = vadd.s32 %v1591_v19, %v1589_v30  ;;  %1653 = vmax.xlane.f32.xlu1 %v8796_v51  ;;  %1655 = vmax.xlane.f32.xlu0 %v8799_v61 }
 0x568   : > { %v1602_v3 = vpop.xlane.xlu1 %1601  ;;  %v1616_v8 = vpop.xlane.xlu0 %1615 }
 0x569   : > { %v1603_v9 = vcvt.f32.s32 %v1602_v3  ;;  %v1617_v2 = vcvt.f32.s32 %v1616_v8  ;;  %vm1638_vm7 = vcmp.eq.s32.totalorder %v8770_v23, %v1578_v39  ;;  %vm1639_vm8 = vcmp.eq.s32.totalorder %v8770_v23, %v1592_v5 }
 0x56a   : > { %v8806_v10 = vsel %vm1638_vm7, -inf, %v8751_v48  ;;  %v8809_v11 = vsel %vm1639_vm8, -inf, %v8759_v21 }
 0x56b   : > { %v1606_v12 = vadd.s32 %v1605_v4, %v1603_v9  ;;  %v1620_v13 = vadd.s32 %v1619_v6, %v1617_v2  ;;  %1657 = vmax.xlane.f32.xlu1 %v8806_v10  ;;  %1659 = vmax.xlane.f32.xlu0 %v8809_v11 }
 0x56c   : > { %v1630_v14 = vpop.xlane.xlu1 %1629 }
 0x56d   : > { %v1631_v44 = vcvt.f32.s32 %v1630_v14  ;;  %vm1640_vm9 = vcmp.eq.s32.totalorder %v8770_v23, %v1606_v12  ;;  %vm1641_vm10 = vcmp.eq.s32.totalorder %v8770_v23, %v1620_v13 }
 0x56e   : > { %v8816_v20 = vsel %vm1640_vm9, -inf, %v8757_v59  ;;  %v8819_v45 = vsel %vm1641_vm10, -inf, %v8765_v31 }
 0x56f   : > { %v1634_v36 = vadd.s32 %v1633_v15, %v1631_v44  ;;  %1661 = vmax.xlane.f32.xlu1 %v8816_v20  ;;  %1663 = vmax.xlane.f32.xlu0 %v8819_v45 }
 0x571   : > { %vm1642_vm11 = vcmp.eq.s32.totalorder %v8770_v23, %v1634_v36 }
 0x572   : > { %v8825_v42 = vsel %vm1642_vm11, -inf, %v8763_v37 }
 0x573   : > { %1665 = vmax.xlane.f32.xlu1 %v8825_v42 }
 0x5ec   : > { %v1652_v38 = vpop.xlane.xlu0 %1651 }
 0x5ed   : > { %vm1667_vm12 = vcmp.eq.f32.partialorder %v8790_v32, %v1652_v38 }
 0x5ee   : > { %v1675_v53 = vsel %vm1667_vm12, %v8770_v23, 128 }
 0x5ef   : > { %v1684_v62 = vshra.s32 %v1675_v53, 16  ;;  %v1683_v39 = vand.u32 65535, %v1675_v53 }
 0x5f0   : > { %v1654_v24 = vpop.xlane.xlu1 %1653  ;;  %v1656_v34 = vpop.xlane.xlu0 %1655 }
 0x5f1   : > { %vm1668_vm13 = vcmp.eq.f32.partialorder %v8796_v51, %v1654_v24  ;;  %vm1669_vm14 = vcmp.eq.f32.partialorder %v8799_v61, %v1656_v34  ;;  %v1686_v54 = vcvt.s32.f32 %v1684_v62  ;;  %v1685_v4 = vcvt.s32.f32 %v1683_v39 }
 0x5f2   : > { %v1676_v33 = vsel %vm1668_vm13, %v8770_v23, 128  ;;  %v1677_v43 = vsel %vm1669_vm14, %v8770_v23, 128 }
 0x5f3   : > { %1687 = vmin.xlane.f32.xlu0 %v1686_v54  ;;  %v1698_v50 = vshra.s32 %v1676_v33, 16  ;;  %v1712_v52 = vshra.s32 %v1677_v43, 16  ;;  %v1697_v6 = vand.u32 65535, %v1676_v33  ;;  %v1711_v7 = vand.u32 65535, %v1677_v43 }
 0x5f4   : > { %v1658_v63 = vpop.xlane.xlu1 %1657  ;;  %v1660_v25 = vpop.xlane.xlu0 %1659 }
 0x5f5   : > { %vm1670_vm15 = vcmp.eq.f32.partialorder %v8806_v10, %v1658_v63  ;;  %vm1671_vm0 = vcmp.eq.f32.partialorder %v8809_v11, %v1660_v25  ;;  %v1700_v35 = vcvt.s32.f32 %v1698_v50  ;;  %v1714_v55 = vcvt.s32.f32 %v1712_v52 }
 0x5f6   : > { %v1678_v27 = vsel %vm1670_vm15, %v8770_v23, 128  ;;  %v1679_v47 = vsel %vm1671_vm0, %v8770_v23, 128  ;;  %v1699_v2 = vcvt.s32.f32 %v1697_v6  ;;  %v1713_v12 = vcvt.s32.f32 %v1711_v7 }
 0x5f7   : > { %1701 = vmin.xlane.f32.xlu1 %v1700_v35  ;;  %1715 = vmin.xlane.f32.xlu0 %v1714_v55  ;;  %v1726_v58 = vshra.s32 %v1678_v27, 16  ;;  %v1740_v57 = vshra.s32 %v1679_v47, 16  ;;  %v1725_v13 = vand.u32 65535, %v1678_v27  ;;  %v1739_v14 = vand.u32 65535, %v1679_v47 }
 0x5f8   : > { %v1662_v18 = vpop.xlane.xlu1 %1661  ;;  %v1664_v28 = vpop.xlane.xlu0 %1663 }
 0x5f9   : > { %vm1672_vm1 = vcmp.eq.f32.partialorder %v8816_v20, %v1662_v18  ;;  %vm1673_vm3 = vcmp.eq.f32.partialorder %v8819_v45, %v1664_v28  ;;  %v1728_v40 = vcvt.s32.f32 %v1726_v58  ;;  %v1742_v16 = vcvt.s32.f32 %v1740_v57 }
 0x5fa   : > { %v1680_v0 = vsel %vm1672_vm1, %v8770_v23, 128  ;;  %v1681_v46 = vsel %vm1673_vm3, %v8770_v23, 128  ;;  %v1727_v53 = vcvt.s32.f32 %v1725_v13  ;;  %v1741_v62 = vcvt.s32.f32 %v1739_v14 }
 0x5fb   : > { %1729 = vmin.xlane.f32.xlu1 %v1728_v40  ;;  %1743 = vmin.xlane.f32.xlu0 %v1742_v16  ;;  %v1754_v56 = vshra.s32 %v1680_v0, 16  ;;  %v1768_v19 = vshra.s32 %v1681_v46, 16  ;;  %v1753_v24 = vand.u32 65535, %v1680_v0  ;;  %v1767_v34 = vand.u32 65535, %v1681_v46 }
 0x5fc   : > { %v1666_v29 = vpop.xlane.xlu1 %1665 }
 0x5fd   : > { %vm1674_vm4 = vcmp.eq.f32.partialorder %v8825_v42, %v1666_v29  ;;  %v1756_v41 = vcvt.s32.f32 %v1754_v56  ;;  %v1770_v1 = vcvt.s32.f32 %v1768_v19  ;;  %v1755_v52 = vcvt.s32.f32 %v1753_v24 }
 0x5fe   : > { %v1682_v17 = vsel %vm1674_vm4, %v8770_v23, 128  ;;  %v1769_v63 = vcvt.s32.f32 %v1767_v34 }
 0x5ff   : > { %1757 = vmin.xlane.f32.xlu1 %v1756_v41  ;;  %1771 = vmin.xlane.f32.xlu0 %v1770_v1  ;;  %v1782_v26 = vshra.s32 %v1682_v17, 16  ;;  %v1781_v25 = vand.u32 65535, %v1682_v17 }
 0x601   : > { %v1784_v30 = vcvt.s32.f32 %v1782_v26  ;;  %v1783_v47 = vcvt.s32.f32 %v1781_v25 }
 0x603   : > { %1785 = vmin.xlane.f32.xlu1 %v1784_v30 }
 0x67c   : > { %v1688_v5 = vpop.xlane.xlu0 %1687 }
 0x67d   : > { %vm1689_vm5 = vcmp.eq.f32.partialorder %v1686_v54, %v1688_v5  ;;  %v1694_v57 = vcvt.f32.s32 %v1688_v5 }
 0x67e   : > { %v1690_v3 = vsel %vm1689_vm5, %v1685_v4, inf }
 0x67f   : > { %1691 = vmin.xlane.f32.xlu0 %v1690_v3 }
 0x680   : > { %v1702_v8 = vpop.xlane.xlu1 %1701  ;;  %v1716_v9 = vpop.xlane.xlu0 %1715 }
 0x681   : > { %vm1703_vm6 = vcmp.eq.f32.partialorder %v1700_v35, %v1702_v8  ;;  %vm1717_vm7 = vcmp.eq.f32.partialorder %v1714_v55, %v1716_v9  ;;  %v1708_v18 = vcvt.f32.s32 %v1702_v8 }
 0x682   : > { %v1704_v15 = vsel %vm1703_vm6, %v1699_v2, inf  ;;  %v1718_v44 = vsel %vm1717_vm7, %v1713_v12, inf }
 0x683   : > { %1705 = vmin.xlane.f32.xlu1 %v1704_v15  ;;  %1719 = vmin.xlane.f32.xlu0 %v1718_v44  ;;  %v1709_v56 = vshll.u32 %v1708_v18, 16 }
 0x684   : > { %v1730_v36 = vpop.xlane.xlu1 %1729  ;;  %v1744_v38 = vpop.xlane.xlu0 %1743 }
 0x685   : > { %vm1731_vm8 = vcmp.eq.f32.partialorder %v1728_v40, %v1730_v36  ;;  %vm1745_vm9 = vcmp.eq.f32.partialorder %v1742_v16, %v1744_v38  ;;  %v1695_v40 = vshll.u32 %v1694_v57, 16  ;;  %v1722_v16 = vcvt.f32.s32 %v1716_v9 }
 0x686   : > { %v1732_v54 = vsel %vm1731_vm8, %v1727_v53, inf  ;;  %v1746_v33 = vsel %vm1745_vm9, %v1741_v62, inf  ;;  %v1736_v19 = vcvt.f32.s32 %v1730_v36  ;;  %v1750_v29 = vcvt.f32.s32 %v1744_v38 }
 0x687   : > { %1733 = vmin.xlane.f32.xlu1 %v1732_v54  ;;  %1747 = vmin.xlane.f32.xlu0 %v1746_v33  ;;  %v1723_v17 = vshll.u32 %v1722_v16, 16 }
 0x688   : > { %v1758_v43 = vpop.xlane.xlu1 %1757  ;;  %v1772_v50 = vpop.xlane.xlu0 %1771  ;;  %v1737_v6 = vshll.u32 %v1736_v19, 16  ;;  %v1751_v7 = vshll.u32 %v1750_v29, 16 }
 0x689   : > { %vm1759_vm10 = vcmp.eq.f32.partialorder %v1756_v41, %v1758_v43  ;;  %vm1773_vm11 = vcmp.eq.f32.partialorder %v1770_v1, %v1772_v50  ;;  %v1764_v3 = vcvt.f32.s32 %v1758_v43  ;;  %v1778_v8 = vcvt.f32.s32 %v1772_v50 }
 0x68a   : > { %v1760_v35 = vsel %vm1759_vm10, %v1755_v52, inf  ;;  %v1774_v55 = vsel %vm1773_vm11, %v1769_v63, inf }
 0x68b   : > { %1761 = vmin.xlane.f32.xlu1 %v1760_v35  ;;  %1775 = vmin.xlane.f32.xlu0 %v1774_v55  ;;  %v1765_v36 = vshll.u32 %v1764_v3, 16  ;;  %v1779_v38 = vshll.u32 %v1778_v8, 16 }
 0x68c   : > { %v1786_v27 = vpop.xlane.xlu1 %1785 }
 0x68d   : > { %vm1787_vm12 = vcmp.eq.f32.partialorder %v1784_v30, %v1786_v27  ;;  %v1792_v53 = vcvt.f32.s32 %v1786_v27 }
 0x68e   : > { %v1788_v58 = vsel %vm1787_vm12, %v1783_v47, inf }
 0x68f   : > { %1789 = vmin.xlane.f32.xlu1 %v1788_v58  ;;  %v1793_v52 = vshll.u32 %v1792_v53, 16 }
 0x708   : > { %v1692_v28 = vpop.xlane.xlu0 %1691 }
 0x709   : > { %v1693_v0 = vcvt.f32.s32 %v1692_v28 }
 0x70b   : > { %v1696_v46 = vadd.s32 %v1695_v40, %v1693_v0 }
 0x70c   : > { %v1706_v41 = vpop.xlane.xlu1 %1705  ;;  %v1720_v1 = vpop.xlane.xlu0 %1719 }
 0x70d   : > { %v1707_v26 = vcvt.f32.s32 %v1706_v41  ;;  %v1721_v39 = vcvt.f32.s32 %v1720_v1  ;;  %vm1795_vm13 = vcmp.eq.s32.totalorder %v8770_v23, %v1696_v46 }
 0x70e   : > { %v8846_v30 = vsel %vm1795_vm13, -inf, %v8790_v32 }
 0x70f   : > { %v1710_v5 = vadd.s32 %v1709_v56, %v1707_v26  ;;  %v1724_v4 = vadd.s32 %v1723_v17, %v1721_v39  ;;  %1811 = vmax.xlane.f32.xlu0 %v8846_v30 }
 0x710   : > { %v1734_v9 = vpop.xlane.xlu1 %1733  ;;  %v1748_v2 = vpop.xlane.xlu0 %1747 }
 0x711   : > { %v1735_v12 = vcvt.f32.s32 %v1734_v9  ;;  %v1749_v13 = vcvt.f32.s32 %v1748_v2  ;;  %vm1796_vm14 = vcmp.eq.s32.totalorder %v8770_v23, %v1710_v5  ;;  %vm1797_vm15 = vcmp.eq.s32.totalorder %v8770_v23, %v1724_v4 }
 0x712   : > { %v8852_v14 = vsel %vm1796_vm14, -inf, %v8796_v51  ;;  %v8855_v32 = vsel %vm1797_vm15, -inf, %v8799_v61 }
 0x713   : > { %v1738_v15 = vadd.s32 %v1737_v6, %v1735_v12  ;;  %v1752_v44 = vadd.s32 %v1751_v7, %v1749_v13  ;;  %1813 = vmax.xlane.f32.xlu1 %v8852_v14  ;;  %1815 = vmax.xlane.f32.xlu0 %v8855_v32 }
 0x714   : > { %v1762_v62 = vpop.xlane.xlu1 %1761  ;;  %v1776_v24 = vpop.xlane.xlu0 %1775 }
 0x715   : > { %v1763_v34 = vcvt.f32.s32 %v1762_v62  ;;  %v1777_v54 = vcvt.f32.s32 %v1776_v24  ;;  %vm1798_vm0 = vcmp.eq.s32.totalorder %v8770_v23, %v1738_v15  ;;  %vm1799_vm1 = vcmp.eq.s32.totalorder %v8770_v23, %v1752_v44 }
 0x716   : > { %v8862_v51 = vsel %vm1798_vm0, -inf, %v8806_v10  ;;  %v8865_v61 = vsel %vm1799_vm1, -inf, %v8809_v11 }
 0x717   : > { %v1766_v33 = vadd.s32 %v1765_v36, %v1763_v34  ;;  %v1780_v43 = vadd.s32 %v1779_v38, %v1777_v54  ;;  %1817 = vmax.xlane.f32.xlu1 %v8862_v51  ;;  %1819 = vmax.xlane.f32.xlu0 %v8865_v61 }
 0x718   : > { %v1790_v50 = vpop.xlane.xlu1 %1789 }
 0x719   : > { %v1791_v63 = vcvt.f32.s32 %v1790_v50  ;;  %vm1800_vm3 = vcmp.eq.s32.totalorder %v8770_v23, %v1766_v33  ;;  %vm1801_vm4 = vcmp.eq.s32.totalorder %v8770_v23, %v1780_v43 }
 0x71a   : > { %v8872_v25 = vsel %vm1800_vm3, -inf, %v8816_v20  ;;  %v8875_v10 = vsel %vm1801_vm4, -inf, %v8819_v45 }
 0x71b   : > { %v1794_v11 = vadd.s32 %v1793_v52, %v1791_v63  ;;  %1821 = vmax.xlane.f32.xlu1 %v8872_v25  ;;  %1823 = vmax.xlane.f32.xlu0 %v8875_v10 }
 0x71d   : > { %vm1802_vm5 = vcmp.eq.s32.totalorder %v8770_v23, %v1794_v11 }
 0x71e   : > { %v8881_v35 = vsel %vm1802_vm5, -inf, %v8825_v42 }
 0x71f   : > { %1825 = vmax.xlane.f32.xlu1 %v8881_v35 }
 0x798   : > { %v1812_v55 = vpop.xlane.xlu0 %1811 }
 0x799   : > { %vm1827_vm6 = vcmp.eq.f32.partialorder %v8846_v30, %v1812_v55 }
 0x79a   : > { %v1835_v20 = vsel %vm1827_vm6, %v8770_v23, 128 }
 0x79b   : > { %v1844_v27 = vshra.s32 %v1835_v20, 16  ;;  %v1843_v15 = vand.u32 65535, %v1835_v20 }
 0x79c   : > { %v1814_v45 = vpop.xlane.xlu1 %1813  ;;  %v1816_v47 = vpop.xlane.xlu0 %1815 }
 0x79d   : > { %vm1828_vm7 = vcmp.eq.f32.partialorder %v8852_v14, %v1814_v45  ;;  %vm1829_vm8 = vcmp.eq.f32.partialorder %v8855_v32, %v1816_v47  ;;  %v1846_v58 = vcvt.s32.f32 %v1844_v27  ;;  %v1845_v36 = vcvt.s32.f32 %v1843_v15 }
 0x79e   : > { %v1836_v57 = vsel %vm1828_vm7, %v8770_v23, 128  ;;  %v1837_v42 = vsel %vm1829_vm8, %v8770_v23, 128 }
 0x79f   : > { %1847 = vmin.xlane.f32.xlu0 %v1846_v58  ;;  %v1858_v18 = vshra.s32 %v1836_v57, 16  ;;  %v1872_v28 = vshra.s32 %v1837_v42, 16  ;;  %v1857_v38 = vand.u32 65535, %v1836_v57  ;;  %v1871_v53 = vand.u32 65535, %v1837_v42 }
 0x7a0   : > { %v1818_v40 = vpop.xlane.xlu1 %1817  ;;  %v1820_v16 = vpop.xlane.xlu0 %1819 }
 0x7a1   : > { %vm1830_vm9 = vcmp.eq.f32.partialorder %v8862_v51, %v1818_v40  ;;  %vm1831_vm10 = vcmp.eq.f32.partialorder %v8865_v61, %v1820_v16  ;;  %v1860_v0 = vcvt.s32.f32 %v1858_v18  ;;  %v1874_v46 = vcvt.s32.f32 %v1872_v28 }
 0x7a2   : > { %v1838_v56 = vsel %vm1830_vm9, %v8770_v23, 128  ;;  %v1839_v19 = vsel %vm1831_vm10, %v8770_v23, 128  ;;  %v1859_v54 = vcvt.s32.f32 %v1857_v38  ;;  %v1873_v33 = vcvt.s32.f32 %v1871_v53 }
 0x7a3   : > { %1861 = vmin.xlane.f32.xlu1 %v1860_v0  ;;  %1875 = vmin.xlane.f32.xlu0 %v1874_v46  ;;  %v1886_v29 = vshra.s32 %v1838_v56, 16  ;;  %v1900_v41 = vshra.s32 %v1839_v19, 16  ;;  %v1885_v43 = vand.u32 65535, %v1838_v56  ;;  %v1899_v50 = vand.u32 65535, %v1839_v19 }
 0x7a4   : > { %v1822_v1 = vpop.xlane.xlu1 %1821  ;;  %v1824_v17 = vpop.xlane.xlu0 %1823 }
 0x7a5   : > { %vm1832_vm11 = vcmp.eq.f32.partialorder %v8872_v25, %v1822_v1  ;;  %vm1833_vm12 = vcmp.eq.f32.partialorder %v8875_v10, %v1824_v17  ;;  %v1888_v26 = vcvt.s32.f32 %v1886_v29  ;;  %v1902_v39 = vcvt.s32.f32 %v1900_v41 }
 0x7a6   : > { %v1840_v5 = vsel %vm1832_vm11, %v8770_v23, 128  ;;  %v1841_v4 = vsel %vm1833_vm12, %v8770_v23, 128  ;;  %v1887_v20 = vcvt.s32.f32 %v1885_v43  ;;  %v1901_v27 = vcvt.s32.f32 %v1899_v50 }
 0x7a7   : > { %1889 = vmin.xlane.f32.xlu1 %v1888_v26  ;;  %1903 = vmin.xlane.f32.xlu0 %v1902_v39  ;;  %v1914_v6 = vshra.s32 %v1840_v5, 16  ;;  %v1928_v7 = vshra.s32 %v1841_v4, 16  ;;  %v1913_v45 = vand.u32 65535, %v1840_v5  ;;  %v1927_v47 = vand.u32 65535, %v1841_v4 }
 0x7a8   : > { %v1826_v3 = vpop.xlane.xlu1 %1825 }
 0x7a9   : > { %vm1834_vm13 = vcmp.eq.f32.partialorder %v8881_v35, %v1826_v3  ;;  %v1916_v8 = vcvt.s32.f32 %v1914_v6  ;;  %v1930_v9 = vcvt.s32.f32 %v1928_v7  ;;  %v1915_v28 = vcvt.s32.f32 %v1913_v45 }
 0x7aa   : > { %v1842_v2 = vsel %vm1834_vm13, %v8770_v23, 128  ;;  %v1929_v40 = vcvt.s32.f32 %v1927_v47 }
 0x7ab   : > { %1917 = vmin.xlane.f32.xlu1 %v1916_v8  ;;  %1931 = vmin.xlane.f32.xlu0 %v1930_v9  ;;  %v1942_v12 = vshra.s32 %v1842_v2, 16  ;;  %v1941_v16 = vand.u32 65535, %v1842_v2 }
 0x7ad   : > { %v1944_v13 = vcvt.s32.f32 %v1942_v12  ;;  %v1943_v19 = vcvt.s32.f32 %v1941_v16 }
 0x7af   : > { %1945 = vmin.xlane.f32.xlu1 %v1944_v13 }
 0x828   : > { %v1848_v44 = vpop.xlane.xlu0 %1847 }
 0x829   : > { %vm1849_vm14 = vcmp.eq.f32.partialorder %v1846_v58, %v1848_v44  ;;  %v1854_v41 = vcvt.f32.s32 %v1848_v44 }
 0x82a   : > { %v1850_v62 = vsel %vm1849_vm14, %v1845_v36, inf }
 0x82b   : > { %1851 = vmin.xlane.f32.xlu0 %v1850_v62 }
 0x82c   : > { %v1862_v24 = vpop.xlane.xlu1 %1861  ;;  %v1876_v34 = vpop.xlane.xlu0 %1875 }
 0x82d   : > { %vm1863_vm15 = vcmp.eq.f32.partialorder %v1860_v0, %v1862_v24  ;;  %vm1877_vm0 = vcmp.eq.f32.partialorder %v1874_v46, %v1876_v34  ;;  %v1868_v1 = vcvt.f32.s32 %v1862_v24 }
 0x82e   : > { %v1864_v52 = vsel %vm1863_vm15, %v1859_v54, inf  ;;  %v1878_v63 = vsel %vm1877_vm0, %v1873_v33, inf }
 0x82f   : > { %1865 = vmin.xlane.f32.xlu1 %v1864_v52  ;;  %1879 = vmin.xlane.f32.xlu0 %v1878_v63  ;;  %v1869_v6 = vshll.u32 %v1868_v1, 16 }
 0x830   : > { %v1890_v11 = vpop.xlane.xlu1 %1889  ;;  %v1904_v55 = vpop.xlane.xlu0 %1903 }
 0x831   : > { %vm1891_vm1 = vcmp.eq.f32.partialorder %v1888_v26, %v1890_v11  ;;  %vm1905_vm3 = vcmp.eq.f32.partialorder %v1902_v39, %v1904_v55  ;;  %v1855_v26 = vshll.u32 %v1854_v41, 16  ;;  %v1882_v39 = vcvt.f32.s32 %v1876_v34 }
 0x832   : > { %v1892_v58 = vsel %vm1891_vm1, %v1887_v20, inf  ;;  %v1906_v57 = vsel %vm1905_vm3, %v1901_v27, inf  ;;  %v1896_v7 = vcvt.f32.s32 %v1890_v11  ;;  %v1910_v3 = vcvt.f32.s32 %v1904_v55 }
 0x833   : > { %1893 = vmin.xlane.f32.xlu1 %v1892_v58  ;;  %1907 = vmin.xlane.f32.xlu0 %v1906_v57  ;;  %v1883_v2 = vshll.u32 %v1882_v39, 16 }
 0x834   : > { %v1918_v42 = vpop.xlane.xlu1 %1917  ;;  %v1932_v18 = vpop.xlane.xlu0 %1931  ;;  %v1897_v38 = vshll.u32 %v1896_v7, 16  ;;  %v1911_v53 = vshll.u32 %v1910_v3, 16 }
 0x835   : > { %vm1919_vm4 = vcmp.eq.f32.partialorder %v1916_v8, %v1918_v42  ;;  %vm1933_vm5 = vcmp.eq.f32.partialorder %v1930_v9, %v1932_v18  ;;  %v1924_v62 = vcvt.f32.s32 %v1918_v42  ;;  %v1938_v24 = vcvt.f32.s32 %v1932_v18 }
 0x836   : > { %v1920_v0 = vsel %vm1919_vm4, %v1915_v28, inf  ;;  %v1934_v46 = vsel %vm1933_vm5, %v1929_v40, inf }
 0x837   : > { %1921 = vmin.xlane.f32.xlu1 %v1920_v0  ;;  %1935 = vmin.xlane.f32.xlu0 %v1934_v46  ;;  %v1925_v11 = vshll.u32 %v1924_v62, 16  ;;  %v1939_v55 = vshll.u32 %v1938_v24, 16 }
 0x838   : > { %v1946_v56 = vpop.xlane.xlu1 %1945 }
 0x839   : > { %vm1947_vm6 = vcmp.eq.f32.partialorder %v1944_v13, %v1946_v56  ;;  %v1952_v20 = vcvt.f32.s32 %v1946_v56 }
 0x83a   : > { %v1948_v29 = vsel %vm1947_vm6, %v1943_v19, inf }
 0x83b   : > { %1949 = vmin.xlane.f32.xlu1 %v1948_v29  ;;  %v1953_v28 = vshll.u32 %v1952_v20, 16 }
 0x8b4   : > { %v1852_v17 = vpop.xlane.xlu0 %1851 }
 0x8b5   : > { %v1853_v5 = vcvt.f32.s32 %v1852_v17 }
 0x8b7   : > { %v1856_v4 = vadd.s32 %v1855_v26, %v1853_v5 }
 0x8b8   : > { %v1866_v8 = vpop.xlane.xlu1 %1865  ;;  %v1880_v9 = vpop.xlane.xlu0 %1879 }
 0x8b9   : > { %v1867_v12 = vcvt.f32.s32 %v1866_v8  ;;  %v1881_v15 = vcvt.f32.s32 %v1880_v9  ;;  %vm1955_vm7 = vcmp.eq.s32.totalorder %v8770_v23, %v1856_v4 }
 0x8ba   : > { %v8902_v13 = vsel %vm1955_vm7, -inf, %v8846_v30 }
 0x8bb   : > { %v1870_v44 = vadd.s32 %v1869_v6, %v1867_v12  ;;  %v1884_v36 = vadd.s32 %v1883_v2, %v1881_v15  ;;  %1971 = vmax.xlane.f32.xlu0 %v8902_v13 }
 0x8bc   : > { %v1894_v34 = vpop.xlane.xlu1 %1893  ;;  %v1908_v54 = vpop.xlane.xlu0 %1907 }
 0x8bd   : > { %v1895_v33 = vcvt.f32.s32 %v1894_v34  ;;  %v1909_v43 = vcvt.f32.s32 %v1908_v54  ;;  %vm1956_vm8 = vcmp.eq.s32.totalorder %v8770_v23, %v1870_v44  ;;  %vm1957_vm9 = vcmp.eq.s32.totalorder %v8770_v23, %v1884_v36 }
 0x8be   : > { %v8908_v50 = vsel %vm1956_vm8, -inf, %v8852_v14  ;;  %v8911_v30 = vsel %vm1957_vm9, -inf, %v8855_v32 }
 0x8bf   : > { %v1898_v52 = vadd.s32 %v1897_v38, %v1895_v33  ;;  %v1912_v63 = vadd.s32 %v1911_v53, %v1909_v43  ;;  %1973 = vmax.xlane.f32.xlu1 %v8908_v50  ;;  %1975 = vmax.xlane.f32.xlu0 %v8911_v30 }
 0x8c0   : > { %v1922_v27 = vpop.xlane.xlu1 %1921  ;;  %v1936_v45 = vpop.xlane.xlu0 %1935 }
 0x8c1   : > { %v1923_v47 = vcvt.f32.s32 %v1922_v27  ;;  %v1937_v58 = vcvt.f32.s32 %v1936_v45  ;;  %vm1958_vm10 = vcmp.eq.s32.totalorder %v8770_v23, %v1898_v52  ;;  %vm1959_vm11 = vcmp.eq.s32.totalorder %v8770_v23, %v1912_v63 }
 0x8c2   : > { %v8918_v14 = vsel %vm1958_vm10, -inf, %v8862_v51  ;;  %v8921_v32 = vsel %vm1959_vm11, -inf, %v8865_v61 }
 0x8c3   : > { %v1926_v57 = vadd.s32 %v1925_v11, %v1923_v47  ;;  %v1940_v42 = vadd.s32 %v1939_v55, %v1937_v58  ;;  %1977 = vmax.xlane.f32.xlu1 %v8918_v14  ;;  %1979 = vmax.xlane.f32.xlu0 %v8921_v32 }
 0x8c4   : > { %v1950_v18 = vpop.xlane.xlu1 %1949 }
 0x8c5   : > { %v1951_v40 = vcvt.f32.s32 %v1950_v18  ;;  %vm1960_vm12 = vcmp.eq.s32.totalorder %v8770_v23, %v1926_v57  ;;  %vm1961_vm13 = vcmp.eq.s32.totalorder %v8770_v23, %v1940_v42 }
 0x8c6   : > { %v8928_v16 = vsel %vm1960_vm12, -inf, %v8872_v25  ;;  %v8931_v51 = vsel %vm1961_vm13, -inf, %v8875_v10 }
 0x8c7   : > { %v1954_v61 = vadd.s32 %v1953_v28, %v1951_v40  ;;  %1981 = vmax.xlane.f32.xlu1 %v8928_v16  ;;  %1983 = vmax.xlane.f32.xlu0 %v8931_v51 }
 0x8c9   : > { %vm1962_vm14 = vcmp.eq.s32.totalorder %v8770_v23, %v1954_v61 }
 0x8ca   : > { %v8937_v0 = vsel %vm1962_vm14, -inf, %v8881_v35 }
 0x8cb   : > { %1985 = vmax.xlane.f32.xlu1 %v8937_v0 }
 0x944   : > { %v1972_v46 = vpop.xlane.xlu0 %1971 }
 0x945   : > { %vm1987_vm15 = vcmp.eq.f32.partialorder %v8902_v13, %v1972_v46 }
 0x946   : > { %v1995_v25 = vsel %vm1987_vm15, %v8770_v23, 128 }
 0x947   : > { %v2004_v56 = vshra.s32 %v1995_v25, 16  ;;  %v2003_v52 = vand.u32 65535, %v1995_v25 }
 0x948   : > { %v1974_v10 = vpop.xlane.xlu1 %1973  ;;  %v1976_v19 = vpop.xlane.xlu0 %1975 }
 0x949   : > { %vm1988_vm0 = vcmp.eq.f32.partialorder %v8908_v50, %v1974_v10  ;;  %vm1989_vm1 = vcmp.eq.f32.partialorder %v8911_v30, %v1976_v19  ;;  %v2006_v29 = vcvt.s32.f32 %v2004_v56  ;;  %v2005_v11 = vcvt.s32.f32 %v2003_v52 }
 0x94a   : > { %v1996_v41 = vsel %vm1988_vm0, %v8770_v23, 128  ;;  %v1997_v35 = vsel %vm1989_vm1, %v8770_v23, 128 }
 0x94b   : > { %2007 = vmin.xlane.f32.xlu0 %v2006_v29  ;;  %v2018_v1 = vshra.s32 %v1996_v41, 16  ;;  %v2032_v17 = vshra.s32 %v1997_v35, 16  ;;  %v2017_v55 = vand.u32 65535, %v1996_v41  ;;  %v2031_v20 = vand.u32 65535, %v1997_v35 }
 0x94c   : > { %v1978_v26 = vpop.xlane.xlu1 %1977  ;;  %v1980_v39 = vpop.xlane.xlu0 %1979 }
 0x94d   : > { %vm1990_vm3 = vcmp.eq.f32.partialorder %v8918_v14, %v1978_v26  ;;  %vm1991_vm4 = vcmp.eq.f32.partialorder %v8921_v32, %v1980_v39  ;;  %v2020_v5 = vcvt.s32.f32 %v2018_v1  ;;  %v2034_v4 = vcvt.s32.f32 %v2032_v17 }
 0x94e   : > { %v1998_v6 = vsel %vm1990_vm3, %v8770_v23, 128  ;;  %v1999_v7 = vsel %vm1991_vm4, %v8770_v23, 128  ;;  %v2019_v58 = vcvt.s32.f32 %v2017_v55  ;;  %v2033_v57 = vcvt.s32.f32 %v2031_v20 }
 0x94f   : > { %2021 = vmin.xlane.f32.xlu1 %v2020_v5  ;;  %2035 = vmin.xlane.f32.xlu0 %v2034_v4  ;;  %v2046_v3 = vshra.s32 %v1998_v6, 16  ;;  %v2060_v8 = vshra.s32 %v1999_v7, 16  ;;  %v2045_v42 = vand.u32 65535, %v1998_v6  ;;  %v2059_v18 = vand.u32 65535, %v1999_v7 }
 0x950   : > { %v1982_v9 = vpop.xlane.xlu1 %1981  ;;  %v1984_v2 = vpop.xlane.xlu0 %1983 }
 0x951   : > { %vm1992_vm5 = vcmp.eq.f32.partialorder %v8928_v16, %v1982_v9  ;;  %vm1993_vm6 = vcmp.eq.f32.partialorder %v8931_v51, %v1984_v2  ;;  %v2048_v12 = vcvt.s32.f32 %v2046_v3  ;;  %v2062_v15 = vcvt.s32.f32 %v2060_v8 }
 0x952   : > { %v2000_v44 = vsel %vm1992_vm5, %v8770_v23, 128  ;;  %v2001_v36 = vsel %vm1993_vm6, %v8770_v23, 128  ;;  %v2047_v25 = vcvt.s32.f32 %v2045_v42  ;;  %v2061_v56 = vcvt.s32.f32 %v2059_v18 }
 0x953   : > { %2049 = vmin.xlane.f32.xlu1 %v2048_v12  ;;  %2063 = vmin.xlane.f32.xlu0 %v2062_v15  ;;  %v2074_v38 = vshra.s32 %v2000_v44, 16  ;;  %v2088_v53 = vshra.s32 %v2001_v36, 16  ;;  %v2073_v10 = vand.u32 65535, %v2000_v44  ;;  %v2087_v19 = vand.u32 65535, %v2001_v36 }
 0x954   : > { %v1986_v62 = vpop.xlane.xlu1 %1985 }
 0x955   : > { %vm1994_vm7 = vcmp.eq.f32.partialorder %v8937_v0, %v1986_v62  ;;  %v2076_v24 = vcvt.s32.f32 %v2074_v38  ;;  %v2090_v34 = vcvt.s32.f32 %v2088_v53  ;;  %v2075_v17 = vcvt.s32.f32 %v2073_v10 }
 0x956   : > { %v2002_v54 = vsel %vm1994_vm7, %v8770_v23, 128  ;;  %v2089_v26 = vcvt.s32.f32 %v2087_v19 }
 0x957   : > { %2077 = vmin.xlane.f32.xlu1 %v2076_v24  ;;  %2091 = vmin.xlane.f32.xlu0 %v2090_v34  ;;  %v2102_v33 = vshra.s32 %v2002_v54, 16  ;;  %v2101_v39 = vand.u32 65535, %v2002_v54 }
 0x959   : > { %v2104_v43 = vcvt.s32.f32 %v2102_v33  ;;  %v2103_v7 = vcvt.s32.f32 %v2101_v39 }
 0x95b   : > { %2105 = vmin.xlane.f32.xlu1 %v2104_v43 }
 0x9d4   : > { %v2008_v63 = vpop.xlane.xlu0 %2007 }
 0x9d5   : > { %vm2009_vm8 = vcmp.eq.f32.partialorder %v2006_v29, %v2008_v63  ;;  %v2014_v8 = vcvt.f32.s32 %v2008_v63 }
 0x9d6   : > { %v2010_v27 = vsel %vm2009_vm8, %v2005_v11, inf }
 0x9d7   : > { %2011 = vmin.xlane.f32.xlu0 %v2010_v27 }
 0x9d8   : > { %v2022_v45 = vpop.xlane.xlu1 %2021  ;;  %v2036_v47 = vpop.xlane.xlu0 %2035 }
 0x9d9   : > { %vm2023_vm9 = vcmp.eq.f32.partialorder %v2020_v5, %v2022_v45  ;;  %vm2037_vm10 = vcmp.eq.f32.partialorder %v2034_v4, %v2036_v47  ;;  %v2028_v9 = vcvt.f32.s32 %v2022_v45 }
 0x9da   : > { %v2024_v28 = vsel %vm2023_vm9, %v2019_v58, inf  ;;  %v2038_v40 = vsel %vm2037_vm10, %v2033_v57, inf }
 0x9db   : > { %2025 = vmin.xlane.f32.xlu1 %v2024_v28  ;;  %2039 = vmin.xlane.f32.xlu0 %v2038_v40  ;;  %v2029_v38 = vshll.u32 %v2028_v9, 16 }
 0x9dc   : > { %v2050_v61 = vpop.xlane.xlu1 %2049  ;;  %v2064_v46 = vpop.xlane.xlu0 %2063 }
 0x9dd   : > { %vm2051_vm11 = vcmp.eq.f32.partialorder %v2048_v12, %v2050_v61  ;;  %vm2065_vm12 = vcmp.eq.f32.partialorder %v2062_v15, %v2064_v46  ;;  %v2015_v12 = vshll.u32 %v2014_v8, 16  ;;  %v2042_v15 = vcvt.f32.s32 %v2036_v47 }
 0x9de   : > { %v2052_v29 = vsel %vm2051_vm11, %v2047_v25, inf  ;;  %v2066_v41 = vsel %vm2065_vm12, %v2061_v56, inf  ;;  %v2056_v53 = vcvt.f32.s32 %v2050_v61  ;;  %v2070_v62 = vcvt.f32.s32 %v2064_v46 }
 0x9df   : > { %2053 = vmin.xlane.f32.xlu1 %v2052_v29  ;;  %2067 = vmin.xlane.f32.xlu0 %v2066_v41  ;;  %v2043_v54 = vshll.u32 %v2042_v15, 16 }
 0x9e0   : > { %v2078_v35 = vpop.xlane.xlu1 %2077  ;;  %v2092_v1 = vpop.xlane.xlu0 %2091  ;;  %v2057_v55 = vshll.u32 %v2056_v53, 16  ;;  %v2071_v20 = vshll.u32 %v2070_v62, 16 }
 0x9e1   : > { %vm2079_vm13 = vcmp.eq.f32.partialorder %v2076_v24, %v2078_v35  ;;  %vm2093_vm14 = vcmp.eq.f32.partialorder %v2090_v34, %v2092_v1  ;;  %v2084_v27 = vcvt.f32.s32 %v2078_v35  ;;  %v2098_v45 = vcvt.f32.s32 %v2092_v1 }
 0x9e2   : > { %v2080_v5 = vsel %vm2079_vm13, %v2075_v17, inf  ;;  %v2094_v4 = vsel %vm2093_vm14, %v2089_v26, inf }
 0x9e3   : > { %2081 = vmin.xlane.f32.xlu1 %v2080_v5  ;;  %2095 = vmin.xlane.f32.xlu0 %v2094_v4  ;;  %v2085_v61 = vshll.u32 %v2084_v27, 16  ;;  %v2099_v46 = vshll.u32 %v2098_v45, 16 }
 0x9e4   : > { %v2106_v6 = vpop.xlane.xlu1 %2105 }
 0x9e5   : > { %vm2107_vm15 = vcmp.eq.f32.partialorder %v2104_v43, %v2106_v6  ;;  %v2112_v25 = vcvt.f32.s32 %v2106_v6 }
 0x9e6   : > { %v2108_v3 = vsel %vm2107_vm15, %v2103_v7, inf }
 0x9e7   : > { %2109 = vmin.xlane.f32.xlu1 %v2108_v3  ;;  %v2113_v17 = vshll.u32 %v2112_v25, 16 }
 0xa60   : > { %v2012_v2 = vpop.xlane.xlu0 %2011 }
 0xa61   : > { %v2013_v44 = vcvt.f32.s32 %v2012_v2 }
 0xa63   : > { %v2016_v36 = vadd.s32 %v2015_v12, %v2013_v44 }
 0xa64   : > { %v2026_v24 = vpop.xlane.xlu1 %2025  ;;  %v2040_v34 = vpop.xlane.xlu0 %2039 }
 0xa65   : > { %v2027_v33 = vcvt.f32.s32 %v2026_v24  ;;  %v2041_v52 = vcvt.f32.s32 %v2040_v34  ;;  %vm2115_vm0 = vcmp.eq.s32.totalorder %v8770_v23, %v2016_v36 }
 0xa66   : > { %v8958_v43 = vsel %vm2115_vm0, -inf, %v8902_v13 }
 0xa67   : > { %v2030_v63 = vadd.s32 %v2029_v38, %v2027_v33  ;;  %v2044_v11 = vadd.s32 %v2043_v54, %v2041_v52  ;;  %2131 = vmax.xlane.f32.xlu0 %v8958_v43 }
 0xa68   : > { %v2054_v47 = vpop.xlane.xlu1 %2053  ;;  %v2068_v58 = vpop.xlane.xlu0 %2067 }
 0xa69   : > { %v2055_v57 = vcvt.f32.s32 %v2054_v47  ;;  %v2069_v42 = vcvt.f32.s32 %v2068_v58  ;;  %vm2116_vm1 = vcmp.eq.s32.totalorder %v8770_v23, %v2030_v63  ;;  %vm2117_vm3 = vcmp.eq.s32.totalorder %v8770_v23, %v2044_v11 }
 0xa6a   : > { %v8964_v18 = vsel %vm2116_vm1, -inf, %v8908_v50  ;;  %v8967_v13 = vsel %vm2117_vm3, -inf, %v8911_v30 }
 0xa6b   : > { %v2058_v28 = vadd.s32 %v2057_v55, %v2055_v57  ;;  %v2072_v40 = vadd.s32 %v2071_v20, %v2069_v42  ;;  %2133 = vmax.xlane.f32.xlu1 %v8964_v18  ;;  %2135 = vmax.xlane.f32.xlu0 %v8967_v13 }
 0xa6c   : > { %v2082_v56 = vpop.xlane.xlu1 %2081  ;;  %v2096_v10 = vpop.xlane.xlu0 %2095 }
 0xa6d   : > { %v2083_v19 = vcvt.f32.s32 %v2082_v56  ;;  %v2097_v29 = vcvt.f32.s32 %v2096_v10  ;;  %vm2118_vm4 = vcmp.eq.s32.totalorder %v8770_v23, %v2058_v28  ;;  %vm2119_vm5 = vcmp.eq.s32.totalorder %v8770_v23, %v2072_v40 }
 0xa6e   : > { %v8974_v50 = vsel %vm2118_vm4, -inf, %v8918_v14  ;;  %v8977_v30 = vsel %vm2119_vm5, -inf, %v8921_v32 }
 0xa6f   : > { %v2086_v41 = vadd.s32 %v2085_v61, %v2083_v19  ;;  %v2100_v35 = vadd.s32 %v2099_v46, %v2097_v29  ;;  %2137 = vmax.xlane.f32.xlu1 %v8974_v50  ;;  %2139 = vmax.xlane.f32.xlu0 %v8977_v30 }
 0xa70   : > { %v2110_v1 = vpop.xlane.xlu1 %2109 }
 0xa71   : > { %v2111_v26 = vcvt.f32.s32 %v2110_v1  ;;  %vm2120_vm6 = vcmp.eq.s32.totalorder %v8770_v23, %v2086_v41  ;;  %vm2121_vm7 = vcmp.eq.s32.totalorder %v8770_v23, %v2100_v35 }
 0xa72   : > { %v8984_v39 = vsel %vm2120_vm6, -inf, %v8928_v16  ;;  %v8987_v14 = vsel %vm2121_vm7, -inf, %v8931_v51 }
 0xa73   : > { %v2114_v32 = vadd.s32 %v2113_v17, %v2111_v26  ;;  %2141 = vmax.xlane.f32.xlu1 %v8984_v39  ;;  %2143 = vmax.xlane.f32.xlu0 %v8987_v14 }
 0xa75   : > { %vm2122_vm8 = vcmp.eq.s32.totalorder %v8770_v23, %v2114_v32 }
 0xa76   : > { %v8993_v5 = vsel %vm2122_vm8, -inf, %v8937_v0 }
 0xa77   : > { %2145 = vmax.xlane.f32.xlu1 %v8993_v5 }
 0xaf0   : > { %v2132_v4 = vpop.xlane.xlu0 %2131 }
 0xaf1   : > { %vm2147_vm9 = vcmp.eq.f32.partialorder %v8958_v43, %v2132_v4 }
 0xaf2   : > { %v2155_v16 = vsel %vm2147_vm9, %v8770_v23, 128 }
 0xaf3   : > { %v2164_v6 = vshra.s32 %v2155_v16, 16  ;;  %v2163_v28 = vand.u32 65535, %v2155_v16 }
 0xaf4   : > { %v2134_v51 = vpop.xlane.xlu1 %2133  ;;  %v2136_v7 = vpop.xlane.xlu0 %2135 }
 0xaf5   : > { %vm2148_vm10 = vcmp.eq.f32.partialorder %v8964_v18, %v2134_v51  ;;  %vm2149_vm11 = vcmp.eq.f32.partialorder %v8967_v13, %v2136_v7  ;;  %v2166_v3 = vcvt.s32.f32 %v2164_v6  ;;  %v2165_v25 = vcvt.s32.f32 %v2163_v28 }
 0xaf6   : > { %v2156_v8 = vsel %vm2148_vm10, %v8770_v23, 128  ;;  %v2157_v0 = vsel %vm2149_vm11, %v8770_v23, 128 }
 0xaf7   : > { %v2178_v9 = vshra.s32 %v2156_v8, 16  ;;  %v2192_v2 = vshra.s32 %v2157_v0, 16  ;;  %2167 = vmin.xlane.f32.xlu0 %v2166_v3  ;;  %v2177_v40 = vand.u32 65535, %v2156_v8  ;;  %v2191_v61 = vand.u32 65535, %v2157_v0 }
 0xaf8   : > { %v2138_v12 = vpop.xlane.xlu1 %2137  ;;  %v2140_v15 = vpop.xlane.xlu0 %2139 }
 0xaf9   : > { %vm2150_vm12 = vcmp.eq.f32.partialorder %v8974_v50, %v2138_v12  ;;  %vm2151_vm13 = vcmp.eq.f32.partialorder %v8977_v30, %v2140_v15  ;;  %v2180_v44 = vcvt.s32.f32 %v2178_v9  ;;  %v2194_v36 = vcvt.s32.f32 %v2192_v2 }
 0xafa   : > { %v2158_v38 = vsel %vm2150_vm12, %v8770_v23, 128  ;;  %v2159_v53 = vsel %vm2151_vm13, %v8770_v23, 128  ;;  %v2179_v35 = vcvt.s32.f32 %v2177_v40  ;;  %v2193_v1 = vcvt.s32.f32 %v2191_v61 }
 0xafb   : > { %v2206_v62 = vshra.s32 %v2158_v38, 16  ;;  %v2220_v24 = vshra.s32 %v2159_v53, 16  ;;  %2181 = vmin.xlane.f32.xlu1 %v2180_v44  ;;  %2195 = vmin.xlane.f32.xlu0 %v2194_v36  ;;  %v2205_v10 = vand.u32 65535, %v2158_v38  ;;  %v2219_v19 = vand.u32 65535, %v2159_v53 }
 0xafc   : > { %v2142_v34 = vpop.xlane.xlu1 %2141  ;;  %v2144_v54 = vpop.xlane.xlu0 %2143 }
 0xafd   : > { %vm2152_vm14 = vcmp.eq.f32.partialorder %v8984_v39, %v2142_v34  ;;  %vm2153_vm15 = vcmp.eq.f32.partialorder %v8987_v14, %v2144_v54  ;;  %v2208_v33 = vcvt.s32.f32 %v2206_v62  ;;  %v2222_v52 = vcvt.s32.f32 %v2220_v24 }
 0xafe   : > { %v2160_v63 = vsel %vm2152_vm14, %v8770_v23, 128  ;;  %v2161_v11 = vsel %vm2153_vm15, %v8770_v23, 128  ;;  %v2207_v51 = vcvt.s32.f32 %v2205_v10  ;;  %v2221_v7 = vcvt.s32.f32 %v2219_v19 }
 0xaff   : > { %v2234_v55 = vshra.s32 %v2160_v63, 16  ;;  %v2248_v20 = vshra.s32 %v2161_v11, 16  ;;  %2209 = vmin.xlane.f32.xlu1 %v2208_v33  ;;  %2223 = vmin.xlane.f32.xlu0 %v2222_v52  ;;  %v2233_v32 = vand.u32 65535, %v2160_v63  ;;  %v2247_v4 = vand.u32 65535, %v2161_v11 }
 0xb00   : > { %v2146_v27 = vpop.xlane.xlu1 %2145 }
 0xb01   : > { %vm2154_vm0 = vcmp.eq.f32.partialorder %v8993_v5, %v2146_v27  ;;  %v2236_v45 = vcvt.s32.f32 %v2234_v55  ;;  %v2250_v47 = vcvt.s32.f32 %v2248_v20  ;;  %v2235_v12 = vcvt.s32.f32 %v2233_v32 }
 0xb02   : > { %v2162_v58 = vsel %vm2154_vm0, %v8770_v23, 128  ;;  %v2249_v15 = vcvt.s32.f32 %v2247_v4 }
 0xb03   : > { %v2262_v57 = vshra.s32 %v2162_v58, 16  ;;  %2237 = vmin.xlane.f32.xlu1 %v2236_v45  ;;  %2251 = vmin.xlane.f32.xlu0 %v2250_v47  ;;  %v2261_v0 = vand.u32 65535, %v2162_v58 }
 0xb05   : > { %v2264_v42 = vcvt.s32.f32 %v2262_v57  ;;  %v2263_v53 = vcvt.s32.f32 %v2261_v0 }
 0xb07   : > { %2265 = vmin.xlane.f32.xlu1 %v2264_v42 }
 0xb80   : > { %v2168_v46 = vpop.xlane.xlu0 %2167 }
 0xb81   : > { %vm2169_vm1 = vcmp.eq.f32.partialorder %v2166_v3, %v2168_v46  ;;  %v2174_v24 = vcvt.f32.s32 %v2168_v46 }
 0xb82   : > { %v2170_v56 = vsel %vm2169_vm1, %v2165_v25, inf }
 0xb83   : > { %2171 = vmin.xlane.f32.xlu0 %v2170_v56 }
 0xb84   : > { %v2182_v29 = vpop.xlane.xlu1 %2181  ;;  %v2196_v41 = vpop.xlane.xlu0 %2195 }
 0xb85   : > { %vm2183_vm3 = vcmp.eq.f32.partialorder %v2180_v44, %v2182_v29  ;;  %vm2197_vm4 = vcmp.eq.f32.partialorder %v2194_v36, %v2196_v41  ;;  %v2188_v34 = vcvt.f32.s32 %v2182_v29 }
 0xb86   : > { %v2184_v17 = vsel %vm2183_vm3, %v2179_v35, inf  ;;  %v2198_v26 = vsel %vm2197_vm4, %v2193_v1, inf }
 0xb87   : > { %2185 = vmin.xlane.f32.xlu1 %v2184_v17  ;;  %2199 = vmin.xlane.f32.xlu0 %v2198_v26  ;;  %v2189_v55 = vshll.u32 %v2188_v34, 16 }
 0xb88   : > { %v2210_v16 = vpop.xlane.xlu1 %2209  ;;  %v2224_v6 = vpop.xlane.xlu0 %2223 }
 0xb89   : > { %vm2211_vm5 = vcmp.eq.f32.partialorder %v2208_v33, %v2210_v16  ;;  %vm2225_vm6 = vcmp.eq.f32.partialorder %v2222_v52, %v2224_v6  ;;  %v2175_v33 = vshll.u32 %v2174_v24, 16  ;;  %v2202_v52 = vcvt.f32.s32 %v2196_v41 }
 0xb8a   : > { %v2212_v3 = vsel %vm2211_vm5, %v2207_v51, inf  ;;  %v2226_v8 = vsel %vm2225_vm6, %v2221_v7, inf  ;;  %v2216_v20 = vcvt.f32.s32 %v2210_v16  ;;  %v2230_v27 = vcvt.f32.s32 %v2224_v6 }
 0xb8b   : > { %2213 = vmin.xlane.f32.xlu1 %v2212_v3  ;;  %2227 = vmin.xlane.f32.xlu0 %v2226_v8  ;;  %v2203_v58 = vshll.u32 %v2202_v52, 16 }
 0xb8c   : > { %v2238_v9 = vpop.xlane.xlu1 %2237  ;;  %v2252_v2 = vpop.xlane.xlu0 %2251  ;;  %v2217_v46 = vshll.u32 %v2216_v20, 16  ;;  %v2231_v25 = vshll.u32 %v2230_v27, 16 }
 0xb8d   : > { %vm2239_vm7 = vcmp.eq.f32.partialorder %v2236_v45, %v2238_v9  ;;  %vm2253_vm8 = vcmp.eq.f32.partialorder %v2250_v47, %v2252_v2  ;;  %v2244_v56 = vcvt.f32.s32 %v2238_v9  ;;  %v2258_v10 = vcvt.f32.s32 %v2252_v2 }
 0xb8e   : > { %v2240_v44 = vsel %vm2239_vm7, %v2235_v12, inf  ;;  %v2254_v36 = vsel %vm2253_vm8, %v2249_v15, inf }
 0xb8f   : > { %2241 = vmin.xlane.f32.xlu1 %v2240_v44  ;;  %2255 = vmin.xlane.f32.xlu0 %v2254_v36  ;;  %v2245_v32 = vshll.u32 %v2244_v56, 16  ;;  %v2259_v4 = vshll.u32 %v2258_v10, 16 }
 0xb90   : > { %v2266_v38 = vpop.xlane.xlu1 %2265 }
 0xb91   : > { %vm2267_vm9 = vcmp.eq.f32.partialorder %v2264_v42, %v2266_v38  ;;  %v2272_v16 = vcvt.f32.s32 %v2266_v38 }
 0xb92   : > { %v2268_v62 = vsel %vm2267_vm9, %v2263_v53, inf }
 0xb93   : > { %2269 = vmin.xlane.f32.xlu1 %v2268_v62  ;;  %v2273_v2 = vshll.u32 %v2272_v16, 16 }
 0xc0c   : > { %v2172_v54 = vpop.xlane.xlu0 %2171 }
 0xc0d   : > { %v2173_v63 = vcvt.f32.s32 %v2172_v54 }
 0xc0f   : > { %v2176_v11 = vadd.s32 %v2175_v33, %v2173_v63 }
 0xc10   : > { %v2186_v45 = vpop.xlane.xlu1 %2185  ;;  %v2200_v47 = vpop.xlane.xlu0 %2199 }
 0xc11   : > { %v2187_v57 = vcvt.f32.s32 %v2186_v45  ;;  %v2201_v28 = vcvt.f32.s32 %v2200_v47  ;;  %vm2275_vm10 = vcmp.eq.s32.totalorder %v8770_v23, %v2176_v11 }
 0xc12   : > { %v9014_v42 = vsel %vm2275_vm10, -inf, %v8958_v43 }
 0xc13   : > { %v2190_v40 = vadd.s32 %v2189_v55, %v2187_v57  ;;  %v2204_v61 = vadd.s32 %v2203_v58, %v2201_v28  ;;  %2291 = vmax.xlane.f32.xlu0 %v9014_v42 }
 0xc14   : > { %v2214_v19 = vpop.xlane.xlu1 %2213  ;;  %v2228_v29 = vpop.xlane.xlu0 %2227 }
 0xc15   : > { %v2215_v41 = vcvt.f32.s32 %v2214_v19  ;;  %v2229_v35 = vcvt.f32.s32 %v2228_v29  ;;  %vm2276_vm11 = vcmp.eq.s32.totalorder %v8770_v23, %v2190_v40  ;;  %vm2277_vm12 = vcmp.eq.s32.totalorder %v8770_v23, %v2204_v61 }
 0xc16   : > { %v9020_v1 = vsel %vm2276_vm11, -inf, %v8964_v18  ;;  %v9023_v43 = vsel %vm2277_vm12, -inf, %v8967_v13 }
 0xc17   : > { %v2218_v17 = vadd.s32 %v2217_v46, %v2215_v41  ;;  %v2232_v26 = vadd.s32 %v2231_v25, %v2229_v35  ;;  %2293 = vmax.xlane.f32.xlu1 %v9020_v1  ;;  %2295 = vmax.xlane.f32.xlu0 %v9023_v43 }
 0xc18   : > { %v2242_v6 = vpop.xlane.xlu1 %2241  ;;  %v2256_v51 = vpop.xlane.xlu0 %2255 }
 0xc19   : > { %v2243_v7 = vcvt.f32.s32 %v2242_v6  ;;  %v2257_v3 = vcvt.f32.s32 %v2256_v51  ;;  %vm2278_vm13 = vcmp.eq.s32.totalorder %v8770_v23, %v2218_v17  ;;  %vm2279_vm14 = vcmp.eq.s32.totalorder %v8770_v23, %v2232_v26 }
 0xc1a   : > { %v9030_v18 = vsel %vm2278_vm13, -inf, %v8974_v50  ;;  %v9033_v13 = vsel %vm2279_vm14, -inf, %v8977_v30 }
 0xc1b   : > { %v2246_v8 = vadd.s32 %v2245_v32, %v2243_v7  ;;  %v2260_v0 = vadd.s32 %v2259_v4, %v2257_v3  ;;  %2297 = vmax.xlane.f32.xlu1 %v9030_v18  ;;  %2299 = vmax.xlane.f32.xlu0 %v9033_v13 }
 0xc1c   : > { %v2270_v9 = vpop.xlane.xlu1 %2269 }
 0xc1d   : > { %v2271_v12 = vcvt.f32.s32 %v2270_v9  ;;  %vm2280_vm15 = vcmp.eq.s32.totalorder %v8770_v23, %v2246_v8  ;;  %vm2281_vm0 = vcmp.eq.s32.totalorder %v8770_v23, %v2260_v0 }
 0xc1e   : > { %v9040_v15 = vsel %vm2280_vm15, -inf, %v8984_v39  ;;  %v9043_v50 = vsel %vm2281_vm0, -inf, %v8987_v14 }
 0xc1f   : > { %v2274_v30 = vadd.s32 %v2273_v2, %v2271_v12  ;;  %2301 = vmax.xlane.f32.xlu1 %v9040_v15  ;;  %2303 = vmax.xlane.f32.xlu0 %v9043_v50 }
 0xc21   : > { %vm2282_vm1 = vcmp.eq.s32.totalorder %v8770_v23, %v2274_v30 }
 0xc22   : > { %v9049_v44 = vsel %vm2282_vm1, -inf, %v8993_v5 }
 0xc23   : > { %2305 = vmax.xlane.f32.xlu1 %v9049_v44 }
 0xc9c   : > { %v2292_v36 = vpop.xlane.xlu0 %2291 }
 0xc9d   : > { %vm2307_vm3 = vcmp.eq.f32.partialorder %v9014_v42, %v2292_v36 }
 0xc9e   : > { %v2315_v39 = vsel %vm2307_vm3, %v8770_v23, 128 }
 0xc9f   : > { %v2324_v38 = vshra.s32 %v2315_v39, 16  ;;  %v2323_v17 = vand.u32 65535, %v2315_v39 }
 0xca0   : > { %v2294_v14 = vpop.xlane.xlu1 %2293  ;;  %v2296_v53 = vpop.xlane.xlu0 %2295 }
 0xca1   : > { %vm2308_vm4 = vcmp.eq.f32.partialorder %v9020_v1, %v2294_v14  ;;  %vm2309_vm5 = vcmp.eq.f32.partialorder %v9023_v43, %v2296_v53  ;;  %v2326_v62 = vcvt.s32.f32 %v2324_v38  ;;  %v2325_v16 = vcvt.s32.f32 %v2323_v17 }
 0xca2   : > { %v2316_v24 = vsel %vm2308_vm4, %v8770_v23, 128  ;;  %v2317_v5 = vsel %vm2309_vm5, %v8770_v23, 128 }
 0xca3   : > { %v2338_v34 = vshra.s32 %v2316_v24, 16  ;;  %v2352_v54 = vshra.s32 %v2317_v5, 16  ;;  %2327 = vmin.xlane.f32.xlu0 %v2326_v62  ;;  %v2337_v26 = vand.u32 65535, %v2316_v24  ;;  %v2351_v32 = vand.u32 65535, %v2317_v5 }
 0xca4   : > { %v2298_v33 = vpop.xlane.xlu1 %2297  ;;  %v2300_v52 = vpop.xlane.xlu0 %2299 }
 0xca5   : > { %vm2310_vm6 = vcmp.eq.f32.partialorder %v9030_v18, %v2298_v33  ;;  %vm2311_vm7 = vcmp.eq.f32.partialorder %v9033_v13, %v2300_v52  ;;  %v2340_v63 = vcvt.s32.f32 %v2338_v34  ;;  %v2354_v11 = vcvt.s32.f32 %v2352_v54 }
 0xca6   : > { %v2318_v55 = vsel %vm2310_vm6, %v8770_v23, 128  ;;  %v2319_v20 = vsel %vm2311_vm7, %v8770_v23, 128  ;;  %v2339_v0 = vcvt.s32.f32 %v2337_v26  ;;  %v2353_v9 = vcvt.s32.f32 %v2351_v32 }
 0xca7   : > { %v2366_v27 = vshra.s32 %v2318_v55, 16  ;;  %v2380_v45 = vshra.s32 %v2319_v20, 16  ;;  %2341 = vmin.xlane.f32.xlu1 %v2340_v63  ;;  %2355 = vmin.xlane.f32.xlu0 %v2354_v11  ;;  %v2365_v51 = vand.u32 65535, %v2318_v55  ;;  %v2379_v7 = vand.u32 65535, %v2319_v20 }
 0xca8   : > { %v2302_v47 = vpop.xlane.xlu1 %2301  ;;  %v2304_v58 = vpop.xlane.xlu0 %2303 }
 0xca9   : > { %vm2312_vm8 = vcmp.eq.f32.partialorder %v9040_v15, %v2302_v47  ;;  %vm2313_vm9 = vcmp.eq.f32.partialorder %v9043_v50, %v2304_v58  ;;  %v2368_v57 = vcvt.s32.f32 %v2366_v27  ;;  %v2382_v28 = vcvt.s32.f32 %v2380_v45 }
 0xcaa   : > { %v2320_v40 = vsel %vm2312_vm8, %v8770_v23, 128  ;;  %v2321_v61 = vsel %vm2313_vm9, %v8770_v23, 128  ;;  %v2367_v14 = vcvt.s32.f32 %v2365_v51  ;;  %v2381_v53 = vcvt.s32.f32 %v2379_v7 }
 0xcab   : > { %v2394_v46 = vshra.s32 %v2320_v40, 16  ;;  %v2408_v25 = vshra.s32 %v2321_v61, 16  ;;  %2369 = vmin.xlane.f32.xlu1 %v2368_v57  ;;  %2383 = vmin.xlane.f32.xlu0 %v2382_v28  ;;  %v2393_v30 = vand.u32 65535, %v2320_v40  ;;  %v2407_v36 = vand.u32 65535, %v2321_v61 }
 0xcac   : > { %v2306_v56 = vpop.xlane.xlu1 %2305 }
 0xcad   : > { %vm2314_vm10 = vcmp.eq.f32.partialorder %v9049_v44, %v2306_v56  ;;  %v2396_v10 = vcvt.s32.f32 %v2394_v46  ;;  %v2410_v19 = vcvt.s32.f32 %v2408_v25  ;;  %v2395_v33 = vcvt.s32.f32 %v2393_v30 }
 0xcae   : > { %v2322_v29 = vsel %vm2314_vm10, %v8770_v23, 128  ;;  %v2409_v52 = vcvt.s32.f32 %v2407_v36 }
 0xcaf   : > { %v2422_v41 = vshra.s32 %v2322_v29, 16  ;;  %2397 = vmin.xlane.f32.xlu1 %v2396_v10  ;;  %2411 = vmin.xlane.f32.xlu0 %v2410_v19  ;;  %v2421_v5 = vand.u32 65535, %v2322_v29 }
 0xcb1   : > { %v2424_v35 = vcvt.s32.f32 %v2422_v41  ;;  %v2423_v20 = vcvt.s32.f32 %v2421_v5 }
 0xcb3   : > { %2425 = vmin.xlane.f32.xlu1 %v2424_v35 }
 0xd2c   : > { %v2328_v4 = vpop.xlane.xlu0 %2327 }
 0xd2d   : > { %vm2329_vm11 = vcmp.eq.f32.partialorder %v2326_v62, %v2328_v4  ;;  %v2334_v45 = vcvt.f32.s32 %v2328_v4 }
 0xd2e   : > { %v2330_v6 = vsel %vm2329_vm11, %v2325_v16, inf }
 0xd2f   : > { %2331 = vmin.xlane.f32.xlu0 %v2330_v6 }
 0xd30   : > { %v2342_v3 = vpop.xlane.xlu1 %2341  ;;  %v2356_v8 = vpop.xlane.xlu0 %2355 }
 0xd31   : > { %vm2343_vm12 = vcmp.eq.f32.partialorder %v2340_v63, %v2342_v3  ;;  %vm2357_vm13 = vcmp.eq.f32.partialorder %v2354_v11, %v2356_v8  ;;  %v2348_v47 = vcvt.f32.s32 %v2342_v3 }
 0xd32   : > { %v2344_v2 = vsel %vm2343_vm12, %v2339_v0, inf  ;;  %v2358_v12 = vsel %vm2357_vm13, %v2353_v9, inf }
 0xd33   : > { %2345 = vmin.xlane.f32.xlu1 %v2344_v2  ;;  %2359 = vmin.xlane.f32.xlu0 %v2358_v12  ;;  %v2349_v46 = vshll.u32 %v2348_v47, 16 }
 0xd34   : > { %v2370_v39 = vpop.xlane.xlu1 %2369  ;;  %v2384_v38 = vpop.xlane.xlu0 %2383 }
 0xd35   : > { %vm2371_vm14 = vcmp.eq.f32.partialorder %v2368_v57, %v2370_v39  ;;  %vm2385_vm15 = vcmp.eq.f32.partialorder %v2382_v28, %v2384_v38  ;;  %v2335_v57 = vshll.u32 %v2334_v45, 16  ;;  %v2362_v28 = vcvt.f32.s32 %v2356_v8 }
 0xd36   : > { %v2372_v62 = vsel %vm2371_vm14, %v2367_v14, inf  ;;  %v2386_v24 = vsel %vm2385_vm15, %v2381_v53, inf  ;;  %v2376_v25 = vcvt.f32.s32 %v2370_v39  ;;  %v2390_v56 = vcvt.f32.s32 %v2384_v38 }
 0xd37   : > { %2373 = vmin.xlane.f32.xlu1 %v2372_v62  ;;  %2387 = vmin.xlane.f32.xlu0 %v2386_v24  ;;  %v2363_v29 = vshll.u32 %v2362_v28, 16 }
 0xd38   : > { %v2398_v34 = vpop.xlane.xlu1 %2397  ;;  %v2412_v54 = vpop.xlane.xlu0 %2411  ;;  %v2377_v4 = vshll.u32 %v2376_v25, 16  ;;  %v2391_v16 = vshll.u32 %v2390_v56, 16 }
 0xd39   : > { %vm2399_vm0 = vcmp.eq.f32.partialorder %v2396_v10, %v2398_v34  ;;  %vm2413_vm1 = vcmp.eq.f32.partialorder %v2410_v19, %v2412_v54  ;;  %v2404_v6 = vcvt.f32.s32 %v2398_v34  ;;  %v2418_v51 = vcvt.f32.s32 %v2412_v54 }
 0xd3a   : > { %v2400_v63 = vsel %vm2399_vm0, %v2395_v33, inf  ;;  %v2414_v11 = vsel %vm2413_vm1, %v2409_v52, inf }
 0xd3b   : > { %2401 = vmin.xlane.f32.xlu1 %v2400_v63  ;;  %2415 = vmin.xlane.f32.xlu0 %v2414_v11  ;;  %v2405_v30 = vshll.u32 %v2404_v6, 16  ;;  %v2419_v36 = vshll.u32 %v2418_v51, 16 }
 0xd3c   : > { %v2426_v55 = vpop.xlane.xlu1 %2425 }
 0xd3d   : > { %vm2427_vm3 = vcmp.eq.f32.partialorder %v2424_v35, %v2426_v55  ;;  %v2432_v39 = vcvt.f32.s32 %v2426_v55 }
 0xd3e   : > { %v2428_v27 = vsel %vm2427_vm3, %v2423_v20, inf }
 0xd3f   : > { %2429 = vmin.xlane.f32.xlu1 %v2428_v27  ;;  %v2433_v54 = vshll.u32 %v2432_v39, 16 }
 0xdb8   : > { %v2332_v58 = vpop.xlane.xlu0 %2331 }
 0xdb9   : > { %v2333_v40 = vcvt.f32.s32 %v2332_v58 }
 0xdbb   : > { %v2336_v61 = vadd.s32 %v2335_v57, %v2333_v40 }
 0xdbc   : > { %v2346_v10 = vpop.xlane.xlu1 %2345  ;;  %v2360_v19 = vpop.xlane.xlu0 %2359 }
 0xdbd   : > { %v2347_v41 = vcvt.f32.s32 %v2346_v10  ;;  %v2361_v17 = vcvt.f32.s32 %v2360_v19  ;;  %vm2435_vm4 = vcmp.eq.s32.totalorder %v8770_v23, %v2336_v61 }
 0xdbe   : > { %v9070_v35 = vsel %vm2435_vm4, -inf, %v9014_v42 }
 0xdbf   : > { %v2350_v26 = vadd.s32 %v2349_v46, %v2347_v41  ;;  %v2364_v32 = vadd.s32 %v2363_v29, %v2361_v17  ;;  %2451 = vmax.xlane.f32.xlu0 %v9070_v35 }
 0xdc0   : > { %v2374_v7 = vpop.xlane.xlu1 %2373  ;;  %v2388_v3 = vpop.xlane.xlu0 %2387 }
 0xdc1   : > { %v2375_v8 = vcvt.f32.s32 %v2374_v7  ;;  %v2389_v0 = vcvt.f32.s32 %v2388_v3  ;;  %vm2436_vm5 = vcmp.eq.s32.totalorder %v8770_v23, %v2350_v26  ;;  %vm2437_vm6 = vcmp.eq.s32.totalorder %v8770_v23, %v2364_v32 }
 0xdc2   : > { %v9076_v9 = vsel %vm2436_vm5, -inf, %v9020_v1  ;;  %v9079_v42 = vsel %vm2437_vm6, -inf, %v9023_v43 }
 0xdc3   : > { %v2378_v2 = vadd.s32 %v2377_v4, %v2375_v8  ;;  %v2392_v12 = vadd.s32 %v2391_v16, %v2389_v0  ;;  %2453 = vmax.xlane.f32.xlu1 %v9076_v9  ;;  %2455 = vmax.xlane.f32.xlu0 %v9079_v42 }
 0xdc4   : > { %v2402_v38 = vpop.xlane.xlu1 %2401  ;;  %v2416_v14 = vpop.xlane.xlu0 %2415 }
 0xdc5   : > { %v2403_v53 = vcvt.f32.s32 %v2402_v38  ;;  %v2417_v62 = vcvt.f32.s32 %v2416_v14  ;;  %vm2438_vm7 = vcmp.eq.s32.totalorder %v8770_v23, %v2378_v2  ;;  %vm2439_vm8 = vcmp.eq.s32.totalorder %v8770_v23, %v2392_v12 }
 0xdc6   : > { %v9086_v1 = vsel %vm2438_vm7, -inf, %v9030_v18  ;;  %v9089_v43 = vsel %vm2439_vm8, -inf, %v9033_v13 }
 0xdc7   : > { %v2406_v24 = vadd.s32 %v2405_v30, %v2403_v53  ;;  %v2420_v5 = vadd.s32 %v2419_v36, %v2417_v62  ;;  %2457 = vmax.xlane.f32.xlu1 %v9086_v1  ;;  %2459 = vmax.xlane.f32.xlu0 %v9089_v43 }
 0xdc8   : > { %v2430_v34 = vpop.xlane.xlu1 %2429 }
 0xdc9   : > { %v2431_v33 = vcvt.f32.s32 %v2430_v34  ;;  %vm2440_vm9 = vcmp.eq.s32.totalorder %v8770_v23, %v2406_v24  ;;  %vm2441_vm10 = vcmp.eq.s32.totalorder %v8770_v23, %v2420_v5 }
 0xdca   : > { %v9096_v52 = vsel %vm2440_vm9, -inf, %v9040_v15  ;;  %v9099_v18 = vsel %vm2441_vm10, -inf, %v9043_v50 }
 0xdcb   : > { %v2434_v13 = vadd.s32 %v2433_v54, %v2431_v33  ;;  %2461 = vmax.xlane.f32.xlu1 %v9096_v52  ;;  %2463 = vmax.xlane.f32.xlu0 %v9099_v18 }
 0xdcd   : > { %vm2442_vm11 = vcmp.eq.s32.totalorder %v8770_v23, %v2434_v13 }
 0xdce   : > { %v9105_v63 = vsel %vm2442_vm11, -inf, %v9049_v44 }
 0xdcf   : > { %2465 = vmax.xlane.f32.xlu1 %v9105_v63 }
 0xe48   : > { %v2452_v11 = vpop.xlane.xlu0 %2451 }
 0xe49   : > { %vm2467_vm12 = vcmp.eq.f32.partialorder %v9070_v35, %v2452_v11 }
 0xe4a   : > { %v2475_v15 = vsel %vm2467_vm12, %v8770_v23, 128 }
 0xe4b   : > { %v2484_v55 = vshra.s32 %v2475_v15, 16  ;;  %v2483_v2 = vand.u32 65535, %v2475_v15 }
 0xe4c   : > { %v2454_v50 = vpop.xlane.xlu1 %2453  ;;  %v2456_v20 = vpop.xlane.xlu0 %2455 }
 0xe4d   : > { %vm2468_vm13 = vcmp.eq.f32.partialorder %v9076_v9, %v2454_v50  ;;  %vm2469_vm14 = vcmp.eq.f32.partialorder %v9079_v42, %v2456_v20  ;;  %v2486_v27 = vcvt.s32.f32 %v2484_v55  ;;  %v2485_v39 = vcvt.s32.f32 %v2483_v2 }
 0xe4e   : > { %v2476_v45 = vsel %vm2468_vm13, %v8770_v23, 128  ;;  %v2477_v44 = vsel %vm2469_vm14, %v8770_v23, 128 }
 0xe4f   : > { %v2498_v47 = vshra.s32 %v2476_v45, 16  ;;  %v2512_v58 = vshra.s32 %v2477_v44, 16  ;;  %2487 = vmin.xlane.f32.xlu0 %v2486_v27  ;;  %v2497_v12 = vand.u32 65535, %v2476_v45  ;;  %v2511_v30 = vand.u32 65535, %v2477_v44 }
 0xe50   : > { %v2458_v57 = vpop.xlane.xlu1 %2457  ;;  %v2460_v28 = vpop.xlane.xlu0 %2459 }
 0xe51   : > { %vm2470_vm15 = vcmp.eq.f32.partialorder %v9086_v1, %v2458_v57  ;;  %vm2471_vm0 = vcmp.eq.f32.partialorder %v9089_v43, %v2460_v28  ;;  %v2500_v40 = vcvt.s32.f32 %v2498_v47  ;;  %v2514_v61 = vcvt.s32.f32 %v2512_v58 }
 0xe52   : > { %v2478_v46 = vsel %vm2470_vm15, %v8770_v23, 128  ;;  %v2479_v25 = vsel %vm2471_vm0, %v8770_v23, 128  ;;  %v2499_v5 = vcvt.s32.f32 %v2497_v12  ;;  %v2513_v34 = vcvt.s32.f32 %v2511_v30 }
 0xe53   : > { %v2526_v56 = vshra.s32 %v2478_v46, 16  ;;  %v2540_v10 = vshra.s32 %v2479_v25, 16  ;;  %2501 = vmin.xlane.f32.xlu1 %v2500_v40  ;;  %2515 = vmin.xlane.f32.xlu0 %v2514_v61  ;;  %v2525_v14 = vand.u32 65535, %v2478_v46  ;;  %v2539_v53 = vand.u32 65535, %v2479_v25 }
 0xe54   : > { %v2462_v19 = vpop.xlane.xlu1 %2461  ;;  %v2464_v29 = vpop.xlane.xlu0 %2463 }
 0xe55   : > { %vm2472_vm1 = vcmp.eq.f32.partialorder %v9096_v52, %v2462_v19  ;;  %vm2473_vm3 = vcmp.eq.f32.partialorder %v9099_v18, %v2464_v29  ;;  %v2528_v41 = vcvt.s32.f32 %v2526_v56  ;;  %v2542_v17 = vcvt.s32.f32 %v2540_v10 }
 0xe56   : > { %v2480_v26 = vsel %vm2472_vm1, %v8770_v23, 128  ;;  %v2481_v32 = vsel %vm2473_vm3, %v8770_v23, 128  ;;  %v2527_v50 = vcvt.s32.f32 %v2525_v14  ;;  %v2541_v20 = vcvt.s32.f32 %v2539_v53 }
 0xe57   : > { %v2554_v4 = vshra.s32 %v2480_v26, 16  ;;  %v2568_v16 = vshra.s32 %v2481_v32, 16  ;;  %2529 = vmin.xlane.f32.xlu1 %v2528_v41  ;;  %2543 = vmin.xlane.f32.xlu0 %v2542_v17  ;;  %v2553_v13 = vand.u32 65535, %v2480_v26  ;;  %v2567_v11 = vand.u32 65535, %v2481_v32 }
 0xe58   : > { %v2466_v6 = vpop.xlane.xlu1 %2465 }
 0xe59   : > { %vm2474_vm4 = vcmp.eq.f32.partialorder %v9105_v63, %v2466_v6  ;;  %v2556_v51 = vcvt.s32.f32 %v2554_v4  ;;  %v2570_v7 = vcvt.s32.f32 %v2568_v16  ;;  %v2555_v57 = vcvt.s32.f32 %v2553_v13 }
 0xe5a   : > { %v2482_v3 = vsel %vm2474_vm4, %v8770_v23, 128  ;;  %v2569_v28 = vcvt.s32.f32 %v2567_v11 }
 0xe5b   : > { %v2582_v8 = vshra.s32 %v2482_v3, 16  ;;  %2557 = vmin.xlane.f32.xlu1 %v2556_v51  ;;  %2571 = vmin.xlane.f32.xlu0 %v2570_v7  ;;  %v2581_v44 = vand.u32 65535, %v2482_v3 }
 0xe5d   : > { %v2584_v0 = vcvt.s32.f32 %v2582_v8  ;;  %v2583_v25 = vcvt.s32.f32 %v2581_v44 }
 0xe5f   : > { %2585 = vmin.xlane.f32.xlu1 %v2584_v0 }
 0xed8   : > { %v2488_v36 = vpop.xlane.xlu0 %2487 }
 0xed9   : > { %vm2489_vm5 = vcmp.eq.f32.partialorder %v2486_v27, %v2488_v36  ;;  %v2494_v10 = vcvt.f32.s32 %v2488_v36 }
 0xeda   : > { %v2490_v38 = vsel %vm2489_vm5, %v2485_v39, inf }
 0xedb   : > { %2491 = vmin.xlane.f32.xlu0 %v2490_v38 }
 0xedc   : > { %v2502_v62 = vpop.xlane.xlu1 %2501  ;;  %v2516_v24 = vpop.xlane.xlu0 %2515 }
 0xedd   : > { %vm2503_vm6 = vcmp.eq.f32.partialorder %v2500_v40, %v2502_v62  ;;  %vm2517_vm7 = vcmp.eq.f32.partialorder %v2514_v61, %v2516_v24  ;;  %v2508_v19 = vcvt.f32.s32 %v2502_v62 }
 0xede   : > { %v2504_v54 = vsel %vm2503_vm6, %v2499_v5, inf  ;;  %v2518_v33 = vsel %vm2517_vm7, %v2513_v34, inf }
 0xedf   : > { %2505 = vmin.xlane.f32.xlu1 %v2504_v54  ;;  %2519 = vmin.xlane.f32.xlu0 %v2518_v33  ;;  %v2509_v4 = vshll.u32 %v2508_v19, 16 }
 0xee0   : > { %v2530_v15 = vpop.xlane.xlu1 %2529  ;;  %v2544_v55 = vpop.xlane.xlu0 %2543 }
 0xee1   : > { %vm2531_vm8 = vcmp.eq.f32.partialorder %v2528_v41, %v2530_v15  ;;  %vm2545_vm9 = vcmp.eq.f32.partialorder %v2542_v17, %v2544_v55  ;;  %v2495_v41 = vshll.u32 %v2494_v10, 16  ;;  %v2522_v17 = vcvt.f32.s32 %v2516_v24 }
 0xee2   : > { %v2532_v27 = vsel %vm2531_vm8, %v2527_v50, inf  ;;  %v2546_v45 = vsel %vm2545_vm9, %v2541_v20, inf  ;;  %v2536_v16 = vcvt.f32.s32 %v2530_v15  ;;  %v2550_v6 = vcvt.f32.s32 %v2544_v55 }
 0xee3   : > { %2533 = vmin.xlane.f32.xlu1 %v2532_v27  ;;  %2547 = vmin.xlane.f32.xlu0 %v2546_v45  ;;  %v2523_v3 = vshll.u32 %v2522_v17, 16 }
 0xee4   : > { %v2558_v47 = vpop.xlane.xlu1 %2557  ;;  %v2572_v58 = vpop.xlane.xlu0 %2571  ;;  %v2537_v36 = vshll.u32 %v2536_v16, 16  ;;  %v2551_v39 = vshll.u32 %v2550_v6, 16 }
 0xee5   : > { %vm2559_vm10 = vcmp.eq.f32.partialorder %v2556_v51, %v2558_v47  ;;  %vm2573_vm11 = vcmp.eq.f32.partialorder %v2570_v7, %v2572_v58  ;;  %v2564_v38 = vcvt.f32.s32 %v2558_v47  ;;  %v2578_v14 = vcvt.f32.s32 %v2572_v58 }
 0xee6   : > { %v2560_v40 = vsel %vm2559_vm10, %v2555_v57, inf  ;;  %v2574_v61 = vsel %vm2573_vm11, %v2569_v28, inf }
 0xee7   : > { %2561 = vmin.xlane.f32.xlu1 %v2560_v40  ;;  %2575 = vmin.xlane.f32.xlu0 %v2574_v61  ;;  %v2565_v13 = vshll.u32 %v2564_v38, 16  ;;  %v2579_v11 = vshll.u32 %v2578_v14, 16 }
 0xee8   : > { %v2586_v46 = vpop.xlane.xlu1 %2585 }
 0xee9   : > { %vm2587_vm12 = vcmp.eq.f32.partialorder %v2584_v0, %v2586_v46  ;;  %v2592_v15 = vcvt.f32.s32 %v2586_v46 }
 0xeea   : > { %v2588_v56 = vsel %vm2587_vm12, %v2583_v25, inf }
 0xeeb   : > { %2589 = vmin.xlane.f32.xlu1 %v2588_v56  ;;  %v2593_v58 = vshll.u32 %v2592_v15, 16 }
 0xf64   : > { %v2492_v29 = vpop.xlane.xlu0 %2491 }
 0xf65   : > { %v2493_v26 = vcvt.f32.s32 %v2492_v29 }
 0xf67   : > { %v2496_v32 = vadd.s32 %v2495_v41, %v2493_v26 }
 0xf68   : > { %v2506_v51 = vpop.xlane.xlu1 %2505  ;;  %v2520_v7 = vpop.xlane.xlu0 %2519 }
 0xf69   : > { %v2507_v8 = vcvt.f32.s32 %v2506_v51  ;;  %v2521_v2 = vcvt.f32.s32 %v2520_v7  ;;  %vm2595_vm13 = vcmp.eq.s32.totalorder %v8770_v23, %v2496_v32 }
 0xf6a   : > { %v9126_v0 = vsel %vm2595_vm13, -inf, %v9070_v35 }
 0xf6b   : > { %v2510_v12 = vadd.s32 %v2509_v4, %v2507_v8  ;;  %v2524_v30 = vadd.s32 %v2523_v3, %v2521_v2  ;;  %2611 = vmax.xlane.f32.xlu0 %v9126_v0 }
 0xf6c   : > { %v2534_v53 = vpop.xlane.xlu1 %2533  ;;  %v2548_v62 = vpop.xlane.xlu0 %2547 }
 0xf6d   : > { %v2535_v24 = vcvt.f32.s32 %v2534_v53  ;;  %v2549_v5 = vcvt.f32.s32 %v2548_v62  ;;  %vm2596_vm14 = vcmp.eq.s32.totalorder %v8770_v23, %v2510_v12  ;;  %vm2597_vm15 = vcmp.eq.s32.totalorder %v8770_v23, %v2524_v30 }
 0xf6e   : > { %v9132_v34 = vsel %vm2596_vm14, -inf, %v9076_v9  ;;  %v9135_v35 = vsel %vm2597_vm15, -inf, %v9079_v42 }
 0xf6f   : > { %v2538_v54 = vadd.s32 %v2537_v36, %v2535_v24  ;;  %v2552_v33 = vadd.s32 %v2551_v39, %v2549_v5  ;;  %2613 = vmax.xlane.f32.xlu1 %v9132_v34  ;;  %2615 = vmax.xlane.f32.xlu0 %v9135_v35 }
 0xf70   : > { %v2562_v55 = vpop.xlane.xlu1 %2561  ;;  %v2576_v50 = vpop.xlane.xlu0 %2575 }
 0xf71   : > { %v2563_v20 = vcvt.f32.s32 %v2562_v55  ;;  %v2577_v27 = vcvt.f32.s32 %v2576_v50  ;;  %vm2598_vm0 = vcmp.eq.s32.totalorder %v8770_v23, %v2538_v54  ;;  %vm2599_vm1 = vcmp.eq.s32.totalorder %v8770_v23, %v2552_v33 }
 0xf72   : > { %v9142_v9 = vsel %vm2598_vm0, -inf, %v9086_v1  ;;  %v9145_v42 = vsel %vm2599_vm1, -inf, %v9089_v43 }
 0xf73   : > { %v2566_v45 = vadd.s32 %v2565_v13, %v2563_v20  ;;  %v2580_v44 = vadd.s32 %v2579_v11, %v2577_v27  ;;  %2617 = vmax.xlane.f32.xlu1 %v9142_v9  ;;  %2619 = vmax.xlane.f32.xlu0 %v9145_v42 }
 0xf74   : > { %v2590_v47 = vpop.xlane.xlu1 %2589 }
 0xf75   : > { %v2591_v57 = vcvt.f32.s32 %v2590_v47  ;;  %vm2600_vm3 = vcmp.eq.s32.totalorder %v8770_v23, %v2566_v45  ;;  %vm2601_vm4 = vcmp.eq.s32.totalorder %v8770_v23, %v2580_v44 }
 0xf76   : > { %v9152_v28 = vsel %vm2600_vm3, -inf, %v9096_v52  ;;  %v9155_v1 = vsel %vm2601_vm4, -inf, %v9099_v18 }
 0xf77   : > { %v2594_v43 = vadd.s32 %v2593_v58, %v2591_v57  ;;  %2621 = vmax.xlane.f32.xlu1 %v9152_v28  ;;  %2623 = vmax.xlane.f32.xlu0 %v9155_v1 }
 0xf79   : > { %vm2602_vm5 = vcmp.eq.s32.totalorder %v8770_v23, %v2594_v43 }
 0xf7a   : > { %v9161_v40 = vsel %vm2602_vm5, -inf, %v9105_v63 }
 0xf7b   : > { %2625 = vmax.xlane.f32.xlu1 %v9161_v40 }
 0xff4   : > { %v2612_v61 = vpop.xlane.xlu0 %2611 }
 0xff5   : > { %vm2627_vm6 = vcmp.eq.f32.partialorder %v9126_v0, %v2612_v61 }
 0xff6   : > { %v2635_v52 = vsel %vm2627_vm6, %v8770_v23, 128 }
 0xff7   : > { %v2644_v46 = vshra.s32 %v2635_v52, 16  ;;  %v2643_v54 = vand.u32 65535, %v2635_v52 }
 0xff8   : > { %v2614_v18 = vpop.xlane.xlu1 %2613  ;;  %v2616_v25 = vpop.xlane.xlu0 %2615 }
 0xff9   : > { %vm2628_vm7 = vcmp.eq.f32.partialorder %v9132_v34, %v2614_v18  ;;  %vm2629_vm8 = vcmp.eq.f32.partialorder %v9135_v35, %v2616_v25  ;;  %v2646_v56 = vcvt.s32.f32 %v2644_v46  ;;  %v2645_v15 = vcvt.s32.f32 %v2643_v54 }
 0xffa   : > { %v2636_v10 = vsel %vm2628_vm7, %v8770_v23, 128  ;;  %v2637_v63 = vsel %vm2629_vm8, %v8770_v23, 128 }
 0xffb   : > { %v2658_v19 = vshra.s32 %v2636_v10, 16  ;;  %v2672_v29 = vshra.s32 %v2637_v63, 16  ;;  %2647 = vmin.xlane.f32.xlu0 %v2646_v56  ;;  %v2657_v33 = vand.u32 65535, %v2636_v10  ;;  %v2671_v13 = vand.u32 65535, %v2637_v63 }
 0xffc   : > { %v2618_v41 = vpop.xlane.xlu1 %2617  ;;  %v2620_v17 = vpop.xlane.xlu0 %2619 }
 0xffd   : > { %vm2630_vm9 = vcmp.eq.f32.partialorder %v9142_v9, %v2618_v41  ;;  %vm2631_vm10 = vcmp.eq.f32.partialorder %v9145_v42, %v2620_v17  ;;  %v2660_v26 = vcvt.s32.f32 %v2658_v19  ;;  %v2674_v32 = vcvt.s32.f32 %v2672_v29 }
 0xffe   : > { %v2638_v4 = vsel %vm2630_vm9, %v8770_v23, 128  ;;  %v2639_v16 = vsel %vm2631_vm10, %v8770_v23, 128  ;;  %v2659_v44 = vcvt.s32.f32 %v2657_v33  ;;  %v2673_v47 = vcvt.s32.f32 %v2671_v13 }
 0xfff   : > { %v2686_v6 = vshra.s32 %v2638_v4, 16  ;;  %v2700_v51 = vshra.s32 %v2639_v16, 16  ;;  %2661 = vmin.xlane.f32.xlu1 %v2660_v26  ;;  %2675 = vmin.xlane.f32.xlu0 %v2674_v32  ;;  %v2685_v50 = vand.u32 65535, %v2638_v4  ;;  %v2699_v20 = vand.u32 65535, %v2639_v16 }
0x1000   : > { %v2622_v7 = vpop.xlane.xlu1 %2621  ;;  %v2624_v3 = vpop.xlane.xlu0 %2623 }
0x1001   : > { %vm2632_vm11 = vcmp.eq.f32.partialorder %v9152_v28, %v2622_v7  ;;  %vm2633_vm12 = vcmp.eq.f32.partialorder %v9155_v1, %v2624_v3  ;;  %v2688_v8 = vcvt.s32.f32 %v2686_v6  ;;  %v2702_v2 = vcvt.s32.f32 %v2700_v51 }
0x1002   : > { %v2640_v12 = vsel %vm2632_vm11, %v8770_v23, 128  ;;  %v2641_v30 = vsel %vm2633_vm12, %v8770_v23, 128  ;;  %v2687_v18 = vcvt.s32.f32 %v2685_v50  ;;  %v2701_v25 = vcvt.s32.f32 %v2699_v20 }
0x1003   : > { %v2714_v36 = vshra.s32 %v2640_v12, 16  ;;  %v2728_v39 = vshra.s32 %v2641_v30, 16  ;;  %2689 = vmin.xlane.f32.xlu1 %v2688_v8  ;;  %2703 = vmin.xlane.f32.xlu0 %v2702_v2  ;;  %v2713_v43 = vand.u32 65535, %v2640_v12  ;;  %v2727_v61 = vand.u32 65535, %v2641_v30 }
0x1004   : > { %v2626_v38 = vpop.xlane.xlu1 %2625 }
0x1005   : > { %vm2634_vm13 = vcmp.eq.f32.partialorder %v9161_v40, %v2626_v38  ;;  %v2716_v14 = vcvt.s32.f32 %v2714_v36  ;;  %v2730_v53 = vcvt.s32.f32 %v2728_v39  ;;  %v2715_v41 = vcvt.s32.f32 %v2713_v43 }
0x1006   : > { %v2642_v62 = vsel %vm2634_vm13, %v8770_v23, 128  ;;  %v2729_v17 = vcvt.s32.f32 %v2727_v61 }
0x1007   : > { %v2742_v24 = vshra.s32 %v2642_v62, 16  ;;  %2717 = vmin.xlane.f32.xlu1 %v2716_v14  ;;  %2731 = vmin.xlane.f32.xlu0 %v2730_v53  ;;  %v2741_v63 = vand.u32 65535, %v2642_v62 }
0x1009   : > { %v2744_v5 = vcvt.s32.f32 %v2742_v24  ;;  %v2743_v16 = vcvt.s32.f32 %v2741_v63 }
0x100b   : > { %2745 = vmin.xlane.f32.xlu1 %v2744_v5 }
0x1084   : > { %v2648_v11 = vpop.xlane.xlu0 %2647 }
0x1085   : > { %vm2649_vm14 = vcmp.eq.f32.partialorder %v2646_v56, %v2648_v11  ;;  %v2654_v51 = vcvt.f32.s32 %v2648_v11 }
0x1086   : > { %v2650_v55 = vsel %vm2649_vm14, %v2645_v15, inf }
0x1087   : > { %2651 = vmin.xlane.f32.xlu0 %v2650_v55 }
0x1088   : > { %v2662_v27 = vpop.xlane.xlu1 %2661  ;;  %v2676_v45 = vpop.xlane.xlu0 %2675 }
0x1089   : > { %vm2663_vm15 = vcmp.eq.f32.partialorder %v2660_v26, %v2662_v27  ;;  %vm2677_vm0 = vcmp.eq.f32.partialorder %v2674_v32, %v2676_v45  ;;  %v2668_v7 = vcvt.f32.s32 %v2662_v27 }
0x108a   : > { %v2664_v58 = vsel %vm2663_vm15, %v2659_v44, inf  ;;  %v2678_v57 = vsel %vm2677_vm0, %v2673_v47, inf }
0x108b   : > { %2665 = vmin.xlane.f32.xlu1 %v2664_v58  ;;  %2679 = vmin.xlane.f32.xlu0 %v2678_v57  ;;  %v2669_v36 = vshll.u32 %v2668_v7, 16 }
0x108c   : > { %v2690_v52 = vpop.xlane.xlu1 %2689  ;;  %v2704_v46 = vpop.xlane.xlu0 %2703 }
0x108d   : > { %vm2691_vm1 = vcmp.eq.f32.partialorder %v2688_v8, %v2690_v52  ;;  %vm2705_vm3 = vcmp.eq.f32.partialorder %v2702_v2, %v2704_v46  ;;  %v2655_v8 = vshll.u32 %v2654_v51, 16  ;;  %v2682_v2 = vcvt.f32.s32 %v2676_v45 }
0x108e   : > { %v2692_v56 = vsel %vm2691_vm1, %v2687_v18, inf  ;;  %v2706_v10 = vsel %vm2705_vm3, %v2701_v25, inf  ;;  %v2696_v39 = vcvt.f32.s32 %v2690_v52  ;;  %v2710_v38 = vcvt.f32.s32 %v2704_v46 }
0x108f   : > { %2693 = vmin.xlane.f32.xlu1 %v2692_v56  ;;  %2707 = vmin.xlane.f32.xlu0 %v2706_v10  ;;  %v2683_v62 = vshll.u32 %v2682_v2, 16 }
0x1090   : > { %v2718_v19 = vpop.xlane.xlu1 %2717  ;;  %v2732_v29 = vpop.xlane.xlu0 %2731  ;;  %v2697_v11 = vshll.u32 %v2696_v39, 16  ;;  %v2711_v15 = vshll.u32 %v2710_v38, 16 }
0x1091   : > { %vm2719_vm4 = vcmp.eq.f32.partialorder %v2716_v14, %v2718_v19  ;;  %vm2733_vm5 = vcmp.eq.f32.partialorder %v2730_v53, %v2732_v29  ;;  %v2724_v55 = vcvt.f32.s32 %v2718_v19  ;;  %v2738_v50 = vcvt.f32.s32 %v2732_v29 }
0x1092   : > { %v2720_v26 = vsel %vm2719_vm4, %v2715_v41, inf  ;;  %v2734_v32 = vsel %vm2733_vm5, %v2729_v17, inf }
0x1093   : > { %2721 = vmin.xlane.f32.xlu1 %v2720_v26  ;;  %2735 = vmin.xlane.f32.xlu0 %v2734_v32  ;;  %v2725_v43 = vshll.u32 %v2724_v55, 16  ;;  %v2739_v61 = vshll.u32 %v2738_v50, 16 }
0x1094   : > { %v2746_v4 = vpop.xlane.xlu1 %2745 }
0x1095   : > { %vm2747_vm6 = vcmp.eq.f32.partialorder %v2744_v5, %v2746_v4  ;;  %v2752_v52 = vcvt.f32.s32 %v2746_v4 }
0x1096   : > { %v2748_v6 = vsel %vm2747_vm6, %v2743_v16, inf }
0x1097   : > { %2749 = vmin.xlane.f32.xlu1 %v2748_v6  ;;  %v2753_v29 = vshll.u32 %v2752_v52, 16 }
0x1110   : > { %v2652_v3 = vpop.xlane.xlu0 %2651 }
0x1111   : > { %v2653_v12 = vcvt.f32.s32 %v2652_v3 }
0x1113   : > { %v2656_v30 = vadd.s32 %v2655_v8, %v2653_v12 }
0x1114   : > { %v2666_v14 = vpop.xlane.xlu1 %2665  ;;  %v2680_v53 = vpop.xlane.xlu0 %2679 }
0x1115   : > { %v2667_v24 = vcvt.f32.s32 %v2666_v14  ;;  %v2681_v54 = vcvt.f32.s32 %v2680_v53  ;;  %vm2755_vm7 = vcmp.eq.s32.totalorder %v8770_v23, %v2656_v30 }
0x1116   : > { %v9182_v5 = vsel %vm2755_vm7, -inf, %v9126_v0 }
0x1117   : > { %v2670_v33 = vadd.s32 %v2669_v36, %v2667_v24  ;;  %v2684_v13 = vadd.s32 %v2683_v62, %v2681_v54  ;;  %2771 = vmax.xlane.f32.xlu0 %v9182_v5 }
0x1118   : > { %v2694_v20 = vpop.xlane.xlu1 %2693  ;;  %v2708_v27 = vpop.xlane.xlu0 %2707 }
0x1119   : > { %v2695_v45 = vcvt.f32.s32 %v2694_v20  ;;  %v2709_v44 = vcvt.f32.s32 %v2708_v27  ;;  %vm2756_vm8 = vcmp.eq.s32.totalorder %v8770_v23, %v2670_v33  ;;  %vm2757_vm9 = vcmp.eq.s32.totalorder %v8770_v23, %v2684_v13 }
0x111a   : > { %v9188_v47 = vsel %vm2756_vm8, -inf, %v9132_v34  ;;  %v9191_v0 = vsel %vm2757_vm9, -inf, %v9135_v35 }
0x111b   : > { %v2698_v58 = vadd.s32 %v2697_v11, %v2695_v45  ;;  %v2712_v57 = vadd.s32 %v2711_v15, %v2709_v44  ;;  %2773 = vmax.xlane.f32.xlu1 %v9188_v47  ;;  %2775 = vmax.xlane.f32.xlu0 %v9191_v0 }
0x111c   : > { %v2722_v46 = vpop.xlane.xlu1 %2721  ;;  %v2736_v18 = vpop.xlane.xlu0 %2735 }
0x111d   : > { %v2723_v25 = vcvt.f32.s32 %v2722_v46  ;;  %v2737_v56 = vcvt.f32.s32 %v2736_v18  ;;  %vm2758_vm10 = vcmp.eq.s32.totalorder %v8770_v23, %v2698_v58  ;;  %vm2759_vm11 = vcmp.eq.s32.totalorder %v8770_v23, %v2712_v57 }
0x111e   : > { %v9198_v34 = vsel %vm2758_vm10, -inf, %v9142_v9  ;;  %v9201_v35 = vsel %vm2759_vm11, -inf, %v9145_v42 }
0x111f   : > { %v2726_v10 = vadd.s32 %v2725_v43, %v2723_v25  ;;  %v2740_v63 = vadd.s32 %v2739_v61, %v2737_v56  ;;  %2777 = vmax.xlane.f32.xlu1 %v9198_v34  ;;  %2779 = vmax.xlane.f32.xlu0 %v9201_v35 }
0x1120   : > { %v2750_v19 = vpop.xlane.xlu1 %2749 }
0x1121   : > { %v2751_v41 = vcvt.f32.s32 %v2750_v19  ;;  %vm2760_vm12 = vcmp.eq.s32.totalorder %v8770_v23, %v2726_v10  ;;  %vm2761_vm13 = vcmp.eq.s32.totalorder %v8770_v23, %v2740_v63 }
0x1122   : > { %v9208_v17 = vsel %vm2760_vm12, -inf, %v9152_v28  ;;  %v9211_v9 = vsel %vm2761_vm13, -inf, %v9155_v1 }
0x1123   : > { %v2754_v42 = vadd.s32 %v2753_v29, %v2751_v41  ;;  %2781 = vmax.xlane.f32.xlu1 %v9208_v17  ;;  %2783 = vmax.xlane.f32.xlu0 %v9211_v9 }
0x1125   : > { %vm2762_vm14 = vcmp.eq.s32.totalorder %v8770_v23, %v2754_v42 }
0x1126   : > { %v9217_v26 = vsel %vm2762_vm14, -inf, %v9161_v40 }
0x1127   : > { %2785 = vmax.xlane.f32.xlu1 %v9217_v26 }
0x11a0   : > { %v2772_v32 = vpop.xlane.xlu0 %2771 }
0x11a1   : > { %vm2787_vm15 = vcmp.eq.f32.partialorder %v9182_v5, %v2772_v32 }
0x11a2   : > { %v2795_v28 = vsel %vm2787_vm15, %v8770_v23, 128 }
0x11a3   : > { %v2804_v4 = vshra.s32 %v2795_v28, 16  ;;  %v2803_v58 = vand.u32 65535, %v2795_v28 }
0x11a4   : > { %v2774_v1 = vpop.xlane.xlu1 %2773  ;;  %v2776_v16 = vpop.xlane.xlu0 %2775 }
0x11a5   : > { %vm2788_vm0 = vcmp.eq.f32.partialorder %v9188_v47, %v2774_v1  ;;  %vm2789_vm1 = vcmp.eq.f32.partialorder %v9191_v0, %v2776_v16  ;;  %v2806_v6 = vcvt.s32.f32 %v2804_v4  ;;  %v2805_v52 = vcvt.s32.f32 %v2803_v58 }
0x11a6   : > { %v2796_v51 = vsel %vm2788_vm0, %v8770_v23, 128  ;;  %v2797_v40 = vsel %vm2789_vm1, %v8770_v23, 128 }
0x11a7   : > { %v2818_v7 = vshra.s32 %v2796_v51, 16  ;;  %v2832_v3 = vshra.s32 %v2797_v40, 16  ;;  %2807 = vmin.xlane.f32.xlu0 %v2806_v6  ;;  %v2817_v57 = vand.u32 65535, %v2796_v51  ;;  %v2831_v43 = vand.u32 65535, %v2797_v40 }
0x11a8   : > { %v2778_v8 = vpop.xlane.xlu1 %2777  ;;  %v2780_v2 = vpop.xlane.xlu0 %2779 }
0x11a9   : > { %vm2790_vm3 = vcmp.eq.f32.partialorder %v9198_v34, %v2778_v8  ;;  %vm2791_vm4 = vcmp.eq.f32.partialorder %v9201_v35, %v2780_v2  ;;  %v2820_v12 = vcvt.s32.f32 %v2818_v7  ;;  %v2834_v30 = vcvt.s32.f32 %v2832_v3 }
0x11aa   : > { %v2798_v36 = vsel %vm2790_vm3, %v8770_v23, 128  ;;  %v2799_v39 = vsel %vm2791_vm4, %v8770_v23, 128  ;;  %v2819_v63 = vcvt.s32.f32 %v2817_v57  ;;  %v2833_v19 = vcvt.s32.f32 %v2831_v43 }
0x11ab   : > { %v2846_v38 = vshra.s32 %v2798_v36, 16  ;;  %v2860_v14 = vshra.s32 %v2799_v39, 16  ;;  %2821 = vmin.xlane.f32.xlu1 %v2820_v12  ;;  %2835 = vmin.xlane.f32.xlu0 %v2834_v30  ;;  %v2845_v18 = vand.u32 65535, %v2798_v36  ;;  %v2859_v25 = vand.u32 65535, %v2799_v39 }
0x11ac   : > { %v2782_v53 = vpop.xlane.xlu1 %2781  ;;  %v2784_v62 = vpop.xlane.xlu0 %2783 }
0x11ad   : > { %vm2792_vm5 = vcmp.eq.f32.partialorder %v9208_v17, %v2782_v53  ;;  %vm2793_vm6 = vcmp.eq.f32.partialorder %v9211_v9, %v2784_v62  ;;  %v2848_v24 = vcvt.s32.f32 %v2846_v38  ;;  %v2862_v54 = vcvt.s32.f32 %v2860_v14 }
0x11ae   : > { %v2800_v33 = vsel %vm2792_vm5, %v8770_v23, 128  ;;  %v2801_v13 = vsel %vm2793_vm6, %v8770_v23, 128  ;;  %v2847_v1 = vcvt.s32.f32 %v2845_v18  ;;  %v2861_v16 = vcvt.s32.f32 %v2859_v25 }
0x11af   : > { %v2874_v11 = vshra.s32 %v2800_v33, 16  ;;  %v2888_v15 = vshra.s32 %v2801_v13, 16  ;;  %2849 = vmin.xlane.f32.xlu1 %v2848_v24  ;;  %2863 = vmin.xlane.f32.xlu0 %v2862_v54  ;;  %v2873_v42 = vand.u32 65535, %v2800_v33  ;;  %v2887_v32 = vand.u32 65535, %v2801_v13 }
0x11b0   : > { %v2786_v55 = vpop.xlane.xlu1 %2785 }
0x11b1   : > { %vm2794_vm7 = vcmp.eq.f32.partialorder %v9217_v26, %v2786_v55  ;;  %v2876_v50 = vcvt.s32.f32 %v2874_v11  ;;  %v2890_v20 = vcvt.s32.f32 %v2888_v15  ;;  %v2875_v8 = vcvt.s32.f32 %v2873_v42 }
0x11b2   : > { %v2802_v27 = vsel %vm2794_vm7, %v8770_v23, 128  ;;  %v2889_v2 = vcvt.s32.f32 %v2887_v32 }
0x11b3   : > { %v2902_v45 = vshra.s32 %v2802_v27, 16  ;;  %2877 = vmin.xlane.f32.xlu1 %v2876_v50  ;;  %2891 = vmin.xlane.f32.xlu0 %v2890_v20  ;;  %v2901_v40 = vand.u32 65535, %v2802_v27 }
0x11b5   : > { %v2904_v44 = vcvt.s32.f32 %v2902_v45  ;;  %v2903_v39 = vcvt.s32.f32 %v2901_v40 }
0x11b7   : > { %2905 = vmin.xlane.f32.xlu1 %v2904_v44 }
0x1230   : > { %v2808_v61 = vpop.xlane.xlu0 %2807 }
0x1231   : > { %vm2809_vm8 = vcmp.eq.f32.partialorder %v2806_v6, %v2808_v61  ;;  %v2814_v14 = vcvt.f32.s32 %v2808_v61 }
0x1232   : > { %v2810_v46 = vsel %vm2809_vm8, %v2805_v52, inf }
0x1233   : > { %2811 = vmin.xlane.f32.xlu0 %v2810_v46 }
0x1234   : > { %v2822_v56 = vpop.xlane.xlu1 %2821  ;;  %v2836_v10 = vpop.xlane.xlu0 %2835 }
0x1235   : > { %vm2823_vm9 = vcmp.eq.f32.partialorder %v2820_v12, %v2822_v56  ;;  %vm2837_vm10 = vcmp.eq.f32.partialorder %v2834_v30, %v2836_v10  ;;  %v2828_v53 = vcvt.f32.s32 %v2822_v56 }
0x1236   : > { %v2824_v29 = vsel %vm2823_vm9, %v2819_v63, inf  ;;  %v2838_v41 = vsel %vm2837_vm10, %v2833_v19, inf }
0x1237   : > { %2825 = vmin.xlane.f32.xlu1 %v2824_v29  ;;  %2839 = vmin.xlane.f32.xlu0 %v2838_v41  ;;  %v2829_v11 = vshll.u32 %v2828_v53, 16 }
0x1238   : > { %v2850_v28 = vpop.xlane.xlu1 %2849  ;;  %v2864_v4 = vpop.xlane.xlu0 %2863 }
0x1239   : > { %vm2851_vm11 = vcmp.eq.f32.partialorder %v2848_v24, %v2850_v28  ;;  %vm2865_vm12 = vcmp.eq.f32.partialorder %v2862_v54, %v2864_v4  ;;  %v2815_v24 = vshll.u32 %v2814_v14, 16  ;;  %v2842_v54 = vcvt.f32.s32 %v2836_v10 }
0x123a   : > { %v2852_v6 = vsel %vm2851_vm11, %v2847_v1, inf  ;;  %v2866_v51 = vsel %vm2865_vm12, %v2861_v16, inf  ;;  %v2856_v15 = vcvt.f32.s32 %v2850_v28  ;;  %v2870_v55 = vcvt.f32.s32 %v2864_v4 }
0x123b   : > { %2853 = vmin.xlane.f32.xlu1 %v2852_v6  ;;  %2867 = vmin.xlane.f32.xlu0 %v2866_v51  ;;  %v2843_v27 = vshll.u32 %v2842_v54, 16 }
0x123c   : > { %v2878_v7 = vpop.xlane.xlu1 %2877  ;;  %v2892_v3 = vpop.xlane.xlu0 %2891  ;;  %v2857_v61 = vshll.u32 %v2856_v15, 16  ;;  %v2871_v52 = vshll.u32 %v2870_v55, 16 }
0x123d   : > { %vm2879_vm13 = vcmp.eq.f32.partialorder %v2876_v50, %v2878_v7  ;;  %vm2893_vm14 = vcmp.eq.f32.partialorder %v2890_v20, %v2892_v3  ;;  %v2884_v46 = vcvt.f32.s32 %v2878_v7  ;;  %v2898_v18 = vcvt.f32.s32 %v2892_v3 }
0x123e   : > { %v2880_v12 = vsel %vm2879_vm13, %v2875_v8, inf  ;;  %v2894_v30 = vsel %vm2893_vm14, %v2889_v2, inf }
0x123f   : > { %2881 = vmin.xlane.f32.xlu1 %v2880_v12  ;;  %2895 = vmin.xlane.f32.xlu0 %v2894_v30  ;;  %v2885_v42 = vshll.u32 %v2884_v46, 16  ;;  %v2899_v32 = vshll.u32 %v2898_v18, 16 }
0x1240   : > { %v2906_v36 = vpop.xlane.xlu1 %2905 }
0x1241   : > { %vm2907_vm15 = vcmp.eq.f32.partialorder %v2904_v44, %v2906_v36  ;;  %v2912_v28 = vcvt.f32.s32 %v2906_v36 }
0x1242   : > { %v2908_v38 = vsel %vm2907_vm15, %v2903_v39, inf }
0x1243   : > { %2909 = vmin.xlane.f32.xlu1 %v2908_v38  ;;  %v2913_v3 = vshll.u32 %v2912_v28, 16 }
0x12bc   : > { %v2812_v62 = vpop.xlane.xlu0 %2811 }
0x12bd   : > { %v2813_v33 = vcvt.f32.s32 %v2812_v62 }
0x12bf   : > { %v2816_v13 = vadd.s32 %v2815_v24, %v2813_v33 }
0x12c0   : > { %v2826_v50 = vpop.xlane.xlu1 %2825  ;;  %v2840_v20 = vpop.xlane.xlu0 %2839 }
0x12c1   : > { %v2827_v45 = vcvt.f32.s32 %v2826_v50  ;;  %v2841_v58 = vcvt.f32.s32 %v2840_v20  ;;  %vm2915_vm0 = vcmp.eq.s32.totalorder %v8770_v23, %v2816_v13 }
0x12c2   : > { %v9238_v44 = vsel %vm2915_vm0, -inf, %v9182_v5 }
0x12c3   : > { %v2830_v57 = vadd.s32 %v2829_v11, %v2827_v45  ;;  %v2844_v43 = vadd.s32 %v2843_v27, %v2841_v58  ;;  %2931 = vmax.xlane.f32.xlu0 %v9238_v44 }
0x12c4   : > { %v2854_v25 = vpop.xlane.xlu1 %2853  ;;  %v2868_v56 = vpop.xlane.xlu0 %2867 }
0x12c5   : > { %v2855_v10 = vcvt.f32.s32 %v2854_v25  ;;  %v2869_v63 = vcvt.f32.s32 %v2868_v56  ;;  %vm2916_vm1 = vcmp.eq.s32.totalorder %v8770_v23, %v2830_v57  ;;  %vm2917_vm3 = vcmp.eq.s32.totalorder %v8770_v23, %v2844_v43 }
0x12c6   : > { %v9244_v19 = vsel %vm2916_vm1, -inf, %v9188_v47  ;;  %v9247_v5 = vsel %vm2917_vm3, -inf, %v9191_v0 }
0x12c7   : > { %v2858_v29 = vadd.s32 %v2857_v61, %v2855_v10  ;;  %v2872_v41 = vadd.s32 %v2871_v52, %v2869_v63  ;;  %2933 = vmax.xlane.f32.xlu1 %v9244_v19  ;;  %2935 = vmax.xlane.f32.xlu0 %v9247_v5 }
0x12c8   : > { %v2882_v4 = vpop.xlane.xlu1 %2881  ;;  %v2896_v1 = vpop.xlane.xlu0 %2895 }
0x12c9   : > { %v2883_v16 = vcvt.f32.s32 %v2882_v4  ;;  %v2897_v6 = vcvt.f32.s32 %v2896_v1  ;;  %vm2918_vm4 = vcmp.eq.s32.totalorder %v8770_v23, %v2858_v29  ;;  %vm2919_vm5 = vcmp.eq.s32.totalorder %v8770_v23, %v2872_v41 }
0x12ca   : > { %v9254_v47 = vsel %vm2918_vm4, -inf, %v9198_v34  ;;  %v9257_v0 = vsel %vm2919_vm5, -inf, %v9201_v35 }
0x12cb   : > { %v2886_v51 = vadd.s32 %v2885_v42, %v2883_v16  ;;  %v2900_v40 = vadd.s32 %v2899_v32, %v2897_v6  ;;  %2937 = vmax.xlane.f32.xlu1 %v9254_v47  ;;  %2939 = vmax.xlane.f32.xlu0 %v9257_v0 }
0x12cc   : > { %v2910_v7 = vpop.xlane.xlu1 %2909 }
0x12cd   : > { %v2911_v8 = vcvt.f32.s32 %v2910_v7  ;;  %vm2920_vm6 = vcmp.eq.s32.totalorder %v8770_v23, %v2886_v51  ;;  %vm2921_vm7 = vcmp.eq.s32.totalorder %v8770_v23, %v2900_v40 }
0x12ce   : > { %v9264_v2 = vsel %vm2920_vm6, -inf, %v9208_v17  ;;  %v9267_v34 = vsel %vm2921_vm7, -inf, %v9211_v9 }
0x12cf   : > { %v2914_v35 = vadd.s32 %v2913_v3, %v2911_v8  ;;  %2941 = vmax.xlane.f32.xlu1 %v9264_v2  ;;  %2943 = vmax.xlane.f32.xlu0 %v9267_v34 }
0x12d1   : > { %vm2922_vm8 = vcmp.eq.s32.totalorder %v8770_v23, %v2914_v35 }
0x12d2   : > { %v9273_v12 = vsel %vm2922_vm8, -inf, %v9217_v26 }
0x12d3   : > { %2945 = vmax.xlane.f32.xlu1 %v9273_v12 }
0x134c   : > { %v2932_v30 = vpop.xlane.xlu0 %2931 }
0x134d   : > { %vm2947_vm9 = vcmp.eq.f32.partialorder %v9238_v44, %v2932_v30 }
0x134e   : > { %v2955_v17 = vsel %vm2947_vm9, %v8770_v23, 128 }
0x134f   : > { %v2964_v36 = vshra.s32 %v2955_v17, 16  ;;  %v2963_v29 = vand.u32 65535, %v2955_v17 }
0x1350   : > { %v2934_v9 = vpop.xlane.xlu1 %2933  ;;  %v2936_v39 = vpop.xlane.xlu0 %2935 }
0x1351   : > { %vm2948_vm10 = vcmp.eq.f32.partialorder %v9244_v19, %v2934_v9  ;;  %vm2949_vm11 = vcmp.eq.f32.partialorder %v9247_v5, %v2936_v39  ;;  %v2966_v38 = vcvt.s32.f32 %v2964_v36  ;;  %v2965_v28 = vcvt.s32.f32 %v2963_v29 }
0x1352   : > { %v2956_v14 = vsel %vm2948_vm10, %v8770_v23, 128  ;;  %v2957_v26 = vsel %vm2949_vm11, %v8770_v23, 128 }
0x1353   : > { %v2978_v53 = vshra.s32 %v2956_v14, 16  ;;  %v2992_v62 = vshra.s32 %v2957_v26, 16  ;;  %2967 = vmin.xlane.f32.xlu0 %v2966_v38  ;;  %v2977_v41 = vand.u32 65535, %v2956_v14  ;;  %v2991_v42 = vand.u32 65535, %v2957_v26 }
0x1354   : > { %v2938_v24 = vpop.xlane.xlu1 %2937  ;;  %v2940_v54 = vpop.xlane.xlu0 %2939 }
0x1355   : > { %vm2950_vm12 = vcmp.eq.f32.partialorder %v9254_v47, %v2938_v24  ;;  %vm2951_vm13 = vcmp.eq.f32.partialorder %v9257_v0, %v2940_v54  ;;  %v2980_v33 = vcvt.s32.f32 %v2978_v53  ;;  %v2994_v13 = vcvt.s32.f32 %v2992_v62 }
0x1356   : > { %v2958_v11 = vsel %vm2950_vm12, %v8770_v23, 128  ;;  %v2959_v15 = vsel %vm2951_vm13, %v8770_v23, 128  ;;  %v2979_v40 = vcvt.s32.f32 %v2977_v41  ;;  %v2993_v7 = vcvt.s32.f32 %v2991_v42 }
0x1357   : > { %v3006_v55 = vshra.s32 %v2958_v11, 16  ;;  %v3020_v50 = vshra.s32 %v2959_v15, 16  ;;  %2981 = vmin.xlane.f32.xlu1 %v2980_v33  ;;  %2995 = vmin.xlane.f32.xlu0 %v2994_v13  ;;  %v3005_v1 = vand.u32 65535, %v2958_v11  ;;  %v3019_v16 = vand.u32 65535, %v2959_v15 }
0x1358   : > { %v2942_v20 = vpop.xlane.xlu1 %2941  ;;  %v2944_v27 = vpop.xlane.xlu0 %2943 }
0x1359   : > { %vm2952_vm14 = vcmp.eq.f32.partialorder %v9264_v2, %v2942_v20  ;;  %vm2953_vm15 = vcmp.eq.f32.partialorder %v9267_v34, %v2944_v27  ;;  %v3008_v45 = vcvt.s32.f32 %v3006_v55  ;;  %v3022_v58 = vcvt.s32.f32 %v3020_v50 }
0x135a   : > { %v2960_v57 = vsel %vm2952_vm14, %v8770_v23, 128  ;;  %v2961_v43 = vsel %vm2953_vm15, %v8770_v23, 128  ;;  %v3007_v9 = vcvt.s32.f32 %v3005_v1  ;;  %v3021_v39 = vcvt.s32.f32 %v3019_v16 }
0x135b   : > { %v3034_v61 = vshra.s32 %v2960_v57, 16  ;;  %v3048_v52 = vshra.s32 %v2961_v43, 16  ;;  %3009 = vmin.xlane.f32.xlu1 %v3008_v45  ;;  %3023 = vmin.xlane.f32.xlu0 %v3022_v58  ;;  %v3033_v35 = vand.u32 65535, %v2960_v57  ;;  %v3047_v30 = vand.u32 65535, %v2961_v43 }
0x135c   : > { %v2946_v46 = vpop.xlane.xlu1 %2945 }
0x135d   : > { %vm2954_vm0 = vcmp.eq.f32.partialorder %v9273_v12, %v2946_v46  ;;  %v3036_v18 = vcvt.s32.f32 %v3034_v61  ;;  %v3050_v25 = vcvt.s32.f32 %v3048_v52  ;;  %v3035_v24 = vcvt.s32.f32 %v3033_v35 }
0x135e   : > { %v2962_v56 = vsel %vm2954_vm0, %v8770_v23, 128  ;;  %v3049_v54 = vcvt.s32.f32 %v3047_v30 }
0x135f   : > { %v3062_v10 = vshra.s32 %v2962_v56, 16  ;;  %3037 = vmin.xlane.f32.xlu1 %v3036_v18  ;;  %3051 = vmin.xlane.f32.xlu0 %v3050_v25  ;;  %v3061_v26 = vand.u32 65535, %v2962_v56 }
0x1361   : > { %v3064_v63 = vcvt.s32.f32 %v3062_v10  ;;  %v3063_v15 = vcvt.s32.f32 %v3061_v26 }
0x1363   : > { %3065 = vmin.xlane.f32.xlu1 %v3064_v63 }
0x13dc   : > { %v2968_v32 = vpop.xlane.xlu0 %2967 }
0x13dd   : > { %vm2969_vm1 = vcmp.eq.f32.partialorder %v2966_v38, %v2968_v32  ;;  %v2974_v50 = vcvt.f32.s32 %v2968_v32 }
0x13de   : > { %v2970_v4 = vsel %vm2969_vm1, %v2965_v28, inf }
0x13df   : > { %2971 = vmin.xlane.f32.xlu0 %v2970_v4 }
0x13e0   : > { %v2982_v6 = vpop.xlane.xlu1 %2981  ;;  %v2996_v51 = vpop.xlane.xlu0 %2995 }
0x13e1   : > { %vm2983_vm3 = vcmp.eq.f32.partialorder %v2980_v33, %v2982_v6  ;;  %vm2997_vm4 = vcmp.eq.f32.partialorder %v2994_v13, %v2996_v51  ;;  %v2988_v20 = vcvt.f32.s32 %v2982_v6 }
0x13e2   : > { %v2984_v3 = vsel %vm2983_vm3, %v2979_v40, inf  ;;  %v2998_v8 = vsel %vm2997_vm4, %v2993_v7, inf }
0x13e3   : > { %2985 = vmin.xlane.f32.xlu1 %v2984_v3  ;;  %2999 = vmin.xlane.f32.xlu0 %v2998_v8  ;;  %v2989_v61 = vshll.u32 %v2988_v20, 16 }
0x13e4   : > { %v3010_v17 = vpop.xlane.xlu1 %3009  ;;  %v3024_v36 = vpop.xlane.xlu0 %3023 }
0x13e5   : > { %vm3011_vm5 = vcmp.eq.f32.partialorder %v3008_v45, %v3010_v17  ;;  %vm3025_vm6 = vcmp.eq.f32.partialorder %v3022_v58, %v3024_v36  ;;  %v2975_v45 = vshll.u32 %v2974_v50, 16  ;;  %v3002_v58 = vcvt.f32.s32 %v2996_v51 }
0x13e6   : > { %v3012_v38 = vsel %vm3011_vm5, %v3007_v9, inf  ;;  %v3026_v14 = vsel %vm3025_vm6, %v3021_v39, inf  ;;  %v3016_v52 = vcvt.f32.s32 %v3010_v17  ;;  %v3030_v46 = vcvt.f32.s32 %v3024_v36 }
0x13e7   : > { %3013 = vmin.xlane.f32.xlu1 %v3012_v38  ;;  %3027 = vmin.xlane.f32.xlu0 %v3026_v14  ;;  %v3003_v56 = vshll.u32 %v3002_v58, 16 }
0x13e8   : > { %v3038_v53 = vpop.xlane.xlu1 %3037  ;;  %v3052_v62 = vpop.xlane.xlu0 %3051  ;;  %v3017_v32 = vshll.u32 %v3016_v52, 16  ;;  %v3031_v28 = vshll.u32 %v3030_v46, 16 }
0x13e9   : > { %vm3039_vm7 = vcmp.eq.f32.partialorder %v3036_v18, %v3038_v53  ;;  %vm3053_vm8 = vcmp.eq.f32.partialorder %v3050_v25, %v3052_v62  ;;  %v3044_v4 = vcvt.f32.s32 %v3038_v53  ;;  %v3058_v1 = vcvt.f32.s32 %v3052_v62 }
0x13ea   : > { %v3040_v33 = vsel %vm3039_vm7, %v3035_v24, inf  ;;  %v3054_v13 = vsel %vm3053_vm8, %v3049_v54, inf }
0x13eb   : > { %3041 = vmin.xlane.f32.xlu1 %v3040_v33  ;;  %3055 = vmin.xlane.f32.xlu0 %v3054_v13  ;;  %v3045_v35 = vshll.u32 %v3044_v4, 16  ;;  %v3059_v30 = vshll.u32 %v3058_v1, 16 }
0x13ec   : > { %v3066_v11 = vpop.xlane.xlu1 %3065 }
0x13ed   : > { %vm3067_vm9 = vcmp.eq.f32.partialorder %v3064_v63, %v3066_v11  ;;  %v3072_v17 = vcvt.f32.s32 %v3066_v11 }
0x13ee   : > { %v3068_v55 = vsel %vm3067_vm9, %v3063_v15, inf }
0x13ef   : > { %3069 = vmin.xlane.f32.xlu1 %v3068_v55  ;;  %v3073_v62 = vshll.u32 %v3072_v17, 16 }
0x1468   : > { %v2972_v27 = vpop.xlane.xlu0 %2971 }
0x1469   : > { %v2973_v57 = vcvt.f32.s32 %v2972_v27 }
0x146b   : > { %v2976_v43 = vadd.s32 %v2975_v45, %v2973_v57 }
0x146c   : > { %v2986_v18 = vpop.xlane.xlu1 %2985  ;;  %v3000_v25 = vpop.xlane.xlu0 %2999 }
0x146d   : > { %v2987_v10 = vcvt.f32.s32 %v2986_v18  ;;  %v3001_v29 = vcvt.f32.s32 %v3000_v25  ;;  %vm3075_vm10 = vcmp.eq.s32.totalorder %v8770_v23, %v2976_v43 }
0x146e   : > { %v9294_v63 = vsel %vm3075_vm10, -inf, %v9238_v44 }
0x146f   : > { %v2990_v41 = vadd.s32 %v2989_v61, %v2987_v10  ;;  %v3004_v42 = vadd.s32 %v3003_v56, %v3001_v29  ;;  %3091 = vmax.xlane.f32.xlu0 %v9294_v63 }
0x1470   : > { %v3014_v16 = vpop.xlane.xlu1 %3013  ;;  %v3028_v6 = vpop.xlane.xlu0 %3027 }
0x1471   : > { %v3015_v51 = vcvt.f32.s32 %v3014_v16  ;;  %v3029_v40 = vcvt.f32.s32 %v3028_v6  ;;  %vm3076_vm11 = vcmp.eq.s32.totalorder %v8770_v23, %v2990_v41  ;;  %vm3077_vm12 = vcmp.eq.s32.totalorder %v8770_v23, %v3004_v42 }
0x1472   : > { %v9300_v7 = vsel %vm3076_vm11, -inf, %v9244_v19  ;;  %v9303_v44 = vsel %vm3077_vm12, -inf, %v9247_v5 }
0x1473   : > { %v3018_v3 = vadd.s32 %v3017_v32, %v3015_v51  ;;  %v3032_v8 = vadd.s32 %v3031_v28, %v3029_v40  ;;  %3093 = vmax.xlane.f32.xlu1 %v9300_v7  ;;  %3095 = vmax.xlane.f32.xlu0 %v9303_v44 }
0x1474   : > { %v3042_v36 = vpop.xlane.xlu1 %3041  ;;  %v3056_v9 = vpop.xlane.xlu0 %3055 }
0x1475   : > { %v3043_v39 = vcvt.f32.s32 %v3042_v36  ;;  %v3057_v38 = vcvt.f32.s32 %v3056_v9  ;;  %vm3078_vm13 = vcmp.eq.s32.totalorder %v8770_v23, %v3018_v3  ;;  %vm3079_vm14 = vcmp.eq.s32.totalorder %v8770_v23, %v3032_v8 }
0x1476   : > { %v9310_v19 = vsel %vm3078_vm13, -inf, %v9254_v47  ;;  %v9313_v5 = vsel %vm3079_vm14, -inf, %v9257_v0 }
0x1477   : > { %v3046_v14 = vadd.s32 %v3045_v35, %v3043_v39  ;;  %v3060_v26 = vadd.s32 %v3059_v30, %v3057_v38  ;;  %3097 = vmax.xlane.f32.xlu1 %v9310_v19  ;;  %3099 = vmax.xlane.f32.xlu0 %v9313_v5 }
0x1478   : > { %v3070_v53 = vpop.xlane.xlu1 %3069 }
0x1479   : > { %v3071_v24 = vcvt.f32.s32 %v3070_v53  ;;  %vm3080_vm15 = vcmp.eq.s32.totalorder %v8770_v23, %v3046_v14  ;;  %vm3081_vm0 = vcmp.eq.s32.totalorder %v8770_v23, %v3060_v26 }
0x147a   : > { %v9320_v54 = vsel %vm3080_vm15, -inf, %v9264_v2  ;;  %v9323_v47 = vsel %vm3081_vm0, -inf, %v9267_v34 }
0x147b   : > { %v3074_v0 = vadd.s32 %v3073_v62, %v3071_v24  ;;  %3101 = vmax.xlane.f32.xlu1 %v9320_v54  ;;  %3103 = vmax.xlane.f32.xlu0 %v9323_v47 }
0x147d   : > { %vm3082_vm1 = vcmp.eq.s32.totalorder %v8770_v23, %v3074_v0 }
0x147e   : > { %v9329_v33 = vsel %vm3082_vm1, -inf, %v9273_v12 }
0x147f   : > { %3105 = vmax.xlane.f32.xlu1 %v9329_v33 }
0x14f8   : > { %v3092_v13 = vpop.xlane.xlu0 %3091 }
0x14f9   : > { %vm3107_vm3 = vcmp.eq.f32.partialorder %v9294_v63, %v3092_v13 }
0x14fa   : > { %v3115_v2 = vsel %vm3107_vm3, %v8770_v23, 128 }
0x14fb   : > { %v3124_v11 = vshra.s32 %v3115_v2, 16  ;;  %v3123_v3 = vand.u32 65535, %v3115_v2 }
0x14fc   : > { %v3094_v34 = vpop.xlane.xlu1 %3093  ;;  %v3096_v15 = vpop.xlane.xlu0 %3095 }
0x14fd   : > { %vm3108_vm4 = vcmp.eq.f32.partialorder %v9300_v7, %v3094_v34  ;;  %vm3109_vm5 = vcmp.eq.f32.partialorder %v9303_v44, %v3096_v15  ;;  %v3126_v55 = vcvt.s32.f32 %v3124_v11  ;;  %v3125_v17 = vcvt.s32.f32 %v3123_v3 }
0x14fe   : > { %v3116_v50 = vsel %vm3108_vm4, %v8770_v23, 128  ;;  %v3117_v12 = vsel %vm3109_vm5, %v8770_v23, 128 }
0x14ff   : > { %v3138_v20 = vshra.s32 %v3116_v50, 16  ;;  %v3152_v27 = vshra.s32 %v3117_v12, 16  ;;  %3127 = vmin.xlane.f32.xlu0 %v3126_v55  ;;  %v3137_v8 = vand.u32 65535, %v3116_v50  ;;  %v3151_v35 = vand.u32 65535, %v3117_v12 }
0x1500   : > { %v3098_v45 = vpop.xlane.xlu1 %3097  ;;  %v3100_v58 = vpop.xlane.xlu0 %3099 }
0x1501   : > { %vm3110_vm6 = vcmp.eq.f32.partialorder %v9310_v19, %v3098_v45  ;;  %vm3111_vm7 = vcmp.eq.f32.partialorder %v9313_v5, %v3100_v58  ;;  %v3140_v57 = vcvt.s32.f32 %v3138_v20  ;;  %v3154_v43 = vcvt.s32.f32 %v3152_v27 }
0x1502   : > { %v3118_v61 = vsel %vm3110_vm6, %v8770_v23, 128  ;;  %v3119_v52 = vsel %vm3111_vm7, %v8770_v23, 128  ;;  %v3139_v26 = vcvt.s32.f32 %v3137_v8  ;;  %v3153_v53 = vcvt.s32.f32 %v3151_v35 }
0x1503   : > { %v3166_v46 = vshra.s32 %v3118_v61, 16  ;;  %v3180_v18 = vshra.s32 %v3119_v52, 16  ;;  %3141 = vmin.xlane.f32.xlu1 %v3140_v57  ;;  %3155 = vmin.xlane.f32.xlu0 %v3154_v43  ;;  %v3165_v9 = vand.u32 65535, %v3118_v61  ;;  %v3179_v39 = vand.u32 65535, %v3119_v52 }
0x1504   : > { %v3102_v25 = vpop.xlane.xlu1 %3101  ;;  %v3104_v56 = vpop.xlane.xlu0 %3103 }
0x1505   : > { %vm3112_vm8 = vcmp.eq.f32.partialorder %v9320_v54, %v3102_v25  ;;  %vm3113_vm9 = vcmp.eq.f32.partialorder %v9323_v47, %v3104_v56  ;;  %v3168_v10 = vcvt.s32.f32 %v3166_v46  ;;  %v3182_v29 = vcvt.s32.f32 %v3180_v18 }
0x1506   : > { %v3120_v41 = vsel %vm3112_vm8, %v8770_v23, 128  ;;  %v3121_v42 = vsel %vm3113_vm9, %v8770_v23, 128  ;;  %v3167_v34 = vcvt.s32.f32 %v3165_v9  ;;  %v3181_v15 = vcvt.s32.f32 %v3179_v39 }
0x1507   : > { %v3194_v32 = vshra.s32 %v3120_v41, 16  ;;  %v3208_v28 = vshra.s32 %v3121_v42, 16  ;;  %3169 = vmin.xlane.f32.xlu1 %v3168_v10  ;;  %3183 = vmin.xlane.f32.xlu0 %v3182_v29  ;;  %v3193_v0 = vand.u32 65535, %v3120_v41  ;;  %v3207_v13 = vand.u32 65535, %v3121_v42 }
0x1508   : > { %v3106_v4 = vpop.xlane.xlu1 %3105 }
0x1509   : > { %vm3114_vm10 = vcmp.eq.f32.partialorder %v9329_v33, %v3106_v4  ;;  %v3196_v1 = vcvt.s32.f32 %v3194_v32  ;;  %v3210_v16 = vcvt.s32.f32 %v3208_v28  ;;  %v3195_v45 = vcvt.s32.f32 %v3193_v0 }
0x150a   : > { %v3122_v6 = vsel %vm3114_vm10, %v8770_v23, 128  ;;  %v3209_v58 = vcvt.s32.f32 %v3207_v13 }
0x150b   : > { %v3222_v51 = vshra.s32 %v3122_v6, 16  ;;  %3197 = vmin.xlane.f32.xlu1 %v3196_v1  ;;  %3211 = vmin.xlane.f32.xlu0 %v3210_v16  ;;  %v3221_v12 = vand.u32 65535, %v3122_v6 }
0x150d   : > { %v3224_v40 = vcvt.s32.f32 %v3222_v51  ;;  %v3223_v52 = vcvt.s32.f32 %v3221_v12 }
0x150f   : > { %3225 = vmin.xlane.f32.xlu1 %v3224_v40 }
0x1588   : > { %v3128_v30 = vpop.xlane.xlu0 %3127 }
0x1589   : > { %vm3129_vm11 = vcmp.eq.f32.partialorder %v3126_v55, %v3128_v30  ;;  %v3134_v18 = vcvt.f32.s32 %v3128_v30 }
0x158a   : > { %v3130_v36 = vsel %vm3129_vm11, %v3125_v17, inf }
0x158b   : > { %3131 = vmin.xlane.f32.xlu0 %v3130_v36 }
0x158c   : > { %v3142_v38 = vpop.xlane.xlu1 %3141  ;;  %v3156_v14 = vpop.xlane.xlu0 %3155 }
0x158d   : > { %vm3143_vm12 = vcmp.eq.f32.partialorder %v3140_v57, %v3142_v38  ;;  %vm3157_vm13 = vcmp.eq.f32.partialorder %v3154_v43, %v3156_v14  ;;  %v3148_v25 = vcvt.f32.s32 %v3142_v38 }
0x158e   : > { %v3144_v62 = vsel %vm3143_vm12, %v3139_v26, inf  ;;  %v3158_v24 = vsel %vm3157_vm13, %v3153_v53, inf }
0x158f   : > { %3145 = vmin.xlane.f32.xlu1 %v3144_v62  ;;  %3159 = vmin.xlane.f32.xlu0 %v3158_v24  ;;  %v3149_v32 = vshll.u32 %v3148_v25, 16 }
0x1590   : > { %v3170_v2 = vpop.xlane.xlu1 %3169  ;;  %v3184_v11 = vpop.xlane.xlu0 %3183 }
0x1591   : > { %vm3171_vm14 = vcmp.eq.f32.partialorder %v3168_v10, %v3170_v2  ;;  %vm3185_vm15 = vcmp.eq.f32.partialorder %v3182_v29, %v3184_v11  ;;  %v3135_v10 = vshll.u32 %v3134_v18, 16  ;;  %v3162_v29 = vcvt.f32.s32 %v3156_v14 }
0x1592   : > { %v3172_v55 = vsel %vm3171_vm14, %v3167_v34, inf  ;;  %v3186_v50 = vsel %vm3185_vm15, %v3181_v15, inf  ;;  %v3176_v28 = vcvt.f32.s32 %v3170_v2  ;;  %v3190_v4 = vcvt.f32.s32 %v3184_v11 }
0x1593   : > { %3173 = vmin.xlane.f32.xlu1 %v3172_v55  ;;  %3187 = vmin.xlane.f32.xlu0 %v3186_v50  ;;  %v3163_v6 = vshll.u32 %v3162_v29, 16 }
0x1594   : > { %v3198_v20 = vpop.xlane.xlu1 %3197  ;;  %v3212_v27 = vpop.xlane.xlu0 %3211  ;;  %v3177_v30 = vshll.u32 %v3176_v28, 16  ;;  %v3191_v17 = vshll.u32 %v3190_v4, 16 }
0x1595   : > { %vm3199_vm0 = vcmp.eq.f32.partialorder %v3196_v1, %v3198_v20  ;;  %vm3213_vm1 = vcmp.eq.f32.partialorder %v3210_v16, %v3212_v27  ;;  %v3204_v36 = vcvt.f32.s32 %v3198_v20  ;;  %v3218_v9 = vcvt.f32.s32 %v3212_v27 }
0x1596   : > { %v3200_v57 = vsel %vm3199_vm0, %v3195_v45, inf  ;;  %v3214_v43 = vsel %vm3213_vm1, %v3209_v58, inf }
0x1597   : > { %3201 = vmin.xlane.f32.xlu1 %v3200_v57  ;;  %3215 = vmin.xlane.f32.xlu0 %v3214_v43  ;;  %v3205_v0 = vshll.u32 %v3204_v36, 16  ;;  %v3219_v13 = vshll.u32 %v3218_v9, 16 }
0x1598   : > { %v3226_v61 = vpop.xlane.xlu1 %3225 }
0x1599   : > { %vm3227_vm3 = vcmp.eq.f32.partialorder %v3224_v40, %v3226_v61  ;;  %v3232_v2 = vcvt.f32.s32 %v3226_v61 }
0x159a   : > { %v3228_v46 = vsel %vm3227_vm3, %v3223_v52, inf }
0x159b   : > { %3229 = vmin.xlane.f32.xlu1 %v3228_v46  ;;  %v3233_v27 = vshll.u32 %v3232_v2, 16 }
0x1614   : > { %v3132_v56 = vpop.xlane.xlu0 %3131 }
0x1615   : > { %v3133_v41 = vcvt.f32.s32 %v3132_v56 }
0x1617   : > { %v3136_v42 = vadd.s32 %v3135_v10, %v3133_v41 }
0x1618   : > { %v3146_v1 = vpop.xlane.xlu1 %3145  ;;  %v3160_v16 = vpop.xlane.xlu0 %3159 }
0x1619   : > { %v3147_v51 = vcvt.f32.s32 %v3146_v1  ;;  %v3161_v3 = vcvt.f32.s32 %v3160_v16  ;;  %vm3235_vm4 = vcmp.eq.s32.totalorder %v8770_v23, %v3136_v42 }
0x161a   : > { %v9350_v40 = vsel %vm3235_vm4, -inf, %v9294_v63 }
0x161b   : > { %v3150_v8 = vadd.s32 %v3149_v32, %v3147_v51  ;;  %v3164_v35 = vadd.s32 %v3163_v6, %v3161_v3  ;;  %3251 = vmax.xlane.f32.xlu0 %v9350_v40 }
0x161c   : > { %v3174_v39 = vpop.xlane.xlu1 %3173  ;;  %v3188_v38 = vpop.xlane.xlu0 %3187 }
0x161d   : > { %v3175_v14 = vcvt.f32.s32 %v3174_v39  ;;  %v3189_v26 = vcvt.f32.s32 %v3188_v38  ;;  %vm3236_vm5 = vcmp.eq.s32.totalorder %v8770_v23, %v3150_v8  ;;  %vm3237_vm6 = vcmp.eq.s32.totalorder %v8770_v23, %v3164_v35 }
0x161e   : > { %v9356_v53 = vsel %vm3236_vm5, -inf, %v9300_v7  ;;  %v9359_v63 = vsel %vm3237_vm6, -inf, %v9303_v44 }
0x161f   : > { %v3178_v62 = vadd.s32 %v3177_v30, %v3175_v14  ;;  %v3192_v24 = vadd.s32 %v3191_v17, %v3189_v26  ;;  %3253 = vmax.xlane.f32.xlu1 %v9356_v53  ;;  %3255 = vmax.xlane.f32.xlu0 %v9359_v63 }
0x1620   : > { %v3202_v11 = vpop.xlane.xlu1 %3201  ;;  %v3216_v34 = vpop.xlane.xlu0 %3215 }
0x1621   : > { %v3203_v15 = vcvt.f32.s32 %v3202_v11  ;;  %v3217_v55 = vcvt.f32.s32 %v3216_v34  ;;  %vm3238_vm7 = vcmp.eq.s32.totalorder %v8770_v23, %v3178_v62  ;;  %vm3239_vm8 = vcmp.eq.s32.totalorder %v8770_v23, %v3192_v24 }
0x1622   : > { %v9366_v7 = vsel %vm3238_vm7, -inf, %v9310_v19  ;;  %v9369_v44 = vsel %vm3239_vm8, -inf, %v9313_v5 }
0x1623   : > { %v3206_v50 = vadd.s32 %v3205_v0, %v3203_v15  ;;  %v3220_v12 = vadd.s32 %v3219_v13, %v3217_v55  ;;  %3257 = vmax.xlane.f32.xlu1 %v9366_v7  ;;  %3259 = vmax.xlane.f32.xlu0 %v9369_v44 }
0x1624   : > { %v3230_v20 = vpop.xlane.xlu1 %3229 }
0x1625   : > { %v3231_v45 = vcvt.f32.s32 %v3230_v20  ;;  %vm3240_vm9 = vcmp.eq.s32.totalorder %v8770_v23, %v3206_v50  ;;  %vm3241_vm10 = vcmp.eq.s32.totalorder %v8770_v23, %v3220_v12 }
0x1626   : > { %v9376_v58 = vsel %vm3240_vm9, -inf, %v9320_v54  ;;  %v9379_v19 = vsel %vm3241_vm10, -inf, %v9323_v47 }
0x1627   : > { %v3234_v5 = vadd.s32 %v3233_v27, %v3231_v45  ;;  %3261 = vmax.xlane.f32.xlu1 %v9376_v58  ;;  %3263 = vmax.xlane.f32.xlu0 %v9379_v19 }
0x1629   : > { %vm3242_vm11 = vcmp.eq.s32.totalorder %v8770_v23, %v3234_v5 }
0x162a   : > { %v9385_v57 = vsel %vm3242_vm11, -inf, %v9329_v33 }
0x162b   : > { %3265 = vmax.xlane.f32.xlu1 %v9385_v57 }
0x16a4   : > { %v3252_v43 = vpop.xlane.xlu0 %3251 }
0x16a5   : > { %vm3267_vm12 = vcmp.eq.f32.partialorder %v9350_v40, %v3252_v43 }
0x16a6   : > { %v3275_v54 = vsel %vm3267_vm12, %v8770_v23, 128 }
0x16a7   : > { %v3284_v61 = vshra.s32 %v3275_v54, 16  ;;  %v3283_v62 = vand.u32 65535, %v3275_v54 }
0x16a8   : > { %v3254_v47 = vpop.xlane.xlu1 %3253  ;;  %v3256_v52 = vpop.xlane.xlu0 %3255 }
0x16a9   : > { %vm3268_vm13 = vcmp.eq.f32.partialorder %v9356_v53, %v3254_v47  ;;  %vm3269_vm14 = vcmp.eq.f32.partialorder %v9359_v63, %v3256_v52  ;;  %v3286_v46 = vcvt.s32.f32 %v3284_v61  ;;  %v3285_v2 = vcvt.s32.f32 %v3283_v62 }
0x16aa   : > { %v3276_v18 = vsel %vm3268_vm13, %v8770_v23, 128  ;;  %v3277_v33 = vsel %vm3269_vm14, %v8770_v23, 128 }
0x16ab   : > { %v3298_v25 = vshra.s32 %v3276_v18, 16  ;;  %v3312_v56 = vshra.s32 %v3277_v33, 16  ;;  %3287 = vmin.xlane.f32.xlu0 %v3286_v46  ;;  %v3297_v24 = vand.u32 65535, %v3276_v18  ;;  %v3311_v0 = vand.u32 65535, %v3277_v33 }
0x16ac   : > { %v3258_v10 = vpop.xlane.xlu1 %3257  ;;  %v3260_v29 = vpop.xlane.xlu0 %3259 }
0x16ad   : > { %vm3270_vm15 = vcmp.eq.f32.partialorder %v9366_v7, %v3258_v10  ;;  %vm3271_vm0 = vcmp.eq.f32.partialorder %v9369_v44, %v3260_v29  ;;  %v3300_v41 = vcvt.s32.f32 %v3298_v25  ;;  %v3314_v42 = vcvt.s32.f32 %v3312_v56 }
0x16ae   : > { %v3278_v32 = vsel %vm3270_vm15, %v8770_v23, 128  ;;  %v3279_v28 = vsel %vm3271_vm0, %v8770_v23, 128  ;;  %v3299_v12 = vcvt.s32.f32 %v3297_v24  ;;  %v3313_v20 = vcvt.s32.f32 %v3311_v0 }
0x16af   : > { %v3326_v4 = vshra.s32 %v3278_v32, 16  ;;  %v3340_v1 = vshra.s32 %v3279_v28, 16  ;;  %3301 = vmin.xlane.f32.xlu1 %v3300_v41  ;;  %3315 = vmin.xlane.f32.xlu0 %v3314_v42  ;;  %v3325_v34 = vand.u32 65535, %v3278_v32  ;;  %v3339_v15 = vand.u32 65535, %v3279_v28 }
0x16b0   : > { %v3262_v16 = vpop.xlane.xlu1 %3261  ;;  %v3264_v6 = vpop.xlane.xlu0 %3263 }
0x16b1   : > { %vm3272_vm1 = vcmp.eq.f32.partialorder %v9376_v58, %v3262_v16  ;;  %vm3273_vm3 = vcmp.eq.f32.partialorder %v9379_v19, %v3264_v6  ;;  %v3328_v51 = vcvt.s32.f32 %v3326_v4  ;;  %v3342_v3 = vcvt.s32.f32 %v3340_v1 }
0x16b2   : > { %v3280_v8 = vsel %vm3272_vm1, %v8770_v23, 128  ;;  %v3281_v35 = vsel %vm3273_vm3, %v8770_v23, 128  ;;  %v3327_v47 = vcvt.s32.f32 %v3325_v34  ;;  %v3341_v52 = vcvt.s32.f32 %v3339_v15 }
0x16b3   : > { %v3354_v30 = vshra.s32 %v3280_v8, 16  ;;  %v3368_v17 = vshra.s32 %v3281_v35, 16  ;;  %3329 = vmin.xlane.f32.xlu1 %v3328_v51  ;;  %3343 = vmin.xlane.f32.xlu0 %v3342_v3  ;;  %v3353_v5 = vand.u32 65535, %v3280_v8  ;;  %v3367_v43 = vand.u32 65535, %v3281_v35 }
0x16b4   : > { %v3266_v36 = vpop.xlane.xlu1 %3265 }
0x16b5   : > { %vm3274_vm4 = vcmp.eq.f32.partialorder %v9385_v57, %v3266_v36  ;;  %v3356_v9 = vcvt.s32.f32 %v3354_v30  ;;  %v3370_v39 = vcvt.s32.f32 %v3368_v17  ;;  %v3355_v10 = vcvt.s32.f32 %v3353_v5 }
0x16b6   : > { %v3282_v38 = vsel %vm3274_vm4, %v8770_v23, 128  ;;  %v3369_v29 = vcvt.s32.f32 %v3367_v43 }
0x16b7   : > { %v3382_v14 = vshra.s32 %v3282_v38, 16  ;;  %3357 = vmin.xlane.f32.xlu1 %v3356_v9  ;;  %3371 = vmin.xlane.f32.xlu0 %v3370_v39  ;;  %v3381_v33 = vand.u32 65535, %v3282_v38 }
0x16b9   : > { %v3384_v26 = vcvt.s32.f32 %v3382_v14  ;;  %v3383_v28 = vcvt.s32.f32 %v3381_v33 }
0x16bb   : > { %3385 = vmin.xlane.f32.xlu1 %v3384_v26 }
0x1734   : > { %v3288_v13 = vpop.xlane.xlu0 %3287 }
0x1735   : > { %vm3289_vm5 = vcmp.eq.f32.partialorder %v3286_v46, %v3288_v13  ;;  %v3294_v1 = vcvt.f32.s32 %v3288_v13 }
0x1736   : > { %v3290_v11 = vsel %vm3289_vm5, %v3285_v2, inf }
0x1737   : > { %3291 = vmin.xlane.f32.xlu0 %v3290_v11 }
0x1738   : > { %v3302_v55 = vpop.xlane.xlu1 %3301  ;;  %v3316_v50 = vpop.xlane.xlu0 %3315 }
0x1739   : > { %vm3303_vm6 = vcmp.eq.f32.partialorder %v3300_v41, %v3302_v55  ;;  %vm3317_vm7 = vcmp.eq.f32.partialorder %v3314_v42, %v3316_v50  ;;  %v3308_v16 = vcvt.f32.s32 %v3302_v55 }
0x173a   : > { %v3304_v27 = vsel %vm3303_vm6, %v3299_v12, inf  ;;  %v3318_v45 = vsel %vm3317_vm7, %v3313_v20, inf }
0x173b   : > { %3305 = vmin.xlane.f32.xlu1 %v3304_v27  ;;  %3319 = vmin.xlane.f32.xlu0 %v3318_v45  ;;  %v3309_v30 = vshll.u32 %v3308_v16, 16 }
0x173c   : > { %v3330_v54 = vpop.xlane.xlu1 %3329  ;;  %v3344_v61 = vpop.xlane.xlu0 %3343 }
0x173d   : > { %vm3331_vm8 = vcmp.eq.f32.partialorder %v3328_v51, %v3330_v54  ;;  %vm3345_vm9 = vcmp.eq.f32.partialorder %v3342_v3, %v3344_v61  ;;  %v3295_v51 = vshll.u32 %v3294_v1, 16  ;;  %v3322_v3 = vcvt.f32.s32 %v3316_v50 }
0x173e   : > { %v3332_v46 = vsel %vm3331_vm8, %v3327_v47, inf  ;;  %v3346_v18 = vsel %vm3345_vm9, %v3341_v52, inf  ;;  %v3336_v17 = vcvt.f32.s32 %v3330_v54  ;;  %v3350_v36 = vcvt.f32.s32 %v3344_v61 }
0x173f   : > { %3333 = vmin.xlane.f32.xlu1 %v3332_v46  ;;  %3347 = vmin.xlane.f32.xlu0 %v3346_v18  ;;  %v3323_v38 = vshll.u32 %v3322_v3, 16 }
0x1740   : > { %v3358_v25 = vpop.xlane.xlu1 %3357  ;;  %v3372_v56 = vpop.xlane.xlu0 %3371  ;;  %v3337_v13 = vshll.u32 %v3336_v17, 16  ;;  %v3351_v2 = vshll.u32 %v3350_v36, 16 }
0x1741   : > { %vm3359_vm10 = vcmp.eq.f32.partialorder %v3356_v9, %v3358_v25  ;;  %vm3373_vm11 = vcmp.eq.f32.partialorder %v3370_v39, %v3372_v56  ;;  %v3364_v11 = vcvt.f32.s32 %v3358_v25  ;;  %v3378_v34 = vcvt.f32.s32 %v3372_v56 }
0x1742   : > { %v3360_v41 = vsel %vm3359_vm10, %v3355_v10, inf  ;;  %v3374_v42 = vsel %vm3373_vm11, %v3369_v29, inf }
0x1743   : > { %3361 = vmin.xlane.f32.xlu1 %v3360_v41  ;;  %3375 = vmin.xlane.f32.xlu0 %v3374_v42  ;;  %v3365_v5 = vshll.u32 %v3364_v11, 16  ;;  %v3379_v43 = vshll.u32 %v3378_v34, 16 }
0x1744   : > { %v3386_v32 = vpop.xlane.xlu1 %3385 }
0x1745   : > { %vm3387_vm12 = vcmp.eq.f32.partialorder %v3384_v26, %v3386_v32  ;;  %v3392_v54 = vcvt.f32.s32 %v3386_v32 }
0x1746   : > { %v3388_v4 = vsel %vm3387_vm12, %v3383_v28, inf }
0x1747   : > { %3389 = vmin.xlane.f32.xlu1 %v3388_v4  ;;  %v3393_v56 = vshll.u32 %v3392_v54, 16 }
0x17c0   : > { %v3292_v6 = vpop.xlane.xlu0 %3291 }
0x17c1   : > { %v3293_v8 = vcvt.f32.s32 %v3292_v6 }
0x17c3   : > { %v3296_v35 = vadd.s32 %v3295_v51, %v3293_v8 }
0x17c4   : > { %v3306_v9 = vpop.xlane.xlu1 %3305  ;;  %v3320_v39 = vpop.xlane.xlu0 %3319 }
0x17c5   : > { %v3307_v14 = vcvt.f32.s32 %v3306_v9  ;;  %v3321_v62 = vcvt.f32.s32 %v3320_v39  ;;  %vm3395_vm13 = vcmp.eq.s32.totalorder %v8770_v23, %v3296_v35 }
0x17c6   : > { %v9406_v26 = vsel %vm3395_vm13, -inf, %v9350_v40 }
0x17c7   : > { %v3310_v24 = vadd.s32 %v3309_v30, %v3307_v14  ;;  %v3324_v0 = vadd.s32 %v3323_v38, %v3321_v62  ;;  %3411 = vmax.xlane.f32.xlu0 %v9406_v26 }
0x17c8   : > { %v3334_v15 = vpop.xlane.xlu1 %3333  ;;  %v3348_v55 = vpop.xlane.xlu0 %3347 }
0x17c9   : > { %v3335_v50 = vcvt.f32.s32 %v3334_v15  ;;  %v3349_v12 = vcvt.f32.s32 %v3348_v55  ;;  %vm3396_vm14 = vcmp.eq.s32.totalorder %v8770_v23, %v3310_v24  ;;  %vm3397_vm15 = vcmp.eq.s32.totalorder %v8770_v23, %v3324_v0 }
0x17ca   : > { %v9412_v20 = vsel %vm3396_vm14, -inf, %v9356_v53  ;;  %v9415_v40 = vsel %vm3397_vm15, -inf, %v9359_v63 }
0x17cb   : > { %v3338_v27 = vadd.s32 %v3337_v13, %v3335_v50  ;;  %v3352_v45 = vadd.s32 %v3351_v2, %v3349_v12  ;;  %3413 = vmax.xlane.f32.xlu1 %v9412_v20  ;;  %3415 = vmax.xlane.f32.xlu0 %v9415_v40 }
0x17cc   : > { %v3362_v61 = vpop.xlane.xlu1 %3361  ;;  %v3376_v47 = vpop.xlane.xlu0 %3375 }
0x17cd   : > { %v3363_v52 = vcvt.f32.s32 %v3362_v61  ;;  %v3377_v46 = vcvt.f32.s32 %v3376_v47  ;;  %vm3398_vm0 = vcmp.eq.s32.totalorder %v8770_v23, %v3338_v27  ;;  %vm3399_vm1 = vcmp.eq.s32.totalorder %v8770_v23, %v3352_v45 }
0x17ce   : > { %v9422_v53 = vsel %vm3398_vm0, -inf, %v9366_v7  ;;  %v9425_v63 = vsel %vm3399_vm1, -inf, %v9369_v44 }
0x17cf   : > { %v3366_v18 = vadd.s32 %v3365_v5, %v3363_v52  ;;  %v3380_v33 = vadd.s32 %v3379_v43, %v3377_v46  ;;  %3417 = vmax.xlane.f32.xlu1 %v9422_v53  ;;  %3419 = vmax.xlane.f32.xlu0 %v9425_v63 }
0x17d0   : > { %v3390_v25 = vpop.xlane.xlu1 %3389 }
0x17d1   : > { %v3391_v10 = vcvt.f32.s32 %v3390_v25  ;;  %vm3400_vm3 = vcmp.eq.s32.totalorder %v8770_v23, %v3366_v18  ;;  %vm3401_vm4 = vcmp.eq.s32.totalorder %v8770_v23, %v3380_v33 }
0x17d2   : > { %v9432_v29 = vsel %vm3400_vm3, -inf, %v9376_v58  ;;  %v9435_v7 = vsel %vm3401_vm4, -inf, %v9379_v19 }
0x17d3   : > { %v3394_v44 = vadd.s32 %v3393_v56, %v3391_v10  ;;  %3421 = vmax.xlane.f32.xlu1 %v9432_v29  ;;  %3423 = vmax.xlane.f32.xlu0 %v9435_v7 }
0x17d5   : > { %vm3402_vm5 = vcmp.eq.s32.totalorder %v8770_v23, %v3394_v44 }
0x17d6   : > { %v9441_v41 = vsel %vm3402_vm5, -inf, %v9385_v57 }
0x17d7   : > { %3425 = vmax.xlane.f32.xlu1 %v9441_v41 }
0x1850   : > { %v3412_v42 = vpop.xlane.xlu0 %3411 }
0x1851   : > { %vm3427_vm6 = vcmp.eq.f32.partialorder %v9406_v26, %v3412_v42 }
0x1852   : > { %v3435_v58 = vsel %vm3427_vm6, %v8770_v23, 128 }
0x1853   : > { %v3444_v32 = vshra.s32 %v3435_v58, 16  ;;  %v3443_v27 = vand.u32 65535, %v3435_v58 }
0x1854   : > { %v3414_v19 = vpop.xlane.xlu1 %3413  ;;  %v3416_v28 = vpop.xlane.xlu0 %3415 }
0x1855   : > { %vm3428_vm7 = vcmp.eq.f32.partialorder %v9412_v20, %v3414_v19  ;;  %vm3429_vm8 = vcmp.eq.f32.partialorder %v9415_v40, %v3416_v28  ;;  %v3446_v4 = vcvt.s32.f32 %v3444_v32  ;;  %v3445_v54 = vcvt.s32.f32 %v3443_v27 }
0x1856   : > { %v3436_v1 = vsel %vm3428_vm7, %v8770_v23, 128  ;;  %v3437_v57 = vsel %vm3429_vm8, %v8770_v23, 128 }
0x1857   : > { %v3458_v16 = vshra.s32 %v3436_v1, 16  ;;  %v3472_v6 = vshra.s32 %v3437_v57, 16  ;;  %3447 = vmin.xlane.f32.xlu0 %v3446_v4  ;;  %v3457_v45 = vand.u32 65535, %v3436_v1  ;;  %v3471_v5 = vand.u32 65535, %v3437_v57 }
0x1858   : > { %v3418_v51 = vpop.xlane.xlu1 %3417  ;;  %v3420_v3 = vpop.xlane.xlu0 %3419 }
0x1859   : > { %vm3430_vm9 = vcmp.eq.f32.partialorder %v9422_v53, %v3418_v51  ;;  %vm3431_vm10 = vcmp.eq.f32.partialorder %v9425_v63, %v3420_v3  ;;  %v3460_v8 = vcvt.s32.f32 %v3458_v16  ;;  %v3474_v35 = vcvt.s32.f32 %v3472_v6 }
0x185a   : > { %v3438_v30 = vsel %vm3430_vm9, %v8770_v23, 128  ;;  %v3439_v17 = vsel %vm3431_vm10, %v8770_v23, 128  ;;  %v3459_v33 = vcvt.s32.f32 %v3457_v45  ;;  %v3473_v25 = vcvt.s32.f32 %v3471_v5 }
0x185b   : > { %v3486_v36 = vshra.s32 %v3438_v30, 16  ;;  %v3500_v9 = vshra.s32 %v3439_v17, 16  ;;  %3461 = vmin.xlane.f32.xlu1 %v3460_v8  ;;  %3475 = vmin.xlane.f32.xlu0 %v3474_v35  ;;  %v3485_v47 = vand.u32 65535, %v3438_v30  ;;  %v3499_v52 = vand.u32 65535, %v3439_v17 }
0x185c   : > { %v3422_v39 = vpop.xlane.xlu1 %3421  ;;  %v3424_v38 = vpop.xlane.xlu0 %3423 }
0x185d   : > { %vm3432_vm11 = vcmp.eq.f32.partialorder %v9432_v29, %v3422_v39  ;;  %vm3433_vm12 = vcmp.eq.f32.partialorder %v9435_v7, %v3424_v38  ;;  %v3488_v14 = vcvt.s32.f32 %v3486_v36  ;;  %v3502_v62 = vcvt.s32.f32 %v3500_v9 }
0x185e   : > { %v3440_v24 = vsel %vm3432_vm11, %v8770_v23, 128  ;;  %v3441_v0 = vsel %vm3433_vm12, %v8770_v23, 128  ;;  %v3487_v19 = vcvt.s32.f32 %v3485_v47  ;;  %v3501_v28 = vcvt.s32.f32 %v3499_v52 }
0x185f   : > { %v3514_v13 = vshra.s32 %v3440_v24, 16  ;;  %v3528_v2 = vshra.s32 %v3441_v0, 16  ;;  %3489 = vmin.xlane.f32.xlu1 %v3488_v14  ;;  %3503 = vmin.xlane.f32.xlu0 %v3502_v62  ;;  %v3513_v44 = vand.u32 65535, %v3440_v24  ;;  %v3527_v42 = vand.u32 65535, %v3441_v0 }
0x1860   : > { %v3426_v11 = vpop.xlane.xlu1 %3425 }
0x1861   : > { %vm3434_vm13 = vcmp.eq.f32.partialorder %v9441_v41, %v3426_v11  ;;  %v3516_v34 = vcvt.s32.f32 %v3514_v13  ;;  %v3530_v15 = vcvt.s32.f32 %v3528_v2  ;;  %v3515_v51 = vcvt.s32.f32 %v3513_v44 }
0x1862   : > { %v3442_v55 = vsel %vm3434_vm13, %v8770_v23, 128  ;;  %v3529_v3 = vcvt.s32.f32 %v3527_v42 }
0x1863   : > { %v3542_v50 = vshra.s32 %v3442_v55, 16  ;;  %3517 = vmin.xlane.f32.xlu1 %v3516_v34  ;;  %3531 = vmin.xlane.f32.xlu0 %v3530_v15  ;;  %v3541_v57 = vand.u32 65535, %v3442_v55 }
0x1865   : > { %v3544_v12 = vcvt.s32.f32 %v3542_v50  ;;  %v3543_v17 = vcvt.s32.f32 %v3541_v57 }
0x1867   : > { %3545 = vmin.xlane.f32.xlu1 %v3544_v12 }
0x18e0   : > { %v3448_v43 = vpop.xlane.xlu0 %3447 }
0x18e1   : > { %vm3449_vm14 = vcmp.eq.f32.partialorder %v3446_v4, %v3448_v43  ;;  %v3454_v9 = vcvt.f32.s32 %v3448_v43 }
0x18e2   : > { %v3450_v61 = vsel %vm3449_vm14, %v3445_v54, inf }
0x18e3   : > { %3451 = vmin.xlane.f32.xlu0 %v3450_v61 }
0x18e4   : > { %v3462_v46 = vpop.xlane.xlu1 %3461  ;;  %v3476_v18 = vpop.xlane.xlu0 %3475 }
0x18e5   : > { %vm3463_vm15 = vcmp.eq.f32.partialorder %v3460_v8, %v3462_v46  ;;  %vm3477_vm0 = vcmp.eq.f32.partialorder %v3474_v35, %v3476_v18  ;;  %v3468_v39 = vcvt.f32.s32 %v3462_v46 }
0x18e6   : > { %v3464_v56 = vsel %vm3463_vm15, %v3459_v33, inf  ;;  %v3478_v10 = vsel %vm3477_vm0, %v3473_v25, inf }
0x18e7   : > { %3465 = vmin.xlane.f32.xlu1 %v3464_v56  ;;  %3479 = vmin.xlane.f32.xlu0 %v3478_v10  ;;  %v3469_v13 = vshll.u32 %v3468_v39, 16 }
0x18e8   : > { %v3490_v58 = vpop.xlane.xlu1 %3489  ;;  %v3504_v32 = vpop.xlane.xlu0 %3503 }
0x18e9   : > { %vm3491_vm1 = vcmp.eq.f32.partialorder %v3488_v14, %v3490_v58  ;;  %vm3505_vm3 = vcmp.eq.f32.partialorder %v3502_v62, %v3504_v32  ;;  %v3455_v14 = vshll.u32 %v3454_v9, 16  ;;  %v3482_v62 = vcvt.f32.s32 %v3476_v18 }
0x18ea   : > { %v3492_v4 = vsel %vm3491_vm1, %v3487_v19, inf  ;;  %v3506_v1 = vsel %vm3505_vm3, %v3501_v28, inf  ;;  %v3496_v2 = vcvt.f32.s32 %v3490_v58  ;;  %v3510_v11 = vcvt.f32.s32 %v3504_v32 }
0x18eb   : > { %3493 = vmin.xlane.f32.xlu1 %v3492_v4  ;;  %3507 = vmin.xlane.f32.xlu0 %v3506_v1  ;;  %v3483_v55 = vshll.u32 %v3482_v62, 16 }
0x18ec   : > { %v3518_v16 = vpop.xlane.xlu1 %3517  ;;  %v3532_v6 = vpop.xlane.xlu0 %3531  ;;  %v3497_v43 = vshll.u32 %v3496_v2, 16  ;;  %v3511_v54 = vshll.u32 %v3510_v11, 16 }
0x18ed   : > { %vm3519_vm4 = vcmp.eq.f32.partialorder %v3516_v34, %v3518_v16  ;;  %vm3533_vm5 = vcmp.eq.f32.partialorder %v3530_v15, %v3532_v6  ;;  %v3524_v61 = vcvt.f32.s32 %v3518_v16  ;;  %v3538_v47 = vcvt.f32.s32 %v3532_v6 }
0x18ee   : > { %v3520_v8 = vsel %vm3519_vm4, %v3515_v51, inf  ;;  %v3534_v35 = vsel %vm3533_vm5, %v3529_v3, inf }
0x18ef   : > { %3521 = vmin.xlane.f32.xlu1 %v3520_v8  ;;  %3535 = vmin.xlane.f32.xlu0 %v3534_v35  ;;  %v3525_v44 = vshll.u32 %v3524_v61, 16  ;;  %v3539_v42 = vshll.u32 %v3538_v47, 16 }
0x18f0   : > { %v3546_v30 = vpop.xlane.xlu1 %3545 }
0x18f1   : > { %vm3547_vm6 = vcmp.eq.f32.partialorder %v3544_v12, %v3546_v30  ;;  %v3552_v58 = vcvt.f32.s32 %v3546_v30 }
0x18f2   : > { %v3548_v36 = vsel %vm3547_vm6, %v3543_v17, inf }
0x18f3   : > { %3549 = vmin.xlane.f32.xlu1 %v3548_v36  ;;  %v3553_v6 = vshll.u32 %v3552_v58, 16 }
0x196c   : > { %v3452_v38 = vpop.xlane.xlu0 %3451 }
0x196d   : > { %v3453_v24 = vcvt.f32.s32 %v3452_v38 }
0x196f   : > { %v3456_v0 = vadd.s32 %v3455_v14, %v3453_v24 }
0x1970   : > { %v3466_v34 = vpop.xlane.xlu1 %3465  ;;  %v3480_v15 = vpop.xlane.xlu0 %3479 }
0x1971   : > { %v3467_v50 = vcvt.f32.s32 %v3466_v34  ;;  %v3481_v27 = vcvt.f32.s32 %v3480_v15  ;;  %vm3555_vm7 = vcmp.eq.s32.totalorder %v8770_v23, %v3456_v0 }
0x1972   : > { %v9462_v12 = vsel %vm3555_vm7, -inf, %v9406_v26 }
0x1973   : > { %v3470_v45 = vadd.s32 %v3469_v13, %v3467_v50  ;;  %v3484_v5 = vadd.s32 %v3483_v55, %v3481_v27  ;;  %3571 = vmax.xlane.f32.xlu0 %v9462_v12 }
0x1974   : > { %v3494_v52 = vpop.xlane.xlu1 %3493  ;;  %v3508_v46 = vpop.xlane.xlu0 %3507 }
0x1975   : > { %v3495_v18 = vcvt.f32.s32 %v3494_v52  ;;  %v3509_v33 = vcvt.f32.s32 %v3508_v46  ;;  %vm3556_vm8 = vcmp.eq.s32.totalorder %v8770_v23, %v3470_v45  ;;  %vm3557_vm9 = vcmp.eq.s32.totalorder %v8770_v23, %v3484_v5 }
0x1976   : > { %v9468_v25 = vsel %vm3556_vm8, -inf, %v9412_v20  ;;  %v9471_v26 = vsel %vm3557_vm9, -inf, %v9415_v40 }
0x1977   : > { %v3498_v56 = vadd.s32 %v3497_v43, %v3495_v18  ;;  %v3512_v10 = vadd.s32 %v3511_v54, %v3509_v33  ;;  %3573 = vmax.xlane.f32.xlu1 %v9468_v25  ;;  %3575 = vmax.xlane.f32.xlu0 %v9471_v26 }
0x1978   : > { %v3522_v32 = vpop.xlane.xlu1 %3521  ;;  %v3536_v19 = vpop.xlane.xlu0 %3535 }
0x1979   : > { %v3523_v28 = vcvt.f32.s32 %v3522_v32  ;;  %v3537_v4 = vcvt.f32.s32 %v3536_v19  ;;  %vm3558_vm10 = vcmp.eq.s32.totalorder %v8770_v23, %v3498_v56  ;;  %vm3559_vm11 = vcmp.eq.s32.totalorder %v8770_v23, %v3512_v10 }
0x197a   : > { %v9478_v20 = vsel %vm3558_vm10, -inf, %v9422_v53  ;;  %v9481_v40 = vsel %vm3559_vm11, -inf, %v9425_v63 }
0x197b   : > { %v3526_v1 = vadd.s32 %v3525_v44, %v3523_v28  ;;  %v3540_v57 = vadd.s32 %v3539_v42, %v3537_v4  ;;  %3577 = vmax.xlane.f32.xlu1 %v9478_v20  ;;  %3579 = vmax.xlane.f32.xlu0 %v9481_v40 }
0x197c   : > { %v3550_v16 = vpop.xlane.xlu1 %3549 }
0x197d   : > { %v3551_v51 = vcvt.f32.s32 %v3550_v16  ;;  %vm3560_vm12 = vcmp.eq.s32.totalorder %v8770_v23, %v3526_v1  ;;  %vm3561_vm13 = vcmp.eq.s32.totalorder %v8770_v23, %v3540_v57 }
0x197e   : > { %v9488_v3 = vsel %vm3560_vm12, -inf, %v9432_v29  ;;  %v9491_v53 = vsel %vm3561_vm13, -inf, %v9435_v7 }
0x197f   : > { %v3554_v63 = vadd.s32 %v3553_v6, %v3551_v51  ;;  %3581 = vmax.xlane.f32.xlu1 %v9488_v3  ;;  %3583 = vmax.xlane.f32.xlu0 %v9491_v53 }
0x1981   : > { %vm3562_vm14 = vcmp.eq.s32.totalorder %v8770_v23, %v3554_v63 }
0x1982   : > { %v9497_v8 = vsel %vm3562_vm14, -inf, %v9441_v41 }
0x1983   : > { %3585 = vmax.xlane.f32.xlu1 %v9497_v8 }
0x19fc   : > { %v3572_v35 = vpop.xlane.xlu0 %3571 }
0x19fd   : > { %vm3587_vm15 = vcmp.eq.f32.partialorder %v9462_v12, %v3572_v35 }
0x19fe   : > { %v3595_v29 = vsel %vm3587_vm15, %v8770_v23, 128 }
0x19ff   : > { %v3604_v30 = vshra.s32 %v3595_v29, 16  ;;  %v3603_v56 = vand.u32 65535, %v3595_v29 }
0x1a00   : > { %v3574_v7 = vpop.xlane.xlu1 %3573  ;;  %v3576_v17 = vpop.xlane.xlu0 %3575 }
0x1a01   : > { %vm3588_vm0 = vcmp.eq.f32.partialorder %v9468_v25, %v3574_v7  ;;  %vm3589_vm1 = vcmp.eq.f32.partialorder %v9471_v26, %v3576_v17  ;;  %v3606_v36 = vcvt.s32.f32 %v3604_v30  ;;  %v3605_v58 = vcvt.s32.f32 %v3603_v56 }
0x1a02   : > { %v3596_v9 = vsel %vm3588_vm0, %v8770_v23, 128  ;;  %v3597_v41 = vsel %vm3589_vm1, %v8770_v23, 128 }
0x1a03   : > { %v3618_v39 = vshra.s32 %v3596_v9, 16  ;;  %v3632_v38 = vshra.s32 %v3597_v41, 16  ;;  %3607 = vmin.xlane.f32.xlu0 %v3606_v36  ;;  %v3617_v10 = vand.u32 65535, %v3596_v9  ;;  %v3631_v44 = vand.u32 65535, %v3597_v41 }
0x1a04   : > { %v3578_v14 = vpop.xlane.xlu1 %3577  ;;  %v3580_v62 = vpop.xlane.xlu0 %3579 }
0x1a05   : > { %vm3590_vm3 = vcmp.eq.f32.partialorder %v9478_v20, %v3578_v14  ;;  %vm3591_vm4 = vcmp.eq.f32.partialorder %v9481_v40, %v3580_v62  ;;  %v3620_v24 = vcvt.s32.f32 %v3618_v39  ;;  %v3634_v0 = vcvt.s32.f32 %v3632_v38 }
0x1a06   : > { %v3598_v13 = vsel %vm3590_vm3, %v8770_v23, 128  ;;  %v3599_v2 = vsel %vm3591_vm4, %v8770_v23, 128  ;;  %v3619_v57 = vcvt.s32.f32 %v3617_v10  ;;  %v3633_v16 = vcvt.s32.f32 %v3631_v44 }
0x1a07   : > { %v3646_v11 = vshra.s32 %v3598_v13, 16  ;;  %v3660_v34 = vshra.s32 %v3599_v2, 16  ;;  %3621 = vmin.xlane.f32.xlu1 %v3620_v24  ;;  %3635 = vmin.xlane.f32.xlu0 %v3634_v0  ;;  %v3645_v19 = vand.u32 65535, %v3598_v13  ;;  %v3659_v28 = vand.u32 65535, %v3599_v2 }
0x1a08   : > { %v3582_v15 = vpop.xlane.xlu1 %3581  ;;  %v3584_v55 = vpop.xlane.xlu0 %3583 }
0x1a09   : > { %vm3592_vm5 = vcmp.eq.f32.partialorder %v9488_v3, %v3582_v15  ;;  %vm3593_vm6 = vcmp.eq.f32.partialorder %v9491_v53, %v3584_v55  ;;  %v3648_v50 = vcvt.s32.f32 %v3646_v11  ;;  %v3662_v27 = vcvt.s32.f32 %v3660_v34 }
0x1a0a   : > { %v3600_v45 = vsel %vm3592_vm5, %v8770_v23, 128  ;;  %v3601_v5 = vsel %vm3593_vm6, %v8770_v23, 128  ;;  %v3647_v7 = vcvt.s32.f32 %v3645_v19  ;;  %v3661_v17 = vcvt.s32.f32 %v3659_v28 }
0x1a0b   : > { %v3674_v43 = vshra.s32 %v3600_v45, 16  ;;  %v3688_v54 = vshra.s32 %v3601_v5, 16  ;;  %3649 = vmin.xlane.f32.xlu1 %v3648_v50  ;;  %3663 = vmin.xlane.f32.xlu0 %v3662_v27  ;;  %v3673_v63 = vand.u32 65535, %v3600_v45  ;;  %v3687_v35 = vand.u32 65535, %v3601_v5 }
0x1a0c   : > { %v3586_v61 = vpop.xlane.xlu1 %3585 }
0x1a0d   : > { %vm3594_vm7 = vcmp.eq.f32.partialorder %v9497_v8, %v3586_v61  ;;  %v3676_v47 = vcvt.s32.f32 %v3674_v43  ;;  %v3690_v52 = vcvt.s32.f32 %v3688_v54  ;;  %v3675_v14 = vcvt.s32.f32 %v3673_v63 }
0x1a0e   : > { %v3602_v46 = vsel %vm3594_vm7, %v8770_v23, 128  ;;  %v3689_v62 = vcvt.s32.f32 %v3687_v35 }
0x1a0f   : > { %v3702_v18 = vshra.s32 %v3602_v46, 16  ;;  %3677 = vmin.xlane.f32.xlu1 %v3676_v47  ;;  %3691 = vmin.xlane.f32.xlu0 %v3690_v52  ;;  %v3701_v41 = vand.u32 65535, %v3602_v46 }
0x1a11   : > { %v3704_v33 = vcvt.s32.f32 %v3702_v18  ;;  %v3703_v2 = vcvt.s32.f32 %v3701_v41 }
0x1a13   : > { %3705 = vmin.xlane.f32.xlu1 %v3704_v33 }
0x1a8c   : > { %v3608_v42 = vpop.xlane.xlu0 %3607 }
0x1a8d   : > { %vm3609_vm8 = vcmp.eq.f32.partialorder %v3606_v36, %v3608_v42  ;;  %v3614_v34 = vcvt.f32.s32 %v3608_v42 }
0x1a8e   : > { %v3610_v32 = vsel %vm3609_vm8, %v3605_v58, inf }
0x1a8f   : > { %3611 = vmin.xlane.f32.xlu0 %v3610_v32 }
0x1a90   : > { %v3622_v4 = vpop.xlane.xlu1 %3621  ;;  %v3636_v1 = vpop.xlane.xlu0 %3635 }
0x1a91   : > { %vm3623_vm9 = vcmp.eq.f32.partialorder %v3620_v24, %v3622_v4  ;;  %vm3637_vm10 = vcmp.eq.f32.partialorder %v3634_v0, %v3636_v1  ;;  %v3628_v15 = vcvt.f32.s32 %v3622_v4 }
0x1a92   : > { %v3624_v6 = vsel %vm3623_vm9, %v3619_v57, inf  ;;  %v3638_v51 = vsel %vm3637_vm10, %v3633_v16, inf }
0x1a93   : > { %3625 = vmin.xlane.f32.xlu1 %v3624_v6  ;;  %3639 = vmin.xlane.f32.xlu0 %v3638_v51  ;;  %v3629_v43 = vshll.u32 %v3628_v15, 16 }
0x1a94   : > { %v3650_v29 = vpop.xlane.xlu1 %3649  ;;  %v3664_v30 = vpop.xlane.xlu0 %3663 }
0x1a95   : > { %vm3651_vm11 = vcmp.eq.f32.partialorder %v3648_v50, %v3650_v29  ;;  %vm3665_vm12 = vcmp.eq.f32.partialorder %v3662_v27, %v3664_v30  ;;  %v3615_v50 = vshll.u32 %v3614_v34, 16  ;;  %v3642_v27 = vcvt.f32.s32 %v3636_v1 }
0x1a96   : > { %v3652_v36 = vsel %vm3651_vm11, %v3647_v7, inf  ;;  %v3666_v9 = vsel %vm3665_vm12, %v3661_v17, inf  ;;  %v3656_v54 = vcvt.f32.s32 %v3650_v29  ;;  %v3670_v61 = vcvt.f32.s32 %v3664_v30 }
0x1a97   : > { %3653 = vmin.xlane.f32.xlu1 %v3652_v36  ;;  %3667 = vmin.xlane.f32.xlu0 %v3666_v9  ;;  %v3643_v46 = vshll.u32 %v3642_v27, 16 }
0x1a98   : > { %v3678_v39 = vpop.xlane.xlu1 %3677  ;;  %v3692_v38 = vpop.xlane.xlu0 %3691  ;;  %v3657_v42 = vshll.u32 %v3656_v54, 16  ;;  %v3671_v58 = vshll.u32 %v3670_v61, 16 }
0x1a99   : > { %vm3679_vm13 = vcmp.eq.f32.partialorder %v3676_v47, %v3678_v39  ;;  %vm3693_vm14 = vcmp.eq.f32.partialorder %v3690_v52, %v3692_v38  ;;  %v3684_v32 = vcvt.f32.s32 %v3678_v39  ;;  %v3698_v19 = vcvt.f32.s32 %v3692_v38 }
0x1a9a   : > { %v3680_v24 = vsel %vm3679_vm13, %v3675_v14, inf  ;;  %v3694_v0 = vsel %vm3693_vm14, %v3689_v62, inf }
0x1a9b   : > { %3681 = vmin.xlane.f32.xlu1 %v3680_v24  ;;  %3695 = vmin.xlane.f32.xlu0 %v3694_v0  ;;  %v3685_v63 = vshll.u32 %v3684_v32, 16  ;;  %v3699_v35 = vshll.u32 %v3698_v19, 16 }
0x1a9c   : > { %v3706_v13 = vpop.xlane.xlu1 %3705 }
0x1a9d   : > { %vm3707_vm15 = vcmp.eq.f32.partialorder %v3704_v33, %v3706_v13  ;;  %v3712_v29 = vcvt.f32.s32 %v3706_v13 }
0x1a9e   : > { %v3708_v11 = vsel %vm3707_vm15, %v3703_v2, inf }
0x1a9f   : > { %3709 = vmin.xlane.f32.xlu1 %v3708_v11  ;;  %v3713_v38 = vshll.u32 %v3712_v29, 16 }
0x1b18   : > { %v3612_v55 = vpop.xlane.xlu0 %3611 }
0x1b19   : > { %v3613_v45 = vcvt.f32.s32 %v3612_v55 }
0x1b1b   : > { %v3616_v5 = vadd.s32 %v3615_v50, %v3613_v45 }
0x1b1c   : > { %v3626_v47 = vpop.xlane.xlu1 %3625  ;;  %v3640_v52 = vpop.xlane.xlu0 %3639 }
0x1b1d   : > { %v3627_v18 = vcvt.f32.s32 %v3626_v47  ;;  %v3641_v56 = vcvt.f32.s32 %v3640_v52  ;;  %vm3715_vm0 = vcmp.eq.s32.totalorder %v8770_v23, %v3616_v5 }
0x1b1e   : > { %v9518_v33 = vsel %vm3715_vm0, -inf, %v9462_v12 }
0x1b1f   : > { %v3630_v10 = vadd.s32 %v3629_v43, %v3627_v18  ;;  %v3644_v44 = vadd.s32 %v3643_v46, %v3641_v56  ;;  %3731 = vmax.xlane.f32.xlu0 %v9518_v33 }
0x1b20   : > { %v3654_v28 = vpop.xlane.xlu1 %3653  ;;  %v3668_v4 = vpop.xlane.xlu0 %3667 }
0x1b21   : > { %v3655_v1 = vcvt.f32.s32 %v3654_v28  ;;  %v3669_v57 = vcvt.f32.s32 %v3668_v4  ;;  %vm3716_vm1 = vcmp.eq.s32.totalorder %v8770_v23, %v3630_v10  ;;  %vm3717_vm3 = vcmp.eq.s32.totalorder %v8770_v23, %v3644_v44 }
0x1b22   : > { %v9524_v16 = vsel %vm3716_vm1, -inf, %v9468_v25  ;;  %v9527_v12 = vsel %vm3717_vm3, -inf, %v9471_v26 }
0x1b23   : > { %v3658_v6 = vadd.s32 %v3657_v42, %v3655_v1  ;;  %v3672_v51 = vadd.s32 %v3671_v58, %v3669_v57  ;;  %3733 = vmax.xlane.f32.xlu1 %v9524_v16  ;;  %3735 = vmax.xlane.f32.xlu0 %v9527_v12 }
0x1b24   : > { %v3682_v30 = vpop.xlane.xlu1 %3681  ;;  %v3696_v7 = vpop.xlane.xlu0 %3695 }
0x1b25   : > { %v3683_v17 = vcvt.f32.s32 %v3682_v30  ;;  %v3697_v36 = vcvt.f32.s32 %v3696_v7  ;;  %vm3718_vm4 = vcmp.eq.s32.totalorder %v8770_v23, %v3658_v6  ;;  %vm3719_vm5 = vcmp.eq.s32.totalorder %v8770_v23, %v3672_v51 }
0x1b26   : > { %v9534_v25 = vsel %vm3718_vm4, -inf, %v9478_v20  ;;  %v9537_v26 = vsel %vm3719_vm5, -inf, %v9481_v40 }
0x1b27   : > { %v3686_v9 = vadd.s32 %v3685_v63, %v3683_v17  ;;  %v3700_v41 = vadd.s32 %v3699_v35, %v3697_v36  ;;  %3737 = vmax.xlane.f32.xlu1 %v9534_v25  ;;  %3739 = vmax.xlane.f32.xlu0 %v9537_v26 }
0x1b28   : > { %v3710_v39 = vpop.xlane.xlu1 %3709 }
0x1b29   : > { %v3711_v14 = vcvt.f32.s32 %v3710_v39  ;;  %vm3720_vm6 = vcmp.eq.s32.totalorder %v8770_v23, %v3686_v9  ;;  %vm3721_vm7 = vcmp.eq.s32.totalorder %v8770_v23, %v3700_v41 }
0x1b2a   : > { %v9544_v62 = vsel %vm3720_vm6, -inf, %v9488_v3  ;;  %v9547_v20 = vsel %vm3721_vm7, -inf, %v9491_v53 }
0x1b2b   : > { %v3714_v40 = vadd.s32 %v3713_v38, %v3711_v14  ;;  %3741 = vmax.xlane.f32.xlu1 %v9544_v62  ;;  %3743 = vmax.xlane.f32.xlu0 %v9547_v20 }
0x1b2d   : > { %vm3722_vm8 = vcmp.eq.s32.totalorder %v8770_v23, %v3714_v40 }
0x1b2e   : > { %v9553_v24 = vsel %vm3722_vm8, -inf, %v9497_v8 }
0x1b2f   : > { %3745 = vmax.xlane.f32.xlu1 %v9553_v24 }
0x1ba8   : > { %v3732_v0 = vpop.xlane.xlu0 %3731 }
0x1ba9   : > { %vm3747_vm9 = vcmp.eq.f32.partialorder %v9518_v33, %v3732_v0 }
0x1baa   : > { %v3755_v3 = vsel %vm3747_vm9, %v8770_v23, 128 }
0x1bab   : > { %v3764_v13 = vshra.s32 %v3755_v3, 16  ;;  %v3763_v6 = vand.u32 65535, %v3755_v3 }
0x1bac   : > { %v3734_v53 = vpop.xlane.xlu1 %3733  ;;  %v3736_v2 = vpop.xlane.xlu0 %3735 }
0x1bad   : > { %vm3748_vm10 = vcmp.eq.f32.partialorder %v9524_v16, %v3734_v53  ;;  %vm3749_vm11 = vcmp.eq.f32.partialorder %v9527_v12, %v3736_v2  ;;  %v3766_v11 = vcvt.s32.f32 %v3764_v13  ;;  %v3765_v29 = vcvt.s32.f32 %v3763_v6 }
0x1bae   : > { %v3756_v34 = vsel %vm3748_vm10, %v8770_v23, 128  ;;  %v3757_v8 = vsel %vm3749_vm11, %v8770_v23, 128  ;;  %vm4100_vm10 = vcmask 130048  }
0x1baf   : > { %v3778_v15 = vshra.s32 %v3756_v34, 16  ;;  %v3792_v55 = vshra.s32 %v3757_v8, 16  ;;  %3767 = vmin.xlane.f32.xlu0 %v3766_v11  ;;  %v3777_v51 = vand.u32 65535, %v3756_v34  ;;  %v3791_v63 = vand.u32 65535, %v3757_v8 }
0x1bb0   : > { %v3738_v50 = vpop.xlane.xlu1 %3737  ;;  %v3740_v27 = vpop.xlane.xlu0 %3739 }
0x1bb1   : > { %vm3750_vm12 = vcmp.eq.f32.partialorder %v9534_v25, %v3738_v50  ;;  %vm3751_vm13 = vcmp.eq.f32.partialorder %v9537_v26, %v3740_v27  ;;  %v3780_v45 = vcvt.s32.f32 %v3778_v15  ;;  %v3794_v5 = vcvt.s32.f32 %v3792_v55 }
0x1bb2   : > { %v3758_v43 = vsel %vm3750_vm12, %v8770_v23, 128  ;;  %v3759_v54 = vsel %vm3751_vm13, %v8770_v23, 128  ;;  %v3779_v41 = vcvt.s32.f32 %v3777_v51  ;;  %v3793_v39 = vcvt.s32.f32 %v3791_v63 }
0x1bb3   : > { %v3806_v61 = vshra.s32 %v3758_v43, 16  ;;  %v3820_v47 = vshra.s32 %v3759_v54, 16  ;;  %3781 = vmin.xlane.f32.xlu1 %v3780_v45  ;;  %3795 = vmin.xlane.f32.xlu0 %v3794_v5  ;;  %v3805_v7 = vand.u32 65535, %v3758_v43  ;;  %v3819_v17 = vand.u32 65535, %v3759_v54 }
0x1bb4   : > { %v3742_v52 = vpop.xlane.xlu1 %3741  ;;  %v3744_v46 = vpop.xlane.xlu0 %3743 }
0x1bb5   : > { %vm3752_vm14 = vcmp.eq.f32.partialorder %v9544_v62, %v3742_v52  ;;  %vm3753_vm15 = vcmp.eq.f32.partialorder %v9547_v20, %v3744_v46  ;;  %v3808_v18 = vcvt.s32.f32 %v3806_v61  ;;  %v3822_v56 = vcvt.s32.f32 %v3820_v47  ;;  %v4099_v47 = vld [vmem:[#allocation3 + $0x78] sm:$0xff]  ;;  %v4098_v52 = vld [vmem:[#allocation3 + $0x70] sm:$0xff]  ;;  %v4097_v46 = vld [vmem:[#allocation3 + $0x68] sm:$0xff] }
0x1bb6   : > { %v3760_v10 = vsel %vm3752_vm14, %v8770_v23, 128  ;;  %v3761_v44 = vsel %vm3753_vm15, %v8770_v23, 128  ;;  %v3807_v53 = vcvt.s32.f32 %v3805_v7  ;;  %v3821_v2 = vcvt.s32.f32 %v3819_v17  ;;  %6973 = vmatprep.subr.msk.mxu1 %vm4100_vm10, %v4099_v47 }
0x1bb7   : > { %v3834_v42 = vshra.s32 %v3760_v10, 16  ;;  %v3848_v58 = vshra.s32 %v3761_v44, 16  ;;  %3809 = vmin.xlane.f32.xlu1 %v3808_v18  ;;  %3823 = vmin.xlane.f32.xlu0 %v3822_v56  ;;  %v3833_v40 = vand.u32 65535, %v3760_v10  ;;  %v3847_v0 = vand.u32 65535, %v3761_v44  ;;  %v4094_v10 = vld [vmem:[#allocation3 + $0x50] sm:$0xff]  ;;  %v4093_v44 = vld [vmem:[#allocation3 + $0x48] sm:$0xff] }
0x1bb8   : > { %v3746_v32 = vpop.xlane.xlu1 %3745  ;;  %6974 = vmatpush3.xpose.msk.msra.mxu1 %vm4100_vm10, %v4099_v47 }
0x1bb9   : > { %vm3754_vm0 = vcmp.eq.f32.partialorder %v9553_v24, %v3746_v32  ;;  %v3836_v19 = vcvt.s32.f32 %v3834_v42  ;;  %v3850_v28 = vcvt.s32.f32 %v3848_v58  ;;  %v3835_v50 = vcvt.s32.f32 %v3833_v40  ;;  %6975 = vmatprep.subr.msk.mxu1 %vm4100_vm10, %v4098_v52  ;;  %v4092_v42 = vld [vmem:[#allocation3 + $0x40] sm:$0xff] }
0x1bba   : > { %v3762_v4 = vsel %vm3754_vm0, %v8770_v23, 128  ;;  %v3849_v27 = vcvt.s32.f32 %v3847_v0 }
0x1bbb   : > { %v3862_v1 = vshra.s32 %v3762_v4, 16  ;;  %3837 = vmin.xlane.f32.xlu1 %v3836_v19  ;;  %3851 = vmin.xlane.f32.xlu0 %v3850_v28  ;;  %v3861_v8 = vand.u32 65535, %v3762_v4 }
0x1bbc   : > { %6976 = vmatpush3.xpose.msk.msra.mxu1 %vm4100_vm10, %v4098_v52 }
0x1bbd   : > { %v3864_v57 = vcvt.s32.f32 %v3862_v1  ;;  %v3863_v54 = vcvt.s32.f32 %v3861_v8  ;;  %6977 = vmatprep.subr.msk.mxu1 %vm4100_vm10, %v4097_v46 }
0x1bbf   : > { %3865 = vmin.xlane.f32.xlu1 %v3864_v57 }
0x1bc0   : > { %6978 = vmatpush3.xpose.msk.msra.mxu1 %vm4100_vm10, %v4097_v46 }
0x1c38   : > { %v9572_v35 = vpop.xlane.xlu0 %3767 }
0x1c39   : > { %vm3769_vm1 = vcmp.eq.f32.partialorder %v3766_v11, %v9572_v35  ;;  %v3774_v58 = vcvt.f32.s32 %v9572_v35 }
0x1c3a   : > { %v3770_v30 = vsel %vm3769_vm1, %v3765_v29, inf }
0x1c3b   : > { %3771 = vmin.xlane.f32.xlu0 %v3770_v30 }
0x1c3c   : > { %v9575_v36 = vpop.xlane.xlu1 %3781  ;;  %v9577_v9 = vpop.xlane.xlu0 %3795 }
0x1c3d   : > { %vm3783_vm3 = vcmp.eq.f32.partialorder %v3780_v45, %v9575_v36  ;;  %vm3797_vm4 = vcmp.eq.f32.partialorder %v3794_v5, %v9577_v9  ;;  %v3788_v32 = vcvt.f32.s32 %v9575_v36  ;;  %v3802_v4 = vcvt.f32.s32 %v9577_v9 }
0x1c3e   : > { %v3784_v38 = vsel %vm3783_vm3, %v3779_v41, inf  ;;  %v3798_v14 = vsel %vm3797_vm4, %v3793_v39, inf }
0x1c3f   : > { %3785 = vmin.xlane.f32.xlu1 %v3784_v38  ;;  %3799 = vmin.xlane.f32.xlu0 %v3798_v14  ;;  %v3789_v6 = vshll.u32 %v3788_v32, 16  ;;  %v3803_v7 = vshll.u32 %v3802_v4, 16  ;;  %v4084_v32 = vld [vmem:[#allocation3] sm:$0xff]  ;;  %v4078_v4 = vld [vmem:[%s9674_s19 + $0x10] sm:$0xff] }
0x1c40   : > { %v9581_v3 = vpop.xlane.xlu1 %3809  ;;  %v9583_v13 = vpop.xlane.xlu0 %3823 }
0x1c41   : > { %vm3811_vm5 = vcmp.eq.f32.partialorder %v3808_v18, %v9581_v3  ;;  %vm3825_vm6 = vcmp.eq.f32.partialorder %v3822_v56, %v9583_v13  ;;  %v4096_v18 = vld [vmem:[#allocation3 + $0x60] sm:$0xff]  ;;  %v4095_v56 = vld [vmem:[#allocation3 + $0x58] sm:$0xff]  ;;  %v3816_v51 = vcvt.f32.s32 %v9581_v3  ;;  %v3830_v63 = vcvt.f32.s32 %v9583_v13 }
0x1c42   : > { %v3812_v11 = vsel %vm3811_vm5, %v3807_v53, inf  ;;  %v3826_v34 = vsel %vm3825_vm6, %v3821_v2, inf  ;;  %6979 = vmatprep.subr.msk.mxu1 %vm4100_vm10, %v4096_v18 }
0x1c43   : > { %3813 = vmin.xlane.f32.xlu1 %v3812_v11  ;;  %3827 = vmin.xlane.f32.xlu0 %v3826_v34  ;;  %v3817_v9 = vshll.u32 %v3816_v51, 16  ;;  %v3831_v38 = vshll.u32 %v3830_v63, 16  ;;  %v4503_v51 = vld [vmem:[#allocation3 + $0xe8] sm:$0xff] }
0x1c44   : > { %v9587_v15 = vpop.xlane.xlu1 %3837  ;;  %v9589_v55 = vpop.xlane.xlu0 %3851  ;;  %6980 = vmatpush3.xpose.msk.msra.mxu1 %vm4100_vm10, %v4096_v18  ;;  %v4081_v63 = vld [vmem:[%s9674_s19 + $0x28] sm:$0xff] }
0x1c45   : > { %vm3853_vm7 = vcmp.eq.f32.partialorder %v3850_v28, %v9589_v55  ;;  %vm3839_vm8 = vcmp.eq.f32.partialorder %v3836_v19, %v9587_v15  ;;  %6981 = vmatprep.subr.msk.mxu1 %vm4100_vm10, %v4095_v56  ;;  %v3775_v28 = vshll.u32 %v3774_v58, 16  ;;  %v3844_v14 = vcvt.f32.s32 %v9587_v15  ;;  %v4076_v58 = vld [vmem:[%s9674_s19] sm:$0xff] }
0x1c46   : > { %v3840_v45 = vsel %vm3839_vm8, %v3835_v50, inf  ;;  %v3854_v5 = vsel %vm3853_vm7, %v3849_v27, inf  ;;  %v3858_v40 = vcvt.f32.s32 %v9589_v55  ;;  %7005 = vmatprep.mubr.msk.f32.mxu1 %vm4100_vm10, %v4076_v58 }
0x1c47   : > { %3841 = vmin.xlane.f32.xlu1 %v3840_v45  ;;  %3855 = vmin.xlane.f32.xlu0 %v3854_v5  ;;  %v3845_v8 = vshll.u32 %v3844_v14, 16  ;;  %v4496_v14 = vld [vmem:[#allocation3 + $0xb0] sm:$0xff] }
0x1c48   : > { %v9593_v43 = vpop.xlane.xlu1 %3865  ;;  %6982 = vmatpush3.xpose.msk.msra.mxu1 %vm4100_vm10, %v4095_v56  ;;  %v3859_v15 = vshll.u32 %v3858_v40, 16  ;;  %v4495_v40 = vld [vmem:[#allocation3 + $0xa8] sm:$0xff] }
0x1c49   : > { %vm3867_vm9 = vcmp.eq.f32.partialorder %v3864_v57, %v9593_v43  ;;  %6983 = vmatprep.subr.msk.mxu1 %vm4100_vm10, %v4094_v10  ;;  %v3872_v55 = vcvt.f32.s32 %v9593_v43 }
0x1c4a   : > { %v3868_v61 = vsel %vm3867_vm9, %v3863_v54, inf }
0x1c4b   : > { %3869 = vmin.xlane.f32.xlu1 %v3868_v61  ;;  %v3873_v47 = vshll.u32 %v3872_v55, 16  ;;  %v6515_v55 = vld [vmem:[%s9674_s19 + $0xa0] sm:$0xff] }
0x1c4c   : > { %6984 = vmatpush3.xpose.msk.msra.mxu1 %vm4100_vm10, %v4094_v10  ;;  %v4088_v10 = vld [vmem:[#allocation3 + $0x20] sm:$0xff] }
0x1c4d   : > { %6985 = vmatprep.subr.msk.mxu1 %vm4100_vm10, %v4093_v44 }
0x1c50   : > { %6986 = vmatpush3.xpose.msk.msra.mxu1 %vm4100_vm10, %v4093_v44  ;;  %v4086_v44 = vld [vmem:[#allocation3 + $0x10] sm:$0xff] }
0x1c51   : > { %6987 = vmatprep.subr.msk.mxu1 %vm4100_vm10, %v4092_v42 }
0x1c54   : > { %6988 = vmatpush3.xpose.msk.msra.mxu1 %vm4100_vm10, %v4092_v42  ;;  %v4085_v42 = vld [vmem:[#allocation3 + $0x8] sm:$0xff] }
0x1cc4   : > { %v3772_v19 = vpop.xlane.xlu0 %3771 }
0x1cc5   : > { %v3773_v1 = vcvt.f32.s32 %v3772_v19  ;;  %v4505_v19 = vld [vmem:[#allocation3 + $0xf8] sm:$0xff] }
0x1cc7   : > { %v3776_v57 = vadd.s32 %v3775_v28, %v3773_v1  ;;  %v4077_v28 = vld [vmem:[%s9674_s19 + $0x8] sm:$0xff]  ;;  %v4504_v1 = vld [vmem:[#allocation3 + $0xf0] sm:$0xff] }
0x1cc8   : > { %v3786_v29 = vpop.xlane.xlu1 %3785  ;;  %v3800_v30 = vpop.xlane.xlu0 %3799 }
0x1cc9   : > { %v3787_v17 = vcvt.f32.s32 %v3786_v29  ;;  %v3801_v41 = vcvt.f32.s32 %v3800_v30  ;;  %vm3875_vm11 = vcmp.eq.s32.totalorder %v8770_v23, %v3776_v57  ;;  %v4079_v57 = vld [vmem:[%s9674_s19 + $0x18] sm:$0xff]  ;;  %v4082_v29 = vld [vmem:[%s9674_s19 + $0x30] sm:$0xff]  ;;  %v4502_v30 = vld [vmem:[#allocation3 + $0xe0] sm:$0xff] }
0x1cca   : > { %v9619_v35 = vsel %vm3875_vm11, -inf, %v9518_v33 }
0x1ccb   : > { %v3790_v36 = vadd.s32 %v3789_v6, %v3787_v17  ;;  %v3804_v39 = vadd.s32 %v3803_v7, %v3801_v41  ;;  %3891 = vmax.xlane.f32.xlu0 %v9619_v35  ;;  %v4080_v6 = vld [vmem:[%s9674_s19 + $0x20] sm:$0xff]  ;;  %v4083_v7 = vld [vmem:[%s9674_s19 + $0x38] sm:$0xff] }
0x1ccc   : > { %v3814_v0 = vpop.xlane.xlu1 %3813  ;;  %v3828_v3 = vpop.xlane.xlu0 %3827  ;;  %v6511_v17 = vld [vmem:[%s9674_s19 + $0x80] sm:$0xff]  ;;  %v4501_v41 = vld [vmem:[#allocation3 + $0xd8] sm:$0xff] }
0x1ccd   : > { %v3815_v13 = vcvt.f32.s32 %v3814_v0  ;;  %v3829_v53 = vcvt.f32.s32 %v3828_v3  ;;  %vm3876_vm12 = vcmp.eq.s32.totalorder %v8770_v23, %v3790_v36  ;;  %vm3877_vm13 = vcmp.eq.s32.totalorder %v8770_v23, %v3804_v39  ;;  %v4500_v36 = vld [vmem:[#allocation3 + $0xd0] sm:$0xff]  ;;  %v4499_v39 = vld [vmem:[#allocation3 + $0xc8] sm:$0xff]  ;;  %v4494_v0 = vld [vmem:[#allocation3 + $0xa0] sm:$0xff] }
0x1cce   : > { %v9627_v33 = vsel %vm3876_vm12, -inf, %v9524_v16  ;;  %v9630_v2 = vsel %vm3877_vm13, -inf, %v9527_v12  ;;  %v4493_v3 = vld [vmem:[#allocation3 + $0x98] sm:$0xff] }
0x1ccf   : > { %v3818_v11 = vadd.s32 %v3817_v9, %v3815_v13  ;;  %v3832_v34 = vadd.s32 %v3831_v38, %v3829_v53  ;;  %3893 = vmax.xlane.f32.xlu1 %v9627_v33  ;;  %3895 = vmax.xlane.f32.xlu0 %v9630_v2  ;;  %v4498_v9 = vld [vmem:[#allocation3 + $0xc0] sm:$0xff]  ;;  %v4497_v38 = vld [vmem:[#allocation3 + $0xb8] sm:$0xff]  ;;  %v4492_v13 = vld [vmem:[#allocation3 + $0x90] sm:$0xff] }
0x1cd0   : > { %v3842_v50 = vpop.xlane.xlu1 %3841  ;;  %v3856_v27 = vpop.xlane.xlu0 %3855  ;;  %v4491_v53 = vld [vmem:[#allocation3 + $0x88] sm:$0xff] }
0x1cd1   : > { %v3843_v45 = vcvt.f32.s32 %v3842_v50  ;;  %v3857_v5 = vcvt.f32.s32 %v3856_v27  ;;  %vm3878_vm14 = vcmp.eq.s32.totalorder %v8770_v23, %v3818_v11  ;;  %vm3879_vm15 = vcmp.eq.s32.totalorder %v8770_v23, %v3832_v34  ;;  %v4490_v11 = vld [vmem:[#allocation3 + $0x80] sm:$0xff]  ;;  %v6512_v34 = vld [vmem:[%s9674_s19 + $0x88] sm:$0xff]  ;;  %v6517_v27 = vld [vmem:[%s9674_s19 + $0xb0] sm:$0xff] }
0x1cd2   : > { %v9638_v16 = vsel %vm3878_vm14, -inf, %v9534_v25  ;;  %v9641_v12 = vsel %vm3879_vm15, -inf, %v9537_v26  ;;  %v4091_v26 = vld [vmem:[#allocation3 + $0x38] sm:$0xff]  ;;  %v6516_v50 = vld [vmem:[%s9674_s19 + $0xa8] sm:$0xff] }
0x1cd3   : > { %v3846_v54 = vadd.s32 %v3845_v8, %v3843_v45  ;;  %v3860_v61 = vadd.s32 %v3859_v15, %v3857_v5  ;;  %3897 = vmax.xlane.f32.xlu1 %v9638_v16  ;;  %3899 = vmax.xlane.f32.xlu0 %v9641_v12  ;;  %v6513_v8 = vld [vmem:[%s9674_s19 + $0x90] sm:$0xff]  ;;  %v6514_v15 = vld [vmem:[%s9674_s19 + $0x98] sm:$0xff] }
0x1cd4   : > { %v3870_v43 = vpop.xlane.xlu1 %3869  ;;  %6989 = vmatprep.subr.msk.mxu1 %vm4100_vm10, %v4091_v26  ;;  %v6518_v45 = vld [vmem:[%s9674_s19 + $0xb8] sm:$0xff] }
0x1cd5   : > { %v3871_v52 = vcvt.f32.s32 %v3870_v43  ;;  %vm3880_vm0 = vcmp.eq.s32.totalorder %v8770_v23, %v3846_v54  ;;  %vm3881_vm1 = vcmp.eq.s32.totalorder %v8770_v23, %v3860_v61  ;;  %6990 = vmatpush3.xpose.msk.msra.mxu1 %vm4100_vm10, %v4091_v26 }
0x1cd6   : > { %v9648_v46 = vsel %vm3880_vm0, -inf, %v9544_v62  ;;  %v9651_v25 = vsel %vm3881_vm1, -inf, %v9547_v20  ;;  %v4090_v62 = vld [vmem:[#allocation3 + $0x30] sm:$0xff]  ;;  %v4089_v20 = vld [vmem:[#allocation3 + $0x28] sm:$0xff] }
0x1cd7   : > { %v3874_v18 = vadd.s32 %v3873_v47, %v3871_v52  ;;  %3901 = vmax.xlane.f32.xlu1 %v9648_v46  ;;  %3903 = vmax.xlane.f32.xlu0 %v9651_v25 }
0x1cd8   : > { %6991 = vmatprep.subr.msk.mxu1 %vm4100_vm10, %v4090_v62 }
0x1cd9   : > { %vm3882_vm3 = vcmp.eq.s32.totalorder %v8770_v23, %v3874_v18  ;;  %6992 = vmatpush3.xpose.msk.msra.mxu1 %vm4100_vm10, %v4090_v62 }
0x1cda   : > { %v9659_v56 = vsel %vm3882_vm3, -inf, %v9553_v24  ;;  %6993 = vmatprep.subr.msk.mxu1 %vm4100_vm10, %v4089_v20  ;;  %v4087_v24 = vld [vmem:[#allocation3 + $0x18] sm:$0xff] }
0x1cdb   : > { %3905 = vmax.xlane.f32.xlu1 %v9659_v56 }
0x1cdd   : > { %6994 = vmatpush3.xpose.msk.msra.mxu1 %vm4100_vm10, %v4089_v20 }
0x1cde   : > { %6995 = vmatprep.subr.msk.mxu1 %vm4100_vm10, %v4088_v10 }
0x1ce1   : > { %6996 = vmatpush3.xpose.msk.msra.mxu1 %vm4100_vm10, %v4088_v10 }
0x1ce2   : > { %6997 = vmatprep.subr.msk.mxu1 %vm4100_vm10, %v4087_v24 }
0x1ce5   : > { %6998 = vmatpush3.xpose.msk.msra.mxu1 %vm4100_vm10, %v4087_v24 }
0x1ce6   : > { %6999 = vmatprep.subr.msk.mxu1 %vm4100_vm10, %v4086_v44 }
0x1ce9   : > { %7000 = vmatpush3.xpose.msk.msra.mxu1 %vm4100_vm10, %v4086_v44 }
0x1cea   : > { %7001 = vmatprep.subr.msk.mxu1 %vm4100_vm10, %v4085_v42 }
0x1ced   : > { %7002 = vmatpush3.xpose.msk.msra.mxu1 %vm4100_vm10, %v4085_v42 }
0x1cee   : > { %7003 = vmatprep.subr.msk.mxu1 %vm4100_vm10, %v4084_v32 }
0x1cf1   : > { %7004 = vmatpush3.xpose.msk.msra.mxu1 %vm4100_vm10, %v4084_v32 }
0x1cf2   : > { %7061 = vmatprep.subr.msk.mxu1 %vm4100_vm10, %v4505_v19 }
0x1cf4   : > { %7006 = vmatmul.mubr.msk.f32.vlgmr.msra.gmra.mxu1 %vm4100_vm10, %v4077_v28 }
0x1cf5   : > { %7062 = vmatpush3.xpose.msk.msra.mxu1 %vm4100_vm10, %v4505_v19  ;;  %7008 = vmatprep.mubr.msk.f32.mxu1 %vm4100_vm10, %v4078_v4 }
0x1cf6   : > { %7063 = vmatprep.subr.msk.mxu1 %vm4100_vm10, %v4504_v1 }
0x1cf8   : > { %7009 = vmatmul.mubr.msk.f32.gmra.mxu1 %vm4100_vm10, %v4079_v57 }
0x1cf9   : > { %7064 = vmatpush3.xpose.msk.msra.mxu1 %vm4100_vm10, %v4504_v1  ;;  %7011 = vmatprep.mubr.msk.f32.mxu1 %vm4100_vm10, %v4080_v6 }
0x1cfa   : > { %7065 = vmatprep.subr.msk.mxu1 %vm4100_vm10, %v4503_v51 }
0x1cfc   : > { %7012 = vmatmul.mubr.msk.f32.gmra.mxu1 %vm4100_vm10, %v4081_v63 }
0x1cfd   : > { %7066 = vmatpush3.xpose.msk.msra.mxu1 %vm4100_vm10, %v4503_v51  ;;  %7014 = vmatprep.mubr.msk.f32.mxu1 %vm4100_vm10, %v4082_v29 }
0x1cfe   : > { %7067 = vmatprep.subr.msk.mxu1 %vm4100_vm10, %v4502_v30 }
0x1d00   : > { %7015 = vmatmul.mubr.msk.f32.gmra.mxu1 %vm4100_vm10, %v4083_v7 }
0x1d01   : > { %7068 = vmatpush3.xpose.msk.msra.mxu1 %vm4100_vm10, %v4502_v30  ;;  %7093 = vmatprep.mubr.msk.f32.mxu1 %vm4100_vm10, %v6511_v17 }
0x1d02   : > { %7069 = vmatprep.subr.msk.mxu1 %vm4100_vm10, %v4501_v41 }
0x1d05   : > { %7070 = vmatpush3.xpose.msk.msra.mxu1 %vm4100_vm10, %v4501_v41 }
0x1d06   : > { %7071 = vmatprep.subr.msk.mxu1 %vm4100_vm10, %v4500_v36 }
0x1d09   : > { %7072 = vmatpush3.xpose.msk.msra.mxu1 %vm4100_vm10, %v4500_v36 }
0x1d0a   : > { %7073 = vmatprep.subr.msk.mxu1 %vm4100_vm10, %v4499_v39 }
0x1d0d   : > { %7074 = vmatpush3.xpose.msk.msra.mxu1 %vm4100_vm10, %v4499_v39 }
0x1d0e   : > { %7075 = vmatprep.subr.msk.mxu1 %vm4100_vm10, %v4498_v9 }
0x1d11   : > { %7076 = vmatpush3.xpose.msk.msra.mxu1 %vm4100_vm10, %v4498_v9 }
0x1d12   : > { %7077 = vmatprep.subr.msk.mxu1 %vm4100_vm10, %v4497_v38 }
0x1d15   : > { %7078 = vmatpush3.xpose.msk.msra.mxu1 %vm4100_vm10, %v4497_v38 }
0x1d16   : > { %7079 = vmatprep.subr.msk.mxu1 %vm4100_vm10, %v4496_v14 }
0x1d19   : > { %7080 = vmatpush3.xpose.msk.msra.mxu1 %vm4100_vm10, %v4496_v14 }
0x1d1a   : > { %7081 = vmatprep.subr.msk.mxu1 %vm4100_vm10, %v4495_v40 }
0x1d1d   : > { %7082 = vmatpush3.xpose.msk.msra.mxu1 %vm4100_vm10, %v4495_v40 }
0x1d1e   : > { %7083 = vmatprep.subr.msk.mxu1 %vm4100_vm10, %v4494_v0 }
0x1d21   : > { %7084 = vmatpush3.xpose.msk.msra.mxu1 %vm4100_vm10, %v4494_v0 }
0x1d22   : > { %7085 = vmatprep.subr.msk.mxu1 %vm4100_vm10, %v4493_v3 }
0x1d25   : > { %7086 = vmatpush3.xpose.msk.msra.mxu1 %vm4100_vm10, %v4493_v3 }
0x1d26   : > { %7087 = vmatprep.subr.msk.mxu1 %vm4100_vm10, %v4492_v13 }
0x1d29   : > { %7088 = vmatpush3.xpose.msk.msra.mxu1 %vm4100_vm10, %v4492_v13 }
0x1d2a   : > { %7089 = vmatprep.subr.msk.mxu1 %vm4100_vm10, %v4491_v53 }
0x1d2d   : > { %7090 = vmatpush3.xpose.msk.msra.mxu1 %vm4100_vm10, %v4491_v53 }
0x1d2e   : > { %7091 = vmatprep.subr.msk.mxu1 %vm4100_vm10, %v4490_v11 }
0x1d31   : > { %7092 = vmatpush3.xpose.msk.msra.mxu1 %vm4100_vm10, %v4490_v11 }
0x1d34   : > { %7094 = vmatmul.mubr.msk.f32.vlgmr.msra.gmra.mxu1 %vm4100_vm10, %v6512_v34 }
0x1d35   : > { %7096 = vmatprep.mubr.msk.f32.mxu1 %vm4100_vm10, %v6513_v8 }
0x1d38   : > { %7097 = vmatmul.mubr.msk.f32.gmra.mxu1 %vm4100_vm10, %v6514_v15 }
0x1d39   : > { %7099 = vmatprep.mubr.msk.f32.mxu1 %vm4100_vm10, %v6515_v55 }
0x1d3c   : > { %7100 = vmatmul.mubr.msk.f32.gmra.mxu1 %vm4100_vm10, %v6516_v50 }
0x1d3d   : > { %7102 = vmatprep.mubr.msk.f32.mxu1 %vm4100_vm10, %v6517_v27 }
0x1d40   : > { %7103 = vmatmul.mubr.msk.f32.gmra.mxu1 %vm4100_vm10, %v6518_v45 }
0x1d54   : > { %v3892_v5 = vpop.xlane.xlu0 %3891 }
0x1d55   : > { %vm3907_vm4 = vcmp.eq.f32.partialorder %v9619_v35, %v3892_v5 }
0x1d56   : > { %v3915_v54 = vsel %vm3907_vm4, %v8770_v23, 128 }
0x1d57   : > { %v3924_v61 = vshra.s32 %v3915_v54, 16  ;;  %v3923_v38 = vand.u32 65535, %v3915_v54 }
0x1d58   : > { %v3894_v43 = vpop.xlane.xlu1 %3893  ;;  %v3896_v47 = vpop.xlane.xlu0 %3895 }
0x1d59   : > { %v3926_v52 = vcvt.s32.f32 %v3924_v61  ;;  %vm3908_vm5 = vcmp.eq.f32.partialorder %v9627_v33, %v3894_v43  ;;  %vm3909_vm6 = vcmp.eq.f32.partialorder %v9630_v2, %v3896_v47  ;;  %v3925_v14 = vcvt.s32.f32 %v3923_v38 }
0x1d5a   : > { %v3916_v26 = vsel %vm3908_vm5, %v8770_v23, 128  ;;  %v3917_v18 = vsel %vm3909_vm6, %v8770_v23, 128 }
0x1d5b   : > { %v3938_v62 = vshra.s32 %v3916_v26, 16  ;;  %v3952_v20 = vshra.s32 %v3917_v18, 16  ;;  %3927 = vmin.xlane.f32.xlu0 %v3926_v52  ;;  %v3937_v40 = vand.u32 65535, %v3916_v26  ;;  %v3951_v0 = vand.u32 65535, %v3917_v18 }
0x1d5c   : > { %v3898_v10 = vpop.xlane.xlu1 %3897  ;;  %v3900_v24 = vpop.xlane.xlu0 %3899 }
0x1d5d   : > { %v3940_v44 = vcvt.s32.f32 %v3938_v62  ;;  %v3954_v42 = vcvt.s32.f32 %v3952_v20  ;;  %vm3910_vm7 = vcmp.eq.f32.partialorder %v9638_v16, %v3898_v10  ;;  %vm3911_vm8 = vcmp.eq.f32.partialorder %v9641_v12, %v3900_v24 }
0x1d5e   : > { %v3918_v58 = vsel %vm3910_vm7, %v8770_v23, 128  ;;  %v3919_v32 = vsel %vm3911_vm8, %v8770_v23, 128  ;;  %v3939_v53 = vcvt.s32.f32 %v3937_v40  ;;  %v3953_v11 = vcvt.s32.f32 %v3951_v0 }
0x1d5f   : > { %3941 = vmin.xlane.f32.xlu1 %v3940_v44  ;;  %3955 = vmin.xlane.f32.xlu0 %v3954_v42  ;;  %v3966_v19 = vshra.s32 %v3918_v58, 16  ;;  %v3980_v28 = vshra.s32 %v3919_v32, 16  ;;  %v3965_v15 = vand.u32 65535, %v3918_v58  ;;  %v3979_v55 = vand.u32 65535, %v3919_v32 }
0x1d60   : > { %v3902_v4 = vpop.xlane.xlu1 %3901  ;;  %v3904_v1 = vpop.xlane.xlu0 %3903 }
0x1d61   : > { %vm3912_vm9 = vcmp.eq.f32.partialorder %v9648_v46, %v3902_v4  ;;  %vm3913_vm11 = vcmp.eq.f32.partialorder %v9651_v25, %v3904_v1  ;;  %v3968_v57 = vcvt.s32.f32 %v3966_v19  ;;  %v3982_v6 = vcvt.s32.f32 %v3980_v28 }
0x1d62   : > { %v3920_v51 = vsel %vm3912_vm9, %v8770_v23, 128  ;;  %v3921_v63 = vsel %vm3913_vm11, %v8770_v23, 128  ;;  %v3967_v45 = vcvt.s32.f32 %v3965_v15  ;;  %v3981_v5 = vcvt.s32.f32 %v3979_v55 }
0x1d63   : > { %v3994_v29 = vshra.s32 %v3920_v51, 16  ;;  %v4008_v30 = vshra.s32 %v3921_v63, 16  ;;  %3969 = vmin.xlane.f32.xlu1 %v3968_v57  ;;  %3983 = vmin.xlane.f32.xlu0 %v3982_v6  ;;  %v3993_v54 = vand.u32 65535, %v3920_v51  ;;  %v4007_v61 = vand.u32 65535, %v3921_v63 }
0x1d64   : > { %v3906_v7 = vpop.xlane.xlu1 %3905 }
0x1d65   : > { %vm3914_vm12 = vcmp.eq.f32.partialorder %v9659_v56, %v3906_v7  ;;  %v3996_v17 = vcvt.s32.f32 %v3994_v29  ;;  %v4010_v41 = vcvt.s32.f32 %v4008_v30  ;;  %v3995_v18 = vcvt.s32.f32 %v3993_v54 }
0x1d66   : > { %v3922_v36 = vsel %vm3914_vm12, %v8770_v23, 128  ;;  %v4009_v62 = vcvt.s32.f32 %v4007_v61 }
0x1d67   : > { %v4022_v39 = vshra.s32 %v3922_v36, 16  ;;  %3997 = vmin.xlane.f32.xlu1 %v3996_v17  ;;  %4011 = vmin.xlane.f32.xlu0 %v4010_v41  ;;  %v4021_v20 = vand.u32 65535, %v3922_v36 }
0x1d69   : > { %v4024_v9 = vcvt.s32.f32 %v4022_v39  ;;  %v4023_v58 = vcvt.s32.f32 %v4021_v20 }
0x1d6b   : > { %4025 = vmin.xlane.f32.xlu1 %v4024_v9 }
0x1db4   : > { %v7007_v28 = vpop.f32.mrf.mxu1 }
0x1db6   : > { %v4239_v4 = vpop.f32.mrf.mxu1 }
0x1db8   : > { %v9766_v1 = vpop.f32.mrf.mxu1 }
0x1de4   : > { %v3928_v3 = vpop.xlane.xlu0 %3927 }
0x1de5   : > { %vm3929_vm13 = vcmp.eq.f32.partialorder %v3926_v52, %v3928_v3  ;;  %v3934_v51 = vcvt.f32.s32 %v3928_v3 }
0x1de6   : > { %v3930_v13 = vsel %vm3929_vm13, %v3925_v14, inf }
0x1de7   : > { %3931 = vmin.xlane.f32.xlu0 %v3930_v13 }
0x1de8   : > { %v3942_v34 = vpop.xlane.xlu1 %3941  ;;  %v3956_v8 = vpop.xlane.xlu0 %3955 }
0x1de9   : > { %vm3943_vm14 = vcmp.eq.f32.partialorder %v3940_v44, %v3942_v34  ;;  %vm3957_vm15 = vcmp.eq.f32.partialorder %v3954_v42, %v3956_v8  ;;  %v3948_v29 = vcvt.f32.s32 %v3942_v34  ;;  %v3962_v30 = vcvt.f32.s32 %v3956_v8 }
0x1dea   : > { %v3944_v50 = vsel %vm3943_vm14, %v3939_v53, inf  ;;  %v3958_v27 = vsel %vm3957_vm15, %v3953_v11, inf }
0x1deb   : > { %3945 = vmin.xlane.f32.xlu1 %v3944_v50  ;;  %3959 = vmin.xlane.f32.xlu0 %v3958_v27  ;;  %v3963_v38 = vshll.u32 %v3962_v30, 16 }
0x1dec   : > { %v3970_v43 = vpop.xlane.xlu1 %3969  ;;  %v3984_v47 = vpop.xlane.xlu0 %3983 }
0x1ded   : > { %vm3971_vm0 = vcmp.eq.f32.partialorder %v3968_v57, %v3970_v43  ;;  %vm3985_vm1 = vcmp.eq.f32.partialorder %v3982_v6, %v3984_v47  ;;  %v4249_v57 = vpop.f32.mrf.mxu1  ;;  %v3976_v14 = vcvt.f32.s32 %v3970_v43  ;;  %v3990_v40 = vcvt.f32.s32 %v3984_v47 }
0x1dee   : > { %v3972_v52 = vsel %vm3971_vm0, %v3967_v45, inf  ;;  %v3986_v26 = vsel %vm3985_vm1, %v3981_v5, inf  ;;  %v7701_v45 = vmov 0.0  }
0x1def   : > { %3973 = vmin.xlane.f32.xlu1 %v3972_v52  ;;  %3987 = vmin.xlane.f32.xlu0 %v3986_v26  ;;  %v9768_v6 = vpop.f32.mrf.mxu1  ;;  %v3977_v55 = vshll.u32 %v3976_v14, 16  ;;  %v3991_v50 = vshll.u32 %v3990_v40, 16 }
0x1df0   : > { %v3998_v10 = vpop.xlane.xlu1 %3997  ;;  %v9760_v24 = vpop.xlane.xlu0 %4011 }
0x1df1   : > { %vm3999_vm3 = vcmp.eq.f32.partialorder %v3996_v17, %v3998_v10  ;;  %vm4013_vm4 = vcmp.eq.f32.partialorder %v4010_v41, %v9760_v24  ;;  %v9770_v63 = vpop.f32.mrf.mxu1  ;;  %v3935_v17 = vshll.u32 %v3934_v51, 16  ;;  %v4004_v34 = vcvt.f32.s32 %v3998_v10 }
0x1df2   : > { %v4000_v44 = vsel %vm3999_vm3, %v3995_v18, inf  ;;  %v4014_v42 = vsel %vm4013_vm4, %v4009_v62, inf  ;;  %v4018_v54 = vcvt.f32.s32 %v9760_v24 }
0x1df3   : > { %4001 = vmin.xlane.f32.xlu1 %v4000_v44  ;;  %4015 = vmin.xlane.f32.xlu0 %v4014_v42  ;;  %v9772_v39 = vpop.f32.mrf.mxu1  ;;  %v4005_v18 = vshll.u32 %v4004_v34, 16  ;;  %v4371_v34 = vld [vmem:[#allocation4 + $0x68] sm:$0xff] }
0x1df4   : > { %v9763_v32 = vpop.xlane.xlu1 %4025 }
0x1df5   : > { %vm4027_vm5 = vcmp.eq.f32.partialorder %v4024_v9, %v9763_v32  ;;  %v3949_v9 = vshll.u32 %v3948_v29, 16  ;;  %v4269_v27 = vpop.f32.mrf.mxu1 }
0x1df6   : > { %v4028_v19 = vsel %vm4027_vm5, %v4023_v58, inf }
0x1df7   : > { %4029 = vmin.xlane.f32.xlu1 %v4028_v19  ;;  %v7095_v20 = vpop.f32.mrf.mxu1 }
0x1e70   : > { %v3932_v7 = vpop.xlane.xlu0 %3931 }
0x1e71   : > { %v3933_v41 = vcvt.f32.s32 %v3932_v7 }
0x1e73   : > { %v3936_v36 = vadd.s32 %v3935_v17, %v3933_v41 }
0x1e74   : > { %v3946_v0 = vpop.xlane.xlu1 %3945  ;;  %v3960_v13 = vpop.xlane.xlu0 %3959 }
0x1e75   : > { %vm4035_vm6 = vcmp.eq.s32.totalorder %v8770_v23, %v3936_v36  ;;  %v3947_v53 = vcvt.f32.s32 %v3946_v0  ;;  %v3961_v3 = vcvt.f32.s32 %v3960_v13 }
0x1e76   : > { %v4043_v11 = vsel %vm4035_vm6, -inf, %v9619_v35 }
0x1e77   : > { %v3950_v8 = vadd.s32 %v3949_v9, %v3947_v53  ;;  %v3964_v15 = vadd.s32 %v3963_v38, %v3961_v3  ;;  %vm4051_vm7 = vcmp.eq.f32.partialorder %v4043_v11, %v8748_v60  ;;  %v4373_v3 = vld [vmem:[#allocation4 + $0x78] sm:$0xff]  ;;  %v4372_v11 = vld [vmem:[#allocation4 + $0x70] sm:$0xff] }
0x1e78   : > { %v9778_v5 = vsel %vm4051_vm7, -inf, %v7701_v45  ;;  %v3974_v61 = vpop.xlane.xlu1 %3973  ;;  %v3988_v35 = vpop.xlane.xlu0 %3987  ;;  %7017 = vmatprep.subr.mxu0 %v4373_v3 }
0x1e79   : > { %vm4036_vm8 = vcmp.eq.s32.totalorder %v8770_v23, %v3950_v8  ;;  %vm4037_vm9 = vcmp.eq.s32.totalorder %v8770_v23, %v3964_v15  ;;  %v9784_v43 = vadd.f32 %v4239_v4, %v9778_v5  ;;  %v3975_v52 = vcvt.f32.s32 %v3974_v61  ;;  %7018 = vmatpush3.msra.mxu0 %v4373_v3  ;;  %v4370_v8 = vld [vmem:[#allocation4 + $0x60] sm:$0xff]  ;;  %v4369_v15 = vld [vmem:[#allocation4 + $0x58] sm:$0xff] }
0x1e7a   : > { %v4044_v60 = vsel %vm4036_vm8, -inf, %v9627_v33  ;;  %v4045_v47 = vsel %vm4037_vm9, -inf, %v9630_v2  ;;  %v3989_v26 = vcvt.f32.s32 %v3988_v35  ;;  %v4019_v33 = vshll.u32 %v4018_v54, 16  ;;  %7019 = vmatprep.subr.mxu0 %v4372_v11  ;;  %v4366_v3 = vld [vmem:[#allocation4 + $0x40] sm:$0xff] }
0x1e7b   : > { %vm4052_vm11 = vcmp.eq.f32.partialorder %v4044_v60, %v8746_v22  ;;  %4278 = vmax.xlane.f32.xlu0 %v9784_v43  ;;  %vm4053_vm12 = vcmp.eq.f32.partialorder %v4045_v47, %v8753_v49  ;;  %v3978_v10 = vadd.s32 %v3977_v55, %v3975_v52  ;;  %v4032_v2 = vcvt.f32.s32 %v9763_v32  ;;  %7020 = vmatpush3.msra.mxu0 %v4372_v11  ;;  %v4368_v55 = vld [vmem:[#allocation4 + $0x50] sm:$0xff] }
0x1e7c   : > { %v9792_v62 = vsel %vm4052_vm11, -inf, %v7701_v45  ;;  %v3992_v24 = vadd.s32 %v3991_v50, %v3989_v26  ;;  %v9795_v44 = vsel %vm4053_vm12, -inf, %v7701_v45  ;;  %v4002_v42 = vpop.xlane.xlu1 %4001  ;;  %v4016_v58 = vpop.xlane.xlu0 %4015  ;;  %7021 = vmatprep.subr.mxu0 %v4371_v34  ;;  %v4367_v50 = vld [vmem:[#allocation4 + $0x48] sm:$0xff] }
0x1e7d   : > { %v9799_v22 = vadd.f32 %v7007_v28, %v9792_v62  ;;  %v9802_v19 = vadd.f32 %v4249_v57, %v9795_v44  ;;  %vm4038_vm13 = vcmp.eq.s32.totalorder %v8770_v23, %v3978_v10  ;;  %v4003_v49 = vcvt.f32.s32 %v4002_v42  ;;  %v4644_v57 = vpop.f32.mrf.mxu1  ;;  %7022 = vmatpush3.msra.mxu0 %v4371_v34 }
0x1e7e   : > { %vm4039_vm14 = vcmp.eq.s32.totalorder %v8770_v23, %v3992_v24  ;;  %v4017_v4 = vcvt.f32.s32 %v4016_v58  ;;  %v4046_v51 = vsel %vm4038_vm13, -inf, %v9638_v16  ;;  %v4033_v17 = vshll.u32 %v4032_v2, 16  ;;  %7023 = vmatprep.subr.mxu0 %v4370_v8 }
0x1e7f   : > { %v4047_v29 = vsel %vm4039_vm14, -inf, %v9641_v12  ;;  %4280 = vmax.xlane.f32.xlu1 %v9799_v22  ;;  %4282 = vmax.xlane.f32.xlu0 %v9802_v19  ;;  %vm4054_vm15 = vcmp.eq.f32.partialorder %v4046_v51, %v8751_v48  ;;  %v4006_v32 = vadd.s32 %v4005_v18, %v4003_v49  ;;  %v7098_v9 = vpop.f32.mrf.mxu1  ;;  %v9860_v40 = vadd.f32 %v4644_v57, %v9778_v5 }
0x1e80   : > { %v4020_v28 = vadd.s32 %v4019_v33, %v4017_v4  ;;  %vm4055_vm0 = vcmp.eq.f32.partialorder %v4047_v29, %v8759_v21  ;;  %v9813_v30 = vsel %vm4054_vm15, -inf, %v7701_v45  ;;  %v4030_v16 = vpop.xlane.xlu1 %4029  ;;  %7024 = vmatpush3.msra.mxu0 %v4370_v8 }
0x1e81   : > { %v9816_v7 = vsel %vm4055_vm0, -inf, %v7701_v45  ;;  %vm4040_vm1 = vcmp.eq.s32.totalorder %v8770_v23, %v4006_v32  ;;  %v4031_v41 = vcvt.f32.s32 %v4030_v16  ;;  %v9824_v21 = vadd.f32 %v9766_v1, %v9813_v30  ;;  %7025 = vmatprep.subr.mxu0 %v4369_v15 }
0x1e82   : > { %vm4041_vm3 = vcmp.eq.s32.totalorder %v8770_v23, %v4020_v28  ;;  %v4048_v12 = vsel %vm4040_vm1, -inf, %v9648_v46  ;;  %v9829_v36 = vadd.f32 %v9770_v63, %v9816_v7  ;;  %v4654_v63 = vpop.f32.mrf.mxu1  ;;  %7026 = vmatpush3.msra.mxu0 %v4369_v15  ;;  %v4365_v15 = vld [vmem:[#allocation4 + $0x38] sm:$0xff] }
0x1e83   : > { %v4049_v48 = vsel %vm4041_vm3, -inf, %v9651_v25  ;;  %vm4056_vm4 = vcmp.eq.f32.partialorder %v4048_v12, %v8757_v59  ;;  %v4034_v46 = vadd.s32 %v4033_v17, %v4031_v41  ;;  %4284 = vmax.xlane.f32.xlu1 %v9824_v21  ;;  %7027 = vmatprep.subr.mxu0 %v4368_v55 }
0x1e84   : > { %vm4057_vm5 = vcmp.eq.f32.partialorder %v4049_v48, %v8765_v31  ;;  %v9833_v38 = vsel %vm4056_vm4, -inf, %v7701_v45  ;;  %4286 = vmax.xlane.f32.xlu0 %v9829_v36  ;;  %7028 = vmatpush3.msra.mxu0 %v4368_v55 }
0x1e85   : > { %v9837_v25 = vsel %vm4057_vm5, -inf, %v7701_v45  ;;  %v9842_v59 = vadd.f32 %v9768_v6, %v9833_v38  ;;  %vm4042_vm6 = vcmp.eq.s32.totalorder %v8770_v23, %v4034_v46  ;;  %v7101_v23 = vpop.f32.mrf.mxu1  ;;  %7029 = vmatprep.subr.mxu0 %v4367_v50 }
0x1e86   : > { %v9845_v1 = vadd.f32 %v4269_v27, %v9837_v25  ;;  %v4050_v31 = vsel %vm4042_vm6, -inf, %v9659_v56  ;;  %v9868_v56 = vadd.f32 %v4654_v63, %v9795_v44  ;;  %v9881_v53 = vadd.f32 %v7101_v23, %v9833_v38  ;;  %7030 = vmatpush3.msra.mxu0 %v4367_v50 }
0x1e87   : > { %vm4058_vm7 = vcmp.eq.f32.partialorder %v4050_v31, %v8763_v37  ;;  %4288 = vmax.xlane.f32.xlu1 %v9842_v59  ;;  %v9865_v37 = vadd.f32 %v7095_v20, %v9792_v62  ;;  %v4664_v0 = vpop.f32.mrf.mxu1  ;;  %7031 = vmatprep.subr.mxu0 %v4366_v3 }
0x1e88   : > { %v9852_v14 = vsel %vm4058_vm7, -inf, %v7701_v45  ;;  %4290 = vmax.xlane.f32.xlu0 %v9845_v1  ;;  %v9876_v13 = vadd.f32 %v4664_v0, %v9816_v7  ;;  %7032 = vmatpush3.msra.mxu0 %v4366_v3 }
0x1e89   : > { %v9857_v6 = vadd.f32 %v9772_v39, %v9852_v14  ;;  %v9873_v39 = vadd.f32 %v7098_v9, %v9813_v30  ;;  %7033 = vmatprep.subr.mxu0 %v4365_v15 }
0x1e8a   : > { %7034 = vmatpush3.msra.mxu0 %v4365_v15 }
0x1e8b   : > { %4292 = vmax.xlane.f32.xlu1 %v9857_v6 }
0x1e8c   : > { %4683 = vmax.xlane.f32.xlu0 %v9860_v40 }
0x1e8f   : > { %4685 = vmax.xlane.f32.xlu1 %v9865_v37 }
0x1e90   : > { %4687 = vmax.xlane.f32.xlu0 %v9868_v56 }
0x1e93   : > { %4689 = vmax.xlane.f32.xlu1 %v9873_v39 }
0x1e94   : > { %4691 = vmax.xlane.f32.xlu0 %v9876_v13 }
0x1e97   : > { %4693 = vmax.xlane.f32.xlu1 %v9881_v53 }
0x1f04   : > { %v4279_v27 = vpop.xlane.xlu0 %4278 }
0x1f05   : > { %v4294_v45 = vsub.f32 %v9784_v43, %v4279_v27  ;;  %v7104_v43 = vpop.f32.mrf.mxu1  ;;  %v4364_v27 = vld [vmem:[#allocation4 + $0x30] sm:$0xff] }
0x1f06   : > { %7035 = vmatprep.subr.mxu0 %v4364_v27 }
0x1f07   : > { %v4302_v54 = vmul.f32 1.442695, %v4294_v45  ;;  %v4674_v51 = vpop.f32.mrf.mxu1  ;;  %v4363_v45 = vld [vmem:[#allocation4 + $0x28] sm:$0xff]  ;;  %7036 = vmatpush3.msra.mxu0 %v4364_v27 }
0x1f08   : > { %v4281_v61 = vpop.xlane.xlu1 %4280  ;;  %v4283_v35 = vpop.xlane.xlu0 %4282  ;;  %v9897_v17 = vadd.f32 %v4674_v51, %v9837_v25  ;;  %7037 = vmatprep.subr.mxu0 %v4363_v45 }
0x1f09   : > { %7497 = vpow2.f32 %v4302_v54  ;;  %v4295_v60 = vsub.f32 %v9799_v22, %v4281_v61  ;;  %v4296_v47 = vsub.f32 %v9802_v19, %v4283_v35  ;;  %v4362_v61 = vld [vmem:[#allocation4 + $0x20] sm:$0xff]  ;;  %7038 = vmatpush3.msra.mxu0 %v4363_v45  ;;  %v4774_v45 = vld [vmem:[#allocation4 + $0xc8] sm:$0xff] }
0x1f0a   : > { %7039 = vmatprep.subr.mxu0 %v4362_v61 }
0x1f0b   : > { %v4304_v52 = vmul.f32 1.442695, %v4295_v60  ;;  %v4306_v26 = vmul.f32 1.442695, %v4296_v47  ;;  %v4361_v47 = vld [vmem:[#allocation4 + $0x18] sm:$0xff]  ;;  %7040 = vmatpush3.msra.mxu0 %v4362_v61 }
0x1f0c   : > { %v4285_v18 = vpop.xlane.xlu1 %4284  ;;  %7041 = vmatprep.subr.mxu0 %v4361_v47 }
0x1f0d   : > { %7499 = vpow2.f32 %v4304_v52  ;;  %v4297_v20 = vsub.f32 %v9824_v21, %v4285_v18  ;;  %v4287_v10 = vpop.xlane.xlu0 %4286  ;;  %7042 = vmatpush3.msra.mxu0 %v4361_v47 }
0x1f0e   : > { %v4298_v24 = vsub.f32 %v9829_v36, %v4287_v10  ;;  %7501 = vpow2.f32 %v4306_v26  ;;  %v4360_v26 = vld [vmem:[#allocation4 + $0x10] sm:$0xff]  ;;  %v4358_v10 = vld [vmem:[#allocation4] sm:$0xff] }
0x1f0f   : > { %v4308_v33 = vmul.f32 1.442695, %v4297_v20  ;;  %v4359_v20 = vld [vmem:[#allocation4 + $0x8] sm:$0xff]  ;;  %7043 = vmatprep.subr.mxu0 %v4360_v26 }
0x1f10   : > { %v4310_v2 = vmul.f32 1.442695, %v4298_v24  ;;  %v4289_v42 = vpop.xlane.xlu1 %4288  ;;  %7044 = vmatpush3.msra.mxu0 %v4360_v26 }
0x1f11   : > { %v4299_v58 = vsub.f32 %v9842_v59, %v4289_v42  ;;  %v4291_v49 = vpop.xlane.xlu0 %4290  ;;  %7503 = vpow2.f32 %v4308_v33  ;;  %v9906_v59 = vadd.f32 %v7104_v43, %v9852_v14  ;;  %7045 = vmatprep.subr.mxu0 %v4359_v20  ;;  %v4780_v33 = vld [vmem:[#allocation4 + $0xf8] sm:$0xff] }
0x1f12   : > { %v4300_v22 = vsub.f32 %v9845_v1, %v4291_v49  ;;  %7505 = vpow2.f32 %v4310_v2  ;;  %7046 = vmatpush3.msra.mxu0 %v4359_v20 }
0x1f13   : > { %v4312_v19 = vmul.f32 1.442695, %v4299_v58  ;;  %7047 = vmatprep.subr.mxu0 %v4358_v10 }
0x1f14   : > { %v4314_v29 = vmul.f32 1.442695, %v4300_v22  ;;  %v4293_v32 = vpop.xlane.xlu1 %4292  ;;  %7048 = vmatpush3.msra.mxu0 %v4358_v10  ;;  %v4772_v10 = vld [vmem:[#allocation4 + $0xb8] sm:$0xff] }
0x1f15   : > { %v4301_v28 = vsub.f32 %v9857_v6, %v4293_v32  ;;  %v4684_v57 = vpop.xlane.xlu0 %4683  ;;  %7507 = vpow2.f32 %v4312_v19  ;;  %7105 = vmatprep.subr.mxu0 %v4780_v33 }
0x1f16   : > { %v9891_v4 = vpop.eup %7497  ;;  %v4699_v16 = vsub.f32 %v9860_v40, %v4684_v57  ;;  %7509 = vpow2.f32 %v4314_v29 }
0x1f17   : > { %4318 = vadd.xlane.f32.xlu0 %v9891_v4  ;;  %v4316_v12 = vmul.f32 1.442695, %v4301_v28 }
0x1f18   : > { %v4707_v41 = vmul.f32 1.442695, %v4699_v16  ;;  %v4686_v21 = vpop.xlane.xlu1 %4685 }
0x1f19   : > { %v4700_v36 = vsub.f32 %v9865_v37, %v4686_v21  ;;  %v4688_v9 = vpop.xlane.xlu0 %4687  ;;  %7511 = vpow2.f32 %v4316_v12 }
0x1f1a   : > { %v9899_v48 = vpop.eup %7499  ;;  %v4701_v46 = vsub.f32 %v9868_v56, %v4688_v9  ;;  %7513 = vpow2.f32 %v4707_v41 }
0x1f1b   : > { %4320 = vadd.xlane.f32.xlu1 %v9899_v48  ;;  %4695 = vmax.xlane.f32.xlu0 %v9897_v17  ;;  %v4709_v1 = vmul.f32 1.442695, %v4700_v36  ;;  %v9908_v31 = vpop.eup %7501 }
0x1f1c   : > { %v4711_v63 = vmul.f32 1.442695, %v4701_v46  ;;  %v4690_v6 = vpop.xlane.xlu1 %4689  ;;  %v4779_v46 = vld [vmem:[#allocation4 + $0xf0] sm:$0xff] }
0x1f1d   : > { %v4702_v40 = vsub.f32 %v9873_v39, %v4690_v6  ;;  %v4692_v23 = vpop.xlane.xlu0 %4691  ;;  %7515 = vpow2.f32 %v4709_v1 }
0x1f1e   : > { %v4703_v37 = vsub.f32 %v9876_v13, %v4692_v23  ;;  %v9914_v56 = vpop.eup %7503  ;;  %7517 = vpow2.f32 %v4711_v63 }
0x1f1f   : > { %4697 = vmax.xlane.f32.xlu1 %v9906_v59  ;;  %4322 = vadd.xlane.f32.xlu0 %v9908_v31  ;;  %v4713_v0 = vmul.f32 1.442695, %v4702_v40  ;;  %v9916_v11 = vpop.eup %7505  ;;  %v4777_v40 = vld [vmem:[#allocation4 + $0xe0] sm:$0xff] }
0x1f20   : > { %v4715_v34 = vmul.f32 1.442695, %v4703_v37  ;;  %v4694_v8 = vpop.xlane.xlu1 %4693  ;;  %v4776_v37 = vld [vmem:[#allocation4 + $0xd8] sm:$0xff] }
0x1f21   : > { %v4704_v39 = vsub.f32 %v9881_v53, %v4694_v8  ;;  %7519 = vpow2.f32 %v4713_v0 }
0x1f22   : > { %v9921_v13 = vpop.eup %7507  ;;  %7521 = vpow2.f32 %v4715_v34 }
0x1f23   : > { %4324 = vadd.xlane.f32.xlu1 %v9914_v56  ;;  %4326 = vadd.xlane.f32.xlu0 %v9916_v11  ;;  %v4717_v55 = vmul.f32 1.442695, %v4704_v39  ;;  %v9923_v50 = vpop.eup %7509  ;;  %v4775_v39 = vld [vmem:[#allocation4 + $0xd0] sm:$0xff] }
0x1f25   : > { %7523 = vpow2.f32 %v4717_v55 }
0x1f26   : > { %v9927_v53 = vpop.eup %7511 }
0x1f27   : > { %4328 = vadd.xlane.f32.xlu1 %v9921_v13  ;;  %4330 = vadd.xlane.f32.xlu0 %v9923_v50  ;;  %v9929_v54 = vpop.eup %7513 }
0x1f2a   : > { %v9933_v35 = vpop.eup %7515 }
0x1f2b   : > { %4332 = vadd.xlane.f32.xlu1 %v9927_v53  ;;  %4723 = vadd.xlane.f32.xlu0 %v9929_v54  ;;  %v9935_v60 = vpop.eup %7517 }
0x1f2e   : > { %v9939_v52 = vpop.eup %7519 }
0x1f2f   : > { %4725 = vadd.xlane.f32.xlu1 %v9933_v35  ;;  %4727 = vadd.xlane.f32.xlu0 %v9935_v60  ;;  %v9941_v18 = vpop.eup %7521 }
0x1f32   : > { %v9945_v24 = vpop.eup %7523 }
0x1f33   : > { %4729 = vadd.xlane.f32.xlu1 %v9939_v52  ;;  %4731 = vadd.xlane.f32.xlu0 %v9941_v18 }
0x1f37   : > { %4733 = vadd.xlane.f32.xlu1 %v9945_v24 }
0x1fa0   : > { %v4319_v43 = vpop.xlane.xlu0 %4318 }
0x1fa1   : > { %7525 = vrcp.f32 %v4319_v43 }
0x1fa4   : > { %v4321_v2 = vpop.xlane.xlu1 %4320  ;;  %v4696_v42 = vpop.xlane.xlu0 %4695 }
0x1fa5   : > { %7527 = vrcp.f32 %v4321_v2  ;;  %v4705_v58 = vsub.f32 %v9897_v17, %v4696_v42  ;;  %v4770_v42 = vld [vmem:[#allocation4 + $0xa8] sm:$0xff] }
0x1fa7   : > { %v4719_v49 = vmul.f32 1.442695, %v4705_v58 }
0x1fa8   : > { %v4698_v22 = vpop.xlane.xlu1 %4697  ;;  %v4323_v19 = vpop.xlane.xlu0 %4322 }
0x1fa9   : > { %7529 = vpow2.f32 %v4719_v49  ;;  %v4706_v51 = vsub.f32 %v9906_v59, %v4698_v22 }
0x1faa   : > { %7531 = vrcp.f32 %v4323_v19  ;;  %v4768_v19 = vld [vmem:[#allocation4 + $0x98] sm:$0xff] }
0x1fab   : > { %v4721_v29 = vmul.f32 1.442695, %v4706_v51 }
0x1fac   : > { %v4325_v32 = vpop.xlane.xlu1 %4324  ;;  %v4327_v28 = vpop.xlane.xlu0 %4326 }
0x1fad   : > { %7533 = vpow2.f32 %v4721_v29  ;;  %v4767_v29 = vld [vmem:[#allocation4 + $0x90] sm:$0xff] }
0x1fae   : > { %v7526_v57 = vpop.eup %7525  ;;  %7535 = vrcp.f32 %v4325_v32  ;;  %v4766_v32 = vld [vmem:[#allocation4 + $0x88] sm:$0xff] }
0x1faf   : > { %7537 = vrcp.f32 %v4327_v28  ;;  %v4342_v16 = vmul.f32 %v7526_v57, %v9891_v4  ;;  %v4778_v4 = vld [vmem:[#allocation4 + $0xe8] sm:$0xff]  ;;  %v4765_v57 = vld [vmem:[#allocation4 + $0x80] sm:$0xff] }
0x1fb0   : > { %v4329_v12 = vpop.xlane.xlu1 %4328  ;;  %v4331_v17 = vpop.xlane.xlu0 %4330 }
0x1fb1   : > { %7539 = vrcp.f32 %v4329_v12  ;;  %4350 = vst [vmem:[%s7883_s20] sm:$0xff] %v4342_v16  ;;  %7049 = vmatprep.mubr.f32.mxu0 %v4342_v16  ;;  %v4069_v16 = vld [vmem:[%s10357_s3 + $0x10] sm:$0xff]  ;;  %v5170_v12 = vld [vmem:[#allocation3 + $0x178] sm:$0xff] }
0x1fb2   : > { %v7528_v41 = vpop.eup %7527  ;;  %7541 = vrcp.f32 %v4331_v17 }
0x1fb3   : > { %v4343_v21 = vmul.f32 %v7528_v41, %v9899_v48 }
0x1fb4   : > { %v4333_v36 = vpop.xlane.xlu1 %4332  ;;  %v4724_v9 = vpop.xlane.xlu0 %4723 }
0x1fb5   : > { %7543 = vrcp.f32 %v4333_v36  ;;  %4351 = vst [vmem:[%s7883_s20 + $0x8] sm:$0xff] %v4343_v21  ;;  %7050 = vmatmul.mubr.f32.vlgmr.msra.gmra.mxu0 %v4343_v21 }
0x1fb6   : > { %v9954_v59 = vpop.eup %7529  ;;  %7545 = vrcp.f32 %v4724_v9  ;;  %7106 = vmatpush3.msra.mxu0 %v4780_v33 }
0x1fb7   : > { %v7532_v1 = vpop.eup %7531  ;;  %7107 = vmatprep.subr.mxu0 %v4779_v46  ;;  %4735 = vadd.xlane.f32.xlu0 %v9954_v59 }
0x1fb8   : > { %7108 = vmatpush3.msra.mxu0 %v4779_v46  ;;  %v4726_v63 = vpop.xlane.xlu1 %4725  ;;  %v4728_v6 = vpop.xlane.xlu0 %4727  ;;  %v4344_v48 = vmul.f32 %v7532_v1, %v9908_v31 }
0x1fb9   : > { %7547 = vrcp.f32 %v4726_v63  ;;  %7109 = vmatprep.subr.mxu0 %v4778_v4 }
0x1fba   : > { %v9958_v23 = vpop.eup %7533  ;;  %7549 = vrcp.f32 %v4728_v6  ;;  %4352 = vst [vmem:[%s7883_s20 + $0x10] sm:$0xff] %v4344_v48  ;;  %7052 = vmatprep.mubr.f32.mxu0 %v4344_v48  ;;  %7110 = vmatpush3.msra.mxu0 %v4778_v4 }
0x1fbb   : > { %v7536_v0 = vpop.eup %7535  ;;  %7111 = vmatprep.subr.mxu0 %v4777_v40  ;;  %4737 = vadd.xlane.f32.xlu1 %v9958_v23 }
0x1fbc   : > { %v7538_v3 = vpop.eup %7537  ;;  %7112 = vmatpush3.msra.mxu0 %v4777_v40  ;;  %v4730_v34 = vpop.xlane.xlu1 %4729  ;;  %v4345_v8 = vmul.f32 %v7536_v0, %v9914_v56 }
0x1fbd   : > { %v4732_v31 = vpop.xlane.xlu0 %4731  ;;  %7551 = vrcp.f32 %v4730_v34  ;;  %7113 = vmatprep.subr.mxu0 %v4776_v37  ;;  %v4346_v15 = vmul.f32 %v7538_v3, %v9916_v11  ;;  %v4773_v11 = vld [vmem:[#allocation4 + $0xc0] sm:$0xff]  ;;  %v5169_v3 = vld [vmem:[#allocation3 + $0x170] sm:$0xff] }
0x1fbe   : > { %v7540_v55 = vpop.eup %7539  ;;  %7553 = vrcp.f32 %v4732_v31  ;;  %4353 = vst [vmem:[%s7883_s20 + $0x18] sm:$0xff] %v4345_v8  ;;  %7053 = vmatmul.mubr.f32.gmra.mxu0 %v4345_v8  ;;  %v5168_v8 = vld [vmem:[#allocation3 + $0x168] sm:$0xff] }
0x1fbf   : > { %v7542_v27 = vpop.eup %7541  ;;  %7114 = vmatpush3.msra.mxu0 %v4776_v37  ;;  %4354 = vst [vmem:[%s7883_s20 + $0x20] sm:$0xff] %v4346_v15  ;;  %7055 = vmatprep.mubr.f32.mxu0 %v4346_v15  ;;  %v4347_v61 = vmul.f32 %v7540_v55, %v9921_v13  ;;  %v5167_v55 = vld [vmem:[#allocation3 + $0x160] sm:$0xff] }
0x1fc0   : > { %7115 = vmatprep.subr.mxu0 %v4775_v39  ;;  %v4734_v56 = vpop.xlane.xlu1 %4733  ;;  %v4348_v47 = vmul.f32 %v7542_v27, %v9923_v50  ;;  %v4771_v50 = vld [vmem:[#allocation4 + $0xb0] sm:$0xff]  ;;  %v5166_v27 = vld [vmem:[#allocation3 + $0x158] sm:$0xff] }
0x1fc1   : > { %7116 = vmatpush3.msra.mxu0 %v4775_v39  ;;  %7555 = vrcp.f32 %v4734_v56  ;;  %4355 = vst [vmem:[%s7883_s20 + $0x28] sm:$0xff] %v4347_v61  ;;  %v5163_v56 = vld [vmem:[#allocation3 + $0x140] sm:$0xff] }
0x1fc2   : > { %v7544_v26 = vpop.eup %7543  ;;  %7117 = vmatprep.subr.mxu0 %v4774_v45  ;;  %7056 = vmatmul.mubr.f32.gmra.mxu0 %v4347_v61  ;;  %4356 = vst [vmem:[%s7883_s20 + $0x30] sm:$0xff] %v4348_v47  ;;  %v5164_v61 = vld [vmem:[#allocation3 + $0x148] sm:$0xff] }
0x1fc3   : > { %v7546_v20 = vpop.eup %7545  ;;  %7118 = vmatpush3.msra.mxu0 %v4774_v45  ;;  %7058 = vmatprep.mubr.f32.mxu0 %v4348_v47  ;;  %v4349_v13 = vmul.f32 %v7544_v26, %v9927_v53  ;;  %v5165_v45 = vld [vmem:[#allocation3 + $0x150] sm:$0xff]  ;;  %v5162_v47 = vld [vmem:[#allocation3 + $0x138] sm:$0xff]  ;;  %v5160_v26 = vld [vmem:[#allocation3 + $0x128] sm:$0xff] }
0x1fc4   : > { %7119 = vmatprep.subr.mxu0 %v4773_v11  ;;  %v4747_v33 = vmul.f32 %v7546_v20, %v9929_v54  ;;  %v4769_v54 = vld [vmem:[#allocation4 + $0xa0] sm:$0xff] }
0x1fc5   : > { %7120 = vmatpush3.msra.mxu0 %v4773_v11  ;;  %4357 = vst [vmem:[%s7883_s20 + $0x38] sm:$0xff] %v4349_v13  ;;  %v5161_v11 = vld [vmem:[#allocation3 + $0x130] sm:$0xff]  ;;  %v5159_v20 = vld [vmem:[#allocation3 + $0x120] sm:$0xff] }
0x1fc6   : > { %v7548_v43 = vpop.eup %7547  ;;  %7121 = vmatprep.subr.mxu0 %v4772_v10  ;;  %7059 = vmatmul.mubr.f32.gmra.mxu0 %v4349_v13  ;;  %6543 = vst [vmem:[%s7883_s20 + $0x40] sm:$0xff] %v4747_v33  ;;  %v5157_v13 = vld [vmem:[#allocation3 + $0x110] sm:$0xff] }
0x1fc7   : > { %v7550_v2 = vpop.eup %7549  ;;  %7122 = vmatpush3.msra.mxu0 %v4772_v10  ;;  %7137 = vmatprep.mubr.f32.mxu0 %v4747_v33  ;;  %v4748_v58 = vmul.f32 %v7548_v43, %v9933_v35  ;;  %v5158_v10 = vld [vmem:[#allocation3 + $0x118] sm:$0xff]  ;;  %v5156_v33 = vld [vmem:[#allocation3 + $0x108] sm:$0xff] }
0x1fc8   : > { %7123 = vmatprep.subr.mxu0 %v4771_v50  ;;  %v4749_v53 = vmul.f32 %v7550_v2, %v9935_v60 }
0x1fc9   : > { %7124 = vmatpush3.msra.mxu0 %v4771_v50  ;;  %6544 = vst [vmem:[%s7883_s20 + $0x48] sm:$0xff] %v4748_v58  ;;  %v5155_v50 = vld [vmem:[#allocation3 + $0x100] sm:$0xff] }
0x1fca   : > { %v7552_v49 = vpop.eup %7551  ;;  %7125 = vmatprep.subr.mxu0 %v4770_v42  ;;  %6545 = vst [vmem:[%s7883_s20 + $0x50] sm:$0xff] %v4749_v53 }
0x1fcb   : > { %v7554_v22 = vpop.eup %7553  ;;  %7126 = vmatpush3.msra.mxu0 %v4770_v42  ;;  %v4750_v51 = vmul.f32 %v7552_v49, %v9939_v52  ;;  %v4068_v52 = vld [vmem:[%s10357_s3 + $0x8] sm:$0xff]  ;;  %v6568_v42 = vld [vmem:[%s9674_s19 + $0x100] sm:$0xff] }
0x1fcc   : > { %7127 = vmatprep.subr.mxu0 %v4769_v54  ;;  %v4751_v35 = vmul.f32 %v7554_v22, %v9941_v18  ;;  %7165 = vmatprep.subr.mxu1 %v4068_v52  ;;  %v4067_v18 = vld [vmem:[%s10357_s3] sm:$0xff]  ;;  %v6573_v22 = vld [vmem:[%s9674_s19 + $0x128] sm:$0xff] }
0x1fcd   : > { %7128 = vmatpush3.msra.mxu0 %v4769_v54  ;;  %6546 = vst [vmem:[%s7883_s20 + $0x58] sm:$0xff] %v4750_v51  ;;  %7166 = vmatpush3.msra.mxu1 %v4068_v52  ;;  %v6571_v54 = vld [vmem:[%s9674_s19 + $0x118] sm:$0xff]  ;;  %v6572_v49 = vld [vmem:[%s9674_s19 + $0x120] sm:$0xff] }
0x1fce   : > { %v7556_v60 = vpop.eup %7555  ;;  %7129 = vmatprep.subr.mxu0 %v4768_v19  ;;  %6547 = vst [vmem:[%s7883_s20 + $0x60] sm:$0xff] %v4751_v35  ;;  %7167 = vmatprep.subr.mxu1 %v4067_v18 }
0x1fcf   : > { %7130 = vmatpush3.msra.mxu0 %v4768_v19  ;;  %v4752_v28 = vmul.f32 %v7556_v60, %v9945_v24  ;;  %7168 = vmatpush3.msra.mxu1 %v4067_v18  ;;  %v4070_v24 = vld [vmem:[%s10357_s3 + $0x18] sm:$0xff]  ;;  %v6574_v19 = vld [vmem:[%s9674_s19 + $0x130] sm:$0xff] }
0x1fd0   : > { %7131 = vmatprep.subr.mxu0 %v4767_v29 }
0x1fd1   : > { %7132 = vmatpush3.msra.mxu0 %v4767_v29  ;;  %6548 = vst [vmem:[%s7883_s20 + $0x68] sm:$0xff] %v4752_v28 }
0x1fd2   : > { %7133 = vmatprep.subr.mxu0 %v4766_v32 }
0x1fd3   : > { %7134 = vmatpush3.msra.mxu0 %v4766_v32 }
0x1fd4   : > { %7135 = vmatprep.subr.mxu0 %v4765_v57 }
0x1fd5   : > { %7136 = vmatpush3.msra.mxu0 %v4765_v57 }
0x1fd6   : > { %7138 = vmatmul.mubr.f32.vlgmr.msra.gmra.mxu0 %v4748_v58  ;;  %7149 = vmatprep.subr.mxu0 %v4070_v24  ;;  %v6569_v58 = vld [vmem:[%s9674_s19 + $0x108] sm:$0xff] }
0x1fd7   : > { %7140 = vmatprep.mubr.f32.mxu0 %v4749_v53  ;;  %7150 = vmatpush3.msra.mxu0 %v4070_v24  ;;  %v6570_v53 = vld [vmem:[%s9674_s19 + $0x110] sm:$0xff] }
0x1fd8   : > { %7151 = vmatprep.subr.mxu0 %v4069_v16 }
0x1fd9   : > { %7152 = vmatpush3.msra.mxu0 %v4069_v16 }
0x1fda   : > { %7141 = vmatmul.mubr.f32.gmra.mxu0 %v4750_v51  ;;  %7181 = vmatprep.subr.msk.mxu0 %vm4100_vm10, %v5170_v12  ;;  %v6575_v51 = vld [vmem:[%s9674_s19 + $0x138] sm:$0xff] }
0x1fdb   : > { %7143 = vmatprep.mubr.f32.mxu0 %v4751_v35 }
0x1fde   : > { %7144 = vmatmul.mubr.f32.gmra.mxu0 %v4752_v28 }
0x2040   : > { %v4736_v17 = vpop.xlane.xlu0 %4735 }
0x2041   : > { %7557 = vrcp.f32 %v4736_v17 }
0x2044   : > { %v4738_v41 = vpop.xlane.xlu1 %4737 }
0x2045   : > { %7559 = vrcp.f32 %v4738_v41 }
0x204e   : > { %v7558_v21 = vpop.eup %7557 }
0x204f   : > { %v4753_v36 = vmul.f32 %v7558_v21, %v9954_v59 }
0x2051   : > { %6549 = vst [vmem:[%s7883_s20 + $0x70] sm:$0xff] %v4753_v36  ;;  %7146 = vmatprep.mubr.f32.mxu0 %v4753_v36 }
0x2052   : > { %v7560_v9 = vpop.eup %7559 }
0x2053   : > { %v4754_v46 = vmul.f32 %v7560_v9, %v9958_v23 }
0x2055   : > { %6550 = vst [vmem:[%s7883_s20 + $0x78] sm:$0xff] %v4754_v46  ;;  %7147 = vmatmul.mubr.f32.gmra.mxu0 %v4754_v46 }
0x2075   : > { %v7051_v4 = vpop.f32.mrf.mxu0 }
0x2077   : > { %v4440_v1 = vpop.f32.mrf.mxu0 }
0x2078   : > { %7169 = vmatprep.mubr.msk.f32.mxu1 %vm4100_vm10, %v4440_v1 }
0x2079   : > { %7170 = vmatmul.mubr.msk.f32.vlgmr.msra.gmra.mxu1 %vm4100_vm10, %v7051_v4 }
0x207e   : > { %v7054_v63 = vpop.f32.mrf.mxu0 }
0x2080   : > { %v4450_v6 = vpop.f32.mrf.mxu0 }
0x2081   : > { %7172 = vmatprep.mubr.msk.f32.mxu1 %vm4100_vm10, %v4450_v6 }
0x2082   : > { %v7057_v48 = vpop.f32.mrf.mxu0  ;;  %7173 = vmatmul.mubr.msk.f32.gmra.mxu1 %vm4100_vm10, %v7054_v63 }
0x2084   : > { %v4460_v59 = vpop.f32.mrf.mxu0 }
0x2085   : > { %7175 = vmatprep.mubr.msk.f32.mxu1 %vm4100_vm10, %v4460_v59 }
0x2086   : > { %v7060_v40 = vpop.f32.mrf.mxu0  ;;  %7176 = vmatmul.mubr.msk.f32.gmra.mxu1 %vm4100_vm10, %v7057_v48 }
0x2088   : > { %v4470_v23 = vpop.f32.mrf.mxu0 }
0x2089   : > { %7178 = vmatprep.mubr.msk.f32.mxu1 %vm4100_vm10, %v4470_v23 }
0x208a   : > { %7179 = vmatmul.mubr.msk.f32.gmra.mxu1 %vm4100_vm10, %v7060_v40 }
0x2096   : > { %v7139_v37 = vpop.f32.mrf.mxu0 }
0x2098   : > { %v4847_v0 = vpop.f32.mrf.mxu0 }
0x2099   : > { %7153 = vmatprep.mubr.msk.f32.mxu0 %vm4100_vm10, %v4847_v0 }
0x209a   : > { %v7142_v34 = vpop.f32.mrf.mxu0  ;;  %7154 = vmatmul.mubr.msk.f32.vlgmr.msra.gmra.mxu0 %vm4100_vm10, %v7139_v37 }
0x209b   : > { %7182 = vmatpush3.xpose.msk.msra.mxu0 %vm4100_vm10, %v5170_v12 }
0x209c   : > { %v4857_v31 = vpop.f32.mrf.mxu0  ;;  %7183 = vmatprep.subr.msk.mxu0 %vm4100_vm10, %v5169_v3 }
0x209d   : > { %7156 = vmatprep.mubr.msk.f32.mxu0 %vm4100_vm10, %v4857_v31 }
0x209e   : > { %v7145_v15 = vpop.f32.mrf.mxu0  ;;  %7157 = vmatmul.mubr.msk.f32.gmra.mxu0 %vm4100_vm10, %v7142_v34 }
0x209f   : > { %7184 = vmatpush3.xpose.msk.msra.mxu0 %vm4100_vm10, %v5169_v3 }
0x20a0   : > { %v4867_v39 = vpop.f32.mrf.mxu0  ;;  %7185 = vmatprep.subr.msk.mxu0 %vm4100_vm10, %v5168_v8 }
0x20a1   : > { %7159 = vmatprep.mubr.msk.f32.mxu0 %vm4100_vm10, %v4867_v39 }
0x20a2   : > { %7160 = vmatmul.mubr.msk.f32.gmra.mxu0 %vm4100_vm10, %v7145_v15 }
0x20a3   : > { %7186 = vmatpush3.xpose.msk.msra.mxu0 %vm4100_vm10, %v5168_v8 }
0x20a4   : > { %7187 = vmatprep.subr.msk.mxu0 %vm4100_vm10, %v5167_v55 }
0x20a7   : > { %7188 = vmatpush3.xpose.msk.msra.mxu0 %vm4100_vm10, %v5167_v55 }
0x20a8   : > { %7189 = vmatprep.subr.msk.mxu0 %vm4100_vm10, %v5166_v27 }
0x20ab   : > { %7190 = vmatpush3.xpose.msk.msra.mxu0 %vm4100_vm10, %v5166_v27  ;;  %v5445_v27 = vld [vmem:[#allocation4 + $0x178] sm:$0xff] }
0x20ac   : > { %7191 = vmatprep.subr.msk.mxu0 %vm4100_vm10, %v5165_v45  ;;  %7225 = vmatprep.subr.mxu1 %v5445_v27 }
0x20ad   : > { %7226 = vmatpush3.msra.mxu1 %v5445_v27  ;;  %v4072_v27 = vld [vmem:[%s10357_s3 + $0x28] sm:$0xff] }
0x20af   : > { %7192 = vmatpush3.xpose.msk.msra.mxu0 %vm4100_vm10, %v5165_v45  ;;  %v5444_v45 = vld [vmem:[#allocation4 + $0x170] sm:$0xff] }
0x20b0   : > { %7193 = vmatprep.subr.msk.mxu0 %vm4100_vm10, %v5164_v61  ;;  %7227 = vmatprep.subr.mxu1 %v5444_v45 }
0x20b1   : > { %7228 = vmatpush3.msra.mxu1 %v5444_v45 }
0x20b3   : > { %7194 = vmatpush3.xpose.msk.msra.mxu0 %vm4100_vm10, %v5164_v61  ;;  %v5443_v61 = vld [vmem:[#allocation4 + $0x168] sm:$0xff] }
0x20b4   : > { %7195 = vmatprep.subr.msk.mxu0 %vm4100_vm10, %v5163_v56  ;;  %7229 = vmatprep.subr.mxu1 %v5443_v61 }
0x20b5   : > { %7230 = vmatpush3.msra.mxu1 %v5443_v61 }
0x20b7   : > { %7196 = vmatpush3.xpose.msk.msra.mxu0 %vm4100_vm10, %v5163_v56  ;;  %v5442_v56 = vld [vmem:[#allocation4 + $0x160] sm:$0xff] }
0x20b8   : > { %7197 = vmatprep.subr.msk.mxu0 %vm4100_vm10, %v5162_v47  ;;  %7231 = vmatprep.subr.mxu1 %v5442_v56 }
0x20b9   : > { %7232 = vmatpush3.msra.mxu1 %v5442_v56 }
0x20bb   : > { %7198 = vmatpush3.xpose.msk.msra.mxu0 %vm4100_vm10, %v5162_v47  ;;  %v5441_v47 = vld [vmem:[#allocation4 + $0x158] sm:$0xff] }
0x20bc   : > { %7199 = vmatprep.subr.msk.mxu0 %vm4100_vm10, %v5161_v11  ;;  %7233 = vmatprep.subr.mxu1 %v5441_v47 }
0x20bd   : > { %7234 = vmatpush3.msra.mxu1 %v5441_v47 }
0x20bf   : > { %7200 = vmatpush3.xpose.msk.msra.mxu0 %vm4100_vm10, %v5161_v11  ;;  %v5440_v11 = vld [vmem:[#allocation4 + $0x150] sm:$0xff] }
0x20c0   : > { %7201 = vmatprep.subr.msk.mxu0 %vm4100_vm10, %v5160_v26  ;;  %7235 = vmatprep.subr.mxu1 %v5440_v11 }
0x20c1   : > { %7236 = vmatpush3.msra.mxu1 %v5440_v11 }
0x20c3   : > { %7202 = vmatpush3.xpose.msk.msra.mxu0 %vm4100_vm10, %v5160_v26  ;;  %v5439_v26 = vld [vmem:[#allocation4 + $0x148] sm:$0xff] }
0x20c4   : > { %7203 = vmatprep.subr.msk.mxu0 %vm4100_vm10, %v5159_v20  ;;  %7237 = vmatprep.subr.mxu1 %v5439_v26 }
0x20c5   : > { %7238 = vmatpush3.msra.mxu1 %v5439_v26 }
0x20c7   : > { %7204 = vmatpush3.xpose.msk.msra.mxu0 %vm4100_vm10, %v5159_v20 }
0x20c8   : > { %7205 = vmatprep.subr.msk.mxu0 %vm4100_vm10, %v5158_v10 }
0x20cb   : > { %7206 = vmatpush3.xpose.msk.msra.mxu0 %vm4100_vm10, %v5158_v10 }
0x20cc   : > { %7207 = vmatprep.subr.msk.mxu0 %vm4100_vm10, %v5157_v13 }
0x20cf   : > { %7208 = vmatpush3.xpose.msk.msra.mxu0 %vm4100_vm10, %v5157_v13 }
0x20d0   : > { %7209 = vmatprep.subr.msk.mxu0 %vm4100_vm10, %v5156_v33 }
0x20d3   : > { %7210 = vmatpush3.xpose.msk.msra.mxu0 %vm4100_vm10, %v5156_v33 }
0x20d4   : > { %7211 = vmatprep.subr.msk.mxu0 %vm4100_vm10, %v5155_v50 }
0x20d7   : > { %7212 = vmatpush3.xpose.msk.msra.mxu0 %vm4100_vm10, %v5155_v50 }
0x2115   : > { %v7148_v43 = vpop.f32.mrf.mxu0 }
0x2117   : > { %v4877_v2 = vpop.f32.mrf.mxu0 }
0x2118   : > { %7162 = vmatprep.mubr.msk.f32.mxu0 %vm4100_vm10, %v4877_v2 }
0x2119   : > { %7163 = vmatmul.mubr.msk.f32.gmra.mxu0 %vm4100_vm10, %v7148_v43 }
0x211a   : > { %7213 = vmatprep.mubr.msk.f32.mxu0 %vm4100_vm10, %v6568_v42 }
0x211d   : > { %7214 = vmatmul.mubr.msk.f32.vlgmr.msra.gmra.mxu0 %vm4100_vm10, %v6569_v58 }
0x211e   : > { %7216 = vmatprep.mubr.msk.f32.mxu0 %vm4100_vm10, %v6570_v53 }
0x2121   : > { %7217 = vmatmul.mubr.msk.f32.gmra.mxu0 %vm4100_vm10, %v6571_v54 }
0x2122   : > { %7219 = vmatprep.mubr.msk.f32.mxu0 %vm4100_vm10, %v6572_v49 }
0x2125   : > { %7220 = vmatmul.mubr.msk.f32.gmra.mxu0 %vm4100_vm10, %v6573_v22 }
0x2126   : > { %7222 = vmatprep.mubr.msk.f32.mxu0 %vm4100_vm10, %v6574_v19 }
0x2129   : > { %7223 = vmatmul.mubr.msk.f32.gmra.mxu0 %vm4100_vm10, %v6575_v51 }
0x2139   : > { %v7171_v35 = vpop.f32.mrf.mxu1 }
0x213b   : > { %v5105_v29 = vpop.f32.mrf.mxu1 }
0x2142   : > { %v7174_v60 = vpop.f32.mrf.mxu1 }
0x2144   : > { %v5115_v18 = vpop.f32.mrf.mxu1 }
0x2146   : > { %v7177_v41 = vpop.f32.mrf.mxu1 }
0x215a   : > { %v7155_v32 = vpop.f32.mrf.mxu0 }
0x215b   : > { %v10064_v28 = vadd.f32 %v7171_v35, %v7155_v32 }
0x215c   : > { %v4976_v57 = vpop.f32.mrf.mxu0 }
0x215d   : > { %v10066_v52 = vadd.f32 %v5105_v29, %v4976_v57 }
0x215e   : > { %v7158_v24 = vpop.f32.mrf.mxu0 }
0x215f   : > { %v10068_v16 = vadd.f32 %v7174_v60, %v7158_v24 }
0x2160   : > { %v4986_v12 = vpop.f32.mrf.mxu0 }
0x2161   : > { %v10070_v17 = vadd.f32 %v5115_v18, %v4986_v12 }
0x2162   : > { %v7161_v21 = vpop.f32.mrf.mxu0 }
0x2163   : > { %v10072_v36 = vadd.f32 %v7177_v41, %v7161_v21 }
0x2164   : > { %v10074_v9 = vpop.f32.mrf.mxu0 }
0x21d9   : > { %v10076_v46 = vpop.f32.mrf.mxu0 }
0x21db   : > { %v10078_v4 = vpop.f32.mrf.mxu0 }
0x21dd   : > { %v7215_v1 = vpop.f32.mrf.mxu0 }
0x21de   : > { %v5315_v63 = vadd.f32 %v7215_v1, %v9792_v62 }
0x21df   : > { %v5309_v6 = vpop.f32.mrf.mxu0 }
0x21e0   : > { %v5310_v48 = vadd.f32 %v5309_v6, %v9778_v5  ;;  %5350 = vmax.xlane.f32.xlu1 %v5315_v63 }
0x21e1   : > { %v7218_v59 = vpop.f32.mrf.mxu0 }
0x21e2   : > { %v5325_v40 = vadd.f32 %v7218_v59, %v9813_v30  ;;  %5348 = vmax.xlane.f32.xlu0 %v5310_v48 }
0x21e3   : > { %v5319_v23 = vpop.f32.mrf.mxu0 }
0x21e4   : > { %v5320_v37 = vadd.f32 %v5319_v23, %v9795_v44  ;;  %5354 = vmax.xlane.f32.xlu1 %v5325_v40 }
0x21e5   : > { %v7221_v0 = vpop.f32.mrf.mxu0 }
0x21e6   : > { %v5335_v3 = vadd.f32 %v7221_v0, %v9833_v38  ;;  %5352 = vmax.xlane.f32.xlu0 %v5320_v37 }
0x21e7   : > { %v5329_v34 = vpop.f32.mrf.mxu0 }
0x21e8   : > { %v5330_v31 = vadd.f32 %v5329_v34, %v9816_v7  ;;  %5358 = vmax.xlane.f32.xlu1 %v5335_v3  ;;  %v5435_v34 = vld [vmem:[#allocation4 + $0x128] sm:$0xff] }
0x21e9   : > { %v7224_v8 = vpop.f32.mrf.mxu0 }
0x21ea   : > { %v5345_v15 = vadd.f32 %v7224_v8, %v9852_v14  ;;  %5356 = vmax.xlane.f32.xlu0 %v5330_v31  ;;  %v5433_v8 = vld [vmem:[#allocation4 + $0x118] sm:$0xff] }
0x21eb   : > { %v5339_v39 = vpop.f32.mrf.mxu0 }
0x21ec   : > { %v5340_v55 = vadd.f32 %v5339_v39, %v9837_v25  ;;  %5362 = vmax.xlane.f32.xlu1 %v5345_v15  ;;  %v5431_v39 = vld [vmem:[#allocation4 + $0x108] sm:$0xff] }
0x21ee   : > { %5360 = vmax.xlane.f32.xlu0 %v5340_v55 }
0x2269   : > { %v5351_v20 = vpop.xlane.xlu1 %5350 }
0x226a   : > { %v5365_v10 = vsub.f32 %v5315_v63, %v5351_v20 }
0x226b   : > { %v5349_v13 = vpop.xlane.xlu0 %5348 }
0x226c   : > { %v5374_v33 = vmul.f32 1.442695, %v5365_v10  ;;  %v5364_v50 = vsub.f32 %v5310_v48, %v5349_v13 }
0x226d   : > { %v5355_v43 = vpop.xlane.xlu1 %5354 }
0x226e   : > { %7561 = vpow2.f32 %v5374_v33  ;;  %v5372_v2 = vmul.f32 1.442695, %v5364_v50  ;;  %v5367_v42 = vsub.f32 %v5325_v40, %v5355_v43  ;;  %v5438_v40 = vld [vmem:[#allocation4 + $0x140] sm:$0xff] }
0x226f   : > { %v5353_v58 = vpop.xlane.xlu0 %5352  ;;  %7239 = vmatprep.subr.mxu1 %v5438_v40 }
0x2270   : > { %7563 = vpow2.f32 %v5372_v2  ;;  %v5378_v53 = vmul.f32 1.442695, %v5367_v42  ;;  %v5366_v54 = vsub.f32 %v5320_v37, %v5353_v58  ;;  %7240 = vmatpush3.msra.mxu1 %v5438_v40  ;;  %v5437_v37 = vld [vmem:[#allocation4 + $0x138] sm:$0xff]  ;;  %v4071_v58 = vld [vmem:[%s10357_s3 + $0x20] sm:$0xff] }
0x2271   : > { %v5359_v49 = vpop.xlane.xlu1 %5358  ;;  %7241 = vmatprep.subr.mxu1 %v5437_v37 }
0x2272   : > { %7565 = vpow2.f32 %v5378_v53  ;;  %v5376_v22 = vmul.f32 1.442695, %v5366_v54  ;;  %v5369_v19 = vsub.f32 %v5335_v3, %v5359_v49  ;;  %7242 = vmatpush3.msra.mxu1 %v5437_v37  ;;  %v5436_v3 = vld [vmem:[#allocation4 + $0x130] sm:$0xff] }
0x2273   : > { %v5357_v51 = vpop.xlane.xlu0 %5356  ;;  %7243 = vmatprep.subr.mxu1 %v5436_v3 }
0x2274   : > { %7567 = vpow2.f32 %v5376_v22  ;;  %v5382_v35 = vmul.f32 1.442695, %v5369_v19  ;;  %v5368_v29 = vsub.f32 %v5330_v31, %v5357_v51  ;;  %7244 = vmatpush3.msra.mxu1 %v5436_v3  ;;  %v5434_v31 = vld [vmem:[#allocation4 + $0x120] sm:$0xff] }
0x2275   : > { %v5363_v60 = vpop.xlane.xlu1 %5362  ;;  %7245 = vmatprep.subr.mxu1 %v5435_v34  ;;  %v6617_v3 = vld [vmem:[%s9674_s19 + $0x180] sm:$0xff] }
0x2276   : > { %7569 = vpow2.f32 %v5382_v35  ;;  %v5380_v32 = vmul.f32 1.442695, %v5368_v29  ;;  %v5371_v57 = vsub.f32 %v5345_v15, %v5363_v60  ;;  %7246 = vmatpush3.msra.mxu1 %v5435_v34  ;;  %v5432_v15 = vld [vmem:[#allocation4 + $0x110] sm:$0xff]  ;;  %v5710_v34 = vld [vmem:[#allocation3 + $0x1d8] sm:$0xff] }
0x2277   : > { %v5361_v18 = vpop.xlane.xlu0 %5360  ;;  %7247 = vmatprep.subr.mxu1 %v5434_v31 }
0x2278   : > { %7571 = vpow2.f32 %v5380_v32  ;;  %v5386_v24 = vmul.f32 1.442695, %v5371_v57  ;;  %v5370_v12 = vsub.f32 %v5340_v55, %v5361_v18  ;;  %7248 = vmatpush3.msra.mxu1 %v5434_v31  ;;  %v5430_v55 = vld [vmem:[#allocation4 + $0x100] sm:$0xff]  ;;  %v5714_v57 = vld [vmem:[#allocation3 + $0x1f8] sm:$0xff]  ;;  %v10131_v18 = vpop.f32.mrf.mxu1  ;;  %v5709_v31 = vld [vmem:[#allocation3 + $0x1d0] sm:$0xff] }
0x2279   : > { %7249 = vmatprep.subr.mxu1 %v5433_v8 }
0x227a   : > { %7573 = vpow2.f32 %v5386_v24  ;;  %v5384_v41 = vmul.f32 1.442695, %v5370_v12  ;;  %7250 = vmatpush3.msra.mxu1 %v5433_v8  ;;  %v10133_v24 = vpop.f32.mrf.mxu1  ;;  %v5708_v8 = vld [vmem:[#allocation3 + $0x1c8] sm:$0xff] }
0x227b   : > { %v10088_v21 = vpop.eup %7561  ;;  %7251 = vmatprep.subr.mxu1 %v5432_v15 }
0x227c   : > { %7575 = vpow2.f32 %v5384_v41  ;;  %5390 = vadd.xlane.f32.xlu1 %v10088_v21  ;;  %7252 = vmatpush3.msra.mxu1 %v5432_v15  ;;  %v10135_v12 = vpop.f32.mrf.mxu1  ;;  %v5707_v15 = vld [vmem:[#allocation3 + $0x1c0] sm:$0xff] }
0x227d   : > { %v7564_v1 = vpop.eup %7563  ;;  %7253 = vmatprep.subr.mxu1 %v5431_v39 }
0x227e   : > { %5388 = vadd.xlane.f32.xlu0 %v7564_v1  ;;  %7254 = vmatpush3.msra.mxu1 %v5431_v39  ;;  %v5706_v39 = vld [vmem:[#allocation3 + $0x1b8] sm:$0xff] }
0x227f   : > { %v10091_v63 = vpop.eup %7565  ;;  %7255 = vmatprep.subr.mxu1 %v5430_v55 }
0x2280   : > { %5394 = vadd.xlane.f32.xlu1 %v10091_v63  ;;  %7256 = vmatpush3.msra.mxu1 %v5430_v55  ;;  %v5705_v55 = vld [vmem:[#allocation3 + $0x1b0] sm:$0xff] }
0x2281   : > { %v10094_v6 = vpop.eup %7567  ;;  %7269 = vmatprep.subr.mxu1 %v4072_v27 }
0x2282   : > { %5392 = vadd.xlane.f32.xlu0 %v10094_v6 }
0x2283   : > { %v10097_v48 = vpop.eup %7569 }
0x2284   : > { %5398 = vadd.xlane.f32.xlu1 %v10097_v48 }
0x2285   : > { %v10100_v59 = vpop.eup %7571 }
0x2286   : > { %5396 = vadd.xlane.f32.xlu0 %v10100_v59 }
0x2287   : > { %v10103_v23 = vpop.eup %7573 }
0x2288   : > { %5402 = vadd.xlane.f32.xlu1 %v10103_v23 }
0x2289   : > { %v10106_v0 = vpop.eup %7575 }
0x228a   : > { %5400 = vadd.xlane.f32.xlu0 %v10106_v0 }
0x2305   : > { %v5391_v45 = vpop.xlane.xlu1 %5390 }
0x2306   : > { %7577 = vrcp.f32 %v5391_v45  ;;  %v5703_v45 = vld [vmem:[#allocation3 + $0x1a0] sm:$0xff] }
0x2307   : > { %v5389_v61 = vpop.xlane.xlu0 %5388 }
0x2308   : > { %7579 = vrcp.f32 %v5389_v61  ;;  %v5702_v61 = vld [vmem:[#allocation3 + $0x198] sm:$0xff] }
0x2309   : > { %v5395_v56 = vpop.xlane.xlu1 %5394 }
0x230a   : > { %7581 = vrcp.f32 %v5395_v56  ;;  %v5701_v56 = vld [vmem:[#allocation3 + $0x190] sm:$0xff] }
0x230b   : > { %v5393_v47 = vpop.xlane.xlu0 %5392 }
0x230c   : > { %7583 = vrcp.f32 %v5393_v47  ;;  %v5700_v47 = vld [vmem:[#allocation3 + $0x188] sm:$0xff] }
0x230d   : > { %v5399_v11 = vpop.xlane.xlu1 %5398 }
0x230e   : > { %7585 = vrcp.f32 %v5399_v11  ;;  %v5699_v11 = vld [vmem:[#allocation3 + $0x180] sm:$0xff] }
0x230f   : > { %v5397_v26 = vpop.xlane.xlu0 %5396 }
0x2310   : > { %7587 = vrcp.f32 %v5397_v26  ;;  %v6618_v26 = vld [vmem:[%s9674_s19 + $0x188] sm:$0xff] }
0x2311   : > { %v5403_v20 = vpop.xlane.xlu1 %5402 }
0x2312   : > { %7589 = vrcp.f32 %v5403_v20  ;;  %v6619_v20 = vld [vmem:[%s9674_s19 + $0x190] sm:$0xff] }
0x2313   : > { %v7578_v10 = vpop.eup %7577  ;;  %v5401_v13 = vpop.xlane.xlu0 %5400 }
0x2314   : > { %7591 = vrcp.f32 %v5401_v13  ;;  %v5413_v33 = vmul.f32 %v7578_v10, %v10088_v21  ;;  %v6620_v10 = vld [vmem:[%s9674_s19 + $0x198] sm:$0xff]  ;;  %v6621_v13 = vld [vmem:[%s9674_s19 + $0x1a0] sm:$0xff] }
0x2315   : > { %v7580_v50 = vpop.eup %7579 }
0x2316   : > { %v5412_v43 = vmul.f32 %v7580_v50, %v7564_v1  ;;  %6601 = vst [vmem:[%s7883_s20 + $0x88] sm:$0xff] %v5413_v33  ;;  %v5713_v1 = vld [vmem:[#allocation3 + $0x1f0] sm:$0xff] }
0x2317   : > { %v7582_v2 = vpop.eup %7581  ;;  %v6623_v50 = vld [vmem:[%s9674_s19 + $0x1b0] sm:$0xff] }
0x2318   : > { %6600 = vst [vmem:[%s7883_s20 + $0x80] sm:$0xff] %v5412_v43  ;;  %7257 = vmatprep.mubr.f32.mxu1 %v5412_v43  ;;  %v5415_v42 = vmul.f32 %v7582_v2, %v10091_v63  ;;  %v6624_v43 = vld [vmem:[%s9674_s19 + $0x1b8] sm:$0xff] }
0x2319   : > { %v7584_v53 = vpop.eup %7583  ;;  %7258 = vmatmul.mubr.f32.vlgmr.msra.gmra.mxu1 %v5413_v33  ;;  %v6622_v33 = vld [vmem:[%s9674_s19 + $0x1a8] sm:$0xff] }
0x231a   : > { %v5414_v54 = vmul.f32 %v7584_v53, %v10094_v6  ;;  %6603 = vst [vmem:[%s7883_s20 + $0x98] sm:$0xff] %v5415_v42  ;;  %7270 = vmatpush3.msra.mxu1 %v4072_v27  ;;  %v5704_v27 = vld [vmem:[#allocation3 + $0x1a8] sm:$0xff] }
0x231b   : > { %v7586_v49 = vpop.eup %7585  ;;  %7271 = vmatprep.subr.mxu1 %v4071_v58 }
0x231c   : > { %6602 = vst [vmem:[%s7883_s20 + $0x90] sm:$0xff] %v5414_v54  ;;  %7260 = vmatprep.mubr.f32.mxu1 %v5414_v54  ;;  %v5417_v22 = vmul.f32 %v7586_v49, %v10097_v48  ;;  %7272 = vmatpush3.msra.mxu1 %v4071_v58  ;;  %v5712_v48 = vld [vmem:[#allocation3 + $0x1e8] sm:$0xff] }
0x231d   : > { %v7588_v19 = vpop.eup %7587  ;;  %7261 = vmatmul.mubr.f32.gmra.mxu1 %v5415_v42  ;;  %7285 = vmatprep.subr.msk.mxu1 %vm4100_vm10, %v5714_v57 }
0x231e   : > { %v5416_v51 = vmul.f32 %v7588_v19, %v10100_v59  ;;  %6605 = vst [vmem:[%s7883_s20 + $0xa8] sm:$0xff] %v5417_v22 }
0x231f   : > { %v7590_v35 = vpop.eup %7589 }
0x2320   : > { %6604 = vst [vmem:[%s7883_s20 + $0xa0] sm:$0xff] %v5416_v51  ;;  %7263 = vmatprep.mubr.f32.mxu1 %v5416_v51  ;;  %v5419_v29 = vmul.f32 %v7590_v35, %v10103_v23  ;;  %v5711_v23 = vld [vmem:[#allocation3 + $0x1e0] sm:$0xff]  ;;  %v5126_v35 = vadd.f32 %v10131_v18, %v10074_v9 }
0x2321   : > { %v7592_v60 = vpop.eup %7591  ;;  %7264 = vmatmul.mubr.f32.gmra.mxu1 %v5417_v22 }
0x2322   : > { %v5418_v32 = vmul.f32 %v7592_v60, %v10106_v0  ;;  %6607 = vst [vmem:[%s7883_s20 + $0xb8] sm:$0xff] %v5419_v29 }
0x2324   : > { %6606 = vst [vmem:[%s7883_s20 + $0xb0] sm:$0xff] %v5418_v32  ;;  %7266 = vmatprep.mubr.f32.mxu1 %v5418_v32 }
0x2325   : > { %7267 = vmatmul.mubr.f32.gmra.mxu1 %v5419_v29 }
0x23d9   : > { %v7259_v41 = vpop.f32.mrf.mxu1 }
0x23db   : > { %v5512_v21 = vpop.f32.mrf.mxu1 }
0x23dc   : > { %7273 = vmatprep.mubr.msk.f32.mxu1 %vm4100_vm10, %v5512_v21 }
0x23dd   : > { %v7262_v63 = vpop.f32.mrf.mxu1  ;;  %7274 = vmatmul.mubr.msk.f32.vlgmr.msra.gmra.mxu1 %vm4100_vm10, %v7259_v41 }
0x23de   : > { %7286 = vmatpush3.xpose.msk.msra.mxu1 %vm4100_vm10, %v5714_v57 }
0x23df   : > { %v5522_v6 = vpop.f32.mrf.mxu1  ;;  %7287 = vmatprep.subr.msk.mxu1 %vm4100_vm10, %v5713_v1 }
0x23e0   : > { %7276 = vmatprep.mubr.msk.f32.mxu1 %vm4100_vm10, %v5522_v6 }
0x23e1   : > { %v7265_v59 = vpop.f32.mrf.mxu1  ;;  %7277 = vmatmul.mubr.msk.f32.gmra.mxu1 %vm4100_vm10, %v7262_v63 }
0x23e2   : > { %7288 = vmatpush3.xpose.msk.msra.mxu1 %vm4100_vm10, %v5713_v1 }
0x23e3   : > { %v5532_v40 = vpop.f32.mrf.mxu1  ;;  %7289 = vmatprep.subr.msk.mxu1 %vm4100_vm10, %v5712_v48 }
0x23e4   : > { %7279 = vmatprep.mubr.msk.f32.mxu1 %vm4100_vm10, %v5532_v40  ;;  %v5989_v40 = vld [vmem:[#allocation4 + $0x1f8] sm:$0xff] }
0x23e5   : > { %v7268_v37 = vpop.f32.mrf.mxu1  ;;  %7280 = vmatmul.mubr.msk.f32.gmra.mxu1 %vm4100_vm10, %v7265_v59  ;;  %7329 = vmatprep.subr.mxu0 %v5989_v40 }
0x23e6   : > { %7290 = vmatpush3.xpose.msk.msra.mxu1 %vm4100_vm10, %v5712_v48  ;;  %7330 = vmatpush3.msra.mxu0 %v5989_v40 }
0x23e7   : > { %v5542_v0 = vpop.f32.mrf.mxu1  ;;  %7291 = vmatprep.subr.msk.mxu1 %vm4100_vm10, %v5711_v23 }
0x23e8   : > { %7282 = vmatprep.mubr.msk.f32.mxu1 %vm4100_vm10, %v5542_v0 }
0x23e9   : > { %7283 = vmatmul.mubr.msk.f32.gmra.mxu1 %vm4100_vm10, %v7268_v37  ;;  %v5983_v37 = vld [vmem:[#allocation4 + $0x1c8] sm:$0xff] }
0x23ea   : > { %7292 = vmatpush3.xpose.msk.msra.mxu1 %vm4100_vm10, %v5711_v23  ;;  %7317 = vmatprep.mubr.msk.f32.mxu1 %vm4100_vm10, %v6617_v3  ;;  %v5987_v23 = vld [vmem:[#allocation4 + $0x1e8] sm:$0xff] }
0x23eb   : > { %7293 = vmatprep.subr.msk.mxu1 %vm4100_vm10, %v5710_v34 }
0x23ee   : > { %7294 = vmatpush3.xpose.msk.msra.mxu1 %vm4100_vm10, %v5710_v34 }
0x23ef   : > { %7295 = vmatprep.subr.msk.mxu1 %vm4100_vm10, %v5709_v31 }
0x23f2   : > { %7296 = vmatpush3.xpose.msk.msra.mxu1 %vm4100_vm10, %v5709_v31 }
0x23f3   : > { %7297 = vmatprep.subr.msk.mxu1 %vm4100_vm10, %v5708_v8 }
0x23f6   : > { %7298 = vmatpush3.xpose.msk.msra.mxu1 %vm4100_vm10, %v5708_v8 }
0x23f7   : > { %7299 = vmatprep.subr.msk.mxu1 %vm4100_vm10, %v5707_v15 }
0x23fa   : > { %7300 = vmatpush3.xpose.msk.msra.mxu1 %vm4100_vm10, %v5707_v15 }
0x23fb   : > { %7301 = vmatprep.subr.msk.mxu1 %vm4100_vm10, %v5706_v39 }
0x23fe   : > { %7302 = vmatpush3.xpose.msk.msra.mxu1 %vm4100_vm10, %v5706_v39 }
0x23ff   : > { %7303 = vmatprep.subr.msk.mxu1 %vm4100_vm10, %v5705_v55 }
0x2402   : > { %7304 = vmatpush3.xpose.msk.msra.mxu1 %vm4100_vm10, %v5705_v55 }
0x2403   : > { %7305 = vmatprep.subr.msk.mxu1 %vm4100_vm10, %v5704_v27 }
0x2406   : > { %7306 = vmatpush3.xpose.msk.msra.mxu1 %vm4100_vm10, %v5704_v27 }
0x2407   : > { %7307 = vmatprep.subr.msk.mxu1 %vm4100_vm10, %v5703_v45 }
0x240a   : > { %7308 = vmatpush3.xpose.msk.msra.mxu1 %vm4100_vm10, %v5703_v45 }
0x240b   : > { %7309 = vmatprep.subr.msk.mxu1 %vm4100_vm10, %v5702_v61 }
0x240e   : > { %7310 = vmatpush3.xpose.msk.msra.mxu1 %vm4100_vm10, %v5702_v61 }
0x240f   : > { %7311 = vmatprep.subr.msk.mxu1 %vm4100_vm10, %v5701_v56 }
0x2412   : > { %7312 = vmatpush3.xpose.msk.msra.mxu1 %vm4100_vm10, %v5701_v56 }
0x2413   : > { %7313 = vmatprep.subr.msk.mxu1 %vm4100_vm10, %v5700_v47 }
0x2416   : > { %7314 = vmatpush3.xpose.msk.msra.mxu1 %vm4100_vm10, %v5700_v47 }
0x2417   : > { %7315 = vmatprep.subr.msk.mxu1 %vm4100_vm10, %v5699_v11 }
0x241a   : > { %7316 = vmatpush3.xpose.msk.msra.mxu1 %vm4100_vm10, %v5699_v11 }
0x241d   : > { %7318 = vmatmul.mubr.msk.f32.vlgmr.msra.gmra.mxu1 %vm4100_vm10, %v6618_v26 }
0x241e   : > { %7320 = vmatprep.mubr.msk.f32.mxu1 %vm4100_vm10, %v6619_v20 }
0x2421   : > { %7321 = vmatmul.mubr.msk.f32.gmra.mxu1 %vm4100_vm10, %v6620_v10 }
0x2422   : > { %7323 = vmatprep.mubr.msk.f32.mxu1 %vm4100_vm10, %v6621_v13 }
0x2425   : > { %7324 = vmatmul.mubr.msk.f32.gmra.mxu1 %vm4100_vm10, %v6622_v33 }
0x2426   : > { %7326 = vmatprep.mubr.msk.f32.mxu1 %vm4100_vm10, %v6623_v50 }
0x2429   : > { %7327 = vmatmul.mubr.msk.f32.gmra.mxu1 %vm4100_vm10, %v6624_v43 }
0x249d   : > { %v7275_v2 = vpop.f32.mrf.mxu1 }
0x249e   : > { %v10193_v42 = vadd.f32 %v7275_v2, %v10064_v28 }
0x249f   : > { %v5641_v58 = vpop.f32.mrf.mxu1 }
0x24a0   : > { %v10196_v53 = vadd.f32 %v5641_v58, %v10066_v52  ;;  %v5141_v52 = vadd.f32 %v10133_v24, %v10076_v46 }
0x24a1   : > { %v7278_v54 = vpop.f32.mrf.mxu1 }
0x24a2   : > { %v10199_v49 = vadd.f32 %v7278_v54, %v10068_v16  ;;  %v5136_v16 = vadd.f32 %v10135_v12, %v10078_v4 }
0x24a3   : > { %v5651_v22 = vpop.f32.mrf.mxu1 }
0x24a4   : > { %v10202_v19 = vadd.f32 %v5651_v22, %v10070_v17 }
0x24a5   : > { %v7281_v51 = vpop.f32.mrf.mxu1 }
0x24a6   : > { %v10207_v29 = vadd.f32 %v7281_v51, %v10072_v36 }
0x24a7   : > { %v5661_v28 = vpop.f32.mrf.mxu1 }
0x24a8   : > { %v10211_v60 = vadd.f32 %v5661_v28, %v5126_v35 }
0x24a9   : > { %v7284_v32 = vpop.f32.mrf.mxu1 }
0x24aa   : > { %v10215_v57 = vadd.f32 %v7284_v32, %v5141_v52  ;;  %v5982_v32 = vld [vmem:[#allocation4 + $0x1c0] sm:$0xff] }
0x24ab   : > { %v5671_v17 = vpop.f32.mrf.mxu1 }
0x24ac   : > { %v10217_v41 = vadd.f32 %v5671_v17, %v5136_v16  ;;  %v5981_v17 = vld [vmem:[#allocation4 + $0x1b8] sm:$0xff] }
0x24dd   : > { %v7319_v21 = vpop.f32.mrf.mxu1 }
0x24de   : > { %v5859_v9 = vadd.f32 %v7319_v21, %v9792_v62 }
0x24df   : > { %v5853_v36 = vpop.f32.mrf.mxu1 }
0x24e0   : > { %v5854_v18 = vadd.f32 %v5853_v36, %v9778_v5  ;;  %5894 = vmax.xlane.f32.xlu1 %v5859_v9  ;;  %v5979_v36 = vld [vmem:[#allocation4 + $0x1a8] sm:$0xff] }
0x24e1   : > { %v7322_v1 = vpop.f32.mrf.mxu1 }
0x24e2   : > { %v5869_v46 = vadd.f32 %v7322_v1, %v9813_v30  ;;  %5892 = vmax.xlane.f32.xlu0 %v5854_v18  ;;  %v5977_v1 = vld [vmem:[#allocation4 + $0x198] sm:$0xff] }
0x24e3   : > { %v5863_v24 = vpop.f32.mrf.mxu1 }
0x24e4   : > { %v5864_v63 = vadd.f32 %v5863_v24, %v9795_v44  ;;  %5898 = vmax.xlane.f32.xlu1 %v5869_v46  ;;  %v5988_v44 = vld [vmem:[#allocation4 + $0x1f0] sm:$0xff]  ;;  %v5975_v24 = vld [vmem:[#allocation4 + $0x188] sm:$0xff] }
0x24e5   : > { %v7325_v4 = vpop.f32.mrf.mxu1  ;;  %7331 = vmatprep.subr.mxu0 %v5988_v44 }
0x24e6   : > { %v5879_v12 = vadd.f32 %v7325_v4, %v9833_v38  ;;  %5896 = vmax.xlane.f32.xlu0 %v5864_v63  ;;  %7332 = vmatpush3.msra.mxu0 %v5988_v44  ;;  %v5986_v38 = vld [vmem:[#allocation4 + $0x1e0] sm:$0xff]  ;;  %v4074_v4 = vld [vmem:[%s10357_s3 + $0x38] sm:$0xff] }
0x24e7   : > { %v5873_v6 = vpop.f32.mrf.mxu1  ;;  %7333 = vmatprep.subr.mxu0 %v5987_v23 }
0x24e8   : > { %v5874_v48 = vadd.f32 %v5873_v6, %v9816_v7  ;;  %5902 = vmax.xlane.f32.xlu1 %v5879_v12  ;;  %7334 = vmatpush3.msra.mxu0 %v5987_v23  ;;  %v5985_v7 = vld [vmem:[#allocation4 + $0x1d8] sm:$0xff] }
0x24e9   : > { %v7328_v62 = vpop.f32.mrf.mxu1  ;;  %7335 = vmatprep.subr.mxu0 %v5986_v38 }
0x24ea   : > { %v5889_v5 = vadd.f32 %v7328_v62, %v9852_v14  ;;  %5900 = vmax.xlane.f32.xlu0 %v5874_v48  ;;  %7336 = vmatpush3.msra.mxu0 %v5986_v38  ;;  %v5984_v14 = vld [vmem:[#allocation4 + $0x1d0] sm:$0xff] }
0x24eb   : > { %v5883_v59 = vpop.f32.mrf.mxu1  ;;  %7337 = vmatprep.subr.mxu0 %v5985_v7 }
0x24ec   : > { %v5884_v30 = vadd.f32 %v5883_v59, %v9837_v25  ;;  %5906 = vmax.xlane.f32.xlu1 %v5889_v5  ;;  %7338 = vmatpush3.msra.mxu0 %v5985_v7 }
0x24ed   : > { %7339 = vmatprep.subr.mxu0 %v5984_v14 }
0x24ee   : > { %5904 = vmax.xlane.f32.xlu0 %v5884_v30  ;;  %7340 = vmatpush3.msra.mxu0 %v5984_v14 }
0x24ef   : > { %7341 = vmatprep.subr.mxu0 %v5983_v37 }
0x24f0   : > { %7342 = vmatpush3.msra.mxu0 %v5983_v37 }
0x24f1   : > { %7343 = vmatprep.subr.mxu0 %v5982_v32 }
0x24f2   : > { %7344 = vmatpush3.msra.mxu0 %v5982_v32 }
0x24f3   : > { %7345 = vmatprep.subr.mxu0 %v5981_v17 }
0x24f4   : > { %7346 = vmatpush3.msra.mxu0 %v5981_v17 }
0x2569   : > { %v5895_v25 = vpop.xlane.xlu1 %5894 }
0x256a   : > { %v5909_v0 = vsub.f32 %v5859_v9, %v5895_v25  ;;  %v5980_v9 = vld [vmem:[#allocation4 + $0x1b0] sm:$0xff] }
0x256b   : > { %v5893_v3 = vpop.xlane.xlu0 %5892  ;;  %7347 = vmatprep.subr.mxu0 %v5980_v9  ;;  %v4073_v25 = vld [vmem:[%s10357_s3 + $0x30] sm:$0xff] }
0x256c   : > { %v5918_v34 = vmul.f32 1.442695, %v5909_v0  ;;  %v5908_v31 = vsub.f32 %v5854_v18, %v5893_v3  ;;  %7348 = vmatpush3.msra.mxu0 %v5980_v9  ;;  %v5978_v18 = vld [vmem:[#allocation4 + $0x1a0] sm:$0xff] }
0x256d   : > { %v5899_v8 = vpop.xlane.xlu1 %5898  ;;  %7349 = vmatprep.subr.mxu0 %v5979_v36 }
0x256e   : > { %7593 = vpow2.f32 %v5918_v34  ;;  %v5916_v15 = vmul.f32 1.442695, %v5908_v31  ;;  %v5911_v39 = vsub.f32 %v5869_v46, %v5899_v8  ;;  %7350 = vmatpush3.msra.mxu0 %v5979_v36  ;;  %v5976_v46 = vld [vmem:[#allocation4 + $0x190] sm:$0xff] }
0x256f   : > { %v5897_v55 = vpop.xlane.xlu0 %5896  ;;  %7351 = vmatprep.subr.mxu0 %v5978_v18 }
0x2570   : > { %7595 = vpow2.f32 %v5916_v15  ;;  %v5922_v27 = vmul.f32 1.442695, %v5911_v39  ;;  %v5910_v45 = vsub.f32 %v5864_v63, %v5897_v55  ;;  %7352 = vmatpush3.msra.mxu0 %v5978_v18  ;;  %v5974_v63 = vld [vmem:[#allocation4 + $0x180] sm:$0xff] }
0x2571   : > { %v5903_v61 = vpop.xlane.xlu1 %5902  ;;  %7353 = vmatprep.subr.mxu0 %v5977_v1 }
0x2572   : > { %7597 = vpow2.f32 %v5922_v27  ;;  %v5920_v56 = vmul.f32 1.442695, %v5910_v45  ;;  %v5913_v47 = vsub.f32 %v5879_v12, %v5903_v61  ;;  %7354 = vmatpush3.msra.mxu0 %v5977_v1 }
0x2573   : > { %v5901_v11 = vpop.xlane.xlu0 %5900  ;;  %7355 = vmatprep.subr.mxu0 %v5976_v46 }
0x2574   : > { %7599 = vpow2.f32 %v5920_v56  ;;  %v5926_v26 = vmul.f32 1.442695, %v5913_v47  ;;  %v5912_v20 = vsub.f32 %v5874_v48, %v5901_v11  ;;  %7356 = vmatpush3.msra.mxu0 %v5976_v46 }
0x2575   : > { %v5907_v10 = vpop.xlane.xlu1 %5906  ;;  %7357 = vmatprep.subr.mxu0 %v5975_v24 }
0x2576   : > { %7601 = vpow2.f32 %v5926_v26  ;;  %v5924_v13 = vmul.f32 1.442695, %v5912_v20  ;;  %v5915_v33 = vsub.f32 %v5889_v5, %v5907_v10  ;;  %7358 = vmatpush3.msra.mxu0 %v5975_v24 }
0x2577   : > { %v5905_v50 = vpop.xlane.xlu0 %5904  ;;  %7359 = vmatprep.subr.mxu0 %v5974_v63 }
0x2578   : > { %7603 = vpow2.f32 %v5924_v13  ;;  %v5930_v43 = vmul.f32 1.442695, %v5915_v33  ;;  %v5914_v2 = vsub.f32 %v5884_v30, %v5905_v50  ;;  %7360 = vmatpush3.msra.mxu0 %v5974_v63  ;;  %v6665_v50 = vld [vmem:[%s10358_s4] ss:$0 sm:$0xff] }
0x2579   : > { %7373 = vmatprep.subr.mxu0 %v4074_v4 }
0x257a   : > { %7605 = vpow2.f32 %v5930_v43  ;;  %v5928_v58 = vmul.f32 1.442695, %v5914_v2 }
0x257b   : > { %v10227_v54 = vpop.eup %7593 }
0x257c   : > { %7607 = vpow2.f32 %v5928_v58  ;;  %5934 = vadd.xlane.f32.xlu1 %v10227_v54 }
0x257d   : > { %v7596_v22 = vpop.eup %7595 }
0x257e   : > { %5932 = vadd.xlane.f32.xlu0 %v7596_v22 }
0x257f   : > { %v10230_v51 = vpop.eup %7597 }
0x2580   : > { %5938 = vadd.xlane.f32.xlu1 %v10230_v51 }
0x2581   : > { %v10233_v35 = vpop.eup %7599 }
0x2582   : > { %5936 = vadd.xlane.f32.xlu0 %v10233_v35 }
0x2583   : > { %v10236_v28 = vpop.eup %7601 }
0x2584   : > { %5942 = vadd.xlane.f32.xlu1 %v10236_v28 }
0x2585   : > { %v10239_v52 = vpop.eup %7603 }
0x2586   : > { %5940 = vadd.xlane.f32.xlu0 %v10239_v52 }
0x2587   : > { %v10242_v16 = vpop.eup %7605 }
0x2588   : > { %5946 = vadd.xlane.f32.xlu1 %v10242_v16 }
0x2589   : > { %v10245_v21 = vpop.eup %7607 }
0x258a   : > { %5944 = vadd.xlane.f32.xlu0 %v10245_v21 }
0x2605   : > { %v5935_v12 = vpop.xlane.xlu1 %5934 }
0x2606   : > { %7609 = vrcp.f32 %v5935_v12 }
0x2607   : > { %v5933_v6 = vpop.xlane.xlu0 %5932 }
0x2608   : > { %7611 = vrcp.f32 %v5933_v6 }
0x2609   : > { %v5939_v48 = vpop.xlane.xlu1 %5938 }
0x260a   : > { %7613 = vrcp.f32 %v5939_v48 }
0x260b   : > { %v5937_v62 = vpop.xlane.xlu0 %5936 }
0x260c   : > { %7615 = vrcp.f32 %v5937_v62 }
0x260d   : > { %v5943_v5 = vpop.xlane.xlu1 %5942 }
0x260e   : > { %7617 = vrcp.f32 %v5943_v5 }
0x260f   : > { %v5941_v59 = vpop.xlane.xlu0 %5940 }
0x2610   : > { %7619 = vrcp.f32 %v5941_v59 }
0x2611   : > { %v5947_v30 = vpop.xlane.xlu1 %5946 }
0x2612   : > { %7621 = vrcp.f32 %v5947_v30 }
0x2613   : > { %v7610_v40 = vpop.eup %7609  ;;  %v5945_v44 = vpop.xlane.xlu0 %5944 }
0x2614   : > { %7623 = vrcp.f32 %v5945_v44  ;;  %v5957_v23 = vmul.f32 %v7610_v40, %v10227_v54 }
0x2615   : > { %v7612_v38 = vpop.eup %7611 }
0x2616   : > { %v5956_v7 = vmul.f32 %v7612_v38, %v7596_v22  ;;  %6650 = vst [vmem:[%s7883_s20 + $0xc8] sm:$0xff] %v5957_v23 }
0x2617   : > { %v7614_v14 = vpop.eup %7613 }
0x2618   : > { %6649 = vst [vmem:[%s7883_s20 + $0xc0] sm:$0xff] %v5956_v7  ;;  %7361 = vmatprep.mubr.f32.mxu0 %v5956_v7  ;;  %v5959_v37 = vmul.f32 %v7614_v14, %v10230_v51 }
0x2619   : > { %v7616_v0 = vpop.eup %7615  ;;  %7362 = vmatmul.mubr.f32.vlgmr.msra.gmra.mxu0 %v5957_v23 }
0x261a   : > { %v5958_v3 = vmul.f32 %v7616_v0, %v10233_v35  ;;  %6652 = vst [vmem:[%s7883_s20 + $0xd8] sm:$0xff] %v5959_v37  ;;  %7374 = vmatpush3.msra.mxu0 %v4074_v4 }
0x261b   : > { %v7618_v34 = vpop.eup %7617  ;;  %7375 = vmatprep.subr.mxu0 %v4073_v25 }
0x261c   : > { %6651 = vst [vmem:[%s7883_s20 + $0xd0] sm:$0xff] %v5958_v3  ;;  %7364 = vmatprep.mubr.f32.mxu0 %v5958_v3  ;;  %v5961_v31 = vmul.f32 %v7618_v34, %v10236_v28  ;;  %7376 = vmatpush3.msra.mxu0 %v4073_v25 }
0x261d   : > { %v7620_v8 = vpop.eup %7619  ;;  %7365 = vmatmul.mubr.f32.gmra.mxu0 %v5959_v37 }
0x261e   : > { %v5960_v15 = vmul.f32 %v7620_v8, %v10239_v52  ;;  %6654 = vst [vmem:[%s7883_s20 + $0xe8] sm:$0xff] %v5961_v31 }
0x261f   : > { %v7622_v39 = vpop.eup %7621 }
0x2620   : > { %6653 = vst [vmem:[%s7883_s20 + $0xe0] sm:$0xff] %v5960_v15  ;;  %7367 = vmatprep.mubr.f32.mxu0 %v5960_v15  ;;  %v5963_v55 = vmul.f32 %v7622_v39, %v10242_v16 }
0x2621   : > { %v7624_v27 = vpop.eup %7623  ;;  %7368 = vmatmul.mubr.f32.gmra.mxu0 %v5961_v31 }
0x2622   : > { %v5962_v45 = vmul.f32 %v7624_v27, %v10245_v21  ;;  %6656 = vst [vmem:[%s7883_s20 + $0xf8] sm:$0xff] %v5963_v55 }
0x2624   : > { %6655 = vst [vmem:[%s7883_s20 + $0xf0] sm:$0xff] %v5962_v45  ;;  %7370 = vmatprep.mubr.f32.mxu0 %v5962_v45 }
0x2625   : > { %7371 = vmatmul.mubr.f32.gmra.mxu0 %v5963_v55 }
0x26d9   : > { %v7363_v61 = vpop.f32.mrf.mxu0 }
0x26db   : > { %v6056_v56 = vpop.f32.mrf.mxu0 }
0x26dc   : > { %7377 = vmatprep.mubr.msk.f32.mxu0 %vm4100_vm10, %v6056_v56 }
0x26dd   : > { %v7366_v47 = vpop.f32.mrf.mxu0  ;;  %7378 = vmatmul.mubr.msk.f32.vlgmr.msra.gmra.mxu0 %vm4100_vm10, %v7363_v61 }
0x26df   : > { %v6066_v11 = vpop.f32.mrf.mxu0 }
0x26e0   : > { %7380 = vmatprep.mubr.msk.f32.mxu0 %vm4100_vm10, %v6066_v11 }
0x26e1   : > { %v7369_v26 = vpop.f32.mrf.mxu0  ;;  %7381 = vmatmul.mubr.msk.f32.gmra.mxu0 %vm4100_vm10, %v7366_v47 }
0x26e3   : > { %v6076_v20 = vpop.f32.mrf.mxu0 }
0x26e4   : > { %7383 = vmatprep.mubr.msk.f32.mxu0 %vm4100_vm10, %v6076_v20 }
0x26e5   : > { %v7372_v10 = vpop.f32.mrf.mxu0  ;;  %7384 = vmatmul.mubr.msk.f32.gmra.mxu0 %vm4100_vm10, %v7369_v26 }
0x26e7   : > { %v6086_v13 = vpop.f32.mrf.mxu0 }
0x26e8   : > { %7386 = vmatprep.mubr.msk.f32.mxu0 %vm4100_vm10, %v6086_v13 }
0x26e9   : > { %7387 = vmatmul.mubr.msk.f32.gmra.mxu0 %vm4100_vm10, %v7372_v10 }
0x279d   : > { %v7379_v33 = vpop.f32.mrf.mxu0 }
0x279e   : > { %v6225_v43 = vadd.f32 %v7379_v33, %v10193_v42 }
0x279f   : > { %v6185_v2 = vpop.f32.mrf.mxu0 }
0x27a0   : > { %v6240_v58 = vadd.f32 %v6665_v50, %v6225_v43  ;;  %v6224_v54 = vadd.f32 %v6185_v2, %v10196_v53 }
0x27a1   : > { %v7382_v22 = vpop.f32.mrf.mxu0 }
0x27a2   : > { %6248 = vst.msk [vmem:[%s7842_s12 + $0x8] sm:$0xff] %vm1311_vm2, %v6240_v58  ;;  %v6239_v51 = vadd.f32 %v6665_v50, %v6224_v54  ;;  %v6227_v35 = vadd.f32 %v7382_v22, %v10199_v49 }
0x27a3   : > { %v6195_v28 = vpop.f32.mrf.mxu0 }
0x27a4   : > { %6247 = vst.msk [vmem:[%s7842_s12] sm:$0xff] %vm1311_vm2, %v6239_v51  ;;  %v6242_v52 = vadd.f32 %v6665_v50, %v6227_v35  ;;  %v6226_v32 = vadd.f32 %v6195_v28, %v10202_v19 }
0x27a5   : > { %v7385_v42 = vpop.f32.mrf.mxu0 }
0x27a6   : > { %6250 = vst.msk [vmem:[%s7842_s12 + $0x18] sm:$0xff] %vm1311_vm2, %v6242_v52  ;;  %v6241_v16 = vadd.f32 %v6665_v50, %v6226_v32  ;;  %v6229_v53 = vadd.f32 %v7385_v42, %v10207_v29 }
0x27a7   : > { %v6205_v17 = vpop.f32.mrf.mxu0 }
0x27a8   : > { %6249 = vst.msk [vmem:[%s7842_s12 + $0x10] sm:$0xff] %vm1311_vm2, %v6241_v16  ;;  %v6244_v49 = vadd.f32 %v6665_v50, %v6229_v53  ;;  %v6228_v21 = vadd.f32 %v6205_v17, %v10211_v60 }
0x27a9   : > { %v7388_v9 = vpop.f32.mrf.mxu0 }
0x27aa   : > { %6252 = vst.msk [vmem:[%s7842_s12 + $0x28] sm:$0xff] %vm1311_vm2, %v6244_v49  ;;  %v6243_v36 = vadd.f32 %v6665_v50, %v6228_v21  ;;  %v6231_v19 = vadd.f32 %v7388_v9, %v10215_v57 }
0x27ab   : > { %v6215_v18 = vpop.f32.mrf.mxu0 }
0x27ac   : > { %6251 = vst.msk [vmem:[%s7842_s12 + $0x20] sm:$0xff] %vm1311_vm2, %v6243_v36  ;;  %v6246_v1 = vadd.f32 %v6665_v50, %v6231_v19  ;;  %v6230_v46 = vadd.f32 %v6215_v18, %v10217_v41 }
0x27ae   : > { %6254 = vst.msk [vmem:[%s7842_s12 + $0x38] sm:$0xff] %vm1311_vm2, %v6246_v1  ;;  %v6245_v29 = vadd.f32 %v6665_v50, %v6230_v46 }
0x27b0   : > { %6253 = vst.msk [vmem:[%s7842_s12 + $0x30] sm:$0xff] %vm1311_vm2, %v6245_v29 }
0x27b1   : > { %s6668_s14 = sshll.u32 %s7679_s25, 6  ;;  %s6294_s16 = sshll.u32 %s7883_s20, 4  ;;  %s6295_s16 = int_to_ptr.vmem [resolvable:$true] %s6294_s16 }
0x27b2   : > { %s6281_s13 = sadd.s32 %s6668_s14, %s7819_s18  ;;  %s7702_s29 = smov 1024  }
0x27b3   : > { %s6669_s24 = sshll.u32 %s6281_s13, 7  ;;  %7405 = sst [smem:[#allocation8]] (%p7794_p3), %s7702_s29 }
0x27b4   : > { %s6283_s12 = scalar_lea.hbm %s10360_s6, %s6669_s24  ;;  %s7703_s5 = smov 2048  }
0x27b5   : > { %7406 = sst [smem:[#allocation8 + $0x1]] (%p7794_p3), %s7703_s5  ;;  %s7704_s8 = smov 8  }
0x27b6   : > { %7407 = sst [smem:[#allocation8 + $0x2]] (%p7794_p3), %s7704_s8  ;;  %s7705_s9 = smov 128  }
0x27b7   : > { %7408 = sst [smem:[#allocation8 + $0x3]] (%p7794_p3), %s7705_s9  ;;  %s7706_s25 = smov 131072  }
0x27b8   : > { %7409 = sst [smem:[#allocation8 + $0x4]] (%p7794_p3), %s7705_s9  ;;  %s7707_s18 = smov 0  }
0x27b9   : > { %7410 = sst [smem:[#allocation8 + $0x5]] (%p7794_p3), %s7704_s8 }
0x27ba   : > { %7411 = dma.general (%p7794_p3), %s6295_s16, 4096, %s6283_s12, %s6265_s30, %s7706_s25, [#allocation8], %s7707_s18, 0  }
0x27bb PF: > { %p7417_p1 = scmp.ge.s32.totalorder %s7691_s28, 2  ;;  %s6334_s20 = sand.u32 1, %s7663_s21  }
0x27bc   : > { %s6335_s17 = scalar_lea.sflag [#allocation6], %s6334_s20 }
0x27bd   : > { %p7414_p2 = pnand %p7417_p1, %p7803_p8 }
0x27bf   : > { %p7415_p4 = pneg %p7414_p2 }
0x27c1   : > { %7658 = dma.done.wait (%p7415_p4), %s6335_s17, 4096  }
0x27c2   : > { %7660 = vsyncadd (%p7415_p4), %s6335_s17, 4294963200  ;;  %s20_s28 = sadd.s32 1, %s7691_s28   ;;  %s10381_s10 = sld [smem:[#allocation10_spill]] }
0x27c3   : > { %p17_p5 = scmp.ge.s32.totalorder %s20_s28, 6   ;;  %s10382_s21 = smov %s7667_s22 }
0x27c4   : > { %s10383_s22 = smov %s7671_s23  ;;  %s10384_s23 = smov %s7812_s15 }
0x27c5   : > { %s10385_s24 = smov %s7683_s26  ;;  %s10386_s25 = smov %s7687_s27 }
0x27c6   : > { %s10387_s26 = smov %s10390_s7  ;;  %19 = sbr.rel (!%p17_p5) target bundleno = 8 (0x8), region = 119 }
0x27c8   : > { %s10388_s27 = smov %s10381_s10 }
0x27cb   :  { %6340 = vsyncpa [#allocation6], 1 }
0x27cc   :  { %6342 = vsyncpa [#allocation6 + $0x1], 1 }

</bundles_post_ra>
